<compile_context>
chip_gen: v7x
topology: tpu7x:2x2x1
jax: 0.10.0
libtpu: 0.0.40
codegen_flags: <defaults>
</compile_context>

<pallas_src>
import functools

import jax
import jax.numpy as jnp
from jax import lax
from jax.experimental import pallas as pl
from jax.experimental.pallas import tpu as pltpu


# --------------------------------------------------------------------------------------
# Pallas kernels
# --------------------------------------------------------------------------------------

def _fused_matmul_kernel(*refs, valid_m, has_bias, has_bn, has_res, relu):
    """K-tiled matmul accumulating directly into the resident f32 output block.

    On the last K step the full epilogue runs in-register:
        (+ bias) (-> train-mode BatchNorm over valid rows) (+ residual) (-> ReLU)
    ref order: a, b, [bias], [gamma, beta], [residual], out
    """
    i = 0
    a_ref = refs[i]; i += 1
    b_ref = refs[i]; i += 1
    bias_ref = g_ref = beta_ref = r_ref = None
    if has_bias:
        bias_ref = refs[i]; i += 1
    if has_bn:
        g_ref = refs[i]; beta_ref = refs[i + 1]; i += 2
    if has_res:
        r_ref = refs[i]; i += 1
    o_ref = refs[i]

    k = pl.program_id(1)

    @pl.when(k == 0)
    def _():
        o_ref[...] = jnp.zeros_like(o_ref)

    o_ref[...] += jnp.dot(a_ref[...], b_ref[...], preferred_element_type=jnp.float32)

    @pl.when(k == pl.num_programs(1) - 1)
    def _():
        y = o_ref[...]
        if has_bias:
            y = y + bias_ref[...]
        if has_bn:
            mp = y.shape[0]
            if valid_m == mp:
                mean = jnp.mean(y, axis=0, keepdims=True)
                var = jnp.mean(jnp.square(y - mean), axis=0, keepdims=True)   # biased var
            else:
                # padded rows (zeros) must not contaminate the batch statistics
                mask = (lax.broadcasted_iota(jnp.int32, (mp, 1), 0)
                        < valid_m).astype(jnp.float32)
                inv = 1.0 / float(valid_m)
                mean = jnp.sum(y * mask, axis=0, keepdims=True) * inv
                d = (y - mean) * mask
                var = jnp.sum(d * d, axis=0, keepdims=True) * inv
            y = (y - mean) * (g_ref[...] * lax.rsqrt(var + 1e-5)) + beta_ref[...]
        if has_res:
            y = y + r_ref[...]
        if relu:
            y = jnp.maximum(y, 0.0)
        o_ref[...] = y


def _l2_normalize_kernel(x_ref, o_ref):
    x = x_ref[...]
    nrm = jnp.sqrt(jnp.sum(x * x, axis=1, keepdims=True))
    o_ref[...] = x / jnp.maximum(nrm, 1e-12)    # matches F.normalize(dim=1), eps=1e-12


# --------------------------------------------------------------------------------------
# Pallas wrappers
# --------------------------------------------------------------------------------------

def _round_up(x, m):
    return (x + m - 1) // m * m


def fused_matmul(a, b, bias=None, bn=None, residual=None, relu=False):
    """(M, K) @ (K, N) with a fused (bias / BN / residual / ReLU) epilogue.

    a, b are cast to bf16 for the MXU; accumulation and the epilogue are f32.
    M is kept as a single block (required for exact BN batch stats); N and K are tiled.
    """
    M, K = a.shape
    K2, N = b.shape
    assert K == K2

    Mp = _round_up(M, 16)          # bf16 sublane tile
    tk = 256
    Kp = _round_up(K, tk)
    tn = 512 if N % 512 == 0 else N
    assert N % tn == 0
    n_tiles, k_tiles = N // tn, Kp // tk

    a_p = jnp.pad(a.astype(jnp.float32), ((0, Mp - M), (0, Kp - K))).astype(jnp.bfloat16)
    b_p = jnp.pad(b.astype(jnp.float32), ((0, Kp - K), (0, 0))).astype(jnp.bfloat16)

    args = [a_p, b_p]
    in_specs = [
        pl.BlockSpec((Mp, tk), lambda n, k: (0, k)),
        pl.BlockSpec((tk, tn), lambda n, k: (k, n)),
    ]
    vec_spec = pl.BlockSpec((1, tn), lambda n, k: (0, n))
    if bias is not None:
        args.append(bias.reshape(1, N).astype(jnp.float32))
        in_specs.append(vec_spec)
    if bn is not None:
        gamma, beta = bn
        args += [gamma.reshape(1, N).astype(jnp.float32),
                 beta.reshape(1, N).astype(jnp.float32)]
        in_specs += [vec_spec, vec_spec]
    if residual is not None:
        args.append(jnp.pad(residual.astype(jnp.float32), ((0, Mp - M), (0, 0))))
        in_specs.append(pl.BlockSpec((Mp, tn), lambda n, k: (0, n)))

    kern = functools.partial(
        _fused_matmul_kernel, valid_m=M,
        has_bias=bias is not None, has_bn=bn is not None,
        has_res=residual is not None, relu=relu)

    out = pl.pallas_call(
        kern,
        out_shape=jax.ShapeDtypeStruct((Mp, N), jnp.float32),
        grid_spec=pltpu.PrefetchScalarGridSpec(
            num_scalar_prefetch=0,
            grid=(n_tiles, k_tiles),
            in_specs=in_specs,
            out_specs=pl.BlockSpec((Mp, tn), lambda n, k: (0, n)),
        ),
        compiler_params=pltpu.CompilerParams(
            dimension_semantics=("parallel", "arbitrary")),
    )(*args)
    return out[:M]


def pallas_l2_normalize(x):
    return pl.pallas_call(
        _l2_normalize_kernel, out_shape=jax.ShapeDtypeStruct(x.shape, jnp.float32)
    )(x)


# --------------------------------------------------------------------------------------
# NHWC im2col glue + conv / pool building blocks
# --------------------------------------------------------------------------------------

def _im2col_rows(x, kh, kw, stride, pad, pad_value=0.0):
    """x: (N, H, W, C) NHWC -> rows (N*Ho*Wo, kh*kw*C); feature idx = (i*kw + j)*C + c."""
    N, H, W, C = x.shape
    xp = jnp.pad(x, ((0, 0), (pad, pad), (pad, pad), (0, 0)), constant_values=pad_value)
    Ho = (H + 2 * pad - kh) // stride + 1
    Wo = (W + 2 * pad - kw) // stride + 1
    cols = []
    for i in range(kh):
        for j in range(kw):
            cols.append(lax.slice(
                xp, (0, i, j, 0),
                (N, i + (Ho - 1) * stride + 1, j + (Wo - 1) * stride + 1, C),
                (1, stride, stride, 1)))
    rows = jnp.concatenate(cols, axis=-1).reshape(N * Ho * Wo, kh * kw * C)
    return rows, Ho, Wo


def conv_bn_act(x, w, gamma, beta, stride, pad, relu=True, residual=None):
    """x: NHWC, w: PyTorch OIHW. Conv (no bias) + train-mode BN (+ residual) (+ ReLU), fused."""
    N = x.shape[0]
    O, C, kh, kw = w.shape
    rows, Ho, Wo = _im2col_rows(x, kh, kw, stride, pad)
    wmat = w.transpose(2, 3, 1, 0).reshape(kh * kw * C, O)      # matches row feature order
    res_rows = residual.reshape(N * Ho * Wo, O) if residual is not None else None
    y = fused_matmul(rows, wmat, bn=(gamma, beta), residual=res_rows, relu=relu)
    return y.reshape(N, Ho, Wo, O)


def maxpool_3x3_s2(x):
    """NHWC 3x3/stride-2/pad-1 max pool; -inf padding matches PyTorch MaxPool2d.
    Pairwise max over the 9 strided taps (XLA fuses; no tap-stack materialization)."""
    N, H, W, C = x.shape
    xp = jnp.pad(x, ((0, 0), (1, 1), (1, 1), (0, 0)), constant_values=-jnp.inf)
    Ho = (H + 2 - 3) // 2 + 1
    Wo = (W + 2 - 3) // 2 + 1
    out = None
    for i in range(3):
        for j in range(3):
            tap = lax.slice(xp, (0, i, j, 0),
                            (N, i + (Ho - 1) * 2 + 1, j + (Wo - 1) * 2 + 1, C),
                            (1, 2, 2, 1))
            out = tap if out is None else jnp.maximum(out, tap)
    return out


# --------------------------------------------------------------------------------------
# ResNet18 encoder + SimSiam heads
# --------------------------------------------------------------------------------------

def basic_block(x, p, stride):
    out = conv_bn_act(x, p["conv1_w"], p["bn1_g"], p["bn1_b"], stride, 1, relu=True)
    if "ds_w" in p:
        shortcut = conv_bn_act(x, p["ds_w"], p["ds_g"], p["ds_b"], stride, 0, relu=False)
    else:
        shortcut = x
    # out = relu( bn2(conv2(out)) + shortcut )   -- residual add fused into the epilogue
    out = conv_bn_act(out, p["conv2_w"], p["bn2_g"], p["bn2_b"], 1, 1, relu=True,
                      residual=shortcut)
    return out


_LAYER_STRIDES = {"layer1": (1, 1), "layer2": (2, 1), "layer3": (2, 1), "layer4": (2, 1)}


def resnet18_encoder(x_nchw, P):
    x = x_nchw.transpose(0, 2, 3, 1)                             # NCHW -> NHWC once
    x = conv_bn_act(x, P["conv1_w"], P["bn1_g"], P["bn1_b"], 2, 3, relu=True)
    x = maxpool_3x3_s2(x)
    for layer in ("layer1", "layer2", "layer3", "layer4"):
        for blk, stride in zip(P[layer], _LAYER_STRIDES[layer]):
            x = basic_block(x, blk, stride)
    # adaptive avg pool to 1x1 + flatten (spatial is 1x1 here -> trivial mean, glue)
    return jnp.mean(x, axis=(1, 2))                              # (N, 512)


def mlp_head(z, p):
    # Linear(512,2048)+bias -> BN1d(2048) (train stats) -> ReLU -> Linear(2048,512)+bias
    h = fused_matmul(z, p["w1"].T, bias=p["b1"], bn=(p["bn_g"], p["bn_b"]), relu=True)
    h = fused_matmul(h, p["w2"].T, bias=p["b2"])
    return h


def simsiam_forward(params, x1, x2):
    # Views are processed separately (train-mode BN stats are per forward call in the reference).
    z1 = resnet18_encoder(x1, params["encoder"])
    z2 = resnet18_encoder(x2, params["encoder"])
    h1 = mlp_head(z1, params["projector"])
    h2 = mlp_head(z2, params["projector"])
    p1 = mlp_head(h1, params["predictor"])
    p2 = mlp_head(h2, params["predictor"])
    p1 = pallas_l2_normalize(p1)
    p2 = pallas_l2_normalize(p2)
    # use_deg=False -> no deg_layer branch
    return p1, p2, h1, h2, z1, z2


# --------------------------------------------------------------------------------------
# Deterministic parameter init (synthetic weights; shapes match torchvision ResNet18 + heads)
# --------------------------------------------------------------------------------------

def init_params(key):
    keys = iter(jax.random.split(key, 256))

    def conv_w(o, c, kh, kw):
        std = (2.0 / (c * kh * kw)) ** 0.5
        return jax.random.normal(next(keys), (o, c, kh, kw), jnp.float32) * std

    def linear(o, i):
        std = (1.0 / i) ** 0.5
        w = jax.random.normal(next(keys), (o, i), jnp.float32) * std
        b = jax.random.normal(next(keys), (o,), jnp.float32) * 0.01
        return w, b

    def bn(c):
        return jnp.ones((c,), jnp.float32), jnp.zeros((c,), jnp.float32)

    def block(cin, cout, stride):
        p = {"conv1_w": conv_w(cout, cin, 3, 3)}
        p["bn1_g"], p["bn1_b"] = bn(cout)
        p["conv2_w"] = conv_w(cout, cout, 3, 3)
        p["bn2_g"], p["bn2_b"] = bn(cout)
        if stride != 1 or cin != cout:
            p["ds_w"] = conv_w(cout, cin, 1, 1)
            p["ds_g"], p["ds_b"] = bn(cout)
        return p

    enc = {"conv1_w": conv_w(64, 3, 7, 7)}
    enc["bn1_g"], enc["bn1_b"] = bn(64)
    for name, cin, cout, s in (("layer1", 64, 64, 1), ("layer2", 64, 128, 2),
                               ("layer3", 128, 256, 2), ("layer4", 256, 512, 2)):
        enc[name] = [block(cin, cout, s), block(cout, cout, 1)]

    def head():
        w1, b1 = linear(2048, 512)
        g, b = bn(2048)
        w2, b2 = linear(512, 2048)
        return {"w1": w1, "b1": b1, "bn_g": g, "bn_b": b, "w2": w2, "b2": b2}

    return {"encoder": enc, "projector": head(), "predictor": head()}


# --------------------------------------------------------------------------------------
# Main
# --------------------------------------------------------------------------------------

if __name__ == "__main__":
    key = jax.random.PRNGKey(0)
    k_params, k_x1, k_x2 = jax.random.split(key, 3)

    params = init_params(k_params)
    x1 = jax.random.normal(k_x1, (2, 3, 16, 16), jnp.float32)   # NCHW, like PyTorch
    x2 = jax.random.normal(k_x2, (2, 3, 16, 16), jnp.float32)

    fwd = jax.jit(simsiam_forward)
    p1, p2, h1, h2, z1, z2 = fwd(params, x1, x2)
    jax.block_until_ready((p1, p2, h1, h2, z1, z2))

    assert p1.shape == (2, 512) and p2.shape == (2, 512)
    assert h1.shape == (2, 512) and h2.shape == (2, 512)
    assert z1.shape == (2, 512) and z2.shape == (2, 512)
    assert bool(jnp.all(jnp.isfinite(p1))) and bool(jnp.all(jnp.isfinite(p2)))

    print("KERNEL_OK")
</pallas_src>

<mosaic_0001>
module attributes {stable_mosaic.version = 11 : i64} {
  func.func @_fused_matmul_kernel(%arg0: i32, %arg1: i32, %arg2: memref<128x256xbf16, #tpu.memory_space<vmem>>, %arg3: memref<256x64xbf16, #tpu.memory_space<vmem>>, %arg4: memref<1x64xf32, #tpu.memory_space<vmem>>, %arg5: memref<1x64xf32, #tpu.memory_space<vmem>>, %arg6: memref<128x64xf32, #tpu.memory_space<vmem>>) attributes {dimension_semantics = [#tpu.dimension_semantics<parallel>, #tpu.dimension_semantics<arbitrary>], iteration_bounds = array<i64: 1, 1>, scalar_prefetch = 0 : i64, scratch_operands = 0 : i64, tpu.core_type = #tpu.core_type<tc>, window_params = [{transform_indices = @transform_0, window_bounds = array<i64: 128, 256>}, {transform_indices = @transform_1, window_bounds = array<i64: 256, 64>}, {transform_indices = @transform_2, window_bounds = array<i64: 1, 64>}, {transform_indices = @transform_3, window_bounds = array<i64: 1, 64>}, {transform_indices = @transform_4, window_bounds = array<i64: 128, 64>}]} {
    %c0_i32 = arith.constant 0 : i32
    %0 = arith.cmpi eq, %arg1, %c0_i32 : i32
    %1 = arith.extui %0 : i1 to i32
    %c0_i32_0 = arith.constant 0 : i32
    %2 = arith.cmpi ne, %1, %c0_i32_0 : i32
    scf.if %2 {
      %cst_10 = arith.constant 0.000000e+00 : f32
      %12 = vector.broadcast %cst_10 : f32 to vector<128x64xf32>
      %c0_11 = arith.constant 0 : index
      %c0_12 = arith.constant 0 : index
      %13 = vector.load %arg6[%c0_11, %c0_12] : memref<128x64xf32, #tpu.memory_space<vmem>>, vector<128x64xf32>
      tpu.vector_store %arg6[%c0_11, %c0_12], %12 {strides = array<i32>} : memref<128x64xf32, #tpu.memory_space<vmem>>, vector<128x64xf32>,
    } else {
    }
    %c0 = arith.constant 0 : index
    %c0_1 = arith.constant 0 : index
    %3 = vector.load %arg6[%c0, %c0_1] : memref<128x64xf32, #tpu.memory_space<vmem>>, vector<128x64xf32>
    %c0_2 = arith.constant 0 : index
    %c0_3 = arith.constant 0 : index
    %4 = vector.load %arg2[%c0_2, %c0_3] : memref<128x256xbf16, #tpu.memory_space<vmem>>, vector<128x256xbf16>
    %c0_4 = arith.constant 0 : index
    %c0_5 = arith.constant 0 : index
    %5 = vector.load %arg3[%c0_4, %c0_5] : memref<256x64xbf16, #tpu.memory_space<vmem>>, vector<256x64xbf16>
    %cst = arith.constant dense<0.000000e+00> : vector<128x64xf32>
    %6 = tpu.matmul %4, %5, %cst {dimension_numbers = #tpu.dot_dimension_numbers<[1], [0], [0], [1], [0, 0, 1, 1], [], []>} : vector<128x256xbf16>, vector<256x64xbf16>, vector<128x64xf32> -> vector<128x64xf32>
    %7 = arith.addf %3, %6 : vector<128x64xf32>
    %c0_6 = arith.constant 0 : index
    %c0_7 = arith.constant 0 : index
    %8 = vector.load %arg6[%c0_6, %c0_7] : memref<128x64xf32, #tpu.memory_space<vmem>>, vector<128x64xf32>
    tpu.vector_store %arg6[%c0_6, %c0_7], %7 {strides = array<i32>} : memref<128x64xf32, #tpu.memory_space<vmem>>, vector<128x64xf32>,
    %c0_i32_8 = arith.constant 0 : i32
    %9 = arith.cmpi eq, %arg1, %c0_i32_8 : i32
    %10 = arith.extui %9 : i1 to i32
    %c0_i32_9 = arith.constant 0 : i32
    %11 = arith.cmpi ne, %10, %c0_i32_9 : i32
    scf.if %11 {
      %c0_10 = arith.constant 0 : index
      %c0_11 = arith.constant 0 : index
      %12 = vector.load %arg6[%c0_10, %c0_11] : memref<128x64xf32, #tpu.memory_space<vmem>>, vector<128x64xf32>
      %cst_12 = arith.constant dense<0.000000e+00> : vector<64xf32>
      %13 = vector.multi_reduction <add>, %12, %cst_12 [0] : vector<128x64xf32> to vector<64xf32>
      %14 = vector.shape_cast %13 : vector<64xf32> to vector<1x64xf32>
      %cst_13 = arith.constant 1.280000e+02 : f32
      %15 = vector.broadcast %cst_13 : f32 to vector<1x64xf32>
      %16 = arith.divf %14, %15 : vector<1x64xf32>
      %17 = vector.broadcast %16 : vector<1x64xf32> to vector<128x64xf32>
      %18 = arith.subf %12, %17 : vector<128x64xf32>
      %19 = arith.mulf %18, %18 : vector<128x64xf32>
      %cst_14 = arith.constant dense<0.000000e+00> : vector<64xf32>
      %20 = vector.multi_reduction <add>, %19, %cst_14 [0] : vector<128x64xf32> to vector<64xf32>
      %21 = vector.shape_cast %20 : vector<64xf32> to vector<1x64xf32>
      %cst_15 = arith.constant 1.280000e+02 : f32
      %22 = vector.broadcast %cst_15 : f32 to vector<1x64xf32>
      %23 = arith.divf %21, %22 : vector<1x64xf32>
      %24 = vector.broadcast %16 : vector<1x64xf32> to vector<128x64xf32>
      %25 = arith.subf %12, %24 : vector<128x64xf32>
      %c0_16 = arith.constant 0 : index
      %c0_17 = arith.constant 0 : index
      %26 = vector.load %arg4[%c0_16, %c0_17] : memref<1x64xf32, #tpu.memory_space<vmem>>, vector<1x64xf32>
      %cst_18 = arith.constant 9.99999974E-6 : f32
      %27 = vector.broadcast %cst_18 : f32 to vector<1x64xf32>
      %28 = arith.addf %23, %27 : vector<1x64xf32>
      %29 = math.rsqrt %28 : vector<1x64xf32>
      %30 = arith.mulf %26, %29 : vector<1x64xf32>
      %31 = vector.broadcast %30 : vector<1x64xf32> to vector<128x64xf32>
      %32 = arith.mulf %25, %31 : vector<128x64xf32>
      %c0_19 = arith.constant 0 : index
      %c0_20 = arith.constant 0 : index
      %33 = vector.load %arg5[%c0_19, %c0_20] : memref<1x64xf32, #tpu.memory_space<vmem>>, vector<1x64xf32>
      %34 = vector.broadcast %33 : vector<1x64xf32> to vector<128x64xf32>
      %35 = arith.addf %32, %34 : vector<128x64xf32>
      %cst_21 = arith.constant 0.000000e+00 : f32
      %36 = vector.broadcast %cst_21 : f32 to vector<128x64xf32>
      %37 = arith.maximumf %35, %36 : vector<128x64xf32>
      %c0_22 = arith.constant 0 : index
      %c0_23 = arith.constant 0 : index
      %38 = vector.load %arg6[%c0_22, %c0_23] : memref<128x64xf32, #tpu.memory_space<vmem>>, vector<128x64xf32>
      tpu.vector_store %arg6[%c0_22, %c0_23], %37 {strides = array<i32>} : memref<128x64xf32, #tpu.memory_space<vmem>>, vector<128x64xf32>,
    } else {
    }
    return
  }
  func.func @transform_0(%arg0: i32, %arg1: i32) -> (i32, i32) {
    %c0_i32 = arith.constant 0 : i32
    %c0_i32_0 = arith.constant 0 : i32
    return %c0_i32, %arg1 : i32, i32
  }
  func.func @transform_1(%arg0: i32, %arg1: i32) -> (i32, i32) {
    %c0_i32 = arith.constant 0 : i32
    return %arg1, %arg0 : i32, i32
  }
  func.func @transform_2(%arg0: i32, %arg1: i32) -> (i32, i32) {
    %c0_i32 = arith.constant 0 : i32
    %c0_i32_0 = arith.constant 0 : i32
    return %c0_i32, %arg0 : i32, i32
  }
  func.func @transform_3(%arg0: i32, %arg1: i32) -> (i32, i32) {
    %c0_i32 = arith.constant 0 : i32
    %c0_i32_0 = arith.constant 0 : i32
    return %c0_i32, %arg0 : i32, i32
  }
  func.func @transform_4(%arg0: i32, %arg1: i32) -> (i32, i32) {
    %c0_i32 = arith.constant 0 : i32
    %c0_i32_0 = arith.constant 0 : i32
    return %c0_i32, %arg0 : i32, i32
  }
}

module attributes {stable_mosaic.version = 11 : i64} {
  func.func @_fused_matmul_kernel(%arg0: i32, %arg1: i32, %arg2: memref<32x256xbf16, #tpu.memory_space<vmem>>, %arg3: memref<256x64xbf16, #tpu.memory_space<vmem>>, %arg4: memref<1x64xf32, #tpu.memory_space<vmem>>, %arg5: memref<1x64xf32, #tpu.memory_space<vmem>>, %arg6: memref<32x64xf32, #tpu.memory_space<vmem>>) attributes {dimension_semantics = [#tpu.dimension_semantics<parallel>, #tpu.dimension_semantics<arbitrary>], iteration_bounds = array<i64: 1, 3>, scalar_prefetch = 0 : i64, scratch_operands = 0 : i64, tpu.core_type = #tpu.core_type<tc>, window_params = [{transform_indices = @transform_0, window_bounds = array<i64: 32, 256>}, {transform_indices = @transform_1, window_bounds = array<i64: 256, 64>}, {transform_indices = @transform_2, window_bounds = array<i64: 1, 64>}, {transform_indices = @transform_3, window_bounds = array<i64: 1, 64>}, {transform_indices = @transform_4, window_bounds = array<i64: 32, 64>}]} {
    %c0_i32 = arith.constant 0 : i32
    %0 = arith.cmpi eq, %arg1, %c0_i32 : i32
    %1 = arith.extui %0 : i1 to i32
    %c0_i32_0 = arith.constant 0 : i32
    %2 = arith.cmpi ne, %1, %c0_i32_0 : i32
    scf.if %2 {
      %cst_9 = arith.constant 0.000000e+00 : f32
      %12 = vector.broadcast %cst_9 : f32 to vector<32x64xf32>
      %c0_10 = arith.constant 0 : index
      %c0_11 = arith.constant 0 : index
      %13 = vector.load %arg6[%c0_10, %c0_11] : memref<32x64xf32, #tpu.memory_space<vmem>>, vector<32x64xf32>
      tpu.vector_store %arg6[%c0_10, %c0_11], %12 {strides = array<i32>} : memref<32x64xf32, #tpu.memory_space<vmem>>, vector<32x64xf32>,
    } else {
    }
    %c0 = arith.constant 0 : index
    %c0_1 = arith.constant 0 : index
    %3 = vector.load %arg6[%c0, %c0_1] : memref<32x64xf32, #tpu.memory_space<vmem>>, vector<32x64xf32>
    %c0_2 = arith.constant 0 : index
    %c0_3 = arith.constant 0 : index
    %4 = vector.load %arg2[%c0_2, %c0_3] : memref<32x256xbf16, #tpu.memory_space<vmem>>, vector<32x256xbf16>
    %c0_4 = arith.constant 0 : index
    %c0_5 = arith.constant 0 : index
    %5 = vector.load %arg3[%c0_4, %c0_5] : memref<256x64xbf16, #tpu.memory_space<vmem>>, vector<256x64xbf16>
    %cst = arith.constant dense<0.000000e+00> : vector<32x64xf32>
    %6 = tpu.matmul %4, %5, %cst {dimension_numbers = #tpu.dot_dimension_numbers<[1], [0], [0], [1], [0, 0, 1, 1], [], []>} : vector<32x256xbf16>, vector<256x64xbf16>, vector<32x64xf32> -> vector<32x64xf32>
    %7 = arith.addf %3, %6 : vector<32x64xf32>
    %c0_6 = arith.constant 0 : index
    %c0_7 = arith.constant 0 : index
    %8 = vector.load %arg6[%c0_6, %c0_7] : memref<32x64xf32, #tpu.memory_space<vmem>>, vector<32x64xf32>
    tpu.vector_store %arg6[%c0_6, %c0_7], %7 {strides = array<i32>} : memref<32x64xf32, #tpu.memory_space<vmem>>, vector<32x64xf32>,
    %c2_i32 = arith.constant 2 : i32
    %9 = arith.cmpi eq, %arg1, %c2_i32 : i32
    %10 = arith.extui %9 : i1 to i32
    %c0_i32_8 = arith.constant 0 : i32
    %11 = arith.cmpi ne, %10, %c0_i32_8 : i32
    scf.if %11 {
      %c0_9 = arith.constant 0 : index
      %c0_10 = arith.constant 0 : index
      %12 = vector.load %arg6[%c0_9, %c0_10] : memref<32x64xf32, #tpu.memory_space<vmem>>, vector<32x64xf32>
      %cst_11 = arith.constant dense<0.000000e+00> : vector<64xf32>
      %13 = vector.multi_reduction <add>, %12, %cst_11 [0] : vector<32x64xf32> to vector<64xf32>
      %14 = vector.shape_cast %13 : vector<64xf32> to vector<1x64xf32>
      %cst_12 = arith.constant 3.200000e+01 : f32
      %15 = vector.broadcast %cst_12 : f32 to vector<1x64xf32>
      %16 = arith.divf %14, %15 : vector<1x64xf32>
      %17 = vector.broadcast %16 : vector<1x64xf32> to vector<32x64xf32>
      %18 = arith.subf %12, %17 : vector<32x64xf32>
      %19 = arith.mulf %18, %18 : vector<32x64xf32>
      %cst_13 = arith.constant dense<0.000000e+00> : vector<64xf32>
      %20 = vector.multi_reduction <add>, %19, %cst_13 [0] : vector<32x64xf32> to vector<64xf32>
      %21 = vector.shape_cast %20 : vector<64xf32> to vector<1x64xf32>
      %cst_14 = arith.constant 3.200000e+01 : f32
      %22 = vector.broadcast %cst_14 : f32 to vector<1x64xf32>
      %23 = arith.divf %21, %22 : vector<1x64xf32>
      %24 = vector.broadcast %16 : vector<1x64xf32> to vector<32x64xf32>
      %25 = arith.subf %12, %24 : vector<32x64xf32>
      %c0_15 = arith.constant 0 : index
      %c0_16 = arith.constant 0 : index
      %26 = vector.load %arg4[%c0_15, %c0_16] : memref<1x64xf32, #tpu.memory_space<vmem>>, vector<1x64xf32>
      %cst_17 = arith.constant 9.99999974E-6 : f32
      %27 = vector.broadcast %cst_17 : f32 to vector<1x64xf32>
      %28 = arith.addf %23, %27 : vector<1x64xf32>
      %29 = math.rsqrt %28 : vector<1x64xf32>
      %30 = arith.mulf %26, %29 : vector<1x64xf32>
      %31 = vector.broadcast %30 : vector<1x64xf32> to vector<32x64xf32>
      %32 = arith.mulf %25, %31 : vector<32x64xf32>
      %c0_18 = arith.constant 0 : index
      %c0_19 = arith.constant 0 : index
      %33 = vector.load %arg5[%c0_18, %c0_19] : memref<1x64xf32, #tpu.memory_space<vmem>>, vector<1x64xf32>
      %34 = vector.broadcast %33 : vector<1x64xf32> to vector<32x64xf32>
      %35 = arith.addf %32, %34 : vector<32x64xf32>
      %cst_20 = arith.constant 0.000000e+00 : f32
      %36 = vector.broadcast %cst_20 : f32 to vector<32x64xf32>
      %37 = arith.maximumf %35, %36 : vector<32x64xf32>
      %c0_21 = arith.constant 0 : index
      %c0_22 = arith.constant 0 : index
      %38 = vector.load %arg6[%c0_21, %c0_22] : memref<32x64xf32, #tpu.memory_space<vmem>>, vector<32x64xf32>
      tpu.vector_store %arg6[%c0_21, %c0_22], %37 {strides = array<i32>} : memref<32x64xf32, #tpu.memory_space<vmem>>, vector<32x64xf32>,
    } else {
    }
    return
  }
  func.func @transform_0(%arg0: i32, %arg1: i32) -> (i32, i32) {
    %c0_i32 = arith.constant 0 : i32
    %c0_i32_0 = arith.constant 0 : i32
    return %c0_i32, %arg1 : i32, i32
  }
  func.func @transform_1(%arg0: i32, %arg1: i32) -> (i32, i32) {
    %c0_i32 = arith.constant 0 : i32
    return %arg1, %arg0 : i32, i32
  }
  func.func @transform_2(%arg0: i32, %arg1: i32) -> (i32, i32) {
    %c0_i32 = arith.constant 0 : i32
    %c0_i32_0 = arith.constant 0 : i32
    return %c0_i32, %arg0 : i32, i32
  }
  func.func @transform_3(%arg0: i32, %arg1: i32) -> (i32, i32) {
    %c0_i32 = arith.constant 0 : i32
    %c0_i32_0 = arith.constant 0 : i32
    return %c0_i32, %arg0 : i32, i32
  }
  func.func @transform_4(%arg0: i32, %arg1: i32) -> (i32, i32) {
    %c0_i32 = arith.constant 0 : i32
    %c0_i32_0 = arith.constant 0 : i32
    return %c0_i32, %arg0 : i32, i32
  }
}

module attributes {stable_mosaic.version = 11 : i64} {
  func.func @_fused_matmul_kernel(%arg0: i32, %arg1: i32, %arg2: memref<32x256xbf16, #tpu.memory_space<vmem>>, %arg3: memref<256x64xbf16, #tpu.memory_space<vmem>>, %arg4: memref<1x64xf32, #tpu.memory_space<vmem>>, %arg5: memref<1x64xf32, #tpu.memory_space<vmem>>, %arg6: memref<32x64xf32, #tpu.memory_space<vmem>>, %arg7: memref<32x64xf32, #tpu.memory_space<vmem>>) attributes {dimension_semantics = [#tpu.dimension_semantics<parallel>, #tpu.dimension_semantics<arbitrary>], iteration_bounds = array<i64: 1, 3>, scalar_prefetch = 0 : i64, scratch_operands = 0 : i64, tpu.core_type = #tpu.core_type<tc>, window_params = [{transform_indices = @transform_0, window_bounds = array<i64: 32, 256>}, {transform_indices = @transform_1, window_bounds = array<i64: 256, 64>}, {transform_indices = @transform_2, window_bounds = array<i64: 1, 64>}, {transform_indices = @transform_3, window_bounds = array<i64: 1, 64>}, {transform_indices = @transform_4, window_bounds = array<i64: 32, 64>}, {transform_indices = @transform_5, window_bounds = array<i64: 32, 64>}]} {
    %c0_i32 = arith.constant 0 : i32
    %0 = arith.cmpi eq, %arg1, %c0_i32 : i32
    %1 = arith.extui %0 : i1 to i32
    %c0_i32_0 = arith.constant 0 : i32
    %2 = arith.cmpi ne, %1, %c0_i32_0 : i32
    scf.if %2 {
      %cst_9 = arith.constant 0.000000e+00 : f32
      %12 = vector.broadcast %cst_9 : f32 to vector<32x64xf32>
      %c0_10 = arith.constant 0 : index
      %c0_11 = arith.constant 0 : index
      %13 = vector.load %arg7[%c0_10, %c0_11] : memref<32x64xf32, #tpu.memory_space<vmem>>, vector<32x64xf32>
      tpu.vector_store %arg7[%c0_10, %c0_11], %12 {strides = array<i32>} : memref<32x64xf32, #tpu.memory_space<vmem>>, vector<32x64xf32>,
    } else {
    }
    %c0 = arith.constant 0 : index
    %c0_1 = arith.constant 0 : index
    %3 = vector.load %arg7[%c0, %c0_1] : memref<32x64xf32, #tpu.memory_space<vmem>>, vector<32x64xf32>
    %c0_2 = arith.constant 0 : index
    %c0_3 = arith.constant 0 : index
    %4 = vector.load %arg2[%c0_2, %c0_3] : memref<32x256xbf16, #tpu.memory_space<vmem>>, vector<32x256xbf16>
    %c0_4 = arith.constant 0 : index
    %c0_5 = arith.constant 0 : index
    %5 = vector.load %arg3[%c0_4, %c0_5] : memref<256x64xbf16, #tpu.memory_space<vmem>>, vector<256x64xbf16>
    %cst = arith.constant dense<0.000000e+00> : vector<32x64xf32>
    %6 = tpu.matmul %4, %5, %cst {dimension_numbers = #tpu.dot_dimension_numbers<[1], [0], [0], [1], [0, 0, 1, 1], [], []>} : vector<32x256xbf16>, vector<256x64xbf16>, vector<32x64xf32> -> vector<32x64xf32>
    %7 = arith.addf %3, %6 : vector<32x64xf32>
    %c0_6 = arith.constant 0 : index
    %c0_7 = arith.constant 0 : index
    %8 = vector.load %arg7[%c0_6, %c0_7] : memref<32x64xf32, #tpu.memory_space<vmem>>, vector<32x64xf32>
    tpu.vector_store %arg7[%c0_6, %c0_7], %7 {strides = array<i32>} : memref<32x64xf32, #tpu.memory_space<vmem>>, vector<32x64xf32>,
    %c2_i32 = arith.constant 2 : i32
    %9 = arith.cmpi eq, %arg1, %c2_i32 : i32
    %10 = arith.extui %9 : i1 to i32
    %c0_i32_8 = arith.constant 0 : i32
    %11 = arith.cmpi ne, %10, %c0_i32_8 : i32
    scf.if %11 {
      %c0_9 = arith.constant 0 : index
      %c0_10 = arith.constant 0 : index
      %12 = vector.load %arg7[%c0_9, %c0_10] : memref<32x64xf32, #tpu.memory_space<vmem>>, vector<32x64xf32>
      %cst_11 = arith.constant dense<0.000000e+00> : vector<64xf32>
      %13 = vector.multi_reduction <add>, %12, %cst_11 [0] : vector<32x64xf32> to vector<64xf32>
      %14 = vector.shape_cast %13 : vector<64xf32> to vector<1x64xf32>
      %cst_12 = arith.constant 3.200000e+01 : f32
      %15 = vector.broadcast %cst_12 : f32 to vector<1x64xf32>
      %16 = arith.divf %14, %15 : vector<1x64xf32>
      %17 = vector.broadcast %16 : vector<1x64xf32> to vector<32x64xf32>
      %18 = arith.subf %12, %17 : vector<32x64xf32>
      %19 = arith.mulf %18, %18 : vector<32x64xf32>
      %cst_13 = arith.constant dense<0.000000e+00> : vector<64xf32>
      %20 = vector.multi_reduction <add>, %19, %cst_13 [0] : vector<32x64xf32> to vector<64xf32>
      %21 = vector.shape_cast %20 : vector<64xf32> to vector<1x64xf32>
      %cst_14 = arith.constant 3.200000e+01 : f32
      %22 = vector.broadcast %cst_14 : f32 to vector<1x64xf32>
      %23 = arith.divf %21, %22 : vector<1x64xf32>
      %24 = vector.broadcast %16 : vector<1x64xf32> to vector<32x64xf32>
      %25 = arith.subf %12, %24 : vector<32x64xf32>
      %c0_15 = arith.constant 0 : index
      %c0_16 = arith.constant 0 : index
      %26 = vector.load %arg4[%c0_15, %c0_16] : memref<1x64xf32, #tpu.memory_space<vmem>>, vector<1x64xf32>
      %cst_17 = arith.constant 9.99999974E-6 : f32
      %27 = vector.broadcast %cst_17 : f32 to vector<1x64xf32>
      %28 = arith.addf %23, %27 : vector<1x64xf32>
      %29 = math.rsqrt %28 : vector<1x64xf32>
      %30 = arith.mulf %26, %29 : vector<1x64xf32>
      %31 = vector.broadcast %30 : vector<1x64xf32> to vector<32x64xf32>
      %32 = arith.mulf %25, %31 : vector<32x64xf32>
      %c0_18 = arith.constant 0 : index
      %c0_19 = arith.constant 0 : index
      %33 = vector.load %arg5[%c0_18, %c0_19] : memref<1x64xf32, #tpu.memory_space<vmem>>, vector<1x64xf32>
      %34 = vector.broadcast %33 : vector<1x64xf32> to vector<32x64xf32>
      %35 = arith.addf %32, %34 : vector<32x64xf32>
      %c0_20 = arith.constant 0 : index
      %c0_21 = arith.constant 0 : index
      %36 = vector.load %arg6[%c0_20, %c0_21] : memref<32x64xf32, #tpu.memory_space<vmem>>, vector<32x64xf32>
      %37 = arith.addf %35, %36 : vector<32x64xf32>
      %cst_22 = arith.constant 0.000000e+00 : f32
      %38 = vector.broadcast %cst_22 : f32 to vector<32x64xf32>
      %39 = arith.maximumf %37, %38 : vector<32x64xf32>
      %c0_23 = arith.constant 0 : index
      %c0_24 = arith.constant 0 : index
      %40 = vector.load %arg7[%c0_23, %c0_24] : memref<32x64xf32, #tpu.memory_space<vmem>>, vector<32x64xf32>
      tpu.vector_store %arg7[%c0_23, %c0_24], %39 {strides = array<i32>} : memref<32x64xf32, #tpu.memory_space<vmem>>, vector<32x64xf32>,
    } else {
    }
    return
  }
  func.func @transform_0(%arg0: i32, %arg1: i32) -> (i32, i32) {
    %c0_i32 = arith.constant 0 : i32
    %c0_i32_0 = arith.constant 0 : i32
    return %c0_i32, %arg1 : i32, i32
  }
  func.func @transform_1(%arg0: i32, %arg1: i32) -> (i32, i32) {
    %c0_i32 = arith.constant 0 : i32
    return %arg1, %arg0 : i32, i32
  }
  func.func @transform_2(%arg0: i32, %arg1: i32) -> (i32, i32) {
    %c0_i32 = arith.constant 0 : i32
    %c0_i32_0 = arith.constant 0 : i32
    return %c0_i32, %arg0 : i32, i32
  }
  func.func @transform_3(%arg0: i32, %arg1: i32) -> (i32, i32) {
    %c0_i32 = arith.constant 0 : i32
    %c0_i32_0 = arith.constant 0 : i32
    return %c0_i32, %arg0 : i32, i32
  }
  func.func @transform_4(%arg0: i32, %arg1: i32) -> (i32, i32) {
    %c0_i32 = arith.constant 0 : i32
    %c0_i32_0 = arith.constant 0 : i32
    return %c0_i32, %arg0 : i32, i32
  }
  func.func @transform_5(%arg0: i32, %arg1: i32) -> (i32, i32) {
    %c0_i32 = arith.constant 0 : i32
    %c0_i32_0 = arith.constant 0 : i32
    return %c0_i32, %arg0 : i32, i32
  }
}

module attributes {stable_mosaic.version = 11 : i64} {
  func.func @_fused_matmul_kernel(%arg0: i32, %arg1: i32, %arg2: memref<16x256xbf16, #tpu.memory_space<vmem>>, %arg3: memref<256x128xbf16, #tpu.memory_space<vmem>>, %arg4: memref<1x128xf32, #tpu.memory_space<vmem>>, %arg5: memref<1x128xf32, #tpu.memory_space<vmem>>, %arg6: memref<16x128xf32, #tpu.memory_space<vmem>>) attributes {dimension_semantics = [#tpu.dimension_semantics<parallel>, #tpu.dimension_semantics<arbitrary>], iteration_bounds = array<i64: 1, 3>, scalar_prefetch = 0 : i64, scratch_operands = 0 : i64, tpu.core_type = #tpu.core_type<tc>, window_params = [{transform_indices = @transform_0, window_bounds = array<i64: 16, 256>}, {transform_indices = @transform_1, window_bounds = array<i64: 256, 128>}, {transform_indices = @transform_2, window_bounds = array<i64: 1, 128>}, {transform_indices = @transform_3, window_bounds = array<i64: 1, 128>}, {transform_indices = @transform_4, window_bounds = array<i64: 16, 128>}]} {
    %c0_i32 = arith.constant 0 : i32
    %0 = arith.cmpi eq, %arg1, %c0_i32 : i32
    %1 = arith.extui %0 : i1 to i32
    %c0_i32_0 = arith.constant 0 : i32
    %2 = arith.cmpi ne, %1, %c0_i32_0 : i32
    scf.if %2 {
      %cst_9 = arith.constant 0.000000e+00 : f32
      %12 = vector.broadcast %cst_9 : f32 to vector<16x128xf32>
      %c0_10 = arith.constant 0 : index
      %c0_11 = arith.constant 0 : index
      %13 = vector.load %arg6[%c0_10, %c0_11] : memref<16x128xf32, #tpu.memory_space<vmem>>, vector<16x128xf32>
      tpu.vector_store %arg6[%c0_10, %c0_11], %12 {strides = array<i32>} : memref<16x128xf32, #tpu.memory_space<vmem>>, vector<16x128xf32>,
    } else {
    }
    %c0 = arith.constant 0 : index
    %c0_1 = arith.constant 0 : index
    %3 = vector.load %arg6[%c0, %c0_1] : memref<16x128xf32, #tpu.memory_space<vmem>>, vector<16x128xf32>
    %c0_2 = arith.constant 0 : index
    %c0_3 = arith.constant 0 : index
    %4 = vector.load %arg2[%c0_2, %c0_3] : memref<16x256xbf16, #tpu.memory_space<vmem>>, vector<16x256xbf16>
    %c0_4 = arith.constant 0 : index
    %c0_5 = arith.constant 0 : index
    %5 = vector.load %arg3[%c0_4, %c0_5] : memref<256x128xbf16, #tpu.memory_space<vmem>>, vector<256x128xbf16>
    %cst = arith.constant dense<0.000000e+00> : vector<16x128xf32>
    %6 = tpu.matmul %4, %5, %cst {dimension_numbers = #tpu.dot_dimension_numbers<[1], [0], [0], [1], [0, 0, 1, 1], [], []>} : vector<16x256xbf16>, vector<256x128xbf16>, vector<16x128xf32> -> vector<16x128xf32>
    %7 = arith.addf %3, %6 : vector<16x128xf32>
    %c0_6 = arith.constant 0 : index
    %c0_7 = arith.constant 0 : index
    %8 = vector.load %arg6[%c0_6, %c0_7] : memref<16x128xf32, #tpu.memory_space<vmem>>, vector<16x128xf32>
    tpu.vector_store %arg6[%c0_6, %c0_7], %7 {strides = array<i32>} : memref<16x128xf32, #tpu.memory_space<vmem>>, vector<16x128xf32>,
    %c2_i32 = arith.constant 2 : i32
    %9 = arith.cmpi eq, %arg1, %c2_i32 : i32
    %10 = arith.extui %9 : i1 to i32
    %c0_i32_8 = arith.constant 0 : i32
    %11 = arith.cmpi ne, %10, %c0_i32_8 : i32
    scf.if %11 {
      %c0_9 = arith.constant 0 : index
      %c0_10 = arith.constant 0 : index
      %12 = vector.load %arg6[%c0_9, %c0_10] : memref<16x128xf32, #tpu.memory_space<vmem>>, vector<16x128xf32>
      %13 = tpu.iota {dimensions = array<i32: 0>} : vector<16x1xi32>
      %c8_i32 = arith.constant 8 : i32
      %14 = vector.broadcast %c8_i32 : i32 to vector<16x1xi32>
      %15 = arith.cmpi slt, %13, %14 : vector<16x1xi32>
      %16 = arith.extui %15 : vector<16x1xi1> to vector<16x1xi32>
      %17 = arith.sitofp %16 : vector<16x1xi32> to vector<16x1xf32>
      %18 = vector.broadcast %17 : vector<16x1xf32> to vector<16x128xf32>
      %19 = arith.mulf %12, %18 : vector<16x128xf32>
      %cst_11 = arith.constant dense<0.000000e+00> : vector<128xf32>
      %20 = vector.multi_reduction <add>, %19, %cst_11 [0] : vector<16x128xf32> to vector<128xf32>
      %21 = vector.shape_cast %20 : vector<128xf32> to vector<1x128xf32>
      %cst_12 = arith.constant 1.250000e-01 : f32
      %22 = vector.broadcast %cst_12 : f32 to vector<1x128xf32>
      %23 = arith.mulf %21, %22 : vector<1x128xf32>
      %24 = vector.broadcast %23 : vector<1x128xf32> to vector<16x128xf32>
      %25 = arith.subf %12, %24 : vector<16x128xf32>
      %26 = vector.broadcast %17 : vector<16x1xf32> to vector<16x128xf32>
      %27 = arith.mulf %25, %26 : vector<16x128xf32>
      %28 = arith.mulf %27, %27 : vector<16x128xf32>
      %cst_13 = arith.constant dense<0.000000e+00> : vector<128xf32>
      %29 = vector.multi_reduction <add>, %28, %cst_13 [0] : vector<16x128xf32> to vector<128xf32>
      %30 = vector.shape_cast %29 : vector<128xf32> to vector<1x128xf32>
      %cst_14 = arith.constant 1.250000e-01 : f32
      %31 = vector.broadcast %cst_14 : f32 to vector<1x128xf32>
      %32 = arith.mulf %30, %31 : vector<1x128xf32>
      %33 = vector.broadcast %23 : vector<1x128xf32> to vector<16x128xf32>
      %34 = arith.subf %12, %33 : vector<16x128xf32>
      %c0_15 = arith.constant 0 : index
      %c0_16 = arith.constant 0 : index
      %35 = vector.load %arg4[%c0_15, %c0_16] : memref<1x128xf32, #tpu.memory_space<vmem>>, vector<1x128xf32>
      %cst_17 = arith.constant 9.99999974E-6 : f32
      %36 = vector.broadcast %cst_17 : f32 to vector<1x128xf32>
      %37 = arith.addf %32, %36 : vector<1x128xf32>
      %38 = math.rsqrt %37 : vector<1x128xf32>
      %39 = arith.mulf %35, %38 : vector<1x128xf32>
      %40 = vector.broadcast %39 : vector<1x128xf32> to vector<16x128xf32>
      %41 = arith.mulf %34, %40 : vector<16x128xf32>
      %c0_18 = arith.constant 0 : index
      %c0_19 = arith.constant 0 : index
      %42 = vector.load %arg5[%c0_18, %c0_19] : memref<1x128xf32, #tpu.memory_space<vmem>>, vector<1x128xf32>
      %43 = vector.broadcast %42 : vector<1x128xf32> to vector<16x128xf32>
      %44 = arith.addf %41, %43 : vector<16x128xf32>
      %cst_20 = arith.constant 0.000000e+00 : f32
      %45 = vector.broadcast %cst_20 : f32 to vector<16x128xf32>
      %46 = arith.maximumf %44, %45 : vector<16x128xf32>
      %c0_21 = arith.constant 0 : index
      %c0_22 = arith.constant 0 : index
      %47 = vector.load %arg6[%c0_21, %c0_22] : memref<16x128xf32, #tpu.memory_space<vmem>>, vector<16x128xf32>
      tpu.vector_store %arg6[%c0_21, %c0_22], %46 {strides = array<i32>} : memref<16x128xf32, #tpu.memory_space<vmem>>, vector<16x128xf32>,
    } else {
    }
    return
  }
  func.func @transform_0(%arg0: i32, %arg1: i32) -> (i32, i32) {
    %c0_i32 = arith.constant 0 : i32
    %c0_i32_0 = arith.constant 0 : i32
    return %c0_i32, %arg1 : i32, i32
  }
  func.func @transform_1(%arg0: i32, %arg1: i32) -> (i32, i32) {
    %c0_i32 = arith.constant 0 : i32
    return %arg1, %arg0 : i32, i32
  }
  func.func @transform_2(%arg0: i32, %arg1: i32) -> (i32, i32) {
    %c0_i32 = arith.constant 0 : i32
    %c0_i32_0 = arith.constant 0 : i32
    return %c0_i32, %arg0 : i32, i32
  }
  func.func @transform_3(%arg0: i32, %arg1: i32) -> (i32, i32) {
    %c0_i32 = arith.constant 0 : i32
    %c0_i32_0 = arith.constant 0 : i32
    return %c0_i32, %arg0 : i32, i32
  }
  func.func @transform_4(%arg0: i32, %arg1: i32) -> (i32, i32) {
    %c0_i32 = arith.constant 0 : i32
    %c0_i32_0 = arith.constant 0 : i32
    return %c0_i32, %arg0 : i32, i32
  }
}

module attributes {stable_mosaic.version = 11 : i64} {
  func.func @_fused_matmul_kernel(%arg0: i32, %arg1: i32, %arg2: memref<16x256xbf16, #tpu.memory_space<vmem>>, %arg3: memref<256x128xbf16, #tpu.memory_space<vmem>>, %arg4: memref<1x128xf32, #tpu.memory_space<vmem>>, %arg5: memref<1x128xf32, #tpu.memory_space<vmem>>, %arg6: memref<16x128xf32, #tpu.memory_space<vmem>>) attributes {dimension_semantics = [#tpu.dimension_semantics<parallel>, #tpu.dimension_semantics<arbitrary>], iteration_bounds = array<i64: 1, 1>, scalar_prefetch = 0 : i64, scratch_operands = 0 : i64, tpu.core_type = #tpu.core_type<tc>, window_params = [{transform_indices = @transform_0, window_bounds = array<i64: 16, 256>}, {transform_indices = @transform_1, window_bounds = array<i64: 256, 128>}, {transform_indices = @transform_2, window_bounds = array<i64: 1, 128>}, {transform_indices = @transform_3, window_bounds = array<i64: 1, 128>}, {transform_indices = @transform_4, window_bounds = array<i64: 16, 128>}]} {
    %c0_i32 = arith.constant 0 : i32
    %0 = arith.cmpi eq, %arg1, %c0_i32 : i32
    %1 = arith.extui %0 : i1 to i32
    %c0_i32_0 = arith.constant 0 : i32
    %2 = arith.cmpi ne, %1, %c0_i32_0 : i32
    scf.if %2 {
      %cst_10 = arith.constant 0.000000e+00 : f32
      %12 = vector.broadcast %cst_10 : f32 to vector<16x128xf32>
      %c0_11 = arith.constant 0 : index
      %c0_12 = arith.constant 0 : index
      %13 = vector.load %arg6[%c0_11, %c0_12] : memref<16x128xf32, #tpu.memory_space<vmem>>, vector<16x128xf32>
      tpu.vector_store %arg6[%c0_11, %c0_12], %12 {strides = array<i32>} : memref<16x128xf32, #tpu.memory_space<vmem>>, vector<16x128xf32>,
    } else {
    }
    %c0 = arith.constant 0 : index
    %c0_1 = arith.constant 0 : index
    %3 = vector.load %arg6[%c0, %c0_1] : memref<16x128xf32, #tpu.memory_space<vmem>>, vector<16x128xf32>
    %c0_2 = arith.constant 0 : index
    %c0_3 = arith.constant 0 : index
    %4 = vector.load %arg2[%c0_2, %c0_3] : memref<16x256xbf16, #tpu.memory_space<vmem>>, vector<16x256xbf16>
    %c0_4 = arith.constant 0 : index
    %c0_5 = arith.constant 0 : index
    %5 = vector.load %arg3[%c0_4, %c0_5] : memref<256x128xbf16, #tpu.memory_space<vmem>>, vector<256x128xbf16>
    %cst = arith.constant dense<0.000000e+00> : vector<16x128xf32>
    %6 = tpu.matmul %4, %5, %cst {dimension_numbers = #tpu.dot_dimension_numbers<[1], [0], [0], [1], [0, 0, 1, 1], [], []>} : vector<16x256xbf16>, vector<256x128xbf16>, vector<16x128xf32> -> vector<16x128xf32>
    %7 = arith.addf %3, %6 : vector<16x128xf32>
    %c0_6 = arith.constant 0 : index
    %c0_7 = arith.constant 0 : index
    %8 = vector.load %arg6[%c0_6, %c0_7] : memref<16x128xf32, #tpu.memory_space<vmem>>, vector<16x128xf32>
    tpu.vector_store %arg6[%c0_6, %c0_7], %7 {strides = array<i32>} : memref<16x128xf32, #tpu.memory_space<vmem>>, vector<16x128xf32>,
    %c0_i32_8 = arith.constant 0 : i32
    %9 = arith.cmpi eq, %arg1, %c0_i32_8 : i32
    %10 = arith.extui %9 : i1 to i32
    %c0_i32_9 = arith.constant 0 : i32
    %11 = arith.cmpi ne, %10, %c0_i32_9 : i32
    scf.if %11 {
      %c0_10 = arith.constant 0 : index
      %c0_11 = arith.constant 0 : index
      %12 = vector.load %arg6[%c0_10, %c0_11] : memref<16x128xf32, #tpu.memory_space<vmem>>, vector<16x128xf32>
      %13 = tpu.iota {dimensions = array<i32: 0>} : vector<16x1xi32>
      %c8_i32 = arith.constant 8 : i32
      %14 = vector.broadcast %c8_i32 : i32 to vector<16x1xi32>
      %15 = arith.cmpi slt, %13, %14 : vector<16x1xi32>
      %16 = arith.extui %15 : vector<16x1xi1> to vector<16x1xi32>
      %17 = arith.sitofp %16 : vector<16x1xi32> to vector<16x1xf32>
      %18 = vector.broadcast %17 : vector<16x1xf32> to vector<16x128xf32>
      %19 = arith.mulf %12, %18 : vector<16x128xf32>
      %cst_12 = arith.constant dense<0.000000e+00> : vector<128xf32>
      %20 = vector.multi_reduction <add>, %19, %cst_12 [0] : vector<16x128xf32> to vector<128xf32>
      %21 = vector.shape_cast %20 : vector<128xf32> to vector<1x128xf32>
      %cst_13 = arith.constant 1.250000e-01 : f32
      %22 = vector.broadcast %cst_13 : f32 to vector<1x128xf32>
      %23 = arith.mulf %21, %22 : vector<1x128xf32>
      %24 = vector.broadcast %23 : vector<1x128xf32> to vector<16x128xf32>
      %25 = arith.subf %12, %24 : vector<16x128xf32>
      %26 = vector.broadcast %17 : vector<16x1xf32> to vector<16x128xf32>
      %27 = arith.mulf %25, %26 : vector<16x128xf32>
      %28 = arith.mulf %27, %27 : vector<16x128xf32>
      %cst_14 = arith.constant dense<0.000000e+00> : vector<128xf32>
      %29 = vector.multi_reduction <add>, %28, %cst_14 [0] : vector<16x128xf32> to vector<128xf32>
      %30 = vector.shape_cast %29 : vector<128xf32> to vector<1x128xf32>
      %cst_15 = arith.constant 1.250000e-01 : f32
      %31 = vector.broadcast %cst_15 : f32 to vector<1x128xf32>
      %32 = arith.mulf %30, %31 : vector<1x128xf32>
      %33 = vector.broadcast %23 : vector<1x128xf32> to vector<16x128xf32>
      %34 = arith.subf %12, %33 : vector<16x128xf32>
      %c0_16 = arith.constant 0 : index
      %c0_17 = arith.constant 0 : index
      %35 = vector.load %arg4[%c0_16, %c0_17] : memref<1x128xf32, #tpu.memory_space<vmem>>, vector<1x128xf32>
      %cst_18 = arith.constant 9.99999974E-6 : f32
      %36 = vector.broadcast %cst_18 : f32 to vector<1x128xf32>
      %37 = arith.addf %32, %36 : vector<1x128xf32>
      %38 = math.rsqrt %37 : vector<1x128xf32>
      %39 = arith.mulf %35, %38 : vector<1x128xf32>
      %40 = vector.broadcast %39 : vector<1x128xf32> to vector<16x128xf32>
      %41 = arith.mulf %34, %40 : vector<16x128xf32>
      %c0_19 = arith.constant 0 : index
      %c0_20 = arith.constant 0 : index
      %42 = vector.load %arg5[%c0_19, %c0_20] : memref<1x128xf32, #tpu.memory_space<vmem>>, vector<1x128xf32>
      %43 = vector.broadcast %42 : vector<1x128xf32> to vector<16x128xf32>
      %44 = arith.addf %41, %43 : vector<16x128xf32>
      %c0_21 = arith.constant 0 : index
      %c0_22 = arith.constant 0 : index
      %45 = vector.load %arg6[%c0_21, %c0_22] : memref<16x128xf32, #tpu.memory_space<vmem>>, vector<16x128xf32>
      tpu.vector_store %arg6[%c0_21, %c0_22], %44 {strides = array<i32>} : memref<16x128xf32, #tpu.memory_space<vmem>>, vector<16x128xf32>,
    } else {
    }
    return
  }
  func.func @transform_0(%arg0: i32, %arg1: i32) -> (i32, i32) {
    %c0_i32 = arith.constant 0 : i32
    %c0_i32_0 = arith.constant 0 : i32
    return %c0_i32, %arg1 : i32, i32
  }
  func.func @transform_1(%arg0: i32, %arg1: i32) -> (i32, i32) {
    %c0_i32 = arith.constant 0 : i32
    return %arg1, %arg0 : i32, i32
  }
  func.func @transform_2(%arg0: i32, %arg1: i32) -> (i32, i32) {
    %c0_i32 = arith.constant 0 : i32
    %c0_i32_0 = arith.constant 0 : i32
    return %c0_i32, %arg0 : i32, i32
  }
  func.func @transform_3(%arg0: i32, %arg1: i32) -> (i32, i32) {
    %c0_i32 = arith.constant 0 : i32
    %c0_i32_0 = arith.constant 0 : i32
    return %c0_i32, %arg0 : i32, i32
  }
  func.func @transform_4(%arg0: i32, %arg1: i32) -> (i32, i32) {
    %c0_i32 = arith.constant 0 : i32
    %c0_i32_0 = arith.constant 0 : i32
    return %c0_i32, %arg0 : i32, i32
  }
}

module attributes {stable_mosaic.version = 11 : i64} {
  func.func @_fused_matmul_kernel(%arg0: i32, %arg1: i32, %arg2: memref<16x256xbf16, #tpu.memory_space<vmem>>, %arg3: memref<256x128xbf16, #tpu.memory_space<vmem>>, %arg4: memref<1x128xf32, #tpu.memory_space<vmem>>, %arg5: memref<1x128xf32, #tpu.memory_space<vmem>>, %arg6: memref<16x128xf32, #tpu.memory_space<vmem>>) attributes {dimension_semantics = [#tpu.dimension_semantics<parallel>, #tpu.dimension_semantics<arbitrary>], iteration_bounds = array<i64: 1, 5>, scalar_prefetch = 0 : i64, scratch_operands = 0 : i64, tpu.core_type = #tpu.core_type<tc>, window_params = [{transform_indices = @transform_0, window_bounds = array<i64: 16, 256>}, {transform_indices = @transform_1, window_bounds = array<i64: 256, 128>}, {transform_indices = @transform_2, window_bounds = array<i64: 1, 128>}, {transform_indices = @transform_3, window_bounds = array<i64: 1, 128>}, {transform_indices = @transform_4, window_bounds = array<i64: 16, 128>}]} {
    %c0_i32 = arith.constant 0 : i32
    %0 = arith.cmpi eq, %arg1, %c0_i32 : i32
    %1 = arith.extui %0 : i1 to i32
    %c0_i32_0 = arith.constant 0 : i32
    %2 = arith.cmpi ne, %1, %c0_i32_0 : i32
    scf.if %2 {
      %cst_9 = arith.constant 0.000000e+00 : f32
      %12 = vector.broadcast %cst_9 : f32 to vector<16x128xf32>
      %c0_10 = arith.constant 0 : index
      %c0_11 = arith.constant 0 : index
      %13 = vector.load %arg6[%c0_10, %c0_11] : memref<16x128xf32, #tpu.memory_space<vmem>>, vector<16x128xf32>
      tpu.vector_store %arg6[%c0_10, %c0_11], %12 {strides = array<i32>} : memref<16x128xf32, #tpu.memory_space<vmem>>, vector<16x128xf32>,
    } else {
    }
    %c0 = arith.constant 0 : index
    %c0_1 = arith.constant 0 : index
    %3 = vector.load %arg6[%c0, %c0_1] : memref<16x128xf32, #tpu.memory_space<vmem>>, vector<16x128xf32>
    %c0_2 = arith.constant 0 : index
    %c0_3 = arith.constant 0 : index
    %4 = vector.load %arg2[%c0_2, %c0_3] : memref<16x256xbf16, #tpu.memory_space<vmem>>, vector<16x256xbf16>
    %c0_4 = arith.constant 0 : index
    %c0_5 = arith.constant 0 : index
    %5 = vector.load %arg3[%c0_4, %c0_5] : memref<256x128xbf16, #tpu.memory_space<vmem>>, vector<256x128xbf16>
    %cst = arith.constant dense<0.000000e+00> : vector<16x128xf32>
    %6 = tpu.matmul %4, %5, %cst {dimension_numbers = #tpu.dot_dimension_numbers<[1], [0], [0], [1], [0, 0, 1, 1], [], []>} : vector<16x256xbf16>, vector<256x128xbf16>, vector<16x128xf32> -> vector<16x128xf32>
    %7 = arith.addf %3, %6 : vector<16x128xf32>
    %c0_6 = arith.constant 0 : index
    %c0_7 = arith.constant 0 : index
    %8 = vector.load %arg6[%c0_6, %c0_7] : memref<16x128xf32, #tpu.memory_space<vmem>>, vector<16x128xf32>
    tpu.vector_store %arg6[%c0_6, %c0_7], %7 {strides = array<i32>} : memref<16x128xf32, #tpu.memory_space<vmem>>, vector<16x128xf32>,
    %c4_i32 = arith.constant 4 : i32
    %9 = arith.cmpi eq, %arg1, %c4_i32 : i32
    %10 = arith.extui %9 : i1 to i32
    %c0_i32_8 = arith.constant 0 : i32
    %11 = arith.cmpi ne, %10, %c0_i32_8 : i32
    scf.if %11 {
      %c0_9 = arith.constant 0 : index
      %c0_10 = arith.constant 0 : index
      %12 = vector.load %arg6[%c0_9, %c0_10] : memref<16x128xf32, #tpu.memory_space<vmem>>, vector<16x128xf32>
      %13 = tpu.iota {dimensions = array<i32: 0>} : vector<16x1xi32>
      %c8_i32 = arith.constant 8 : i32
      %14 = vector.broadcast %c8_i32 : i32 to vector<16x1xi32>
      %15 = arith.cmpi slt, %13, %14 : vector<16x1xi32>
      %16 = arith.extui %15 : vector<16x1xi1> to vector<16x1xi32>
      %17 = arith.sitofp %16 : vector<16x1xi32> to vector<16x1xf32>
      %18 = vector.broadcast %17 : vector<16x1xf32> to vector<16x128xf32>
      %19 = arith.mulf %12, %18 : vector<16x128xf32>
      %cst_11 = arith.constant dense<0.000000e+00> : vector<128xf32>
      %20 = vector.multi_reduction <add>, %19, %cst_11 [0] : vector<16x128xf32> to vector<128xf32>
      %21 = vector.shape_cast %20 : vector<128xf32> to vector<1x128xf32>
      %cst_12 = arith.constant 1.250000e-01 : f32
      %22 = vector.broadcast %cst_12 : f32 to vector<1x128xf32>
      %23 = arith.mulf %21, %22 : vector<1x128xf32>
      %24 = vector.broadcast %23 : vector<1x128xf32> to vector<16x128xf32>
      %25 = arith.subf %12, %24 : vector<16x128xf32>
      %26 = vector.broadcast %17 : vector<16x1xf32> to vector<16x128xf32>
      %27 = arith.mulf %25, %26 : vector<16x128xf32>
      %28 = arith.mulf %27, %27 : vector<16x128xf32>
      %cst_13 = arith.constant dense<0.000000e+00> : vector<128xf32>
      %29 = vector.multi_reduction <add>, %28, %cst_13 [0] : vector<16x128xf32> to vector<128xf32>
      %30 = vector.shape_cast %29 : vector<128xf32> to vector<1x128xf32>
      %cst_14 = arith.constant 1.250000e-01 : f32
      %31 = vector.broadcast %cst_14 : f32 to vector<1x128xf32>
      %32 = arith.mulf %30, %31 : vector<1x128xf32>
      %33 = vector.broadcast %23 : vector<1x128xf32> to vector<16x128xf32>
      %34 = arith.subf %12, %33 : vector<16x128xf32>
      %c0_15 = arith.constant 0 : index
      %c0_16 = arith.constant 0 : index
      %35 = vector.load %arg4[%c0_15, %c0_16] : memref<1x128xf32, #tpu.memory_space<vmem>>, vector<1x128xf32>
      %cst_17 = arith.constant 9.99999974E-6 : f32
      %36 = vector.broadcast %cst_17 : f32 to vector<1x128xf32>
      %37 = arith.addf %32, %36 : vector<1x128xf32>
      %38 = math.rsqrt %37 : vector<1x128xf32>
      %39 = arith.mulf %35, %38 : vector<1x128xf32>
      %40 = vector.broadcast %39 : vector<1x128xf32> to vector<16x128xf32>
      %41 = arith.mulf %34, %40 : vector<16x128xf32>
      %c0_18 = arith.constant 0 : index
      %c0_19 = arith.constant 0 : index
      %42 = vector.load %arg5[%c0_18, %c0_19] : memref<1x128xf32, #tpu.memory_space<vmem>>, vector<1x128xf32>
      %43 = vector.broadcast %42 : vector<1x128xf32> to vector<16x128xf32>
      %44 = arith.addf %41, %43 : vector<16x128xf32>
      %cst_20 = arith.constant 0.000000e+00 : f32
      %45 = vector.broadcast %cst_20 : f32 to vector<16x128xf32>
      %46 = arith.maximumf %44, %45 : vector<16x128xf32>
      %c0_21 = arith.constant 0 : index
      %c0_22 = arith.constant 0 : index
      %47 = vector.load %arg6[%c0_21, %c0_22] : memref<16x128xf32, #tpu.memory_space<vmem>>, vector<16x128xf32>
      tpu.vector_store %arg6[%c0_21, %c0_22], %46 {strides = array<i32>} : memref<16x128xf32, #tpu.memory_space<vmem>>, vector<16x128xf32>,
    } else {
    }
    return
  }
  func.func @transform_0(%arg0: i32, %arg1: i32) -> (i32, i32) {
    %c0_i32 = arith.constant 0 : i32
    %c0_i32_0 = arith.constant 0 : i32
    return %c0_i32, %arg1 : i32, i32
  }
  func.func @transform_1(%arg0: i32, %arg1: i32) -> (i32, i32) {
    %c0_i32 = arith.constant 0 : i32
    return %arg1, %arg0 : i32, i32
  }
  func.func @transform_2(%arg0: i32, %arg1: i32) -> (i32, i32) {
    %c0_i32 = arith.constant 0 : i32
    %c0_i32_0 = arith.constant 0 : i32
    return %c0_i32, %arg0 : i32, i32
  }
  func.func @transform_3(%arg0: i32, %arg1: i32) -> (i32, i32) {
    %c0_i32 = arith.constant 0 : i32
    %c0_i32_0 = arith.constant 0 : i32
    return %c0_i32, %arg0 : i32, i32
  }
  func.func @transform_4(%arg0: i32, %arg1: i32) -> (i32, i32) {
    %c0_i32 = arith.constant 0 : i32
    %c0_i32_0 = arith.constant 0 : i32
    return %c0_i32, %arg0 : i32, i32
  }
}

module attributes {stable_mosaic.version = 11 : i64} {
  func.func @_fused_matmul_kernel(%arg0: i32, %arg1: i32, %arg2: memref<16x256xbf16, #tpu.memory_space<vmem>>, %arg3: memref<256x128xbf16, #tpu.memory_space<vmem>>, %arg4: memref<1x128xf32, #tpu.memory_space<vmem>>, %arg5: memref<1x128xf32, #tpu.memory_space<vmem>>, %arg6: memref<16x128xf32, #tpu.memory_space<vmem>>, %arg7: memref<16x128xf32, #tpu.memory_space<vmem>>) attributes {dimension_semantics = [#tpu.dimension_semantics<parallel>, #tpu.dimension_semantics<arbitrary>], iteration_bounds = array<i64: 1, 5>, scalar_prefetch = 0 : i64, scratch_operands = 0 : i64, tpu.core_type = #tpu.core_type<tc>, window_params = [{transform_indices = @transform_0, window_bounds = array<i64: 16, 256>}, {transform_indices = @transform_1, window_bounds = array<i64: 256, 128>}, {transform_indices = @transform_2, window_bounds = array<i64: 1, 128>}, {transform_indices = @transform_3, window_bounds = array<i64: 1, 128>}, {transform_indices = @transform_4, window_bounds = array<i64: 16, 128>}, {transform_indices = @transform_5, window_bounds = array<i64: 16, 128>}]} {
    %c0_i32 = arith.constant 0 : i32
    %0 = arith.cmpi eq, %arg1, %c0_i32 : i32
    %1 = arith.extui %0 : i1 to i32
    %c0_i32_0 = arith.constant 0 : i32
    %2 = arith.cmpi ne, %1, %c0_i32_0 : i32
    scf.if %2 {
      %cst_9 = arith.constant 0.000000e+00 : f32
      %12 = vector.broadcast %cst_9 : f32 to vector<16x128xf32>
      %c0_10 = arith.constant 0 : index
      %c0_11 = arith.constant 0 : index
      %13 = vector.load %arg7[%c0_10, %c0_11] : memref<16x128xf32, #tpu.memory_space<vmem>>, vector<16x128xf32>
      tpu.vector_store %arg7[%c0_10, %c0_11], %12 {strides = array<i32>} : memref<16x128xf32, #tpu.memory_space<vmem>>, vector<16x128xf32>,
    } else {
    }
    %c0 = arith.constant 0 : index
    %c0_1 = arith.constant 0 : index
    %3 = vector.load %arg7[%c0, %c0_1] : memref<16x128xf32, #tpu.memory_space<vmem>>, vector<16x128xf32>
    %c0_2 = arith.constant 0 : index
    %c0_3 = arith.constant 0 : index
    %4 = vector.load %arg2[%c0_2, %c0_3] : memref<16x256xbf16, #tpu.memory_space<vmem>>, vector<16x256xbf16>
    %c0_4 = arith.constant 0 : index
    %c0_5 = arith.constant 0 : index
    %5 = vector.load %arg3[%c0_4, %c0_5] : memref<256x128xbf16, #tpu.memory_space<vmem>>, vector<256x128xbf16>
    %cst = arith.constant dense<0.000000e+00> : vector<16x128xf32>
    %6 = tpu.matmul %4, %5, %cst {dimension_numbers = #tpu.dot_dimension_numbers<[1], [0], [0], [1], [0, 0, 1, 1], [], []>} : vector<16x256xbf16>, vector<256x128xbf16>, vector<16x128xf32> -> vector<16x128xf32>
    %7 = arith.addf %3, %6 : vector<16x128xf32>
    %c0_6 = arith.constant 0 : index
    %c0_7 = arith.constant 0 : index
    %8 = vector.load %arg7[%c0_6, %c0_7] : memref<16x128xf32, #tpu.memory_space<vmem>>, vector<16x128xf32>
    tpu.vector_store %arg7[%c0_6, %c0_7], %7 {strides = array<i32>} : memref<16x128xf32, #tpu.memory_space<vmem>>, vector<16x128xf32>,
    %c4_i32 = arith.constant 4 : i32
    %9 = arith.cmpi eq, %arg1, %c4_i32 : i32
    %10 = arith.extui %9 : i1 to i32
    %c0_i32_8 = arith.constant 0 : i32
    %11 = arith.cmpi ne, %10, %c0_i32_8 : i32
    scf.if %11 {
      %c0_9 = arith.constant 0 : index
      %c0_10 = arith.constant 0 : index
      %12 = vector.load %arg7[%c0_9, %c0_10] : memref<16x128xf32, #tpu.memory_space<vmem>>, vector<16x128xf32>
      %13 = tpu.iota {dimensions = array<i32: 0>} : vector<16x1xi32>
      %c8_i32 = arith.constant 8 : i32
      %14 = vector.broadcast %c8_i32 : i32 to vector<16x1xi32>
      %15 = arith.cmpi slt, %13, %14 : vector<16x1xi32>
      %16 = arith.extui %15 : vector<16x1xi1> to vector<16x1xi32>
      %17 = arith.sitofp %16 : vector<16x1xi32> to vector<16x1xf32>
      %18 = vector.broadcast %17 : vector<16x1xf32> to vector<16x128xf32>
      %19 = arith.mulf %12, %18 : vector<16x128xf32>
      %cst_11 = arith.constant dense<0.000000e+00> : vector<128xf32>
      %20 = vector.multi_reduction <add>, %19, %cst_11 [0] : vector<16x128xf32> to vector<128xf32>
      %21 = vector.shape_cast %20 : vector<128xf32> to vector<1x128xf32>
      %cst_12 = arith.constant 1.250000e-01 : f32
      %22 = vector.broadcast %cst_12 : f32 to vector<1x128xf32>
      %23 = arith.mulf %21, %22 : vector<1x128xf32>
      %24 = vector.broadcast %23 : vector<1x128xf32> to vector<16x128xf32>
      %25 = arith.subf %12, %24 : vector<16x128xf32>
      %26 = vector.broadcast %17 : vector<16x1xf32> to vector<16x128xf32>
      %27 = arith.mulf %25, %26 : vector<16x128xf32>
      %28 = arith.mulf %27, %27 : vector<16x128xf32>
      %cst_13 = arith.constant dense<0.000000e+00> : vector<128xf32>
      %29 = vector.multi_reduction <add>, %28, %cst_13 [0] : vector<16x128xf32> to vector<128xf32>
      %30 = vector.shape_cast %29 : vector<128xf32> to vector<1x128xf32>
      %cst_14 = arith.constant 1.250000e-01 : f32
      %31 = vector.broadcast %cst_14 : f32 to vector<1x128xf32>
      %32 = arith.mulf %30, %31 : vector<1x128xf32>
      %33 = vector.broadcast %23 : vector<1x128xf32> to vector<16x128xf32>
      %34 = arith.subf %12, %33 : vector<16x128xf32>
      %c0_15 = arith.constant 0 : index
      %c0_16 = arith.constant 0 : index
      %35 = vector.load %arg4[%c0_15, %c0_16] : memref<1x128xf32, #tpu.memory_space<vmem>>, vector<1x128xf32>
      %cst_17 = arith.constant 9.99999974E-6 : f32
      %36 = vector.broadcast %cst_17 : f32 to vector<1x128xf32>
      %37 = arith.addf %32, %36 : vector<1x128xf32>
      %38 = math.rsqrt %37 : vector<1x128xf32>
      %39 = arith.mulf %35, %38 : vector<1x128xf32>
      %40 = vector.broadcast %39 : vector<1x128xf32> to vector<16x128xf32>
      %41 = arith.mulf %34, %40 : vector<16x128xf32>
      %c0_18 = arith.constant 0 : index
      %c0_19 = arith.constant 0 : index
      %42 = vector.load %arg5[%c0_18, %c0_19] : memref<1x128xf32, #tpu.memory_space<vmem>>, vector<1x128xf32>
      %43 = vector.broadcast %42 : vector<1x128xf32> to vector<16x128xf32>
      %44 = arith.addf %41, %43 : vector<16x128xf32>
      %c0_20 = arith.constant 0 : index
      %c0_21 = arith.constant 0 : index
      %45 = vector.load %arg6[%c0_20, %c0_21] : memref<16x128xf32, #tpu.memory_space<vmem>>, vector<16x128xf32>
      %46 = arith.addf %44, %45 : vector<16x128xf32>
      %cst_22 = arith.constant 0.000000e+00 : f32
      %47 = vector.broadcast %cst_22 : f32 to vector<16x128xf32>
      %48 = arith.maximumf %46, %47 : vector<16x128xf32>
      %c0_23 = arith.constant 0 : index
      %c0_24 = arith.constant 0 : index
      %49 = vector.load %arg7[%c0_23, %c0_24] : memref<16x128xf32, #tpu.memory_space<vmem>>, vector<16x128xf32>
      tpu.vector_store %arg7[%c0_23, %c0_24], %48 {strides = array<i32>} : memref<16x128xf32, #tpu.memory_space<vmem>>, vector<16x128xf32>,
    } else {
    }
    return
  }
  func.func @transform_0(%arg0: i32, %arg1: i32) -> (i32, i32) {
    %c0_i32 = arith.constant 0 : i32
    %c0_i32_0 = arith.constant 0 : i32
    return %c0_i32, %arg1 : i32, i32
  }
  func.func @transform_1(%arg0: i32, %arg1: i32) -> (i32, i32) {
    %c0_i32 = arith.constant 0 : i32
    return %arg1, %arg0 : i32, i32
  }
  func.func @transform_2(%arg0: i32, %arg1: i32) -> (i32, i32) {
    %c0_i32 = arith.constant 0 : i32
    %c0_i32_0 = arith.constant 0 : i32
    return %c0_i32, %arg0 : i32, i32
  }
  func.func @transform_3(%arg0: i32, %arg1: i32) -> (i32, i32) {
    %c0_i32 = arith.constant 0 : i32
    %c0_i32_0 = arith.constant 0 : i32
    return %c0_i32, %arg0 : i32, i32
  }
  func.func @transform_4(%arg0: i32, %arg1: i32) -> (i32, i32) {
    %c0_i32 = arith.constant 0 : i32
    %c0_i32_0 = arith.constant 0 : i32
    return %c0_i32, %arg0 : i32, i32
  }
  func.func @transform_5(%arg0: i32, %arg1: i32) -> (i32, i32) {
    %c0_i32 = arith.constant 0 : i32
    %c0_i32_0 = arith.constant 0 : i32
    return %c0_i32, %arg0 : i32, i32
  }
}

module attributes {stable_mosaic.version = 11 : i64} {
  func.func @_fused_matmul_kernel(%arg0: i32, %arg1: i32, %arg2: memref<16x256xbf16, #tpu.memory_space<vmem>>, %arg3: memref<256x256xbf16, #tpu.memory_space<vmem>>, %arg4: memref<1x256xf32, #tpu.memory_space<vmem>>, %arg5: memref<1x256xf32, #tpu.memory_space<vmem>>, %arg6: memref<16x256xf32, #tpu.memory_space<vmem>>) attributes {dimension_semantics = [#tpu.dimension_semantics<parallel>, #tpu.dimension_semantics<arbitrary>], iteration_bounds = array<i64: 1, 5>, scalar_prefetch = 0 : i64, scratch_operands = 0 : i64, tpu.core_type = #tpu.core_type<tc>, window_params = [{transform_indices = @transform_0, window_bounds = array<i64: 16, 256>}, {transform_indices = @transform_1, window_bounds = array<i64: 256, 256>}, {transform_indices = @transform_2, window_bounds = array<i64: 1, 256>}, {transform_indices = @transform_3, window_bounds = array<i64: 1, 256>}, {transform_indices = @transform_4, window_bounds = array<i64: 16, 256>}]} {
    %c0_i32 = arith.constant 0 : i32
    %0 = arith.cmpi eq, %arg1, %c0_i32 : i32
    %1 = arith.extui %0 : i1 to i32
    %c0_i32_0 = arith.constant 0 : i32
    %2 = arith.cmpi ne, %1, %c0_i32_0 : i32
    scf.if %2 {
      %cst_9 = arith.constant 0.000000e+00 : f32
      %12 = vector.broadcast %cst_9 : f32 to vector<16x256xf32>
      %c0_10 = arith.constant 0 : index
      %c0_11 = arith.constant 0 : index
      %13 = vector.load %arg6[%c0_10, %c0_11] : memref<16x256xf32, #tpu.memory_space<vmem>>, vector<16x256xf32>
      tpu.vector_store %arg6[%c0_10, %c0_11], %12 {strides = array<i32>} : memref<16x256xf32, #tpu.memory_space<vmem>>, vector<16x256xf32>,
    } else {
    }
    %c0 = arith.constant 0 : index
    %c0_1 = arith.constant 0 : index
    %3 = vector.load %arg6[%c0, %c0_1] : memref<16x256xf32, #tpu.memory_space<vmem>>, vector<16x256xf32>
    %c0_2 = arith.constant 0 : index
    %c0_3 = arith.constant 0 : index
    %4 = vector.load %arg2[%c0_2, %c0_3] : memref<16x256xbf16, #tpu.memory_space<vmem>>, vector<16x256xbf16>
    %c0_4 = arith.constant 0 : index
    %c0_5 = arith.constant 0 : index
    %5 = vector.load %arg3[%c0_4, %c0_5] : memref<256x256xbf16, #tpu.memory_space<vmem>>, vector<256x256xbf16>
    %cst = arith.constant dense<0.000000e+00> : vector<16x256xf32>
    %6 = tpu.matmul %4, %5, %cst {dimension_numbers = #tpu.dot_dimension_numbers<[1], [0], [0], [1], [0, 0, 1, 1], [], []>} : vector<16x256xbf16>, vector<256x256xbf16>, vector<16x256xf32> -> vector<16x256xf32>
    %7 = arith.addf %3, %6 : vector<16x256xf32>
    %c0_6 = arith.constant 0 : index
    %c0_7 = arith.constant 0 : index
    %8 = vector.load %arg6[%c0_6, %c0_7] : memref<16x256xf32, #tpu.memory_space<vmem>>, vector<16x256xf32>
    tpu.vector_store %arg6[%c0_6, %c0_7], %7 {strides = array<i32>} : memref<16x256xf32, #tpu.memory_space<vmem>>, vector<16x256xf32>,
    %c4_i32 = arith.constant 4 : i32
    %9 = arith.cmpi eq, %arg1, %c4_i32 : i32
    %10 = arith.extui %9 : i1 to i32
    %c0_i32_8 = arith.constant 0 : i32
    %11 = arith.cmpi ne, %10, %c0_i32_8 : i32
    scf.if %11 {
      %c0_9 = arith.constant 0 : index
      %c0_10 = arith.constant 0 : index
      %12 = vector.load %arg6[%c0_9, %c0_10] : memref<16x256xf32, #tpu.memory_space<vmem>>, vector<16x256xf32>
      %13 = tpu.iota {dimensions = array<i32: 0>} : vector<16x1xi32>
      %c2_i32 = arith.constant 2 : i32
      %14 = vector.broadcast %c2_i32 : i32 to vector<16x1xi32>
      %15 = arith.cmpi slt, %13, %14 : vector<16x1xi32>
      %16 = arith.extui %15 : vector<16x1xi1> to vector<16x1xi32>
      %17 = arith.sitofp %16 : vector<16x1xi32> to vector<16x1xf32>
      %18 = vector.broadcast %17 : vector<16x1xf32> to vector<16x256xf32>
      %19 = arith.mulf %12, %18 : vector<16x256xf32>
      %cst_11 = arith.constant dense<0.000000e+00> : vector<256xf32>
      %20 = vector.multi_reduction <add>, %19, %cst_11 [0] : vector<16x256xf32> to vector<256xf32>
      %21 = vector.shape_cast %20 : vector<256xf32> to vector<1x256xf32>
      %cst_12 = arith.constant 5.000000e-01 : f32
      %22 = vector.broadcast %cst_12 : f32 to vector<1x256xf32>
      %23 = arith.mulf %21, %22 : vector<1x256xf32>
      %24 = vector.broadcast %23 : vector<1x256xf32> to vector<16x256xf32>
      %25 = arith.subf %12, %24 : vector<16x256xf32>
      %26 = vector.broadcast %17 : vector<16x1xf32> to vector<16x256xf32>
      %27 = arith.mulf %25, %26 : vector<16x256xf32>
      %28 = arith.mulf %27, %27 : vector<16x256xf32>
      %cst_13 = arith.constant dense<0.000000e+00> : vector<256xf32>
      %29 = vector.multi_reduction <add>, %28, %cst_13 [0] : vector<16x256xf32> to vector<256xf32>
      %30 = vector.shape_cast %29 : vector<256xf32> to vector<1x256xf32>
      %cst_14 = arith.constant 5.000000e-01 : f32
      %31 = vector.broadcast %cst_14 : f32 to vector<1x256xf32>
      %32 = arith.mulf %30, %31 : vector<1x256xf32>
      %33 = vector.broadcast %23 : vector<1x256xf32> to vector<16x256xf32>
      %34 = arith.subf %12, %33 : vector<16x256xf32>
      %c0_15 = arith.constant 0 : index
      %c0_16 = arith.constant 0 : index
      %35 = vector.load %arg4[%c0_15, %c0_16] : memref<1x256xf32, #tpu.memory_space<vmem>>, vector<1x256xf32>
      %cst_17 = arith.constant 9.99999974E-6 : f32
      %36 = vector.broadcast %cst_17 : f32 to vector<1x256xf32>
      %37 = arith.addf %32, %36 : vector<1x256xf32>
      %38 = math.rsqrt %37 : vector<1x256xf32>
      %39 = arith.mulf %35, %38 : vector<1x256xf32>
      %40 = vector.broadcast %39 : vector<1x256xf32> to vector<16x256xf32>
      %41 = arith.mulf %34, %40 : vector<16x256xf32>
      %c0_18 = arith.constant 0 : index
      %c0_19 = arith.constant 0 : index
      %42 = vector.load %arg5[%c0_18, %c0_19] : memref<1x256xf32, #tpu.memory_space<vmem>>, vector<1x256xf32>
      %43 = vector.broadcast %42 : vector<1x256xf32> to vector<16x256xf32>
      %44 = arith.addf %41, %43 : vector<16x256xf32>
      %cst_20 = arith.constant 0.000000e+00 : f32
      %45 = vector.broadcast %cst_20 : f32 to vector<16x256xf32>
      %46 = arith.maximumf %44, %45 : vector<16x256xf32>
      %c0_21 = arith.constant 0 : index
      %c0_22 = arith.constant 0 : index
      %47 = vector.load %arg6[%c0_21, %c0_22] : memref<16x256xf32, #tpu.memory_space<vmem>>, vector<16x256xf32>
      tpu.vector_store %arg6[%c0_21, %c0_22], %46 {strides = array<i32>} : memref<16x256xf32, #tpu.memory_space<vmem>>, vector<16x256xf32>,
    } else {
    }
    return
  }
  func.func @transform_0(%arg0: i32, %arg1: i32) -> (i32, i32) {
    %c0_i32 = arith.constant 0 : i32
    %c0_i32_0 = arith.constant 0 : i32
    return %c0_i32, %arg1 : i32, i32
  }
  func.func @transform_1(%arg0: i32, %arg1: i32) -> (i32, i32) {
    %c0_i32 = arith.constant 0 : i32
    return %arg1, %arg0 : i32, i32
  }
  func.func @transform_2(%arg0: i32, %arg1: i32) -> (i32, i32) {
    %c0_i32 = arith.constant 0 : i32
    %c0_i32_0 = arith.constant 0 : i32
    return %c0_i32, %arg0 : i32, i32
  }
  func.func @transform_3(%arg0: i32, %arg1: i32) -> (i32, i32) {
    %c0_i32 = arith.constant 0 : i32
    %c0_i32_0 = arith.constant 0 : i32
    return %c0_i32, %arg0 : i32, i32
  }
  func.func @transform_4(%arg0: i32, %arg1: i32) -> (i32, i32) {
    %c0_i32 = arith.constant 0 : i32
    %c0_i32_0 = arith.constant 0 : i32
    return %c0_i32, %arg0 : i32, i32
  }
}

module attributes {stable_mosaic.version = 11 : i64} {
  func.func @_fused_matmul_kernel(%arg0: i32, %arg1: i32, %arg2: memref<16x256xbf16, #tpu.memory_space<vmem>>, %arg3: memref<256x256xbf16, #tpu.memory_space<vmem>>, %arg4: memref<1x256xf32, #tpu.memory_space<vmem>>, %arg5: memref<1x256xf32, #tpu.memory_space<vmem>>, %arg6: memref<16x256xf32, #tpu.memory_space<vmem>>) attributes {dimension_semantics = [#tpu.dimension_semantics<parallel>, #tpu.dimension_semantics<arbitrary>], iteration_bounds = array<i64: 1, 1>, scalar_prefetch = 0 : i64, scratch_operands = 0 : i64, tpu.core_type = #tpu.core_type<tc>, window_params = [{transform_indices = @transform_0, window_bounds = array<i64: 16, 256>}, {transform_indices = @transform_1, window_bounds = array<i64: 256, 256>}, {transform_indices = @transform_2, window_bounds = array<i64: 1, 256>}, {transform_indices = @transform_3, window_bounds = array<i64: 1, 256>}, {transform_indices = @transform_4, window_bounds = array<i64: 16, 256>}]} {
    %c0_i32 = arith.constant 0 : i32
    %0 = arith.cmpi eq, %arg1, %c0_i32 : i32
    %1 = arith.extui %0 : i1 to i32
    %c0_i32_0 = arith.constant 0 : i32
    %2 = arith.cmpi ne, %1, %c0_i32_0 : i32
    scf.if %2 {
      %cst_10 = arith.constant 0.000000e+00 : f32
      %12 = vector.broadcast %cst_10 : f32 to vector<16x256xf32>
      %c0_11 = arith.constant 0 : index
      %c0_12 = arith.constant 0 : index
      %13 = vector.load %arg6[%c0_11, %c0_12] : memref<16x256xf32, #tpu.memory_space<vmem>>, vector<16x256xf32>
      tpu.vector_store %arg6[%c0_11, %c0_12], %12 {strides = array<i32>} : memref<16x256xf32, #tpu.memory_space<vmem>>, vector<16x256xf32>,
    } else {
    }
    %c0 = arith.constant 0 : index
    %c0_1 = arith.constant 0 : index
    %3 = vector.load %arg6[%c0, %c0_1] : memref<16x256xf32, #tpu.memory_space<vmem>>, vector<16x256xf32>
    %c0_2 = arith.constant 0 : index
    %c0_3 = arith.constant 0 : index
    %4 = vector.load %arg2[%c0_2, %c0_3] : memref<16x256xbf16, #tpu.memory_space<vmem>>, vector<16x256xbf16>
    %c0_4 = arith.constant 0 : index
    %c0_5 = arith.constant 0 : index
    %5 = vector.load %arg3[%c0_4, %c0_5] : memref<256x256xbf16, #tpu.memory_space<vmem>>, vector<256x256xbf16>
    %cst = arith.constant dense<0.000000e+00> : vector<16x256xf32>
    %6 = tpu.matmul %4, %5, %cst {dimension_numbers = #tpu.dot_dimension_numbers<[1], [0], [0], [1], [0, 0, 1, 1], [], []>} : vector<16x256xbf16>, vector<256x256xbf16>, vector<16x256xf32> -> vector<16x256xf32>
    %7 = arith.addf %3, %6 : vector<16x256xf32>
    %c0_6 = arith.constant 0 : index
    %c0_7 = arith.constant 0 : index
    %8 = vector.load %arg6[%c0_6, %c0_7] : memref<16x256xf32, #tpu.memory_space<vmem>>, vector<16x256xf32>
    tpu.vector_store %arg6[%c0_6, %c0_7], %7 {strides = array<i32>} : memref<16x256xf32, #tpu.memory_space<vmem>>, vector<16x256xf32>,
    %c0_i32_8 = arith.constant 0 : i32
    %9 = arith.cmpi eq, %arg1, %c0_i32_8 : i32
    %10 = arith.extui %9 : i1 to i32
    %c0_i32_9 = arith.constant 0 : i32
    %11 = arith.cmpi ne, %10, %c0_i32_9 : i32
    scf.if %11 {
      %c0_10 = arith.constant 0 : index
      %c0_11 = arith.constant 0 : index
      %12 = vector.load %arg6[%c0_10, %c0_11] : memref<16x256xf32, #tpu.memory_space<vmem>>, vector<16x256xf32>
      %13 = tpu.iota {dimensions = array<i32: 0>} : vector<16x1xi32>
      %c2_i32 = arith.constant 2 : i32
      %14 = vector.broadcast %c2_i32 : i32 to vector<16x1xi32>
      %15 = arith.cmpi slt, %13, %14 : vector<16x1xi32>
      %16 = arith.extui %15 : vector<16x1xi1> to vector<16x1xi32>
      %17 = arith.sitofp %16 : vector<16x1xi32> to vector<16x1xf32>
      %18 = vector.broadcast %17 : vector<16x1xf32> to vector<16x256xf32>
      %19 = arith.mulf %12, %18 : vector<16x256xf32>
      %cst_12 = arith.constant dense<0.000000e+00> : vector<256xf32>
      %20 = vector.multi_reduction <add>, %19, %cst_12 [0] : vector<16x256xf32> to vector<256xf32>
      %21 = vector.shape_cast %20 : vector<256xf32> to vector<1x256xf32>
      %cst_13 = arith.constant 5.000000e-01 : f32
      %22 = vector.broadcast %cst_13 : f32 to vector<1x256xf32>
      %23 = arith.mulf %21, %22 : vector<1x256xf32>
      %24 = vector.broadcast %23 : vector<1x256xf32> to vector<16x256xf32>
      %25 = arith.subf %12, %24 : vector<16x256xf32>
      %26 = vector.broadcast %17 : vector<16x1xf32> to vector<16x256xf32>
      %27 = arith.mulf %25, %26 : vector<16x256xf32>
      %28 = arith.mulf %27, %27 : vector<16x256xf32>
      %cst_14 = arith.constant dense<0.000000e+00> : vector<256xf32>
      %29 = vector.multi_reduction <add>, %28, %cst_14 [0] : vector<16x256xf32> to vector<256xf32>
      %30 = vector.shape_cast %29 : vector<256xf32> to vector<1x256xf32>
      %cst_15 = arith.constant 5.000000e-01 : f32
      %31 = vector.broadcast %cst_15 : f32 to vector<1x256xf32>
      %32 = arith.mulf %30, %31 : vector<1x256xf32>
      %33 = vector.broadcast %23 : vector<1x256xf32> to vector<16x256xf32>
      %34 = arith.subf %12, %33 : vector<16x256xf32>
      %c0_16 = arith.constant 0 : index
      %c0_17 = arith.constant 0 : index
      %35 = vector.load %arg4[%c0_16, %c0_17] : memref<1x256xf32, #tpu.memory_space<vmem>>, vector<1x256xf32>
      %cst_18 = arith.constant 9.99999974E-6 : f32
      %36 = vector.broadcast %cst_18 : f32 to vector<1x256xf32>
      %37 = arith.addf %32, %36 : vector<1x256xf32>
      %38 = math.rsqrt %37 : vector<1x256xf32>
      %39 = arith.mulf %35, %38 : vector<1x256xf32>
      %40 = vector.broadcast %39 : vector<1x256xf32> to vector<16x256xf32>
      %41 = arith.mulf %34, %40 : vector<16x256xf32>
      %c0_19 = arith.constant 0 : index
      %c0_20 = arith.constant 0 : index
      %42 = vector.load %arg5[%c0_19, %c0_20] : memref<1x256xf32, #tpu.memory_space<vmem>>, vector<1x256xf32>
      %43 = vector.broadcast %42 : vector<1x256xf32> to vector<16x256xf32>
      %44 = arith.addf %41, %43 : vector<16x256xf32>
      %c0_21 = arith.constant 0 : index
      %c0_22 = arith.constant 0 : index
      %45 = vector.load %arg6[%c0_21, %c0_22] : memref<16x256xf32, #tpu.memory_space<vmem>>, vector<16x256xf32>
      tpu.vector_store %arg6[%c0_21, %c0_22], %44 {strides = array<i32>} : memref<16x256xf32, #tpu.memory_space<vmem>>, vector<16x256xf32>,
    } else {
    }
    return
  }
  func.func @transform_0(%arg0: i32, %arg1: i32) -> (i32, i32) {
    %c0_i32 = arith.constant 0 : i32
    %c0_i32_0 = arith.constant 0 : i32
    return %c0_i32, %arg1 : i32, i32
  }
  func.func @transform_1(%arg0: i32, %arg1: i32) -> (i32, i32) {
    %c0_i32 = arith.constant 0 : i32
    return %arg1, %arg0 : i32, i32
  }
  func.func @transform_2(%arg0: i32, %arg1: i32) -> (i32, i32) {
    %c0_i32 = arith.constant 0 : i32
    %c0_i32_0 = arith.constant 0 : i32
    return %c0_i32, %arg0 : i32, i32
  }
  func.func @transform_3(%arg0: i32, %arg1: i32) -> (i32, i32) {
    %c0_i32 = arith.constant 0 : i32
    %c0_i32_0 = arith.constant 0 : i32
    return %c0_i32, %arg0 : i32, i32
  }
  func.func @transform_4(%arg0: i32, %arg1: i32) -> (i32, i32) {
    %c0_i32 = arith.constant 0 : i32
    %c0_i32_0 = arith.constant 0 : i32
    return %c0_i32, %arg0 : i32, i32
  }
}

module attributes {stable_mosaic.version = 11 : i64} {
  func.func @_fused_matmul_kernel(%arg0: i32, %arg1: i32, %arg2: memref<16x256xbf16, #tpu.memory_space<vmem>>, %arg3: memref<256x256xbf16, #tpu.memory_space<vmem>>, %arg4: memref<1x256xf32, #tpu.memory_space<vmem>>, %arg5: memref<1x256xf32, #tpu.memory_space<vmem>>, %arg6: memref<16x256xf32, #tpu.memory_space<vmem>>) attributes {dimension_semantics = [#tpu.dimension_semantics<parallel>, #tpu.dimension_semantics<arbitrary>], iteration_bounds = array<i64: 1, 9>, scalar_prefetch = 0 : i64, scratch_operands = 0 : i64, tpu.core_type = #tpu.core_type<tc>, window_params = [{transform_indices = @transform_0, window_bounds = array<i64: 16, 256>}, {transform_indices = @transform_1, window_bounds = array<i64: 256, 256>}, {transform_indices = @transform_2, window_bounds = array<i64: 1, 256>}, {transform_indices = @transform_3, window_bounds = array<i64: 1, 256>}, {transform_indices = @transform_4, window_bounds = array<i64: 16, 256>}]} {
    %c0_i32 = arith.constant 0 : i32
    %0 = arith.cmpi eq, %arg1, %c0_i32 : i32
    %1 = arith.extui %0 : i1 to i32
    %c0_i32_0 = arith.constant 0 : i32
    %2 = arith.cmpi ne, %1, %c0_i32_0 : i32
    scf.if %2 {
      %cst_9 = arith.constant 0.000000e+00 : f32
      %12 = vector.broadcast %cst_9 : f32 to vector<16x256xf32>
      %c0_10 = arith.constant 0 : index
      %c0_11 = arith.constant 0 : index
      %13 = vector.load %arg6[%c0_10, %c0_11] : memref<16x256xf32, #tpu.memory_space<vmem>>, vector<16x256xf32>
      tpu.vector_store %arg6[%c0_10, %c0_11], %12 {strides = array<i32>} : memref<16x256xf32, #tpu.memory_space<vmem>>, vector<16x256xf32>,
    } else {
    }
    %c0 = arith.constant 0 : index
    %c0_1 = arith.constant 0 : index
    %3 = vector.load %arg6[%c0, %c0_1] : memref<16x256xf32, #tpu.memory_space<vmem>>, vector<16x256xf32>
    %c0_2 = arith.constant 0 : index
    %c0_3 = arith.constant 0 : index
    %4 = vector.load %arg2[%c0_2, %c0_3] : memref<16x256xbf16, #tpu.memory_space<vmem>>, vector<16x256xbf16>
    %c0_4 = arith.constant 0 : index
    %c0_5 = arith.constant 0 : index
    %5 = vector.load %arg3[%c0_4, %c0_5] : memref<256x256xbf16, #tpu.memory_space<vmem>>, vector<256x256xbf16>
    %cst = arith.constant dense<0.000000e+00> : vector<16x256xf32>
    %6 = tpu.matmul %4, %5, %cst {dimension_numbers = #tpu.dot_dimension_numbers<[1], [0], [0], [1], [0, 0, 1, 1], [], []>} : vector<16x256xbf16>, vector<256x256xbf16>, vector<16x256xf32> -> vector<16x256xf32>
    %7 = arith.addf %3, %6 : vector<16x256xf32>
    %c0_6 = arith.constant 0 : index
    %c0_7 = arith.constant 0 : index
    %8 = vector.load %arg6[%c0_6, %c0_7] : memref<16x256xf32, #tpu.memory_space<vmem>>, vector<16x256xf32>
    tpu.vector_store %arg6[%c0_6, %c0_7], %7 {strides = array<i32>} : memref<16x256xf32, #tpu.memory_space<vmem>>, vector<16x256xf32>,
    %c8_i32 = arith.constant 8 : i32
    %9 = arith.cmpi eq, %arg1, %c8_i32 : i32
    %10 = arith.extui %9 : i1 to i32
    %c0_i32_8 = arith.constant 0 : i32
    %11 = arith.cmpi ne, %10, %c0_i32_8 : i32
    scf.if %11 {
      %c0_9 = arith.constant 0 : index
      %c0_10 = arith.constant 0 : index
      %12 = vector.load %arg6[%c0_9, %c0_10] : memref<16x256xf32, #tpu.memory_space<vmem>>, vector<16x256xf32>
      %13 = tpu.iota {dimensions = array<i32: 0>} : vector<16x1xi32>
      %c2_i32 = arith.constant 2 : i32
      %14 = vector.broadcast %c2_i32 : i32 to vector<16x1xi32>
      %15 = arith.cmpi slt, %13, %14 : vector<16x1xi32>
      %16 = arith.extui %15 : vector<16x1xi1> to vector<16x1xi32>
      %17 = arith.sitofp %16 : vector<16x1xi32> to vector<16x1xf32>
      %18 = vector.broadcast %17 : vector<16x1xf32> to vector<16x256xf32>
      %19 = arith.mulf %12, %18 : vector<16x256xf32>
      %cst_11 = arith.constant dense<0.000000e+00> : vector<256xf32>
      %20 = vector.multi_reduction <add>, %19, %cst_11 [0] : vector<16x256xf32> to vector<256xf32>
      %21 = vector.shape_cast %20 : vector<256xf32> to vector<1x256xf32>
      %cst_12 = arith.constant 5.000000e-01 : f32
      %22 = vector.broadcast %cst_12 : f32 to vector<1x256xf32>
      %23 = arith.mulf %21, %22 : vector<1x256xf32>
      %24 = vector.broadcast %23 : vector<1x256xf32> to vector<16x256xf32>
      %25 = arith.subf %12, %24 : vector<16x256xf32>
      %26 = vector.broadcast %17 : vector<16x1xf32> to vector<16x256xf32>
      %27 = arith.mulf %25, %26 : vector<16x256xf32>
      %28 = arith.mulf %27, %27 : vector<16x256xf32>
      %cst_13 = arith.constant dense<0.000000e+00> : vector<256xf32>
      %29 = vector.multi_reduction <add>, %28, %cst_13 [0] : vector<16x256xf32> to vector<256xf32>
      %30 = vector.shape_cast %29 : vector<256xf32> to vector<1x256xf32>
      %cst_14 = arith.constant 5.000000e-01 : f32
      %31 = vector.broadcast %cst_14 : f32 to vector<1x256xf32>
      %32 = arith.mulf %30, %31 : vector<1x256xf32>
      %33 = vector.broadcast %23 : vector<1x256xf32> to vector<16x256xf32>
      %34 = arith.subf %12, %33 : vector<16x256xf32>
      %c0_15 = arith.constant 0 : index
      %c0_16 = arith.constant 0 : index
      %35 = vector.load %arg4[%c0_15, %c0_16] : memref<1x256xf32, #tpu.memory_space<vmem>>, vector<1x256xf32>
      %cst_17 = arith.constant 9.99999974E-6 : f32
      %36 = vector.broadcast %cst_17 : f32 to vector<1x256xf32>
      %37 = arith.addf %32, %36 : vector<1x256xf32>
      %38 = math.rsqrt %37 : vector<1x256xf32>
      %39 = arith.mulf %35, %38 : vector<1x256xf32>
      %40 = vector.broadcast %39 : vector<1x256xf32> to vector<16x256xf32>
      %41 = arith.mulf %34, %40 : vector<16x256xf32>
      %c0_18 = arith.constant 0 : index
      %c0_19 = arith.constant 0 : index
      %42 = vector.load %arg5[%c0_18, %c0_19] : memref<1x256xf32, #tpu.memory_space<vmem>>, vector<1x256xf32>
      %43 = vector.broadcast %42 : vector<1x256xf32> to vector<16x256xf32>
      %44 = arith.addf %41, %43 : vector<16x256xf32>
      %cst_20 = arith.constant 0.000000e+00 : f32
      %45 = vector.broadcast %cst_20 : f32 to vector<16x256xf32>
      %46 = arith.maximumf %44, %45 : vector<16x256xf32>
      %c0_21 = arith.constant 0 : index
      %c0_22 = arith.constant 0 : index
      %47 = vector.load %arg6[%c0_21, %c0_22] : memref<16x256xf32, #tpu.memory_space<vmem>>, vector<16x256xf32>
      tpu.vector_store %arg6[%c0_21, %c0_22], %46 {strides = array<i32>} : memref<16x256xf32, #tpu.memory_space<vmem>>, vector<16x256xf32>,
    } else {
    }
    return
  }
  func.func @transform_0(%arg0: i32, %arg1: i32) -> (i32, i32) {
    %c0_i32 = arith.constant 0 : i32
    %c0_i32_0 = arith.constant 0 : i32
    return %c0_i32, %arg1 : i32, i32
  }
  func.func @transform_1(%arg0: i32, %arg1: i32) -> (i32, i32) {
    %c0_i32 = arith.constant 0 : i32
    return %arg1, %arg0 : i32, i32
  }
  func.func @transform_2(%arg0: i32, %arg1: i32) -> (i32, i32) {
    %c0_i32 = arith.constant 0 : i32
    %c0_i32_0 = arith.constant 0 : i32
    return %c0_i32, %arg0 : i32, i32
  }
  func.func @transform_3(%arg0: i32, %arg1: i32) -> (i32, i32) {
    %c0_i32 = arith.constant 0 : i32
    %c0_i32_0 = arith.constant 0 : i32
    return %c0_i32, %arg0 : i32, i32
  }
  func.func @transform_4(%arg0: i32, %arg1: i32) -> (i32, i32) {
    %c0_i32 = arith.constant 0 : i32
    %c0_i32_0 = arith.constant 0 : i32
    return %c0_i32, %arg0 : i32, i32
  }
}

module attributes {stable_mosaic.version = 11 : i64} {
  func.func @_fused_matmul_kernel(%arg0: i32, %arg1: i32, %arg2: memref<16x256xbf16, #tpu.memory_space<vmem>>, %arg3: memref<256x256xbf16, #tpu.memory_space<vmem>>, %arg4: memref<1x256xf32, #tpu.memory_space<vmem>>, %arg5: memref<1x256xf32, #tpu.memory_space<vmem>>, %arg6: memref<16x256xf32, #tpu.memory_space<vmem>>, %arg7: memref<16x256xf32, #tpu.memory_space<vmem>>) attributes {dimension_semantics = [#tpu.dimension_semantics<parallel>, #tpu.dimension_semantics<arbitrary>], iteration_bounds = array<i64: 1, 9>, scalar_prefetch = 0 : i64, scratch_operands = 0 : i64, tpu.core_type = #tpu.core_type<tc>, window_params = [{transform_indices = @transform_0, window_bounds = array<i64: 16, 256>}, {transform_indices = @transform_1, window_bounds = array<i64: 256, 256>}, {transform_indices = @transform_2, window_bounds = array<i64: 1, 256>}, {transform_indices = @transform_3, window_bounds = array<i64: 1, 256>}, {transform_indices = @transform_4, window_bounds = array<i64: 16, 256>}, {transform_indices = @transform_5, window_bounds = array<i64: 16, 256>}]} {
    %c0_i32 = arith.constant 0 : i32
    %0 = arith.cmpi eq, %arg1, %c0_i32 : i32
    %1 = arith.extui %0 : i1 to i32
    %c0_i32_0 = arith.constant 0 : i32
    %2 = arith.cmpi ne, %1, %c0_i32_0 : i32
    scf.if %2 {
      %cst_9 = arith.constant 0.000000e+00 : f32
      %12 = vector.broadcast %cst_9 : f32 to vector<16x256xf32>
      %c0_10 = arith.constant 0 : index
      %c0_11 = arith.constant 0 : index
      %13 = vector.load %arg7[%c0_10, %c0_11] : memref<16x256xf32, #tpu.memory_space<vmem>>, vector<16x256xf32>
      tpu.vector_store %arg7[%c0_10, %c0_11], %12 {strides = array<i32>} : memref<16x256xf32, #tpu.memory_space<vmem>>, vector<16x256xf32>,
    } else {
    }
    %c0 = arith.constant 0 : index
    %c0_1 = arith.constant 0 : index
    %3 = vector.load %arg7[%c0, %c0_1] : memref<16x256xf32, #tpu.memory_space<vmem>>, vector<16x256xf32>
    %c0_2 = arith.constant 0 : index
    %c0_3 = arith.constant 0 : index
    %4 = vector.load %arg2[%c0_2, %c0_3] : memref<16x256xbf16, #tpu.memory_space<vmem>>, vector<16x256xbf16>
    %c0_4 = arith.constant 0 : index
    %c0_5 = arith.constant 0 : index
    %5 = vector.load %arg3[%c0_4, %c0_5] : memref<256x256xbf16, #tpu.memory_space<vmem>>, vector<256x256xbf16>
    %cst = arith.constant dense<0.000000e+00> : vector<16x256xf32>
    %6 = tpu.matmul %4, %5, %cst {dimension_numbers = #tpu.dot_dimension_numbers<[1], [0], [0], [1], [0, 0, 1, 1], [], []>} : vector<16x256xbf16>, vector<256x256xbf16>, vector<16x256xf32> -> vector<16x256xf32>
    %7 = arith.addf %3, %6 : vector<16x256xf32>
    %c0_6 = arith.constant 0 : index
    %c0_7 = arith.constant 0 : index
    %8 = vector.load %arg7[%c0_6, %c0_7] : memref<16x256xf32, #tpu.memory_space<vmem>>, vector<16x256xf32>
    tpu.vector_store %arg7[%c0_6, %c0_7], %7 {strides = array<i32>} : memref<16x256xf32, #tpu.memory_space<vmem>>, vector<16x256xf32>,
    %c8_i32 = arith.constant 8 : i32
    %9 = arith.cmpi eq, %arg1, %c8_i32 : i32
    %10 = arith.extui %9 : i1 to i32
    %c0_i32_8 = arith.constant 0 : i32
    %11 = arith.cmpi ne, %10, %c0_i32_8 : i32
    scf.if %11 {
      %c0_9 = arith.constant 0 : index
      %c0_10 = arith.constant 0 : index
      %12 = vector.load %arg7[%c0_9, %c0_10] : memref<16x256xf32, #tpu.memory_space<vmem>>, vector<16x256xf32>
      %13 = tpu.iota {dimensions = array<i32: 0>} : vector<16x1xi32>
      %c2_i32 = arith.constant 2 : i32
      %14 = vector.broadcast %c2_i32 : i32 to vector<16x1xi32>
      %15 = arith.cmpi slt, %13, %14 : vector<16x1xi32>
      %16 = arith.extui %15 : vector<16x1xi1> to vector<16x1xi32>
      %17 = arith.sitofp %16 : vector<16x1xi32> to vector<16x1xf32>
      %18 = vector.broadcast %17 : vector<16x1xf32> to vector<16x256xf32>
      %19 = arith.mulf %12, %18 : vector<16x256xf32>
      %cst_11 = arith.constant dense<0.000000e+00> : vector<256xf32>
      %20 = vector.multi_reduction <add>, %19, %cst_11 [0] : vector<16x256xf32> to vector<256xf32>
      %21 = vector.shape_cast %20 : vector<256xf32> to vector<1x256xf32>
      %cst_12 = arith.constant 5.000000e-01 : f32
      %22 = vector.broadcast %cst_12 : f32 to vector<1x256xf32>
      %23 = arith.mulf %21, %22 : vector<1x256xf32>
      %24 = vector.broadcast %23 : vector<1x256xf32> to vector<16x256xf32>
      %25 = arith.subf %12, %24 : vector<16x256xf32>
      %26 = vector.broadcast %17 : vector<16x1xf32> to vector<16x256xf32>
      %27 = arith.mulf %25, %26 : vector<16x256xf32>
      %28 = arith.mulf %27, %27 : vector<16x256xf32>
      %cst_13 = arith.constant dense<0.000000e+00> : vector<256xf32>
      %29 = vector.multi_reduction <add>, %28, %cst_13 [0] : vector<16x256xf32> to vector<256xf32>
      %30 = vector.shape_cast %29 : vector<256xf32> to vector<1x256xf32>
      %cst_14 = arith.constant 5.000000e-01 : f32
      %31 = vector.broadcast %cst_14 : f32 to vector<1x256xf32>
      %32 = arith.mulf %30, %31 : vector<1x256xf32>
      %33 = vector.broadcast %23 : vector<1x256xf32> to vector<16x256xf32>
      %34 = arith.subf %12, %33 : vector<16x256xf32>
      %c0_15 = arith.constant 0 : index
      %c0_16 = arith.constant 0 : index
      %35 = vector.load %arg4[%c0_15, %c0_16] : memref<1x256xf32, #tpu.memory_space<vmem>>, vector<1x256xf32>
      %cst_17 = arith.constant 9.99999974E-6 : f32
      %36 = vector.broadcast %cst_17 : f32 to vector<1x256xf32>
      %37 = arith.addf %32, %36 : vector<1x256xf32>
      %38 = math.rsqrt %37 : vector<1x256xf32>
      %39 = arith.mulf %35, %38 : vector<1x256xf32>
      %40 = vector.broadcast %39 : vector<1x256xf32> to vector<16x256xf32>
      %41 = arith.mulf %34, %40 : vector<16x256xf32>
      %c0_18 = arith.constant 0 : index
      %c0_19 = arith.constant 0 : index
      %42 = vector.load %arg5[%c0_18, %c0_19] : memref<1x256xf32, #tpu.memory_space<vmem>>, vector<1x256xf32>
      %43 = vector.broadcast %42 : vector<1x256xf32> to vector<16x256xf32>
      %44 = arith.addf %41, %43 : vector<16x256xf32>
      %c0_20 = arith.constant 0 : index
      %c0_21 = arith.constant 0 : index
      %45 = vector.load %arg6[%c0_20, %c0_21] : memref<16x256xf32, #tpu.memory_space<vmem>>, vector<16x256xf32>
      %46 = arith.addf %44, %45 : vector<16x256xf32>
      %cst_22 = arith.constant 0.000000e+00 : f32
      %47 = vector.broadcast %cst_22 : f32 to vector<16x256xf32>
      %48 = arith.maximumf %46, %47 : vector<16x256xf32>
      %c0_23 = arith.constant 0 : index
      %c0_24 = arith.constant 0 : index
      %49 = vector.load %arg7[%c0_23, %c0_24] : memref<16x256xf32, #tpu.memory_space<vmem>>, vector<16x256xf32>
      tpu.vector_store %arg7[%c0_23, %c0_24], %48 {strides = array<i32>} : memref<16x256xf32, #tpu.memory_space<vmem>>, vector<16x256xf32>,
    } else {
    }
    return
  }
  func.func @transform_0(%arg0: i32, %arg1: i32) -> (i32, i32) {
    %c0_i32 = arith.constant 0 : i32
    %c0_i32_0 = arith.constant 0 : i32
    return %c0_i32, %arg1 : i32, i32
  }
  func.func @transform_1(%arg0: i32, %arg1: i32) -> (i32, i32) {
    %c0_i32 = arith.constant 0 : i32
    return %arg1, %arg0 : i32, i32
  }
  func.func @transform_2(%arg0: i32, %arg1: i32) -> (i32, i32) {
    %c0_i32 = arith.constant 0 : i32
    %c0_i32_0 = arith.constant 0 : i32
    return %c0_i32, %arg0 : i32, i32
  }
  func.func @transform_3(%arg0: i32, %arg1: i32) -> (i32, i32) {
    %c0_i32 = arith.constant 0 : i32
    %c0_i32_0 = arith.constant 0 : i32
    return %c0_i32, %arg0 : i32, i32
  }
  func.func @transform_4(%arg0: i32, %arg1: i32) -> (i32, i32) {
    %c0_i32 = arith.constant 0 : i32
    %c0_i32_0 = arith.constant 0 : i32
    return %c0_i32, %arg0 : i32, i32
  }
  func.func @transform_5(%arg0: i32, %arg1: i32) -> (i32, i32) {
    %c0_i32 = arith.constant 0 : i32
    %c0_i32_0 = arith.constant 0 : i32
    return %c0_i32, %arg0 : i32, i32
  }
}

module attributes {stable_mosaic.version = 11 : i64} {
  func.func @_fused_matmul_kernel(%arg0: i32, %arg1: i32, %arg2: memref<16x256xbf16, #tpu.memory_space<vmem>>, %arg3: memref<256x512xbf16, #tpu.memory_space<vmem>>, %arg4: memref<1x512xf32, #tpu.memory_space<vmem>>, %arg5: memref<1x512xf32, #tpu.memory_space<vmem>>, %arg6: memref<16x512xf32, #tpu.memory_space<vmem>>) attributes {dimension_semantics = [#tpu.dimension_semantics<parallel>, #tpu.dimension_semantics<arbitrary>], iteration_bounds = array<i64: 1, 1>, scalar_prefetch = 0 : i64, scratch_operands = 0 : i64, tpu.core_type = #tpu.core_type<tc>, window_params = [{transform_indices = @transform_0, window_bounds = array<i64: 16, 256>}, {transform_indices = @transform_1, window_bounds = array<i64: 256, 512>}, {transform_indices = @transform_2, window_bounds = array<i64: 1, 512>}, {transform_indices = @transform_3, window_bounds = array<i64: 1, 512>}, {transform_indices = @transform_4, window_bounds = array<i64: 16, 512>}]} {
    %c0_i32 = arith.constant 0 : i32
    %0 = arith.cmpi eq, %arg1, %c0_i32 : i32
    %1 = arith.extui %0 : i1 to i32
    %c0_i32_0 = arith.constant 0 : i32
    %2 = arith.cmpi ne, %1, %c0_i32_0 : i32
    scf.if %2 {
      %cst_10 = arith.constant 0.000000e+00 : f32
      %12 = vector.broadcast %cst_10 : f32 to vector<16x512xf32>
      %c0_11 = arith.constant 0 : index
      %c0_12 = arith.constant 0 : index
      %13 = vector.load %arg6[%c0_11, %c0_12] : memref<16x512xf32, #tpu.memory_space<vmem>>, vector<16x512xf32>
      tpu.vector_store %arg6[%c0_11, %c0_12], %12 {strides = array<i32>} : memref<16x512xf32, #tpu.memory_space<vmem>>, vector<16x512xf32>,
    } else {
    }
    %c0 = arith.constant 0 : index
    %c0_1 = arith.constant 0 : index
    %3 = vector.load %arg6[%c0, %c0_1] : memref<16x512xf32, #tpu.memory_space<vmem>>, vector<16x512xf32>
    %c0_2 = arith.constant 0 : index
    %c0_3 = arith.constant 0 : index
    %4 = vector.load %arg2[%c0_2, %c0_3] : memref<16x256xbf16, #tpu.memory_space<vmem>>, vector<16x256xbf16>
    %c0_4 = arith.constant 0 : index
    %c0_5 = arith.constant 0 : index
    %5 = vector.load %arg3[%c0_4, %c0_5] : memref<256x512xbf16, #tpu.memory_space<vmem>>, vector<256x512xbf16>
    %cst = arith.constant dense<0.000000e+00> : vector<16x512xf32>
    %6 = tpu.matmul %4, %5, %cst {dimension_numbers = #tpu.dot_dimension_numbers<[1], [0], [0], [1], [0, 0, 1, 1], [], []>} : vector<16x256xbf16>, vector<256x512xbf16>, vector<16x512xf32> -> vector<16x512xf32>
    %7 = arith.addf %3, %6 : vector<16x512xf32>
    %c0_6 = arith.constant 0 : index
    %c0_7 = arith.constant 0 : index
    %8 = vector.load %arg6[%c0_6, %c0_7] : memref<16x512xf32, #tpu.memory_space<vmem>>, vector<16x512xf32>
    tpu.vector_store %arg6[%c0_6, %c0_7], %7 {strides = array<i32>} : memref<16x512xf32, #tpu.memory_space<vmem>>, vector<16x512xf32>,
    %c0_i32_8 = arith.constant 0 : i32
    %9 = arith.cmpi eq, %arg1, %c0_i32_8 : i32
    %10 = arith.extui %9 : i1 to i32
    %c0_i32_9 = arith.constant 0 : i32
    %11 = arith.cmpi ne, %10, %c0_i32_9 : i32
    scf.if %11 {
      %c0_10 = arith.constant 0 : index
      %c0_11 = arith.constant 0 : index
      %12 = vector.load %arg6[%c0_10, %c0_11] : memref<16x512xf32, #tpu.memory_space<vmem>>, vector<16x512xf32>
      %13 = tpu.iota {dimensions = array<i32: 0>} : vector<16x1xi32>
      %c2_i32 = arith.constant 2 : i32
      %14 = vector.broadcast %c2_i32 : i32 to vector<16x1xi32>
      %15 = arith.cmpi slt, %13, %14 : vector<16x1xi32>
      %16 = arith.extui %15 : vector<16x1xi1> to vector<16x1xi32>
      %17 = arith.sitofp %16 : vector<16x1xi32> to vector<16x1xf32>
      %18 = vector.broadcast %17 : vector<16x1xf32> to vector<16x512xf32>
      %19 = arith.mulf %12, %18 : vector<16x512xf32>
      %cst_12 = arith.constant dense<0.000000e+00> : vector<512xf32>
      %20 = vector.multi_reduction <add>, %19, %cst_12 [0] : vector<16x512xf32> to vector<512xf32>
      %21 = vector.shape_cast %20 : vector<512xf32> to vector<1x512xf32>
      %cst_13 = arith.constant 5.000000e-01 : f32
      %22 = vector.broadcast %cst_13 : f32 to vector<1x512xf32>
      %23 = arith.mulf %21, %22 : vector<1x512xf32>
      %24 = vector.broadcast %23 : vector<1x512xf32> to vector<16x512xf32>
      %25 = arith.subf %12, %24 : vector<16x512xf32>
      %26 = vector.broadcast %17 : vector<16x1xf32> to vector<16x512xf32>
      %27 = arith.mulf %25, %26 : vector<16x512xf32>
      %28 = arith.mulf %27, %27 : vector<16x512xf32>
      %cst_14 = arith.constant dense<0.000000e+00> : vector<512xf32>
      %29 = vector.multi_reduction <add>, %28, %cst_14 [0] : vector<16x512xf32> to vector<512xf32>
      %30 = vector.shape_cast %29 : vector<512xf32> to vector<1x512xf32>
      %cst_15 = arith.constant 5.000000e-01 : f32
      %31 = vector.broadcast %cst_15 : f32 to vector<1x512xf32>
      %32 = arith.mulf %30, %31 : vector<1x512xf32>
      %33 = vector.broadcast %23 : vector<1x512xf32> to vector<16x512xf32>
      %34 = arith.subf %12, %33 : vector<16x512xf32>
      %c0_16 = arith.constant 0 : index
      %c0_17 = arith.constant 0 : index
      %35 = vector.load %arg4[%c0_16, %c0_17] : memref<1x512xf32, #tpu.memory_space<vmem>>, vector<1x512xf32>
      %cst_18 = arith.constant 9.99999974E-6 : f32
      %36 = vector.broadcast %cst_18 : f32 to vector<1x512xf32>
      %37 = arith.addf %32, %36 : vector<1x512xf32>
      %38 = math.rsqrt %37 : vector<1x512xf32>
      %39 = arith.mulf %35, %38 : vector<1x512xf32>
      %40 = vector.broadcast %39 : vector<1x512xf32> to vector<16x512xf32>
      %41 = arith.mulf %34, %40 : vector<16x512xf32>
      %c0_19 = arith.constant 0 : index
      %c0_20 = arith.constant 0 : index
      %42 = vector.load %arg5[%c0_19, %c0_20] : memref<1x512xf32, #tpu.memory_space<vmem>>, vector<1x512xf32>
      %43 = vector.broadcast %42 : vector<1x512xf32> to vector<16x512xf32>
      %44 = arith.addf %41, %43 : vector<16x512xf32>
      %c0_21 = arith.constant 0 : index
      %c0_22 = arith.constant 0 : index
      %45 = vector.load %arg6[%c0_21, %c0_22] : memref<16x512xf32, #tpu.memory_space<vmem>>, vector<16x512xf32>
      tpu.vector_store %arg6[%c0_21, %c0_22], %44 {strides = array<i32>} : memref<16x512xf32, #tpu.memory_space<vmem>>, vector<16x512xf32>,
    } else {
    }
    return
  }
  func.func @transform_0(%arg0: i32, %arg1: i32) -> (i32, i32) {
    %c0_i32 = arith.constant 0 : i32
    %c0_i32_0 = arith.constant 0 : i32
    return %c0_i32, %arg1 : i32, i32
  }
  func.func @transform_1(%arg0: i32, %arg1: i32) -> (i32, i32) {
    %c0_i32 = arith.constant 0 : i32
    return %arg1, %arg0 : i32, i32
  }
  func.func @transform_2(%arg0: i32, %arg1: i32) -> (i32, i32) {
    %c0_i32 = arith.constant 0 : i32
    %c0_i32_0 = arith.constant 0 : i32
    return %c0_i32, %arg0 : i32, i32
  }
  func.func @transform_3(%arg0: i32, %arg1: i32) -> (i32, i32) {
    %c0_i32 = arith.constant 0 : i32
    %c0_i32_0 = arith.constant 0 : i32
    return %c0_i32, %arg0 : i32, i32
  }
  func.func @transform_4(%arg0: i32, %arg1: i32) -> (i32, i32) {
    %c0_i32 = arith.constant 0 : i32
    %c0_i32_0 = arith.constant 0 : i32
    return %c0_i32, %arg0 : i32, i32
  }
}

module attributes {stable_mosaic.version = 11 : i64} {
  func.func @_fused_matmul_kernel(%arg0: i32, %arg1: i32, %arg2: memref<16x256xbf16, #tpu.memory_space<vmem>>, %arg3: memref<256x512xbf16, #tpu.memory_space<vmem>>, %arg4: memref<1x512xf32, #tpu.memory_space<vmem>>, %arg5: memref<1x512xf32, #tpu.memory_space<vmem>>, %arg6: memref<16x512xf32, #tpu.memory_space<vmem>>) attributes {dimension_semantics = [#tpu.dimension_semantics<parallel>, #tpu.dimension_semantics<arbitrary>], iteration_bounds = array<i64: 1, 9>, scalar_prefetch = 0 : i64, scratch_operands = 0 : i64, tpu.core_type = #tpu.core_type<tc>, window_params = [{transform_indices = @transform_0, window_bounds = array<i64: 16, 256>}, {transform_indices = @transform_1, window_bounds = array<i64: 256, 512>}, {transform_indices = @transform_2, window_bounds = array<i64: 1, 512>}, {transform_indices = @transform_3, window_bounds = array<i64: 1, 512>}, {transform_indices = @transform_4, window_bounds = array<i64: 16, 512>}]} {
    %c0_i32 = arith.constant 0 : i32
    %0 = arith.cmpi eq, %arg1, %c0_i32 : i32
    %1 = arith.extui %0 : i1 to i32
    %c0_i32_0 = arith.constant 0 : i32
    %2 = arith.cmpi ne, %1, %c0_i32_0 : i32
    scf.if %2 {
      %cst_9 = arith.constant 0.000000e+00 : f32
      %12 = vector.broadcast %cst_9 : f32 to vector<16x512xf32>
      %c0_10 = arith.constant 0 : index
      %c0_11 = arith.constant 0 : index
      %13 = vector.load %arg6[%c0_10, %c0_11] : memref<16x512xf32, #tpu.memory_space<vmem>>, vector<16x512xf32>
      tpu.vector_store %arg6[%c0_10, %c0_11], %12 {strides = array<i32>} : memref<16x512xf32, #tpu.memory_space<vmem>>, vector<16x512xf32>,
    } else {
    }
    %c0 = arith.constant 0 : index
    %c0_1 = arith.constant 0 : index
    %3 = vector.load %arg6[%c0, %c0_1] : memref<16x512xf32, #tpu.memory_space<vmem>>, vector<16x512xf32>
    %c0_2 = arith.constant 0 : index
    %c0_3 = arith.constant 0 : index
    %4 = vector.load %arg2[%c0_2, %c0_3] : memref<16x256xbf16, #tpu.memory_space<vmem>>, vector<16x256xbf16>
    %c0_4 = arith.constant 0 : index
    %c0_5 = arith.constant 0 : index
    %5 = vector.load %arg3[%c0_4, %c0_5] : memref<256x512xbf16, #tpu.memory_space<vmem>>, vector<256x512xbf16>
    %cst = arith.constant dense<0.000000e+00> : vector<16x512xf32>
    %6 = tpu.matmul %4, %5, %cst {dimension_numbers = #tpu.dot_dimension_numbers<[1], [0], [0], [1], [0, 0, 1, 1], [], []>} : vector<16x256xbf16>, vector<256x512xbf16>, vector<16x512xf32> -> vector<16x512xf32>
    %7 = arith.addf %3, %6 : vector<16x512xf32>
    %c0_6 = arith.constant 0 : index
    %c0_7 = arith.constant 0 : index
    %8 = vector.load %arg6[%c0_6, %c0_7] : memref<16x512xf32, #tpu.memory_space<vmem>>, vector<16x512xf32>
    tpu.vector_store %arg6[%c0_6, %c0_7], %7 {strides = array<i32>} : memref<16x512xf32, #tpu.memory_space<vmem>>, vector<16x512xf32>,
    %c8_i32 = arith.constant 8 : i32
    %9 = arith.cmpi eq, %arg1, %c8_i32 : i32
    %10 = arith.extui %9 : i1 to i32
    %c0_i32_8 = arith.constant 0 : i32
    %11 = arith.cmpi ne, %10, %c0_i32_8 : i32
    scf.if %11 {
      %c0_9 = arith.constant 0 : index
      %c0_10 = arith.constant 0 : index
      %12 = vector.load %arg6[%c0_9, %c0_10] : memref<16x512xf32, #tpu.memory_space<vmem>>, vector<16x512xf32>
      %13 = tpu.iota {dimensions = array<i32: 0>} : vector<16x1xi32>
      %c2_i32 = arith.constant 2 : i32
      %14 = vector.broadcast %c2_i32 : i32 to vector<16x1xi32>
      %15 = arith.cmpi slt, %13, %14 : vector<16x1xi32>
      %16 = arith.extui %15 : vector<16x1xi1> to vector<16x1xi32>
      %17 = arith.sitofp %16 : vector<16x1xi32> to vector<16x1xf32>
      %18 = vector.broadcast %17 : vector<16x1xf32> to vector<16x512xf32>
      %19 = arith.mulf %12, %18 : vector<16x512xf32>
      %cst_11 = arith.constant dense<0.000000e+00> : vector<512xf32>
      %20 = vector.multi_reduction <add>, %19, %cst_11 [0] : vector<16x512xf32> to vector<512xf32>
      %21 = vector.shape_cast %20 : vector<512xf32> to vector<1x512xf32>
      %cst_12 = arith.constant 5.000000e-01 : f32
      %22 = vector.broadcast %cst_12 : f32 to vector<1x512xf32>
      %23 = arith.mulf %21, %22 : vector<1x512xf32>
      %24 = vector.broadcast %23 : vector<1x512xf32> to vector<16x512xf32>
      %25 = arith.subf %12, %24 : vector<16x512xf32>
      %26 = vector.broadcast %17 : vector<16x1xf32> to vector<16x512xf32>
      %27 = arith.mulf %25, %26 : vector<16x512xf32>
      %28 = arith.mulf %27, %27 : vector<16x512xf32>
      %cst_13 = arith.constant dense<0.000000e+00> : vector<512xf32>
      %29 = vector.multi_reduction <add>, %28, %cst_13 [0] : vector<16x512xf32> to vector<512xf32>
      %30 = vector.shape_cast %29 : vector<512xf32> to vector<1x512xf32>
      %cst_14 = arith.constant 5.000000e-01 : f32
      %31 = vector.broadcast %cst_14 : f32 to vector<1x512xf32>
      %32 = arith.mulf %30, %31 : vector<1x512xf32>
      %33 = vector.broadcast %23 : vector<1x512xf32> to vector<16x512xf32>
      %34 = arith.subf %12, %33 : vector<16x512xf32>
      %c0_15 = arith.constant 0 : index
      %c0_16 = arith.constant 0 : index
      %35 = vector.load %arg4[%c0_15, %c0_16] : memref<1x512xf32, #tpu.memory_space<vmem>>, vector<1x512xf32>
      %cst_17 = arith.constant 9.99999974E-6 : f32
      %36 = vector.broadcast %cst_17 : f32 to vector<1x512xf32>
      %37 = arith.addf %32, %36 : vector<1x512xf32>
      %38 = math.rsqrt %37 : vector<1x512xf32>
      %39 = arith.mulf %35, %38 : vector<1x512xf32>
      %40 = vector.broadcast %39 : vector<1x512xf32> to vector<16x512xf32>
      %41 = arith.mulf %34, %40 : vector<16x512xf32>
      %c0_18 = arith.constant 0 : index
      %c0_19 = arith.constant 0 : index
      %42 = vector.load %arg5[%c0_18, %c0_19] : memref<1x512xf32, #tpu.memory_space<vmem>>, vector<1x512xf32>
      %43 = vector.broadcast %42 : vector<1x512xf32> to vector<16x512xf32>
      %44 = arith.addf %41, %43 : vector<16x512xf32>
      %cst_20 = arith.constant 0.000000e+00 : f32
      %45 = vector.broadcast %cst_20 : f32 to vector<16x512xf32>
      %46 = arith.maximumf %44, %45 : vector<16x512xf32>
      %c0_21 = arith.constant 0 : index
      %c0_22 = arith.constant 0 : index
      %47 = vector.load %arg6[%c0_21, %c0_22] : memref<16x512xf32, #tpu.memory_space<vmem>>, vector<16x512xf32>
      tpu.vector_store %arg6[%c0_21, %c0_22], %46 {strides = array<i32>} : memref<16x512xf32, #tpu.memory_space<vmem>>, vector<16x512xf32>,
    } else {
    }
    return
  }
  func.func @transform_0(%arg0: i32, %arg1: i32) -> (i32, i32) {
    %c0_i32 = arith.constant 0 : i32
    %c0_i32_0 = arith.constant 0 : i32
    return %c0_i32, %arg1 : i32, i32
  }
  func.func @transform_1(%arg0: i32, %arg1: i32) -> (i32, i32) {
    %c0_i32 = arith.constant 0 : i32
    return %arg1, %arg0 : i32, i32
  }
  func.func @transform_2(%arg0: i32, %arg1: i32) -> (i32, i32) {
    %c0_i32 = arith.constant 0 : i32
    %c0_i32_0 = arith.constant 0 : i32
    return %c0_i32, %arg0 : i32, i32
  }
  func.func @transform_3(%arg0: i32, %arg1: i32) -> (i32, i32) {
    %c0_i32 = arith.constant 0 : i32
    %c0_i32_0 = arith.constant 0 : i32
    return %c0_i32, %arg0 : i32, i32
  }
  func.func @transform_4(%arg0: i32, %arg1: i32) -> (i32, i32) {
    %c0_i32 = arith.constant 0 : i32
    %c0_i32_0 = arith.constant 0 : i32
    return %c0_i32, %arg0 : i32, i32
  }
}

module attributes {stable_mosaic.version = 11 : i64} {
  func.func @_fused_matmul_kernel(%arg0: i32, %arg1: i32, %arg2: memref<16x256xbf16, #tpu.memory_space<vmem>>, %arg3: memref<256x512xbf16, #tpu.memory_space<vmem>>, %arg4: memref<1x512xf32, #tpu.memory_space<vmem>>, %arg5: memref<1x512xf32, #tpu.memory_space<vmem>>, %arg6: memref<16x512xf32, #tpu.memory_space<vmem>>, %arg7: memref<16x512xf32, #tpu.memory_space<vmem>>) attributes {dimension_semantics = [#tpu.dimension_semantics<parallel>, #tpu.dimension_semantics<arbitrary>], iteration_bounds = array<i64: 1, 18>, scalar_prefetch = 0 : i64, scratch_operands = 0 : i64, tpu.core_type = #tpu.core_type<tc>, window_params = [{transform_indices = @transform_0, window_bounds = array<i64: 16, 256>}, {transform_indices = @transform_1, window_bounds = array<i64: 256, 512>}, {transform_indices = @transform_2, window_bounds = array<i64: 1, 512>}, {transform_indices = @transform_3, window_bounds = array<i64: 1, 512>}, {transform_indices = @transform_4, window_bounds = array<i64: 16, 512>}, {transform_indices = @transform_5, window_bounds = array<i64: 16, 512>}]} {
    %c0_i32 = arith.constant 0 : i32
    %0 = arith.cmpi eq, %arg1, %c0_i32 : i32
    %1 = arith.extui %0 : i1 to i32
    %c0_i32_0 = arith.constant 0 : i32
    %2 = arith.cmpi ne, %1, %c0_i32_0 : i32
    scf.if %2 {
      %cst_9 = arith.constant 0.000000e+00 : f32
      %12 = vector.broadcast %cst_9 : f32 to vector<16x512xf32>
      %c0_10 = arith.constant 0 : index
      %c0_11 = arith.constant 0 : index
      %13 = vector.load %arg7[%c0_10, %c0_11] : memref<16x512xf32, #tpu.memory_space<vmem>>, vector<16x512xf32>
      tpu.vector_store %arg7[%c0_10, %c0_11], %12 {strides = array<i32>} : memref<16x512xf32, #tpu.memory_space<vmem>>, vector<16x512xf32>,
    } else {
    }
    %c0 = arith.constant 0 : index
    %c0_1 = arith.constant 0 : index
    %3 = vector.load %arg7[%c0, %c0_1] : memref<16x512xf32, #tpu.memory_space<vmem>>, vector<16x512xf32>
    %c0_2 = arith.constant 0 : index
    %c0_3 = arith.constant 0 : index
    %4 = vector.load %arg2[%c0_2, %c0_3] : memref<16x256xbf16, #tpu.memory_space<vmem>>, vector<16x256xbf16>
    %c0_4 = arith.constant 0 : index
    %c0_5 = arith.constant 0 : index
    %5 = vector.load %arg3[%c0_4, %c0_5] : memref<256x512xbf16, #tpu.memory_space<vmem>>, vector<256x512xbf16>
    %cst = arith.constant dense<0.000000e+00> : vector<16x512xf32>
    %6 = tpu.matmul %4, %5, %cst {dimension_numbers = #tpu.dot_dimension_numbers<[1], [0], [0], [1], [0, 0, 1, 1], [], []>} : vector<16x256xbf16>, vector<256x512xbf16>, vector<16x512xf32> -> vector<16x512xf32>
    %7 = arith.addf %3, %6 : vector<16x512xf32>
    %c0_6 = arith.constant 0 : index
    %c0_7 = arith.constant 0 : index
    %8 = vector.load %arg7[%c0_6, %c0_7] : memref<16x512xf32, #tpu.memory_space<vmem>>, vector<16x512xf32>
    tpu.vector_store %arg7[%c0_6, %c0_7], %7 {strides = array<i32>} : memref<16x512xf32, #tpu.memory_space<vmem>>, vector<16x512xf32>,
    %c17_i32 = arith.constant 17 : i32
    %9 = arith.cmpi eq, %arg1, %c17_i32 : i32
    %10 = arith.extui %9 : i1 to i32
    %c0_i32_8 = arith.constant 0 : i32
    %11 = arith.cmpi ne, %10, %c0_i32_8 : i32
    scf.if %11 {
      %c0_9 = arith.constant 0 : index
      %c0_10 = arith.constant 0 : index
      %12 = vector.load %arg7[%c0_9, %c0_10] : memref<16x512xf32, #tpu.memory_space<vmem>>, vector<16x512xf32>
      %13 = tpu.iota {dimensions = array<i32: 0>} : vector<16x1xi32>
      %c2_i32 = arith.constant 2 : i32
      %14 = vector.broadcast %c2_i32 : i32 to vector<16x1xi32>
      %15 = arith.cmpi slt, %13, %14 : vector<16x1xi32>
      %16 = arith.extui %15 : vector<16x1xi1> to vector<16x1xi32>
      %17 = arith.sitofp %16 : vector<16x1xi32> to vector<16x1xf32>
      %18 = vector.broadcast %17 : vector<16x1xf32> to vector<16x512xf32>
      %19 = arith.mulf %12, %18 : vector<16x512xf32>
      %cst_11 = arith.constant dense<0.000000e+00> : vector<512xf32>
      %20 = vector.multi_reduction <add>, %19, %cst_11 [0] : vector<16x512xf32> to vector<512xf32>
      %21 = vector.shape_cast %20 : vector<512xf32> to vector<1x512xf32>
      %cst_12 = arith.constant 5.000000e-01 : f32
      %22 = vector.broadcast %cst_12 : f32 to vector<1x512xf32>
      %23 = arith.mulf %21, %22 : vector<1x512xf32>
      %24 = vector.broadcast %23 : vector<1x512xf32> to vector<16x512xf32>
      %25 = arith.subf %12, %24 : vector<16x512xf32>
      %26 = vector.broadcast %17 : vector<16x1xf32> to vector<16x512xf32>
      %27 = arith.mulf %25, %26 : vector<16x512xf32>
      %28 = arith.mulf %27, %27 : vector<16x512xf32>
      %cst_13 = arith.constant dense<0.000000e+00> : vector<512xf32>
      %29 = vector.multi_reduction <add>, %28, %cst_13 [0] : vector<16x512xf32> to vector<512xf32>
      %30 = vector.shape_cast %29 : vector<512xf32> to vector<1x512xf32>
      %cst_14 = arith.constant 5.000000e-01 : f32
      %31 = vector.broadcast %cst_14 : f32 to vector<1x512xf32>
      %32 = arith.mulf %30, %31 : vector<1x512xf32>
      %33 = vector.broadcast %23 : vector<1x512xf32> to vector<16x512xf32>
      %34 = arith.subf %12, %33 : vector<16x512xf32>
      %c0_15 = arith.constant 0 : index
      %c0_16 = arith.constant 0 : index
      %35 = vector.load %arg4[%c0_15, %c0_16] : memref<1x512xf32, #tpu.memory_space<vmem>>, vector<1x512xf32>
      %cst_17 = arith.constant 9.99999974E-6 : f32
      %36 = vector.broadcast %cst_17 : f32 to vector<1x512xf32>
      %37 = arith.addf %32, %36 : vector<1x512xf32>
      %38 = math.rsqrt %37 : vector<1x512xf32>
      %39 = arith.mulf %35, %38 : vector<1x512xf32>
      %40 = vector.broadcast %39 : vector<1x512xf32> to vector<16x512xf32>
      %41 = arith.mulf %34, %40 : vector<16x512xf32>
      %c0_18 = arith.constant 0 : index
      %c0_19 = arith.constant 0 : index
      %42 = vector.load %arg5[%c0_18, %c0_19] : memref<1x512xf32, #tpu.memory_space<vmem>>, vector<1x512xf32>
      %43 = vector.broadcast %42 : vector<1x512xf32> to vector<16x512xf32>
      %44 = arith.addf %41, %43 : vector<16x512xf32>
      %c0_20 = arith.constant 0 : index
      %c0_21 = arith.constant 0 : index
      %45 = vector.load %arg6[%c0_20, %c0_21] : memref<16x512xf32, #tpu.memory_space<vmem>>, vector<16x512xf32>
      %46 = arith.addf %44, %45 : vector<16x512xf32>
      %cst_22 = arith.constant 0.000000e+00 : f32
      %47 = vector.broadcast %cst_22 : f32 to vector<16x512xf32>
      %48 = arith.maximumf %46, %47 : vector<16x512xf32>
      %c0_23 = arith.constant 0 : index
      %c0_24 = arith.constant 0 : index
      %49 = vector.load %arg7[%c0_23, %c0_24] : memref<16x512xf32, #tpu.memory_space<vmem>>, vector<16x512xf32>
      tpu.vector_store %arg7[%c0_23, %c0_24], %48 {strides = array<i32>} : memref<16x512xf32, #tpu.memory_space<vmem>>, vector<16x512xf32>,
    } else {
    }
    return
  }
  func.func @transform_0(%arg0: i32, %arg1: i32) -> (i32, i32) {
    %c0_i32 = arith.constant 0 : i32
    %c0_i32_0 = arith.constant 0 : i32
    return %c0_i32, %arg1 : i32, i32
  }
  func.func @transform_1(%arg0: i32, %arg1: i32) -> (i32, i32) {
    %c0_i32 = arith.constant 0 : i32
    return %arg1, %arg0 : i32, i32
  }
  func.func @transform_2(%arg0: i32, %arg1: i32) -> (i32, i32) {
    %c0_i32 = arith.constant 0 : i32
    %c0_i32_0 = arith.constant 0 : i32
    return %c0_i32, %arg0 : i32, i32
  }
  func.func @transform_3(%arg0: i32, %arg1: i32) -> (i32, i32) {
    %c0_i32 = arith.constant 0 : i32
    %c0_i32_0 = arith.constant 0 : i32
    return %c0_i32, %arg0 : i32, i32
  }
  func.func @transform_4(%arg0: i32, %arg1: i32) -> (i32, i32) {
    %c0_i32 = arith.constant 0 : i32
    %c0_i32_0 = arith.constant 0 : i32
    return %c0_i32, %arg0 : i32, i32
  }
  func.func @transform_5(%arg0: i32, %arg1: i32) -> (i32, i32) {
    %c0_i32 = arith.constant 0 : i32
    %c0_i32_0 = arith.constant 0 : i32
    return %c0_i32, %arg0 : i32, i32
  }
}

module attributes {stable_mosaic.version = 11 : i64} {
  func.func @_fused_matmul_kernel(%arg0: i32, %arg1: i32, %arg2: memref<16x256xbf16, #tpu.memory_space<vmem>>, %arg3: memref<256x512xbf16, #tpu.memory_space<vmem>>, %arg4: memref<1x512xf32, #tpu.memory_space<vmem>>, %arg5: memref<1x512xf32, #tpu.memory_space<vmem>>, %arg6: memref<16x512xf32, #tpu.memory_space<vmem>>) attributes {dimension_semantics = [#tpu.dimension_semantics<parallel>, #tpu.dimension_semantics<arbitrary>], iteration_bounds = array<i64: 1, 18>, scalar_prefetch = 0 : i64, scratch_operands = 0 : i64, tpu.core_type = #tpu.core_type<tc>, window_params = [{transform_indices = @transform_0, window_bounds = array<i64: 16, 256>}, {transform_indices = @transform_1, window_bounds = array<i64: 256, 512>}, {transform_indices = @transform_2, window_bounds = array<i64: 1, 512>}, {transform_indices = @transform_3, window_bounds = array<i64: 1, 512>}, {transform_indices = @transform_4, window_bounds = array<i64: 16, 512>}]} {
    %c0_i32 = arith.constant 0 : i32
    %0 = arith.cmpi eq, %arg1, %c0_i32 : i32
    %1 = arith.extui %0 : i1 to i32
    %c0_i32_0 = arith.constant 0 : i32
    %2 = arith.cmpi ne, %1, %c0_i32_0 : i32
    scf.if %2 {
      %cst_9 = arith.constant 0.000000e+00 : f32
      %12 = vector.broadcast %cst_9 : f32 to vector<16x512xf32>
      %c0_10 = arith.constant 0 : index
      %c0_11 = arith.constant 0 : index
      %13 = vector.load %arg6[%c0_10, %c0_11] : memref<16x512xf32, #tpu.memory_space<vmem>>, vector<16x512xf32>
      tpu.vector_store %arg6[%c0_10, %c0_11], %12 {strides = array<i32>} : memref<16x512xf32, #tpu.memory_space<vmem>>, vector<16x512xf32>,
    } else {
    }
    %c0 = arith.constant 0 : index
    %c0_1 = arith.constant 0 : index
    %3 = vector.load %arg6[%c0, %c0_1] : memref<16x512xf32, #tpu.memory_space<vmem>>, vector<16x512xf32>
    %c0_2 = arith.constant 0 : index
    %c0_3 = arith.constant 0 : index
    %4 = vector.load %arg2[%c0_2, %c0_3] : memref<16x256xbf16, #tpu.memory_space<vmem>>, vector<16x256xbf16>
    %c0_4 = arith.constant 0 : index
    %c0_5 = arith.constant 0 : index
    %5 = vector.load %arg3[%c0_4, %c0_5] : memref<256x512xbf16, #tpu.memory_space<vmem>>, vector<256x512xbf16>
    %cst = arith.constant dense<0.000000e+00> : vector<16x512xf32>
    %6 = tpu.matmul %4, %5, %cst {dimension_numbers = #tpu.dot_dimension_numbers<[1], [0], [0], [1], [0, 0, 1, 1], [], []>} : vector<16x256xbf16>, vector<256x512xbf16>, vector<16x512xf32> -> vector<16x512xf32>
    %7 = arith.addf %3, %6 : vector<16x512xf32>
    %c0_6 = arith.constant 0 : index
    %c0_7 = arith.constant 0 : index
    %8 = vector.load %arg6[%c0_6, %c0_7] : memref<16x512xf32, #tpu.memory_space<vmem>>, vector<16x512xf32>
    tpu.vector_store %arg6[%c0_6, %c0_7], %7 {strides = array<i32>} : memref<16x512xf32, #tpu.memory_space<vmem>>, vector<16x512xf32>,
    %c17_i32 = arith.constant 17 : i32
    %9 = arith.cmpi eq, %arg1, %c17_i32 : i32
    %10 = arith.extui %9 : i1 to i32
    %c0_i32_8 = arith.constant 0 : i32
    %11 = arith.cmpi ne, %10, %c0_i32_8 : i32
    scf.if %11 {
      %c0_9 = arith.constant 0 : index
      %c0_10 = arith.constant 0 : index
      %12 = vector.load %arg6[%c0_9, %c0_10] : memref<16x512xf32, #tpu.memory_space<vmem>>, vector<16x512xf32>
      %13 = tpu.iota {dimensions = array<i32: 0>} : vector<16x1xi32>
      %c2_i32 = arith.constant 2 : i32
      %14 = vector.broadcast %c2_i32 : i32 to vector<16x1xi32>
      %15 = arith.cmpi slt, %13, %14 : vector<16x1xi32>
      %16 = arith.extui %15 : vector<16x1xi1> to vector<16x1xi32>
      %17 = arith.sitofp %16 : vector<16x1xi32> to vector<16x1xf32>
      %18 = vector.broadcast %17 : vector<16x1xf32> to vector<16x512xf32>
      %19 = arith.mulf %12, %18 : vector<16x512xf32>
      %cst_11 = arith.constant dense<0.000000e+00> : vector<512xf32>
      %20 = vector.multi_reduction <add>, %19, %cst_11 [0] : vector<16x512xf32> to vector<512xf32>
      %21 = vector.shape_cast %20 : vector<512xf32> to vector<1x512xf32>
      %cst_12 = arith.constant 5.000000e-01 : f32
      %22 = vector.broadcast %cst_12 : f32 to vector<1x512xf32>
      %23 = arith.mulf %21, %22 : vector<1x512xf32>
      %24 = vector.broadcast %23 : vector<1x512xf32> to vector<16x512xf32>
      %25 = arith.subf %12, %24 : vector<16x512xf32>
      %26 = vector.broadcast %17 : vector<16x1xf32> to vector<16x512xf32>
      %27 = arith.mulf %25, %26 : vector<16x512xf32>
      %28 = arith.mulf %27, %27 : vector<16x512xf32>
      %cst_13 = arith.constant dense<0.000000e+00> : vector<512xf32>
      %29 = vector.multi_reduction <add>, %28, %cst_13 [0] : vector<16x512xf32> to vector<512xf32>
      %30 = vector.shape_cast %29 : vector<512xf32> to vector<1x512xf32>
      %cst_14 = arith.constant 5.000000e-01 : f32
      %31 = vector.broadcast %cst_14 : f32 to vector<1x512xf32>
      %32 = arith.mulf %30, %31 : vector<1x512xf32>
      %33 = vector.broadcast %23 : vector<1x512xf32> to vector<16x512xf32>
      %34 = arith.subf %12, %33 : vector<16x512xf32>
      %c0_15 = arith.constant 0 : index
      %c0_16 = arith.constant 0 : index
      %35 = vector.load %arg4[%c0_15, %c0_16] : memref<1x512xf32, #tpu.memory_space<vmem>>, vector<1x512xf32>
      %cst_17 = arith.constant 9.99999974E-6 : f32
      %36 = vector.broadcast %cst_17 : f32 to vector<1x512xf32>
      %37 = arith.addf %32, %36 : vector<1x512xf32>
      %38 = math.rsqrt %37 : vector<1x512xf32>
      %39 = arith.mulf %35, %38 : vector<1x512xf32>
      %40 = vector.broadcast %39 : vector<1x512xf32> to vector<16x512xf32>
      %41 = arith.mulf %34, %40 : vector<16x512xf32>
      %c0_18 = arith.constant 0 : index
      %c0_19 = arith.constant 0 : index
      %42 = vector.load %arg5[%c0_18, %c0_19] : memref<1x512xf32, #tpu.memory_space<vmem>>, vector<1x512xf32>
      %43 = vector.broadcast %42 : vector<1x512xf32> to vector<16x512xf32>
      %44 = arith.addf %41, %43 : vector<16x512xf32>
      %cst_20 = arith.constant 0.000000e+00 : f32
      %45 = vector.broadcast %cst_20 : f32 to vector<16x512xf32>
      %46 = arith.maximumf %44, %45 : vector<16x512xf32>
      %c0_21 = arith.constant 0 : index
      %c0_22 = arith.constant 0 : index
      %47 = vector.load %arg6[%c0_21, %c0_22] : memref<16x512xf32, #tpu.memory_space<vmem>>, vector<16x512xf32>
      tpu.vector_store %arg6[%c0_21, %c0_22], %46 {strides = array<i32>} : memref<16x512xf32, #tpu.memory_space<vmem>>, vector<16x512xf32>,
    } else {
    }
    return
  }
  func.func @transform_0(%arg0: i32, %arg1: i32) -> (i32, i32) {
    %c0_i32 = arith.constant 0 : i32
    %c0_i32_0 = arith.constant 0 : i32
    return %c0_i32, %arg1 : i32, i32
  }
  func.func @transform_1(%arg0: i32, %arg1: i32) -> (i32, i32) {
    %c0_i32 = arith.constant 0 : i32
    return %arg1, %arg0 : i32, i32
  }
  func.func @transform_2(%arg0: i32, %arg1: i32) -> (i32, i32) {
    %c0_i32 = arith.constant 0 : i32
    %c0_i32_0 = arith.constant 0 : i32
    return %c0_i32, %arg0 : i32, i32
  }
  func.func @transform_3(%arg0: i32, %arg1: i32) -> (i32, i32) {
    %c0_i32 = arith.constant 0 : i32
    %c0_i32_0 = arith.constant 0 : i32
    return %c0_i32, %arg0 : i32, i32
  }
  func.func @transform_4(%arg0: i32, %arg1: i32) -> (i32, i32) {
    %c0_i32 = arith.constant 0 : i32
    %c0_i32_0 = arith.constant 0 : i32
    return %c0_i32, %arg0 : i32, i32
  }
}

module attributes {stable_mosaic.version = 11 : i64} {
  func.func @_fused_matmul_kernel(%arg0: i32, %arg1: i32, %arg2: memref<16x256xbf16, #tpu.memory_space<vmem>>, %arg3: memref<256x512xbf16, #tpu.memory_space<vmem>>, %arg4: memref<1x512xf32, #tpu.memory_space<vmem>>, %arg5: memref<1x512xf32, #tpu.memory_space<vmem>>, %arg6: memref<1x512xf32, #tpu.memory_space<vmem>>, %arg7: memref<16x512xf32, #tpu.memory_space<vmem>>) attributes {dimension_semantics = [#tpu.dimension_semantics<parallel>, #tpu.dimension_semantics<arbitrary>], iteration_bounds = array<i64: 4, 2>, scalar_prefetch = 0 : i64, scratch_operands = 0 : i64, tpu.core_type = #tpu.core_type<tc>, window_params = [{transform_indices = @transform_0, window_bounds = array<i64: 16, 256>}, {transform_indices = @transform_1, window_bounds = array<i64: 256, 512>}, {transform_indices = @transform_2, window_bounds = array<i64: 1, 512>}, {transform_indices = @transform_3, window_bounds = array<i64: 1, 512>}, {transform_indices = @transform_4, window_bounds = array<i64: 1, 512>}, {transform_indices = @transform_5, window_bounds = array<i64: 16, 512>}]} {
    %c0_i32 = arith.constant 0 : i32
    %0 = arith.cmpi eq, %arg1, %c0_i32 : i32
    %1 = arith.extui %0 : i1 to i32
    %c0_i32_0 = arith.constant 0 : i32
    %2 = arith.cmpi ne, %1, %c0_i32_0 : i32
    scf.if %2 {
      %cst_9 = arith.constant 0.000000e+00 : f32
      %12 = vector.broadcast %cst_9 : f32 to vector<16x512xf32>
      %c0_10 = arith.constant 0 : index
      %c0_11 = arith.constant 0 : index
      %13 = vector.load %arg7[%c0_10, %c0_11] : memref<16x512xf32, #tpu.memory_space<vmem>>, vector<16x512xf32>
      tpu.vector_store %arg7[%c0_10, %c0_11], %12 {strides = array<i32>} : memref<16x512xf32, #tpu.memory_space<vmem>>, vector<16x512xf32>,
    } else {
    }
    %c0 = arith.constant 0 : index
    %c0_1 = arith.constant 0 : index
    %3 = vector.load %arg7[%c0, %c0_1] : memref<16x512xf32, #tpu.memory_space<vmem>>, vector<16x512xf32>
    %c0_2 = arith.constant 0 : index
    %c0_3 = arith.constant 0 : index
    %4 = vector.load %arg2[%c0_2, %c0_3] : memref<16x256xbf16, #tpu.memory_space<vmem>>, vector<16x256xbf16>
    %c0_4 = arith.constant 0 : index
    %c0_5 = arith.constant 0 : index
    %5 = vector.load %arg3[%c0_4, %c0_5] : memref<256x512xbf16, #tpu.memory_space<vmem>>, vector<256x512xbf16>
    %cst = arith.constant dense<0.000000e+00> : vector<16x512xf32>
    %6 = tpu.matmul %4, %5, %cst {dimension_numbers = #tpu.dot_dimension_numbers<[1], [0], [0], [1], [0, 0, 1, 1], [], []>} : vector<16x256xbf16>, vector<256x512xbf16>, vector<16x512xf32> -> vector<16x512xf32>
    %7 = arith.addf %3, %6 : vector<16x512xf32>
    %c0_6 = arith.constant 0 : index
    %c0_7 = arith.constant 0 : index
    %8 = vector.load %arg7[%c0_6, %c0_7] : memref<16x512xf32, #tpu.memory_space<vmem>>, vector<16x512xf32>
    tpu.vector_store %arg7[%c0_6, %c0_7], %7 {strides = array<i32>} : memref<16x512xf32, #tpu.memory_space<vmem>>, vector<16x512xf32>,
    %c1_i32 = arith.constant 1 : i32
    %9 = arith.cmpi eq, %arg1, %c1_i32 : i32
    %10 = arith.extui %9 : i1 to i32
    %c0_i32_8 = arith.constant 0 : i32
    %11 = arith.cmpi ne, %10, %c0_i32_8 : i32
    scf.if %11 {
      %c0_9 = arith.constant 0 : index
      %c0_10 = arith.constant 0 : index
      %12 = vector.load %arg7[%c0_9, %c0_10] : memref<16x512xf32, #tpu.memory_space<vmem>>, vector<16x512xf32>
      %c0_11 = arith.constant 0 : index
      %c0_12 = arith.constant 0 : index
      %13 = vector.load %arg4[%c0_11, %c0_12] : memref<1x512xf32, #tpu.memory_space<vmem>>, vector<1x512xf32>
      %14 = vector.broadcast %13 : vector<1x512xf32> to vector<16x512xf32>
      %15 = arith.addf %12, %14 : vector<16x512xf32>
      %16 = tpu.iota {dimensions = array<i32: 0>} : vector<16x1xi32>
      %c2_i32 = arith.constant 2 : i32
      %17 = vector.broadcast %c2_i32 : i32 to vector<16x1xi32>
      %18 = arith.cmpi slt, %16, %17 : vector<16x1xi32>
      %19 = arith.extui %18 : vector<16x1xi1> to vector<16x1xi32>
      %20 = arith.sitofp %19 : vector<16x1xi32> to vector<16x1xf32>
      %21 = vector.broadcast %20 : vector<16x1xf32> to vector<16x512xf32>
      %22 = arith.mulf %15, %21 : vector<16x512xf32>
      %cst_13 = arith.constant dense<0.000000e+00> : vector<512xf32>
      %23 = vector.multi_reduction <add>, %22, %cst_13 [0] : vector<16x512xf32> to vector<512xf32>
      %24 = vector.shape_cast %23 : vector<512xf32> to vector<1x512xf32>
      %cst_14 = arith.constant 5.000000e-01 : f32
      %25 = vector.broadcast %cst_14 : f32 to vector<1x512xf32>
      %26 = arith.mulf %24, %25 : vector<1x512xf32>
      %27 = vector.broadcast %26 : vector<1x512xf32> to vector<16x512xf32>
      %28 = arith.subf %15, %27 : vector<16x512xf32>
      %29 = vector.broadcast %20 : vector<16x1xf32> to vector<16x512xf32>
      %30 = arith.mulf %28, %29 : vector<16x512xf32>
      %31 = arith.mulf %30, %30 : vector<16x512xf32>
      %cst_15 = arith.constant dense<0.000000e+00> : vector<512xf32>
      %32 = vector.multi_reduction <add>, %31, %cst_15 [0] : vector<16x512xf32> to vector<512xf32>
      %33 = vector.shape_cast %32 : vector<512xf32> to vector<1x512xf32>
      %cst_16 = arith.constant 5.000000e-01 : f32
      %34 = vector.broadcast %cst_16 : f32 to vector<1x512xf32>
      %35 = arith.mulf %33, %34 : vector<1x512xf32>
      %36 = vector.broadcast %26 : vector<1x512xf32> to vector<16x512xf32>
      %37 = arith.subf %15, %36 : vector<16x512xf32>
      %c0_17 = arith.constant 0 : index
      %c0_18 = arith.constant 0 : index
      %38 = vector.load %arg5[%c0_17, %c0_18] : memref<1x512xf32, #tpu.memory_space<vmem>>, vector<1x512xf32>
      %cst_19 = arith.constant 9.99999974E-6 : f32
      %39 = vector.broadcast %cst_19 : f32 to vector<1x512xf32>
      %40 = arith.addf %35, %39 : vector<1x512xf32>
      %41 = math.rsqrt %40 : vector<1x512xf32>
      %42 = arith.mulf %38, %41 : vector<1x512xf32>
      %43 = vector.broadcast %42 : vector<1x512xf32> to vector<16x512xf32>
      %44 = arith.mulf %37, %43 : vector<16x512xf32>
      %c0_20 = arith.constant 0 : index
      %c0_21 = arith.constant 0 : index
      %45 = vector.load %arg6[%c0_20, %c0_21] : memref<1x512xf32, #tpu.memory_space<vmem>>, vector<1x512xf32>
      %46 = vector.broadcast %45 : vector<1x512xf32> to vector<16x512xf32>
      %47 = arith.addf %44, %46 : vector<16x512xf32>
      %cst_22 = arith.constant 0.000000e+00 : f32
      %48 = vector.broadcast %cst_22 : f32 to vector<16x512xf32>
      %49 = arith.maximumf %47, %48 : vector<16x512xf32>
      %c0_23 = arith.constant 0 : index
      %c0_24 = arith.constant 0 : index
      %50 = vector.load %arg7[%c0_23, %c0_24] : memref<16x512xf32, #tpu.memory_space<vmem>>, vector<16x512xf32>
      tpu.vector_store %arg7[%c0_23, %c0_24], %49 {strides = array<i32>} : memref<16x512xf32, #tpu.memory_space<vmem>>, vector<16x512xf32>,
    } else {
    }
    return
  }
  func.func @transform_0(%arg0: i32, %arg1: i32) -> (i32, i32) {
    %c0_i32 = arith.constant 0 : i32
    %c0_i32_0 = arith.constant 0 : i32
    return %c0_i32, %arg1 : i32, i32
  }
  func.func @transform_1(%arg0: i32, %arg1: i32) -> (i32, i32) {
    %c0_i32 = arith.constant 0 : i32
    return %arg1, %arg0 : i32, i32
  }
  func.func @transform_2(%arg0: i32, %arg1: i32) -> (i32, i32) {
    %c0_i32 = arith.constant 0 : i32
    %c0_i32_0 = arith.constant 0 : i32
    return %c0_i32, %arg0 : i32, i32
  }
  func.func @transform_3(%arg0: i32, %arg1: i32) -> (i32, i32) {
    %c0_i32 = arith.constant 0 : i32
    %c0_i32_0 = arith.constant 0 : i32
    return %c0_i32, %arg0 : i32, i32
  }
  func.func @transform_4(%arg0: i32, %arg1: i32) -> (i32, i32) {
    %c0_i32 = arith.constant 0 : i32
    %c0_i32_0 = arith.constant 0 : i32
    return %c0_i32, %arg0 : i32, i32
  }
  func.func @transform_5(%arg0: i32, %arg1: i32) -> (i32, i32) {
    %c0_i32 = arith.constant 0 : i32
    %c0_i32_0 = arith.constant 0 : i32
    return %c0_i32, %arg0 : i32, i32
  }
}

module attributes {stable_mosaic.version = 11 : i64} {
  func.func @_fused_matmul_kernel(%arg0: i32, %arg1: i32, %arg2: memref<16x256xbf16, #tpu.memory_space<vmem>>, %arg3: memref<256x512xbf16, #tpu.memory_space<vmem>>, %arg4: memref<1x512xf32, #tpu.memory_space<vmem>>, %arg5: memref<16x512xf32, #tpu.memory_space<vmem>>) attributes {dimension_semantics = [#tpu.dimension_semantics<parallel>, #tpu.dimension_semantics<arbitrary>], iteration_bounds = array<i64: 1, 8>, scalar_prefetch = 0 : i64, scratch_operands = 0 : i64, tpu.core_type = #tpu.core_type<tc>, window_params = [{transform_indices = @transform_0, window_bounds = array<i64: 16, 256>}, {transform_indices = @transform_1, window_bounds = array<i64: 256, 512>}, {transform_indices = @transform_2, window_bounds = array<i64: 1, 512>}, {transform_indices = @transform_3, window_bounds = array<i64: 16, 512>}]} {
    %c0_i32 = arith.constant 0 : i32
    %0 = arith.cmpi eq, %arg1, %c0_i32 : i32
    %1 = arith.extui %0 : i1 to i32
    %c0_i32_0 = arith.constant 0 : i32
    %2 = arith.cmpi ne, %1, %c0_i32_0 : i32
    scf.if %2 {
      %cst_9 = arith.constant 0.000000e+00 : f32
      %12 = vector.broadcast %cst_9 : f32 to vector<16x512xf32>
      %c0_10 = arith.constant 0 : index
      %c0_11 = arith.constant 0 : index
      %13 = vector.load %arg5[%c0_10, %c0_11] : memref<16x512xf32, #tpu.memory_space<vmem>>, vector<16x512xf32>
      tpu.vector_store %arg5[%c0_10, %c0_11], %12 {strides = array<i32>} : memref<16x512xf32, #tpu.memory_space<vmem>>, vector<16x512xf32>,
    } else {
    }
    %c0 = arith.constant 0 : index
    %c0_1 = arith.constant 0 : index
    %3 = vector.load %arg5[%c0, %c0_1] : memref<16x512xf32, #tpu.memory_space<vmem>>, vector<16x512xf32>
    %c0_2 = arith.constant 0 : index
    %c0_3 = arith.constant 0 : index
    %4 = vector.load %arg2[%c0_2, %c0_3] : memref<16x256xbf16, #tpu.memory_space<vmem>>, vector<16x256xbf16>
    %c0_4 = arith.constant 0 : index
    %c0_5 = arith.constant 0 : index
    %5 = vector.load %arg3[%c0_4, %c0_5] : memref<256x512xbf16, #tpu.memory_space<vmem>>, vector<256x512xbf16>
    %cst = arith.constant dense<0.000000e+00> : vector<16x512xf32>
    %6 = tpu.matmul %4, %5, %cst {dimension_numbers = #tpu.dot_dimension_numbers<[1], [0], [0], [1], [0, 0, 1, 1], [], []>} : vector<16x256xbf16>, vector<256x512xbf16>, vector<16x512xf32> -> vector<16x512xf32>
    %7 = arith.addf %3, %6 : vector<16x512xf32>
    %c0_6 = arith.constant 0 : index
    %c0_7 = arith.constant 0 : index
    %8 = vector.load %arg5[%c0_6, %c0_7] : memref<16x512xf32, #tpu.memory_space<vmem>>, vector<16x512xf32>
    tpu.vector_store %arg5[%c0_6, %c0_7], %7 {strides = array<i32>} : memref<16x512xf32, #tpu.memory_space<vmem>>, vector<16x512xf32>,
    %c7_i32 = arith.constant 7 : i32
    %9 = arith.cmpi eq, %arg1, %c7_i32 : i32
    %10 = arith.extui %9 : i1 to i32
    %c0_i32_8 = arith.constant 0 : i32
    %11 = arith.cmpi ne, %10, %c0_i32_8 : i32
    scf.if %11 {
      %c0_9 = arith.constant 0 : index
      %c0_10 = arith.constant 0 : index
      %12 = vector.load %arg5[%c0_9, %c0_10] : memref<16x512xf32, #tpu.memory_space<vmem>>, vector<16x512xf32>
      %c0_11 = arith.constant 0 : index
      %c0_12 = arith.constant 0 : index
      %13 = vector.load %arg4[%c0_11, %c0_12] : memref<1x512xf32, #tpu.memory_space<vmem>>, vector<1x512xf32>
      %14 = vector.broadcast %13 : vector<1x512xf32> to vector<16x512xf32>
      %15 = arith.addf %12, %14 : vector<16x512xf32>
      %c0_13 = arith.constant 0 : index
      %c0_14 = arith.constant 0 : index
      %16 = vector.load %arg5[%c0_13, %c0_14] : memref<16x512xf32, #tpu.memory_space<vmem>>, vector<16x512xf32>
      tpu.vector_store %arg5[%c0_13, %c0_14], %15 {strides = array<i32>} : memref<16x512xf32, #tpu.memory_space<vmem>>, vector<16x512xf32>,
    } else {
    }
    return
  }
  func.func @transform_0(%arg0: i32, %arg1: i32) -> (i32, i32) {
    %c0_i32 = arith.constant 0 : i32
    %c0_i32_0 = arith.constant 0 : i32
    return %c0_i32, %arg1 : i32, i32
  }
  func.func @transform_1(%arg0: i32, %arg1: i32) -> (i32, i32) {
    %c0_i32 = arith.constant 0 : i32
    return %arg1, %arg0 : i32, i32
  }
  func.func @transform_2(%arg0: i32, %arg1: i32) -> (i32, i32) {
    %c0_i32 = arith.constant 0 : i32
    %c0_i32_0 = arith.constant 0 : i32
    return %c0_i32, %arg0 : i32, i32
  }
  func.func @transform_3(%arg0: i32, %arg1: i32) -> (i32, i32) {
    %c0_i32 = arith.constant 0 : i32
    %c0_i32_0 = arith.constant 0 : i32
    return %c0_i32, %arg0 : i32, i32
  }
}

module attributes {stable_mosaic.version = 11 : i64} {
  func.func @_l2_normalize_kernel(%arg0: memref<2x512xf32, #tpu.memory_space<vmem>>, %arg1: memref<2x512xf32, #tpu.memory_space<vmem>>) attributes {dimension_semantics = [], scalar_prefetch = 0 : i64, scratch_operands = 0 : i64, tpu.core_type = #tpu.core_type<tc>} {
    %c0 = arith.constant 0 : index
    %c0_0 = arith.constant 0 : index
    %0 = vector.load %arg0[%c0, %c0_0] : memref<2x512xf32, #tpu.memory_space<vmem>>, vector<2x512xf32>
    %1 = arith.mulf %0, %0 : vector<2x512xf32>
    %cst = arith.constant dense<0.000000e+00> : vector<2xf32>
    %2 = vector.multi_reduction <add>, %1, %cst [1] : vector<2x512xf32> to vector<2xf32>
    %3 = vector.shape_cast %2 : vector<2xf32> to vector<2x1xf32>
    %4 = math.sqrt %3 : vector<2x1xf32>
    %cst_1 = arith.constant 9.99999996E-13 : f32
    %5 = vector.broadcast %cst_1 : f32 to vector<2x1xf32>
    %6 = arith.maximumf %4, %5 : vector<2x1xf32>
    %7 = vector.broadcast %6 : vector<2x1xf32> to vector<2x512xf32>
    %8 = arith.divf %0, %7 : vector<2x512xf32>
    %c0_2 = arith.constant 0 : index
    %c0_3 = arith.constant 0 : index
    %9 = vector.load %arg1[%c0_2, %c0_3] : memref<2x512xf32, #tpu.memory_space<vmem>>, vector<2x512xf32>
    tpu.vector_store %arg1[%c0_2, %c0_3], %8 {strides = array<i32>} : memref<2x512xf32, #tpu.memory_space<vmem>>, vector<2x512xf32>,
    return
  }
}

</mosaic_0001>

<bundles_post_ra>
// kernel: simsiam_forward.50
= control target key start
LH: loop header
LB: loop body
LE: loop exit
PB: predicated region body
PF: predicated region fallthrough
CT: control target
= control target key end

     0   :  { %vm22_vm0 = vcmask 523264   ;;  %v778_v32 = vmov 0.0   ;;  %s1301_s1 = inlined_call_operand.vmem [shape: bf16[256,64], index: 1, kind: input, shape index: {}]   ;;  %s1302_s0 = inlined_call_operand.vmem [shape: bf16[128,256], index: 0, kind: input, shape index: {}]   ;;  %s1303_s4 = inlined_call_operand.vmem [shape: f32[128,64], index: 4, kind: output, shape index: {}]   ;;  %s1304_s2 = inlined_call_operand.vmem [shape: f32[1,64], index: 2, kind: input, shape index: {}]   ;;  %s1305_s3 = inlined_call_operand.vmem [shape: f32[1,64], index: 3, kind: input, shape index: {}]  }
   0x1   :  { %v736_v0 = vld [vmem:[%s1301_s1 + $0x40] sm:$0xff]   ;;  %v738_v2 = vld [vmem:[%s1301_s1 + $0x48] sm:$0xff]   ;;  %v740_v4 = vld [vmem:[%s1301_s1 + $0x50] sm:$0xff]   ;;  %23 = vst.msk [vmem:[%s1303_s4] sm:$0xff] %vm22_vm0, %v778_v32 }
   0x2   :  { %v737_v1 = vld [vmem:[%s1301_s1] sm:$0xff]   ;;  %655 = vmatprep.subr.bf16.mxu0 %v736_v0  ;;  %719 = vmatprep.subr.bf16.mxu1 %v736_v0  ;;  %v739_v3 = vld [vmem:[%s1301_s1 + $0x8] sm:$0xff]   ;;  %v741_v5 = vld [vmem:[%s1301_s1 + $0x10] sm:$0xff]   ;;  %24 = vst.msk [vmem:[%s1303_s4 + $0x8] sm:$0xff] %vm22_vm0, %v778_v32 }
   0x3   :  { %656 = vmatpush3.bf16.msra.mxu0 %v737_v1  ;;  %727 = vmatpush3.bf16.msra.mxu1 %v737_v1  ;;  %v742_v6 = vld [vmem:[%s1301_s1 + $0x58] sm:$0xff]   ;;  %v744_v8 = vld [vmem:[%s1301_s1 + $0x60] sm:$0xff]   ;;  %v746_v10 = vld [vmem:[%s1301_s1 + $0x68] sm:$0xff]   ;;  %25 = vst.msk [vmem:[%s1303_s4 + $0x10] sm:$0xff] %vm22_vm0, %v778_v32 }
   0x4   :  { %657 = vmatprep.subr.bf16.mxu0 %v738_v2  ;;  %720 = vmatprep.subr.bf16.mxu1 %v738_v2  ;;  %v743_v7 = vld [vmem:[%s1301_s1 + $0x18] sm:$0xff]   ;;  %v745_v9 = vld [vmem:[%s1301_s1 + $0x20] sm:$0xff]   ;;  %v747_v12 = vld [vmem:[%s1301_s1 + $0x28] sm:$0xff]   ;;  %26 = vst.msk [vmem:[%s1303_s4 + $0x18] sm:$0xff] %vm22_vm0, %v778_v32 }
   0x5   :  { %v754_v11 = vld [vmem:[%s1302_s0 + $0x4] ss:$8 sps:$4 sm:$0xff]   ;;  %v748_v14 = vld [vmem:[%s1301_s1 + $0x70] sm:$0xff]   ;;  %v750_v16 = vld [vmem:[%s1301_s1 + $0x78] sm:$0xff]   ;;  %27 = vst.msk [vmem:[%s1303_s4 + $0x20] sm:$0xff] %vm22_vm0, %v778_v32 }
   0x6   :  { %v760_v13 = vld [vmem:[%s1302_s0 + $0x44] ss:$8 sps:$4 sm:$0xff]   ;;  %311 = vmatprep.mubr.bf16.mxu0 %v754_v11  ;;  %v749_v15 = vld [vmem:[%s1301_s1 + $0x30] sm:$0xff]   ;;  %v751_v17 = vld [vmem:[%s1301_s1 + $0x38] sm:$0xff]   ;;  %28 = vst.msk [vmem:[%s1303_s4 + $0x28] sm:$0xff] %vm22_vm0, %v778_v32 }
   0x7   :  { %658 = vmatpush3.bf16.msra.mxu0 %v739_v3  ;;  %728 = vmatpush3.bf16.msra.mxu1 %v739_v3  ;;  %v752_v18 = vld [vmem:[%s1302_s0] ss:$8 sps:$4 sm:$0xff]   ;;  %v755_v20 = vld [vmem:[%s1302_s0 + $0x14] ss:$8 sps:$4 sm:$0xff]   ;;  %v757_v22 = vld [vmem:[%s1302_s0 + $0x10] ss:$8 sps:$4 sm:$0xff]  }
   0x8   :  { %659 = vmatprep.subr.bf16.mxu0 %v740_v4  ;;  %721 = vmatprep.subr.bf16.mxu1 %v740_v4  ;;  %v758_v19 = vld [vmem:[%s1302_s0 + $0x40] ss:$8 sps:$4 sm:$0xff]   ;;  %v764_v21 = vld [vmem:[%s1302_s0 + $0x54] ss:$8 sps:$4 sm:$0xff]   ;;  %v766_v23 = vld [vmem:[%s1302_s0 + $0x50] ss:$8 sps:$4 sm:$0xff]  }
   0x9   :  { %343 = vmatprep.mubr.bf16.mxu1 %v760_v13  ;;  %v761_v24 = vld [vmem:[%s1302_s0 + $0x24] ss:$8 sps:$4 sm:$0xff]   ;;  %v763_v26 = vld [vmem:[%s1302_s0 + $0x20] ss:$8 sps:$4 sm:$0xff]   ;;  %v767_v28 = vld [vmem:[%s1302_s0 + $0x34] ss:$8 sps:$4 sm:$0xff]  }
   0xa   :  { %v770_v25 = vld [vmem:[%s1302_s0 + $0x64] ss:$8 sps:$4 sm:$0xff]   ;;  %v772_v27 = vld [vmem:[%s1302_s0 + $0x60] ss:$8 sps:$4 sm:$0xff]   ;;  %v773_v29 = vld [vmem:[%s1302_s0 + $0x74] ss:$8 sps:$4 sm:$0xff]  }
   0xb   :  { %660 = vmatpush3.bf16.msra.mxu0 %v741_v5  ;;  %729 = vmatpush3.bf16.msra.mxu1 %v741_v5  ;;  %v769_v30 = vld [vmem:[%s1302_s0 + $0x30] ss:$8 sps:$4 sm:$0xff]   ;;  %29 = vst.msk [vmem:[%s1303_s4 + $0x30] sm:$0xff] %vm22_vm0, %v778_v32  ;;  %30 = vst.msk [vmem:[%s1303_s4 + $0x38] sm:$0xff] %vm22_vm0, %v778_v32  ;;  %v39_v35 = vld [vmem:[%s1303_s4] sm:$0xff] }
   0xc   :  { %661 = vmatprep.subr.bf16.mxu0 %v742_v6  ;;  %722 = vmatprep.subr.bf16.mxu1 %v742_v6  ;;  %v775_v31 = vld [vmem:[%s1302_s0 + $0x70] ss:$8 sps:$4 sm:$0xff]   ;;  %31 = vst.msk [vmem:[%s1303_s4 + $0x40] sm:$0xff] %vm22_vm0, %v778_v32  ;;  %32 = vst.msk [vmem:[%s1303_s4 + $0x48] sm:$0xff] %vm22_vm0, %v778_v32  ;;  %v40_v43 = vld [vmem:[%s1303_s4 + $0x8] sm:$0xff] }
   0xd   :  { %33 = vst.msk [vmem:[%s1303_s4 + $0x50] sm:$0xff] %vm22_vm0, %v778_v32  ;;  %34 = vst.msk [vmem:[%s1303_s4 + $0x58] sm:$0xff] %vm22_vm0, %v778_v32  ;;  %v41_v55 = vld [vmem:[%s1303_s4 + $0x10] sm:$0xff]  ;;  %v42_v63 = vld [vmem:[%s1303_s4 + $0x18] sm:$0xff] }
   0xe   :  { %35 = vst.msk [vmem:[%s1303_s4 + $0x60] sm:$0xff] %vm22_vm0, %v778_v32  ;;  %36 = vst.msk [vmem:[%s1303_s4 + $0x68] sm:$0xff] %vm22_vm0, %v778_v32  ;;  %v43_v11 = vld [vmem:[%s1303_s4 + $0x20] sm:$0xff] }
   0xf   :  { %662 = vmatpush3.bf16.msra.mxu0 %v743_v7  ;;  %730 = vmatpush3.bf16.msra.mxu1 %v743_v7  ;;  %37 = vst.msk [vmem:[%s1303_s4 + $0x70] sm:$0xff] %vm22_vm0, %v778_v32  ;;  %38 = vst.msk [vmem:[%s1303_s4 + $0x78] sm:$0xff] %vm22_vm0, %v778_v32 }
  0x10   :  { %663 = vmatprep.subr.bf16.mxu0 %v744_v8  ;;  %723 = vmatprep.subr.bf16.mxu1 %v744_v8 }
  0x13   :  { %664 = vmatpush3.bf16.msra.mxu0 %v745_v9  ;;  %731 = vmatpush3.bf16.msra.mxu1 %v745_v9  ;;  %v47_v37 = vld [vmem:[%s1303_s4 + $0x40] sm:$0xff]  ;;  %v48_v45 = vld [vmem:[%s1303_s4 + $0x48] sm:$0xff] }
  0x14   :  { %665 = vmatprep.subr.bf16.mxu0 %v746_v10  ;;  %724 = vmatprep.subr.bf16.mxu1 %v746_v10  ;;  %v49_v57 = vld [vmem:[%s1303_s4 + $0x50] sm:$0xff]  ;;  %v50_v1 = vld [vmem:[%s1303_s4 + $0x58] sm:$0xff] }
  0x15   :  { %v51_v13 = vld [vmem:[%s1303_s4 + $0x60] sm:$0xff] }
  0x17   :  { %666 = vmatpush3.bf16.msra.mxu0 %v747_v12  ;;  %732 = vmatpush3.bf16.msra.mxu1 %v747_v12 }
  0x18   :  { %667 = vmatprep.subr.bf16.mxu0 %v748_v14  ;;  %725 = vmatprep.subr.bf16.mxu1 %v748_v14 }
  0x1b   :  { %668 = vmatpush3.bf16.msra.mxu0 %v749_v15  ;;  %733 = vmatpush3.bf16.msra.mxu1 %v749_v15 }
  0x1c   :  { %669 = vmatprep.subr.bf16.mxu0 %v750_v16  ;;  %726 = vmatprep.subr.bf16.mxu1 %v750_v16 }
  0x1f   :  { %670 = vmatpush3.bf16.msra.mxu0 %v751_v17  ;;  %734 = vmatpush3.bf16.msra.mxu1 %v751_v17 }
  0x22   :  { %312 = vmatmul.mubr.bf16.vlgmr.msra.gmra.mrb[0].mxu0 %v752_v18  ;;  %344 = vmatmul.mubr.bf16.vlgmr.msra.gmra.mrb[0].mxu1 %v758_v19 }
  0x23   :  { %319 = vmatprep.mubr.bf16.mxu0 %v755_v20  ;;  %351 = vmatprep.mubr.bf16.mxu1 %v764_v21  ;;  %v44_v20 = vld [vmem:[%s1303_s4 + $0x28] sm:$0xff] }
  0x2a   :  { %320 = vmatmul.mubr.bf16.gmra.mrb[4].mxu0 %v757_v22  ;;  %352 = vmatmul.mubr.bf16.gmra.mrb[4].mxu1 %v766_v23  ;;  %v52_v22 = vld [vmem:[%s1303_s4 + $0x68] sm:$0xff] }
  0x2b   :  { %327 = vmatprep.mubr.bf16.mxu0 %v761_v24  ;;  %359 = vmatprep.mubr.bf16.mxu1 %v770_v25 }
  0x32   :  { %328 = vmatmul.mubr.bf16.gmra.mrb[8].mxu0 %v763_v26  ;;  %360 = vmatmul.mubr.bf16.gmra.mrb[8].mxu1 %v772_v27 }
  0x33   :  { %335 = vmatprep.mubr.bf16.mxu0 %v767_v28  ;;  %367 = vmatprep.mubr.bf16.mxu1 %v773_v29 }
  0x3a   :  { %336 = vmatmul.mubr.bf16.gmra.mrb[12].mxu0 %v769_v30  ;;  %368 = vmatmul.mubr.bf16.gmra.mrb[12].mxu1 %v775_v31 }
  0xf5   :  { %v671_v33 = vpop.f32.mrb[0].mxu0  ;;  %v695_v34 = vpop.f32.mrb[0].mxu1 }
  0xf6   :  { %v672_v36 = vpop.f32.mrb[1].mxu0  ;;  %v696_v38 = vpop.f32.mrb[1].mxu1 }
  0xf7   :  { %v673_v39 = vadd.f32 %v672_v36, %v671_v33  ;;  %v674_v40 = vpop.f32.mrb[2].mxu0  ;;  %v697_v41 = vadd.f32 %v696_v38, %v695_v34  ;;  %v698_v42 = vpop.f32.mrb[2].mxu1 }
  0xf8   :  { %v675_v44 = vpop.f32.mrb[3].mxu0  ;;  %v699_v46 = vpop.f32.mrb[3].mxu1 }
  0xf9   :  { %v376_v47 = vadd.f32 %v673_v39, %v39_v35  ;;  %v676_v48 = vadd.f32 %v675_v44, %v674_v40  ;;  %v384_v49 = vadd.f32 %v697_v41, %v47_v37  ;;  %v700_v50 = vadd.f32 %v699_v46, %v698_v42  ;;  %v45_v39 = vld [vmem:[%s1303_s4 + $0x30] sm:$0xff] }
  0xfa   :  { %v53_v41 = vld [vmem:[%s1303_s4 + $0x70] sm:$0xff] }
  0xfb   :  { %393 = vst.msk [vmem:[%s1303_s4] sm:$0xff] %vm22_vm0, %v376_v47  ;;  %v377_v51 = vadd.f32 %v676_v48, %v40_v43  ;;  %401 = vst.msk [vmem:[%s1303_s4 + $0x40] sm:$0xff] %vm22_vm0, %v384_v49  ;;  %v385_v52 = vadd.f32 %v700_v50, %v48_v45  ;;  %v46_v49 = vld [vmem:[%s1303_s4 + $0x38] sm:$0xff] }
  0xfd   :  { %394 = vst.msk [vmem:[%s1303_s4 + $0x8] sm:$0xff] %vm22_vm0, %v377_v51  ;;  %v677_v53 = vpop.f32.mrb[4].mxu0  ;;  %402 = vst.msk [vmem:[%s1303_s4 + $0x48] sm:$0xff] %vm22_vm0, %v385_v52  ;;  %v701_v54 = vpop.f32.mrb[4].mxu1  ;;  %v54_v51 = vld [vmem:[%s1303_s4 + $0x78] sm:$0xff] }
  0xfe   :  { %v678_v56 = vpop.f32.mrb[5].mxu0  ;;  %v702_v58 = vpop.f32.mrb[5].mxu1 }
  0xff   :  { %v679_v59 = vadd.f32 %v678_v56, %v677_v53  ;;  %v680_v60 = vpop.f32.mrb[6].mxu0  ;;  %v703_v61 = vadd.f32 %v702_v58, %v701_v54  ;;  %v704_v62 = vpop.f32.mrb[6].mxu1 }
 0x100   :  { %v681_v0 = vpop.f32.mrb[7].mxu0  ;;  %v705_v2 = vpop.f32.mrb[7].mxu1 }
 0x101   :  { %v378_v3 = vadd.f32 %v679_v59, %v41_v55  ;;  %v682_v4 = vadd.f32 %v681_v0, %v680_v60  ;;  %v386_v5 = vadd.f32 %v703_v61, %v49_v57  ;;  %v706_v6 = vadd.f32 %v705_v2, %v704_v62 }
 0x102   :  { %v1040_v28 = vld [vmem:[%s1303_s4] sm:$0xff] }
 0x103   :  { %395 = vst.msk [vmem:[%s1303_s4 + $0x10] sm:$0xff] %vm22_vm0, %v378_v3  ;;  %v379_v7 = vadd.f32 %v682_v4, %v42_v63  ;;  %403 = vst.msk [vmem:[%s1303_s4 + $0x50] sm:$0xff] %vm22_vm0, %v386_v5  ;;  %v387_v8 = vadd.f32 %v706_v6, %v50_v1  ;;  %v428_v33 = vsel %vm22_vm0, %v1040_v28, 0.0  ;;  %v420_v4 = vld [vmem:[%s1303_s4 + $0x40] sm:$0xff] }
 0x104   :  { %v1029_v19 = vld [vmem:[%s1303_s4 + $0x8] sm:$0xff] }
 0x105   :  { %396 = vst.msk [vmem:[%s1303_s4 + $0x18] sm:$0xff] %vm22_vm0, %v379_v7  ;;  %v683_v9 = vpop.f32.mrb[8].mxu0  ;;  %404 = vst.msk [vmem:[%s1303_s4 + $0x58] sm:$0xff] %vm22_vm0, %v387_v8  ;;  %v707_v10 = vpop.f32.mrb[8].mxu1  ;;  %v429_v30 = vsel %vm22_vm0, %v1029_v19, 0.0  ;;  %v421_v8 = vld [vmem:[%s1303_s4 + $0x48] sm:$0xff] }
 0x106   :  { %v684_v12 = vpop.f32.mrb[9].mxu0  ;;  %v708_v14 = vpop.f32.mrb[9].mxu1  ;;  %v430_v38 = vadd.f32 %v429_v30, %v428_v33 }
 0x107   :  { %v685_v15 = vadd.f32 %v684_v12, %v683_v9  ;;  %v686_v16 = vpop.f32.mrb[10].mxu0  ;;  %v709_v17 = vadd.f32 %v708_v14, %v707_v10  ;;  %v710_v18 = vpop.f32.mrb[10].mxu1  ;;  %v443_v10 = vsel %vm22_vm0, %v420_v4, 0.0 }
 0x108   :  { %v687_v21 = vpop.f32.mrb[11].mxu0  ;;  %v711_v23 = vpop.f32.mrb[11].mxu1 }
 0x109   :  { %v380_v24 = vadd.f32 %v685_v15, %v43_v11  ;;  %v688_v25 = vadd.f32 %v687_v21, %v686_v16  ;;  %v388_v26 = vadd.f32 %v709_v17, %v51_v13  ;;  %v712_v27 = vadd.f32 %v711_v23, %v710_v18 }
 0x10a   :  { %v1045_v29 = vld [vmem:[%s1303_s4 + $0x10] sm:$0xff]  ;;  %v445_v13 = vsel %vm22_vm0, %v421_v8, 0.0 }
 0x10b   :  { %397 = vst.msk [vmem:[%s1303_s4 + $0x20] sm:$0xff] %vm22_vm0, %v380_v24  ;;  %v381_v31 = vadd.f32 %v688_v25, %v44_v20  ;;  %405 = vst.msk [vmem:[%s1303_s4 + $0x60] sm:$0xff] %vm22_vm0, %v388_v26  ;;  %v389_v32 = vadd.f32 %v712_v27, %v52_v22  ;;  %v431_v34 = vsel %vm22_vm0, %v1045_v29, 0.0  ;;  %v422_v11 = vld [vmem:[%s1303_s4 + $0x50] sm:$0xff] }
 0x10c   :  { %v1064_v35 = vld [vmem:[%s1303_s4 + $0x18] sm:$0xff]  ;;  %v432_v47 = vadd.f32 %v431_v34, %v430_v38  ;;  %v447_v16 = vsel %vm22_vm0, %v422_v11, 0.0 }
 0x10d   :  { %398 = vst.msk [vmem:[%s1303_s4 + $0x28] sm:$0xff] %vm22_vm0, %v381_v31  ;;  %v689_v36 = vpop.f32.mrb[12].mxu0  ;;  %406 = vst.msk [vmem:[%s1303_s4 + $0x68] sm:$0xff] %vm22_vm0, %v389_v32  ;;  %v713_v37 = vpop.f32.mrb[12].mxu1  ;;  %v433_v48 = vsel %vm22_vm0, %v1064_v35, 0.0  ;;  %v423_v14 = vld [vmem:[%s1303_s4 + $0x58] sm:$0xff] }
 0x10e   :  { %v690_v40 = vpop.f32.mrb[13].mxu0  ;;  %v714_v42 = vpop.f32.mrb[13].mxu1  ;;  %v434_v61 = vadd.f32 %v433_v48, %v432_v47  ;;  %v449_v20 = vsel %vm22_vm0, %v423_v14, 0.0 }
 0x10f   :  { %v691_v43 = vadd.f32 %v690_v40, %v689_v36  ;;  %v692_v44 = vpop.f32.mrb[14].mxu0  ;;  %v715_v45 = vadd.f32 %v714_v42, %v713_v37  ;;  %v716_v46 = vpop.f32.mrb[14].mxu1 }
 0x110   :  { %v693_v50 = vpop.f32.mrb[15].mxu0  ;;  %v717_v52 = vpop.f32.mrb[15].mxu1 }
 0x111   :  { %v382_v53 = vadd.f32 %v691_v43, %v45_v39  ;;  %v694_v54 = vadd.f32 %v693_v50, %v692_v44  ;;  %v390_v55 = vadd.f32 %v715_v45, %v53_v41  ;;  %v718_v56 = vadd.f32 %v717_v52, %v716_v46 }
 0x112   :  { %v416_v57 = vld [vmem:[%s1303_s4 + $0x20] sm:$0xff] }
 0x113   :  { %v435_v58 = vsel %vm22_vm0, %v416_v57, 0.0  ;;  %399 = vst.msk [vmem:[%s1303_s4 + $0x30] sm:$0xff] %vm22_vm0, %v382_v53  ;;  %v383_v59 = vadd.f32 %v694_v54, %v46_v49  ;;  %407 = vst.msk [vmem:[%s1303_s4 + $0x70] sm:$0xff] %vm22_vm0, %v390_v55  ;;  %v391_v60 = vadd.f32 %v718_v56, %v54_v51  ;;  %v424_v17 = vld [vmem:[%s1303_s4 + $0x60] sm:$0xff] }
 0x114   :  { %v417_v62 = vld [vmem:[%s1303_s4 + $0x28] sm:$0xff]  ;;  %v436_v63 = vadd.f32 %v435_v58, %v434_v61  ;;  %v451_v24 = vsel %vm22_vm0, %v424_v17, 0.0 }
 0x115   :  { %400 = vst.msk [vmem:[%s1303_s4 + $0x38] sm:$0xff] %vm22_vm0, %v383_v59  ;;  %408 = vst.msk [vmem:[%s1303_s4 + $0x78] sm:$0xff] %vm22_vm0, %v391_v60  ;;  %v437_v0 = vsel %vm22_vm0, %v417_v62, 0.0  ;;  %v425_v21 = vld [vmem:[%s1303_s4 + $0x68] sm:$0xff] }
 0x116   :  { %v438_v1 = vadd.f32 %v437_v0, %v436_v63  ;;  %v453_v26 = vsel %vm22_vm0, %v425_v21, 0.0 }
 0x11a   :  { %v418_v2 = vld [vmem:[%s1303_s4 + $0x30] sm:$0xff] }
 0x11b   :  { %v439_v3 = vsel %vm22_vm0, %v418_v2, 0.0  ;;  %v1145_v22 = vld [vmem:[%s1303_s4 + $0x70] sm:$0xff] }
 0x11c   :  { %v419_v5 = vld [vmem:[%s1303_s4 + $0x38] sm:$0xff]  ;;  %v440_v6 = vadd.f32 %v439_v3, %v438_v1  ;;  %v455_v27 = vsel %vm22_vm0, %v1145_v22, 0.0 }
 0x11d   :  { %v441_v7 = vsel %vm22_vm0, %v419_v5, 0.0  ;;  %v427_v30 = vld [vmem:[%s1303_s4 + $0x78] sm:$0xff] }
 0x11e   :  { %v442_v9 = vadd.f32 %v441_v7, %v440_v6  ;;  %v457_v33 = vsel %vm22_vm0, %v427_v30, 0.0 }
 0x120   :  { %v444_v12 = vadd.f32 %v443_v10, %v442_v9 }
 0x122   :  { %v446_v15 = vadd.f32 %v445_v13, %v444_v12 }
 0x124   :  { %v448_v18 = vadd.f32 %v447_v16, %v446_v15 }
 0x126   :  { %v450_v23 = vadd.f32 %v449_v20, %v448_v18 }
 0x128   :  { %v452_v25 = vadd.f32 %v451_v24, %v450_v23 }
 0x12a   :  { %v454_v31 = vadd.f32 %v453_v26, %v452_v25 }
 0x12c   :  { %v456_v32 = vadd.f32 %v455_v27, %v454_v31 }
 0x12e   :  { %v458_v34 = vadd.f32 %v457_v33, %v456_v32 }
 0x130   :  { %v459_v36 = vrot.slane %v458_v34, 4 }
 0x132   :  { %v460_v37 = vadd.f32 %v459_v36, %v458_v34 }
 0x134   :  { %v461_v38 = vrot.slane %v460_v37, 2 }
 0x136   :  { %v462_v39 = vadd.f32 %v461_v38, %v460_v37 }
 0x138   :  { %v463_v40 = vrot.slane %v462_v39, 1 }
 0x13a   :  { %v464_v41 = vadd.f32 %v463_v40, %v462_v39 }
 0x13c   :  { %v466_v42 = vmul.f32 0.0078125, %v464_v41 }
 0x13e   :  { %v1156_v43 = vsub.f32 %v1040_v28, %v466_v42  ;;  %v1159_v44 = vsub.f32 %v1029_v19, %v466_v42  ;;  %v1162_v45 = vsub.f32 %v1045_v29, %v466_v42  ;;  %v1165_v46 = vsub.f32 %v1064_v35, %v466_v42 }
 0x13f   :  { %v1171_v49 = vsub.f32 %v416_v57, %v466_v42  ;;  %v1175_v50 = vsub.f32 %v417_v62, %v466_v42  ;;  %v1181_v52 = vsub.f32 %v418_v2, %v466_v42  ;;  %v1186_v56 = vsub.f32 %v419_v5, %v466_v42 }
 0x140   :  { %v483_v47 = vmul.f32 %v1156_v43, %v1156_v43  ;;  %v484_v48 = vmul.f32 %v1159_v44, %v1159_v44  ;;  %v485_v28 = vmul.f32 %v1162_v45, %v1162_v45  ;;  %v486_v19 = vmul.f32 %v1165_v46, %v1165_v46 }
 0x141   :  { %v487_v53 = vmul.f32 %v1171_v49, %v1171_v49  ;;  %v488_v57 = vmul.f32 %v1175_v50, %v1175_v50  ;;  %v1191_v60 = vsub.f32 %v420_v4, %v466_v42  ;;  %v489_v61 = vmul.f32 %v1181_v52, %v1181_v52 }
 0x142   :  { %v499_v29 = vsel %vm22_vm0, %v483_v47, 0.0  ;;  %v500_v35 = vsel %vm22_vm0, %v484_v48, 0.0  ;;  %v502_v54 = vsel %vm22_vm0, %v485_v28, 0.0  ;;  %v504_v58 = vsel %vm22_vm0, %v486_v19, 0.0 }
 0x143   :  { %v501_v51 = vadd.f32 %v500_v35, %v499_v29  ;;  %v506_v62 = vsel %vm22_vm0, %v487_v53, 0.0  ;;  %v1196_v0 = vsub.f32 %v421_v8, %v466_v42  ;;  %v490_v1 = vmul.f32 %v1186_v56, %v1186_v56 }
 0x144   :  { %v508_v2 = vsel %vm22_vm0, %v488_v57, 0.0  ;;  %v1201_v5 = vsub.f32 %v422_v11, %v466_v42  ;;  %v491_v4 = vmul.f32 %v1191_v60, %v1191_v60  ;;  %v510_v6 = vsel %vm22_vm0, %v489_v61, 0.0 }
 0x145   :  { %v503_v55 = vadd.f32 %v502_v54, %v501_v51  ;;  %v478_v9 = vsub.f32 %v423_v14, %v466_v42  ;;  %v492_v10 = vmul.f32 %v1196_v0, %v1196_v0  ;;  %v512_v8 = vsel %vm22_vm0, %v490_v1, 0.0 }
 0x146   :  { %v479_v13 = vsub.f32 %v424_v17, %v466_v42  ;;  %v493_v15 = vmul.f32 %v1201_v5, %v1201_v5  ;;  %v514_v11 = vsel %vm22_vm0, %v491_v4, 0.0  ;;  %v480_v18 = vsub.f32 %v425_v21, %v466_v42 }
 0x147   :  { %v505_v59 = vadd.f32 %v504_v58, %v503_v55  ;;  %v494_v20 = vmul.f32 %v478_v9, %v478_v9  ;;  %v516_v23 = vsel %vm22_vm0, %v492_v10, 0.0  ;;  %v481_v14 = vsub.f32 %v1145_v22, %v466_v42  ;;  %v537_v55 = vld [vmem:[%s1304_s2] sm:$0x1] }
 0x148   :  { %v495_v25 = vmul.f32 %v479_v13, %v479_v13  ;;  %v518_v26 = vsel %vm22_vm0, %v493_v15, 0.0  ;;  %v482_v31 = vsub.f32 %v427_v30, %v466_v42  ;;  %v496_v32 = vmul.f32 %v480_v18, %v480_v18  ;;  %v654_v10 = vld [vmem:[%s1305_s3] ss:$0 sm:$0xff] }
 0x149   :  { %v507_v63 = vadd.f32 %v506_v62, %v505_v59  ;;  %v520_v17 = vsel %vm22_vm0, %v494_v20, 0.0  ;;  %v497_v34 = vmul.f32 %v481_v14, %v481_v14  ;;  %v542_v53 = vlaneseq }
 0x14a   :  { %v522_v36 = vsel %vm22_vm0, %v495_v25, 0.0  ;;  %v498_v21 = vmul.f32 %v482_v31, %v482_v31  ;;  %v524_v38 = vsel %vm22_vm0, %v496_v32, 0.0 }
 0x14b   :  { %v509_v3 = vadd.f32 %v508_v2, %v507_v63  ;;  %v526_v40 = vsel %vm22_vm0, %v497_v34, 0.0  ;;  %v543_v54 = vshrl.u32 %v542_v53, 7 }
 0x14c   :  { %v528_v41 = vsel %vm22_vm0, %v498_v21, 0.0 }
 0x14d   :  { %v511_v7 = vadd.f32 %v510_v6, %v509_v3  ;;  %v544_v57 = vsub.s32 0, %v543_v54 }
 0x14f   :  { %v513_v12 = vadd.f32 %v512_v8, %v511_v7 }
 0x151   :  { %v515_v16 = vadd.f32 %v514_v11, %v513_v12 }
 0x153   :  { %v517_v24 = vadd.f32 %v516_v23, %v515_v16 }
 0x155   :  { %v519_v27 = vadd.f32 %v518_v26, %v517_v24 }
 0x157   :  { %v521_v33 = vadd.f32 %v520_v17, %v519_v27 }
 0x159   :  { %v523_v37 = vadd.f32 %v522_v36, %v521_v33 }
 0x15b   :  { %v525_v39 = vadd.f32 %v524_v38, %v523_v37 }
 0x15d   :  { %v527_v22 = vadd.f32 %v526_v40, %v525_v39 }
 0x15f   :  { %v529_v47 = vadd.f32 %v528_v41, %v527_v22 }
 0x161   :  { %v530_v48 = vrot.slane %v529_v47, 4 }
 0x163   :  { %v531_v30 = vadd.f32 %v530_v48, %v529_v47 }
 0x165   :  { %v532_v42 = vrot.slane %v531_v30, 2 }
 0x167   :  { %v533_v28 = vadd.f32 %v532_v42, %v531_v30 }
 0x169   :  { %v534_v19 = vrot.slane %v533_v28, 1 }
 0x16b   :  { %v535_v29 = vadd.f32 %v534_v19, %v533_v28 }
 0x16d   :  { %v536_v35 = vmul.f32 0.0078125, %v535_v29 }
 0x16f   :  { %v538_v51 = vadd.f32 1e-05, %v536_v35 }
 0x171   :  { %776 = vrsqrt.f32 %v538_v51 }
 0x17b   :  { %v777_v58 = vpop.eup %776 }
 0x17c   :  { %v540_v59 = vmul.f32 %v777_v58, %v537_v55 }
 0x17e   :  { %v545_v61 = vrot.slane %v540_v59, %v544_v57 }
 0x180   :  { %v547_v62 = vmul.f32 %v545_v61, %v1156_v43  ;;  %v548_v63 = vmul.f32 %v545_v61, %v1159_v44  ;;  %v549_v1 = vmul.f32 %v545_v61, %v1162_v45  ;;  %v550_v2 = vmul.f32 %v545_v61, %v1165_v46 }
 0x181   :  { %v551_v3 = vmul.f32 %v545_v61, %v1171_v49  ;;  %v552_v4 = vmul.f32 %v545_v61, %v1175_v50  ;;  %v553_v6 = vmul.f32 %v545_v61, %v1181_v52  ;;  %v554_v7 = vmul.f32 %v545_v61, %v1186_v56 }
 0x182   :  { %v555_v43 = vmul.f32 %v545_v61, %v1191_v60  ;;  %v556_v44 = vmul.f32 %v545_v61, %v1196_v0  ;;  %v557_v45 = vmul.f32 %v545_v61, %v1201_v5  ;;  %v558_v8 = vmul.f32 %v545_v61, %v478_v9 }
 0x183   :  { %v559_v46 = vmul.f32 %v545_v61, %v479_v13  ;;  %v560_v12 = vmul.f32 %v545_v61, %v480_v18  ;;  %v561_v49 = vmul.f32 %v545_v61, %v481_v14  ;;  %v562_v15 = vmul.f32 %v545_v61, %v482_v31 }
 0x184   :  { %v570_v50 = vadd.f32 %v654_v10, %v547_v62  ;;  %v571_v11 = vadd.f32 %v654_v10, %v548_v63  ;;  %v572_v52 = vadd.f32 %v654_v10, %v549_v1  ;;  %v573_v16 = vadd.f32 %v654_v10, %v550_v2 }
 0x185   :  { %v574_v56 = vadd.f32 %v654_v10, %v551_v3  ;;  %v575_v20 = vadd.f32 %v654_v10, %v552_v4  ;;  %v576_v23 = vadd.f32 %v654_v10, %v553_v6  ;;  %v577_v24 = vadd.f32 %v654_v10, %v554_v7 }
 0x186   :  { %v578_v25 = vadd.f32 %v654_v10, %v555_v43  ;;  %v579_v26 = vadd.f32 %v654_v10, %v556_v44  ;;  %v580_v60 = vadd.f32 %v654_v10, %v557_v45  ;;  %v581_v27 = vadd.f32 %v654_v10, %v558_v8 }
 0x187   :  { %v582_v0 = vadd.f32 %v654_v10, %v559_v46  ;;  %v583_v32 = vadd.f32 %v654_v10, %v560_v12  ;;  %v584_v5 = vadd.f32 %v654_v10, %v561_v49  ;;  %v585_v9 = vadd.f32 %v654_v10, %v562_v15 }
 0x188   :  { %v586_v13 = vmax.f32 %v570_v50, 0.0  ;;  %v587_v18 = vmax.f32 %v571_v11, 0.0  ;;  %v588_v14 = vmax.f32 %v572_v52, 0.0  ;;  %v589_v31 = vmax.f32 %v573_v16, 0.0 }
 0x189   :  { %v590_v17 = vmax.f32 %v574_v56, 0.0  ;;  %v591_v33 = vmax.f32 %v575_v20, 0.0  ;;  %v592_v34 = vmax.f32 %v576_v23, 0.0  ;;  %v593_v36 = vmax.f32 %v577_v24, 0.0 }
 0x18a   :  { %v594_v37 = vmax.f32 %v578_v25, 0.0  ;;  %v595_v21 = vmax.f32 %v579_v26, 0.0  ;;  %v596_v38 = vmax.f32 %v580_v60, 0.0  ;;  %v597_v39 = vmax.f32 %v581_v27, 0.0  ;;  %602 = vst.msk [vmem:[%s1303_s4] sm:$0xff] %vm22_vm0, %v586_v13  ;;  %603 = vst.msk [vmem:[%s1303_s4 + $0x8] sm:$0xff] %vm22_vm0, %v587_v18 }
 0x18b   :  { %604 = vst.msk [vmem:[%s1303_s4 + $0x10] sm:$0xff] %vm22_vm0, %v588_v14  ;;  %605 = vst.msk [vmem:[%s1303_s4 + $0x18] sm:$0xff] %vm22_vm0, %v589_v31  ;;  %v598_v40 = vmax.f32 %v582_v0, 0.0  ;;  %v599_v22 = vmax.f32 %v583_v32, 0.0  ;;  %v600_v41 = vmax.f32 %v584_v5, 0.0  ;;  %v601_v47 = vmax.f32 %v585_v9, 0.0 }
 0x18c   :  { %606 = vst.msk [vmem:[%s1303_s4 + $0x20] sm:$0xff] %vm22_vm0, %v590_v17  ;;  %607 = vst.msk [vmem:[%s1303_s4 + $0x28] sm:$0xff] %vm22_vm0, %v591_v33 }
 0x18d   :  { %608 = vst.msk [vmem:[%s1303_s4 + $0x30] sm:$0xff] %vm22_vm0, %v592_v34  ;;  %609 = vst.msk [vmem:[%s1303_s4 + $0x38] sm:$0xff] %vm22_vm0, %v593_v36 }
 0x18e   :  { %610 = vst.msk [vmem:[%s1303_s4 + $0x40] sm:$0xff] %vm22_vm0, %v594_v37  ;;  %611 = vst.msk [vmem:[%s1303_s4 + $0x48] sm:$0xff] %vm22_vm0, %v595_v21 }
 0x18f   :  { %612 = vst.msk [vmem:[%s1303_s4 + $0x50] sm:$0xff] %vm22_vm0, %v596_v38  ;;  %613 = vst.msk [vmem:[%s1303_s4 + $0x58] sm:$0xff] %vm22_vm0, %v597_v39 }
 0x190   :  { %614 = vst.msk [vmem:[%s1303_s4 + $0x60] sm:$0xff] %vm22_vm0, %v598_v40  ;;  %615 = vst.msk [vmem:[%s1303_s4 + $0x68] sm:$0xff] %vm22_vm0, %v599_v22 }
 0x191   :  { %616 = vst.msk [vmem:[%s1303_s4 + $0x70] sm:$0xff] %vm22_vm0, %v600_v41  ;;  %617 = vst.msk [vmem:[%s1303_s4 + $0x78] sm:$0xff] %vm22_vm0, %v601_v47 }

// kernel: simsiam_forward.51
= control target key start
LH: loop header
LB: loop body
LE: loop exit
PB: predicated region body
PF: predicated region fallthrough
CT: control target
= control target key end

     0   :  { %s937_s15 = smov 0   ;;  %s939_s16 = smov 0   ;;  %s1110_s0 = inlined_call_operand.vmem [shape: bf16[32,768], index: 0, kind: input, shape index: {}]   ;;  %s1111_s1 = inlined_call_operand.vmem [shape: bf16[768,64], index: 1, kind: input, shape index: {}]   ;;  %s1112_s2 = inlined_call_operand.vmem [shape: f32[1,64], index: 2, kind: input, shape index: {}]   ;;  %s1113_s3 = inlined_call_operand.vmem [shape: f32[1,64], index: 3, kind: input, shape index: {}]   ;;  %s1114_s4 = inlined_call_operand.vmem [shape: f32[32,64], index: 4, kind: output, shape index: {}]  }
   0x1   :  { %s941_s17 = smov 0   ;;  %s943_s18 = smov 0  }
   0x2   :  { %s945_s19 = smov 0  }
   0x3 LB: > { %s23_s20 = sadd.s32 1, %s905_s18  ;;  %p40_p1 = scmp.ne.s32.totalorder %s897_s16, %s893_s15  ;;  %s909_s19 = sphi %s945_s19, %s14_s19   ;;  %s905_s18 = sphi %s943_s18, %s1118_s18   ;;  %s901_s17 = sphi %s941_s17, %s1117_s17   ;;  %s897_s16 = sphi %s939_s16, %s1116_s16   ;;  %s893_s15 = sphi %s937_s15, %s1115_s15  }
   0x4   : > { %p24_p0 = scmp.ge.s32.totalorder %s23_s20, 3  ;;  %p41_p2 = scmp.eq.s32.totalorder %s909_s19, 0 }
   0x5   : > { %s33_s22 = sadd.s32 1, %s897_s16  ;;  %p727_p5 = scmp.ge.s32.totalorder %s909_s19, 3 }
   0x6   : > { %s1120_s20 = smov (%p24_p0, %s23_s20), 0  ;;  %p42_p3 = por %p41_p2, %p40_p1 }
   0x7   : > { %s30_s21 = ssub.s32 %s905_s18, %s1120_s20  ;;  %184 = sbr.rel (%p727_p5) target bundleno = 21 (0x15), region = 24 }
   0x8   : > { %p31_p4 = scmp.eq.s32.totalorder %s30_s21, 0 }
   0xa   : > { %s972_s23 = scalar_select %p31_p4, %s897_s16, %s33_s22  }
   0xe   : > { %187 = sbr.rel (!%p42_p3) target bundleno = 21 (0x15), region = 28  ;;  %s189_s24 = sand.u32 (%p42_p3), 1, %s897_s16  }
   0xf   : > { %s761_s25 = sshll.u32 (%p42_p3), %s905_s18, 3  ;;  %s728_s26 = sshll.u32 (%p42_p3), %s189_s24, 5 }
  0x10   : > { %s194_s29 = scalar_lea.vmem (%p42_p3), %s1110_s0, %s761_s25  ;;  %s191_s30 = scalar_lea.vmem (%p42_p3), [#allocation2], %s728_s26 }
  0x11   : > { %v228_v0 = vld [vmem:[%s194_s29] sm:$0xff] (%p42_p3)  ;;  %v230_v1 = vld [vmem:[%s194_s29 + $0x18] sm:$0xff] (%p42_p3)  ;;  %v232_v2 = vld [vmem:[%s194_s29 + $0x30] sm:$0xff] (%p42_p3) }
  0x12   : > { %229 = vst [vmem:[%s191_s30] sm:$0xff] (%p42_p3), %v228_v0  ;;  %231 = vst [vmem:[%s191_s30 + $0x8] sm:$0xff] (%p42_p3), %v230_v1  ;;  %v234_v3 = vld [vmem:[%s194_s29 + $0x48] sm:$0xff] (%p42_p3) }
  0x13   : > { %233 = vst [vmem:[%s191_s30 + $0x10] sm:$0xff] (%p42_p3), %v232_v2  ;;  %235 = vst [vmem:[%s191_s30 + $0x18] sm:$0xff] (%p42_p3), %v234_v3 }
  0x15 PF: > { %p731_p6 = scmp.ge.s32.totalorder %s909_s19, 1  ;;  %p252_p7 = scmp.lt.s32.totalorder %s909_s19, 4 }
  0x17   : > { %p253_p8 = pnand %p731_p6, %p252_p7 }
  0x18   : > { %s259_s5 = sand.u32 (!%p253_p8), 1, %s893_s15   ;;  %s733_s6 = sshll.u32 (!%p253_p8), %s901_s17, 5 }
  0x19   : > { %256 = sbr.rel (%p253_p8) target bundleno = 370 (0x172), region = 70  ;;  %s732_s7 = sshll.u32 (!%p253_p8), %s259_s5, 5 }
  0x1a   : > { %p299_p9 = scmp.lt.s32.totalorder (!%p253_p8), %s733_s6, 95  ;;  %s989_s12 = scalar_lea.vmem (!%p253_p8), [#allocation2], %s732_s7 }
  0x1b   : > { %p735_p10 = scmp.ne.s32.totalorder (!%p253_p8), %s901_s17, 0 }
  0x20   : > { %s1122_s6 = smov (!%p299_p9, %s733_s6), 95  ;;  %321 = sbr.rel (%p735_p10) target bundleno = 39 (0x27), region = 78 }
  0x21   : > { %s734_s8 = sshll.u32 %s1122_s6, 2  ;;  %vm322_vm0 = vcmask (!%p735_p10), 523264   ;;  %v911_v4 = vmov (!%p735_p10), 0.0  }
  0x22   : > { %s987_s11 = scalar_lea.vmem %s1111_s1, %s734_s8  ;;  %323 = vst.msk [vmem:[%s1114_s4] sm:$0xff] (!%p735_p10), %vm322_vm0, %v911_v4  ;;  %324 = vst.msk [vmem:[%s1114_s4 + $0x8] sm:$0xff] (!%p735_p10), %vm322_vm0, %v911_v4 }
  0x23   : > { %325 = vst.msk [vmem:[%s1114_s4 + $0x10] sm:$0xff] (!%p735_p10), %vm322_vm0, %v911_v4  ;;  %326 = vst.msk [vmem:[%s1114_s4 + $0x18] sm:$0xff] (!%p735_p10), %vm322_vm0, %v911_v4 }
  0x27 PF: > { %v847_v5 = vld [vmem:[%s987_s11 + $0x40] sm:$0xff]   ;;  %v849_v7 = vld [vmem:[%s987_s11 + $0x48] sm:$0xff]   ;;  %v851_v9 = vld [vmem:[%s987_s11 + $0x50] sm:$0xff]   ;;  %vm536_vm1 = vcmask 523264   ;;  %p756_p11 = scmp.ne.s32.totalorder %s901_s17, 2 }
  0x28   : > { %v848_v6 = vld [vmem:[%s987_s11] sm:$0xff]   ;;  %762 = vmatprep.subr.bf16.mxu0 %v847_v5  ;;  %790 = vmatprep.subr.bf16.mxu1 %v847_v5  ;;  %v850_v8 = vld [vmem:[%s987_s11 + $0x8] sm:$0xff]   ;;  %v852_v10 = vld [vmem:[%s987_s11 + $0x10] sm:$0xff]  }
  0x29   : > { %763 = vmatpush3.bf16.msra.mxu0 %v848_v6  ;;  %798 = vmatpush3.bf16.msra.mxu1 %v848_v6  ;;  %v853_v11 = vld [vmem:[%s987_s11 + $0x58] sm:$0xff]   ;;  %v855_v13 = vld [vmem:[%s987_s11 + $0x60] sm:$0xff]   ;;  %v857_v15 = vld [vmem:[%s987_s11 + $0x68] sm:$0xff]  }
  0x2a   : > { %764 = vmatprep.subr.bf16.mxu0 %v849_v7  ;;  %791 = vmatprep.subr.bf16.mxu1 %v849_v7  ;;  %v854_v12 = vld [vmem:[%s987_s11 + $0x18] sm:$0xff]   ;;  %v856_v14 = vld [vmem:[%s987_s11 + $0x20] sm:$0xff]   ;;  %v858_v18 = vld [vmem:[%s987_s11 + $0x28] sm:$0xff]  }
  0x2b   : > { %v865_v16 = vld [vmem:[%s989_s12 + $0x4] ss:$8 sps:$4 sm:$0xff]   ;;  %v868_v17 = vld [vmem:[%s989_s12 + $0x14] ss:$8 sps:$4 sm:$0xff]   ;;  %v863_v23 = vld [vmem:[%s989_s12] ss:$8 sps:$4 sm:$0xff]  }
  0x2c   : > { %v859_v19 = vld [vmem:[%s987_s11 + $0x70] sm:$0xff]   ;;  %515 = vmatprep.mubr.bf16.mxu0 %v865_v16  ;;  %523 = vmatprep.mubr.bf16.mxu1 %v868_v17  ;;  %v861_v21 = vld [vmem:[%s987_s11 + $0x78] sm:$0xff]   ;;  %v327_v27 = vld [vmem:[%s1114_s4] sm:$0xff] }
  0x2d   : > { %765 = vmatpush3.bf16.msra.mxu0 %v850_v8  ;;  %799 = vmatpush3.bf16.msra.mxu1 %v850_v8  ;;  %v860_v20 = vld [vmem:[%s987_s11 + $0x30] sm:$0xff]   ;;  %v862_v22 = vld [vmem:[%s987_s11 + $0x38] sm:$0xff]   ;;  %v328_v35 = vld [vmem:[%s1114_s4 + $0x8] sm:$0xff] }
  0x2e   : > { %766 = vmatprep.subr.bf16.mxu0 %v851_v9  ;;  %792 = vmatprep.subr.bf16.mxu1 %v851_v9  ;;  %v866_v24 = vld [vmem:[%s989_s12 + $0x10] ss:$8 sps:$4 sm:$0xff]  }
  0x2f   : > { %v329_v29 = vld [vmem:[%s1114_s4 + $0x10] sm:$0xff]  ;;  %v330_v37 = vld [vmem:[%s1114_s4 + $0x18] sm:$0xff] }
  0x31   : > { %767 = vmatpush3.bf16.msra.mxu0 %v852_v10  ;;  %800 = vmatpush3.bf16.msra.mxu1 %v852_v10 }
  0x32   : > { %768 = vmatprep.subr.bf16.mxu0 %v853_v11  ;;  %793 = vmatprep.subr.bf16.mxu1 %v853_v11 }
  0x35   : > { %769 = vmatpush3.bf16.msra.mxu0 %v854_v12  ;;  %801 = vmatpush3.bf16.msra.mxu1 %v854_v12 }
  0x36   : > { %770 = vmatprep.subr.bf16.mxu0 %v855_v13  ;;  %794 = vmatprep.subr.bf16.mxu1 %v855_v13 }
  0x39   : > { %771 = vmatpush3.bf16.msra.mxu0 %v856_v14  ;;  %802 = vmatpush3.bf16.msra.mxu1 %v856_v14 }
  0x3a   : > { %772 = vmatprep.subr.bf16.mxu0 %v857_v15  ;;  %795 = vmatprep.subr.bf16.mxu1 %v857_v15 }
  0x3d   : > { %773 = vmatpush3.bf16.msra.mxu0 %v858_v18  ;;  %803 = vmatpush3.bf16.msra.mxu1 %v858_v18 }
  0x3e   : > { %774 = vmatprep.subr.bf16.mxu0 %v859_v19  ;;  %796 = vmatprep.subr.bf16.mxu1 %v859_v19 }
  0x41   : > { %775 = vmatpush3.bf16.msra.mxu0 %v860_v20  ;;  %804 = vmatpush3.bf16.msra.mxu1 %v860_v20 }
  0x42   : > { %776 = vmatprep.subr.bf16.mxu0 %v861_v21  ;;  %797 = vmatprep.subr.bf16.mxu1 %v861_v21 }
  0x45   : > { %777 = vmatpush3.bf16.msra.mxu0 %v862_v22  ;;  %805 = vmatpush3.bf16.msra.mxu1 %v862_v22  ;;  %v591_v22 = vlaneseq (!%p756_p11) }
  0x48   : > { %516 = vmatmul.mubr.bf16.vlgmr.msra.gmra.mrb[0].mxu0 %v863_v23  ;;  %524 = vmatmul.mubr.bf16.vlgmr.msra.gmra.mrb[0].mxu1 %v866_v24  ;;  %v592_v23 = vshrl.u32 (!%p756_p11), %v591_v22, 7  ;;  %v586_v24 = vld [vmem:[%s1112_s2] sm:$0x1] (!%p756_p11) }
 0x11b   : > { %v778_v25 = vpop.f32.mrb[0].mxu0  ;;  %v784_v26 = vpop.f32.mrb[0].mxu1 }
 0x11c   : > { %v779_v28 = vpop.f32.mrb[1].mxu0  ;;  %v785_v30 = vpop.f32.mrb[1].mxu1 }
 0x11d   : > { %v780_v31 = vadd.f32 %v779_v28, %v778_v25  ;;  %v786_v32 = vadd.f32 %v785_v30, %v784_v26  ;;  %v781_v33 = vpop.f32.mrb[2].mxu0  ;;  %v787_v34 = vpop.f32.mrb[2].mxu1  ;;  %544 = sbr.rel (%p756_p11) target bundleno = 370 (0x172), region = 82  ;;  %v593_v25 = vsub.s32 (!%p756_p11), 0, %v592_v23 }
 0x11e   : > { %v782_v36 = vpop.f32.mrb[3].mxu0  ;;  %v788_v38 = vpop.f32.mrb[3].mxu1 }
 0x11f   : > { %v532_v39 = vadd.f32 %v780_v31, %v327_v27  ;;  %v534_v40 = vadd.f32 %v786_v32, %v329_v29  ;;  %v783_v41 = vadd.f32 %v782_v36, %v781_v33  ;;  %v789_v42 = vadd.f32 %v788_v38, %v787_v34  ;;  %v757_v29 = vld [vmem:[%s1113_s3] ss:$0 sm:$0xff] (!%p756_p11) }
 0x121   : > { %537 = vst.msk [vmem:[%s1114_s4] sm:$0xff] %vm536_vm1, %v532_v39  ;;  %539 = vst.msk [vmem:[%s1114_s4 + $0x10] sm:$0xff] %vm536_vm1, %v534_v40  ;;  %v533_v43 = vadd.f32 %v783_v41, %v328_v35  ;;  %v535_v44 = vadd.f32 %v789_v42, %v330_v37 }
 0x123   : > { %538 = vst.msk [vmem:[%s1114_s4 + $0x8] sm:$0xff] %vm536_vm1, %v533_v43  ;;  %540 = vst.msk [vmem:[%s1114_s4 + $0x18] sm:$0xff] %vm536_vm1, %v535_v44 }
 0x128   : > { %v545_v45 = vld [vmem:[%s1114_s4] sm:$0xff]  ;;  %v547_v47 = vld [vmem:[%s1114_s4 + $0x10] sm:$0xff] }
 0x129   : > { %v549_v49 = vsel %vm536_vm1, %v545_v45, 0.0  ;;  %v552_v51 = vsel %vm536_vm1, %v547_v47, 0.0 }
 0x12a   : > { %v546_v46 = vld [vmem:[%s1114_s4 + $0x8] sm:$0xff]  ;;  %v548_v48 = vld [vmem:[%s1114_s4 + $0x18] sm:$0xff] }
 0x12b   : > { %v550_v50 = vsel %vm536_vm1, %v546_v46, 0.0  ;;  %v554_v53 = vsel %vm536_vm1, %v548_v48, 0.0 }
 0x12c   : > { %v551_v52 = vadd.f32 %v550_v50, %v549_v49 }
 0x12e   : > { %v553_v54 = vadd.f32 %v552_v51, %v551_v52 }
 0x130   : > { %v555_v55 = vadd.f32 %v554_v53, %v553_v54 }
 0x132   : > { %v556_v56 = vrot.slane %v555_v55, 4 }
 0x134   : > { %v557_v57 = vadd.f32 %v556_v56, %v555_v55 }
 0x136   : > { %v558_v58 = vrot.slane %v557_v57, 2 }
 0x138   : > { %v559_v59 = vadd.f32 %v558_v58, %v557_v57 }
 0x13a   : > { %v560_v60 = vrot.slane %v559_v59, 1 }
 0x13c   : > { %v561_v61 = vadd.f32 %v560_v60, %v559_v59 }
 0x13e   : > { %v563_v62 = vmul.f32 0.03125, %v561_v61 }
 0x140   : > { %v564_v63 = vsub.f32 %v545_v45, %v563_v62  ;;  %v565_v0 = vsub.f32 %v546_v46, %v563_v62  ;;  %v566_v1 = vsub.f32 %v547_v47, %v563_v62  ;;  %v567_v2 = vsub.f32 %v548_v48, %v563_v62 }
 0x142   : > { %v568_v3 = vmul.f32 %v564_v63, %v564_v63  ;;  %v569_v4 = vmul.f32 %v565_v0, %v565_v0  ;;  %v570_v5 = vmul.f32 %v566_v1, %v566_v1  ;;  %v571_v6 = vmul.f32 %v567_v2, %v567_v2 }
 0x144   : > { %v572_v7 = vsel %vm536_vm1, %v568_v3, 0.0  ;;  %v573_v8 = vsel %vm536_vm1, %v569_v4, 0.0  ;;  %v575_v9 = vsel %vm536_vm1, %v570_v5, 0.0  ;;  %v577_v11 = vsel %vm536_vm1, %v571_v6, 0.0 }
 0x145   : > { %v574_v10 = vadd.f32 %v573_v8, %v572_v7 }
 0x147   : > { %v576_v12 = vadd.f32 %v575_v9, %v574_v10 }
 0x149   : > { %v578_v13 = vadd.f32 %v577_v11, %v576_v12 }
 0x14b   : > { %v579_v14 = vrot.slane %v578_v13, 4 }
 0x14d   : > { %v580_v15 = vadd.f32 %v579_v14, %v578_v13 }
 0x14f   : > { %v581_v16 = vrot.slane %v580_v15, 2 }
 0x151   : > { %v582_v17 = vadd.f32 %v581_v16, %v580_v15 }
 0x153   : > { %v583_v18 = vrot.slane %v582_v17, 1 }
 0x155   : > { %v584_v19 = vadd.f32 %v583_v18, %v582_v17 }
 0x157   : > { %v585_v20 = vmul.f32 0.03125, %v584_v19 }
 0x159   : > { %v587_v21 = vadd.f32 1e-05, %v585_v20 }
 0x15b   : > { %869 = vrsqrt.f32 %v587_v21 }
 0x165   : > { %v870_v26 = vpop.eup %869 }
 0x166   : > { %v589_v27 = vmul.f32 %v870_v26, %v586_v24 }
 0x168   : > { %v594_v28 = vrot.slane %v589_v27, %v593_v25 }
 0x16a   : > { %v596_v30 = vmul.f32 %v594_v28, %v564_v63  ;;  %v597_v31 = vmul.f32 %v594_v28, %v565_v0  ;;  %v598_v32 = vmul.f32 %v594_v28, %v566_v1  ;;  %v599_v33 = vmul.f32 %v594_v28, %v567_v2 }
 0x16c   : > { %v607_v34 = vadd.f32 %v757_v29, %v596_v30  ;;  %v608_v35 = vadd.f32 %v757_v29, %v597_v31  ;;  %v609_v36 = vadd.f32 %v757_v29, %v598_v32  ;;  %v610_v37 = vadd.f32 %v757_v29, %v599_v33 }
 0x16e   : > { %v611_v38 = vmax.f32 %v607_v34, 0.0  ;;  %v612_v39 = vmax.f32 %v608_v35, 0.0  ;;  %v613_v40 = vmax.f32 %v609_v36, 0.0  ;;  %v614_v41 = vmax.f32 %v610_v37, 0.0 }
 0x170   : > { %615 = vst.msk [vmem:[%s1114_s4] sm:$0xff] %vm536_vm1, %v611_v38  ;;  %616 = vst.msk [vmem:[%s1114_s4 + $0x8] sm:$0xff] %vm536_vm1, %v612_v39 }
 0x171   : > { %617 = vst.msk [vmem:[%s1114_s4 + $0x10] sm:$0xff] %vm536_vm1, %v613_v40  ;;  %618 = vst.msk [vmem:[%s1114_s4 + $0x18] sm:$0xff] %vm536_vm1, %v614_v41 }
 0x172 PF: > { %s14_s19 = sadd.s32 1, %s909_s19   ;;  %s1115_s15 = smov %s897_s16 }
 0x173   : > { %p11_p12 = scmp.ge.s32.totalorder %s14_s19, 5   ;;  %s1116_s16 = smov %s972_s23 }
 0x174   : > { %s1117_s17 = smov %s905_s18  ;;  %s1118_s18 = smov %s1120_s20 }
 0x175   :  { %13 = sbr.rel (!%p11_p12) target bundleno = 3 (0x3), region = 126 }

// kernel: simsiam_forward.52
= control target key start
LH: loop header
LB: loop body
LE: loop exit
PB: predicated region body
PF: predicated region fallthrough
CT: control target
= control target key end

     0   :  { %s1010_s18 = smov 0   ;;  %s1012_s19 = smov 0   ;;  %s1195_s0 = inlined_call_operand.vmem [shape: bf16[32,768], index: 0, kind: input, shape index: {}]   ;;  %s1196_s1 = inlined_call_operand.vmem [shape: bf16[768,64], index: 1, kind: input, shape index: {}]   ;;  %s1197_s2 = inlined_call_operand.vmem [shape: f32[1,64], index: 2, kind: input, shape index: {}]   ;;  %s1198_s3 = inlined_call_operand.vmem [shape: f32[1,64], index: 3, kind: input, shape index: {}]   ;;  %s1199_s4 = inlined_call_operand.vmem [shape: f32[32,64], index: 4, kind: input, shape index: {}]   ;;  %s1200_s5 = inlined_call_operand.vmem [shape: f32[32,64], index: 5, kind: output, shape index: {}]  }
   0x1   :  { %s1014_s20 = smov 0   ;;  %s1016_s21 = smov 0  }
   0x2   :  { %s1018_s22 = smov 0  }
   0x3 LB: > { %s24_s23 = sadd.s32 1, %s973_s21  ;;  %p41_p1 = scmp.ne.s32.totalorder %s965_s19, %s961_s18  ;;  %s977_s22 = sphi %s1018_s22, %s15_s22   ;;  %s973_s21 = sphi %s1016_s21, %s1204_s21   ;;  %s969_s20 = sphi %s1014_s20, %s1203_s20   ;;  %s965_s19 = sphi %s1012_s19, %s1202_s19   ;;  %s961_s18 = sphi %s1010_s18, %s1201_s18  }
   0x4   : > { %p25_p0 = scmp.ge.s32.totalorder %s24_s23, 3  ;;  %p42_p2 = scmp.eq.s32.totalorder %s977_s22, 0 }
   0x5   : > { %s34_s25 = sadd.s32 1, %s965_s19  ;;  %p795_p5 = scmp.ge.s32.totalorder %s977_s22, 3 }
   0x6   : > { %s1206_s23 = smov (%p25_p0, %s24_s23), 0  ;;  %p43_p3 = por %p42_p2, %p41_p1 }
   0x7   : > { %s31_s24 = ssub.s32 %s973_s21, %s1206_s23  ;;  %218 = sbr.rel (%p795_p5) target bundleno = 21 (0x15), region = 28 }
   0x8   : > { %p32_p4 = scmp.eq.s32.totalorder %s31_s24, 0 }
   0xa   : > { %s1045_s26 = scalar_select %p32_p4, %s965_s19, %s34_s25  }
   0xe   : > { %221 = sbr.rel (!%p43_p3) target bundleno = 21 (0x15), region = 32  ;;  %s223_s27 = sand.u32 (%p43_p3), 1, %s965_s19  }
   0xf   : > { %s829_s28 = sshll.u32 (%p43_p3), %s973_s21, 3  ;;  %s796_s29 = sshll.u32 (%p43_p3), %s223_s27, 5 }
  0x10   : > { %s228_s7 = scalar_lea.vmem (%p43_p3), %s1195_s0, %s829_s28  ;;  %s225_s8 = scalar_lea.vmem (%p43_p3), [#allocation2], %s796_s29 }
  0x11   : > { %v262_v0 = vld [vmem:[%s228_s7] sm:$0xff] (%p43_p3)  ;;  %v264_v1 = vld [vmem:[%s228_s7 + $0x18] sm:$0xff] (%p43_p3)  ;;  %v266_v2 = vld [vmem:[%s228_s7 + $0x30] sm:$0xff] (%p43_p3) }
  0x12   : > { %263 = vst [vmem:[%s225_s8] sm:$0xff] (%p43_p3), %v262_v0  ;;  %265 = vst [vmem:[%s225_s8 + $0x8] sm:$0xff] (%p43_p3), %v264_v1  ;;  %v268_v3 = vld [vmem:[%s228_s7 + $0x48] sm:$0xff] (%p43_p3) }
  0x13   : > { %267 = vst [vmem:[%s225_s8 + $0x10] sm:$0xff] (%p43_p3), %v266_v2  ;;  %269 = vst [vmem:[%s225_s8 + $0x18] sm:$0xff] (%p43_p3), %v268_v3 }
  0x15 PF: > { %p799_p6 = scmp.ge.s32.totalorder %s977_s22, 1  ;;  %p286_p7 = scmp.lt.s32.totalorder %s977_s22, 4 }
  0x17   : > { %p287_p8 = pnand %p799_p6, %p286_p7 }
  0x18   : > { %s293_s9 = sand.u32 (!%p287_p8), 1, %s961_s18   ;;  %s801_s10 = sshll.u32 (!%p287_p8), %s969_s20, 5 }
  0x19   : > { %290 = sbr.rel (%p287_p8) target bundleno = 372 (0x174), region = 74  ;;  %s800_s11 = sshll.u32 (!%p287_p8), %s293_s9, 5 }
  0x1a   : > { %p339_p9 = scmp.lt.s32.totalorder (!%p287_p8), %s801_s10, 95  ;;  %s1062_s16 = scalar_lea.vmem (!%p287_p8), [#allocation2], %s800_s11 }
  0x1b   : > { %p803_p10 = scmp.ne.s32.totalorder (!%p287_p8), %s969_s20, 0 }
  0x20   : > { %s1208_s10 = smov (!%p339_p9, %s801_s10), 95  ;;  %365 = sbr.rel (%p803_p10) target bundleno = 39 (0x27), region = 82 }
  0x21   : > { %s802_s12 = sshll.u32 %s1208_s10, 2  ;;  %vm366_vm0 = vcmask (!%p803_p10), 523264   ;;  %v979_v4 = vmov (!%p803_p10), 0.0  }
  0x22   : > { %s1060_s15 = scalar_lea.vmem %s1196_s1, %s802_s12  ;;  %367 = vst.msk [vmem:[%s1200_s5] sm:$0xff] (!%p803_p10), %vm366_vm0, %v979_v4  ;;  %368 = vst.msk [vmem:[%s1200_s5 + $0x8] sm:$0xff] (!%p803_p10), %vm366_vm0, %v979_v4 }
  0x23   : > { %369 = vst.msk [vmem:[%s1200_s5 + $0x10] sm:$0xff] (!%p803_p10), %vm366_vm0, %v979_v4  ;;  %370 = vst.msk [vmem:[%s1200_s5 + $0x18] sm:$0xff] (!%p803_p10), %vm366_vm0, %v979_v4 }
  0x27 PF: > { %v915_v5 = vld [vmem:[%s1060_s15 + $0x40] sm:$0xff]   ;;  %v917_v7 = vld [vmem:[%s1060_s15 + $0x48] sm:$0xff]   ;;  %v919_v9 = vld [vmem:[%s1060_s15 + $0x50] sm:$0xff]   ;;  %vm580_vm1 = vcmask 523264   ;;  %p824_p11 = scmp.ne.s32.totalorder %s969_s20, 2 }
  0x28   : > { %v916_v6 = vld [vmem:[%s1060_s15] sm:$0xff]   ;;  %830 = vmatprep.subr.bf16.mxu0 %v915_v5  ;;  %858 = vmatprep.subr.bf16.mxu1 %v915_v5  ;;  %v918_v8 = vld [vmem:[%s1060_s15 + $0x8] sm:$0xff]   ;;  %v920_v10 = vld [vmem:[%s1060_s15 + $0x10] sm:$0xff]  }
  0x29   : > { %831 = vmatpush3.bf16.msra.mxu0 %v916_v6  ;;  %866 = vmatpush3.bf16.msra.mxu1 %v916_v6  ;;  %v921_v11 = vld [vmem:[%s1060_s15 + $0x58] sm:$0xff]   ;;  %v923_v13 = vld [vmem:[%s1060_s15 + $0x60] sm:$0xff]   ;;  %v925_v15 = vld [vmem:[%s1060_s15 + $0x68] sm:$0xff]  }
  0x2a   : > { %832 = vmatprep.subr.bf16.mxu0 %v917_v7  ;;  %859 = vmatprep.subr.bf16.mxu1 %v917_v7  ;;  %v922_v12 = vld [vmem:[%s1060_s15 + $0x18] sm:$0xff]   ;;  %v924_v14 = vld [vmem:[%s1060_s15 + $0x20] sm:$0xff]   ;;  %v926_v18 = vld [vmem:[%s1060_s15 + $0x28] sm:$0xff]  }
  0x2b   : > { %v933_v16 = vld [vmem:[%s1062_s16 + $0x4] ss:$8 sps:$4 sm:$0xff]   ;;  %v936_v17 = vld [vmem:[%s1062_s16 + $0x14] ss:$8 sps:$4 sm:$0xff]   ;;  %v931_v23 = vld [vmem:[%s1062_s16] ss:$8 sps:$4 sm:$0xff]  }
  0x2c   : > { %v927_v19 = vld [vmem:[%s1060_s15 + $0x70] sm:$0xff]   ;;  %559 = vmatprep.mubr.bf16.mxu0 %v933_v16  ;;  %567 = vmatprep.mubr.bf16.mxu1 %v936_v17  ;;  %v929_v21 = vld [vmem:[%s1060_s15 + $0x78] sm:$0xff]   ;;  %v371_v27 = vld [vmem:[%s1200_s5] sm:$0xff] }
  0x2d   : > { %833 = vmatpush3.bf16.msra.mxu0 %v918_v8  ;;  %867 = vmatpush3.bf16.msra.mxu1 %v918_v8  ;;  %v928_v20 = vld [vmem:[%s1060_s15 + $0x30] sm:$0xff]   ;;  %v930_v22 = vld [vmem:[%s1060_s15 + $0x38] sm:$0xff]   ;;  %v372_v35 = vld [vmem:[%s1200_s5 + $0x8] sm:$0xff] }
  0x2e   : > { %834 = vmatprep.subr.bf16.mxu0 %v919_v9  ;;  %860 = vmatprep.subr.bf16.mxu1 %v919_v9  ;;  %v934_v24 = vld [vmem:[%s1062_s16 + $0x10] ss:$8 sps:$4 sm:$0xff]  }
  0x2f   : > { %v373_v29 = vld [vmem:[%s1200_s5 + $0x10] sm:$0xff]  ;;  %v374_v37 = vld [vmem:[%s1200_s5 + $0x18] sm:$0xff] }
  0x31   : > { %835 = vmatpush3.bf16.msra.mxu0 %v920_v10  ;;  %868 = vmatpush3.bf16.msra.mxu1 %v920_v10 }
  0x32   : > { %836 = vmatprep.subr.bf16.mxu0 %v921_v11  ;;  %861 = vmatprep.subr.bf16.mxu1 %v921_v11 }
  0x35   : > { %837 = vmatpush3.bf16.msra.mxu0 %v922_v12  ;;  %869 = vmatpush3.bf16.msra.mxu1 %v922_v12 }
  0x36   : > { %838 = vmatprep.subr.bf16.mxu0 %v923_v13  ;;  %862 = vmatprep.subr.bf16.mxu1 %v923_v13 }
  0x39   : > { %839 = vmatpush3.bf16.msra.mxu0 %v924_v14  ;;  %870 = vmatpush3.bf16.msra.mxu1 %v924_v14 }
  0x3a   : > { %840 = vmatprep.subr.bf16.mxu0 %v925_v15  ;;  %863 = vmatprep.subr.bf16.mxu1 %v925_v15 }
  0x3d   : > { %841 = vmatpush3.bf16.msra.mxu0 %v926_v18  ;;  %871 = vmatpush3.bf16.msra.mxu1 %v926_v18 }
  0x3e   : > { %842 = vmatprep.subr.bf16.mxu0 %v927_v19  ;;  %864 = vmatprep.subr.bf16.mxu1 %v927_v19 }
  0x41   : > { %843 = vmatpush3.bf16.msra.mxu0 %v928_v20  ;;  %872 = vmatpush3.bf16.msra.mxu1 %v928_v20 }
  0x42   : > { %844 = vmatprep.subr.bf16.mxu0 %v929_v21  ;;  %865 = vmatprep.subr.bf16.mxu1 %v929_v21 }
  0x45   : > { %845 = vmatpush3.bf16.msra.mxu0 %v930_v22  ;;  %873 = vmatpush3.bf16.msra.mxu1 %v930_v22  ;;  %v635_v22 = vlaneseq (!%p824_p11) }
  0x48   : > { %560 = vmatmul.mubr.bf16.vlgmr.msra.gmra.mrb[0].mxu0 %v931_v23  ;;  %568 = vmatmul.mubr.bf16.vlgmr.msra.gmra.mrb[0].mxu1 %v934_v24  ;;  %v636_v23 = vshrl.u32 (!%p824_p11), %v635_v22, 7  ;;  %v630_v24 = vld [vmem:[%s1197_s2] sm:$0x1] (!%p824_p11) }
 0x11b   : > { %v846_v25 = vpop.f32.mrb[0].mxu0  ;;  %v852_v26 = vpop.f32.mrb[0].mxu1 }
 0x11c   : > { %v847_v28 = vpop.f32.mrb[1].mxu0  ;;  %v853_v30 = vpop.f32.mrb[1].mxu1 }
 0x11d   : > { %v848_v31 = vadd.f32 %v847_v28, %v846_v25  ;;  %v854_v32 = vadd.f32 %v853_v30, %v852_v26  ;;  %v849_v33 = vpop.f32.mrb[2].mxu0  ;;  %v855_v34 = vpop.f32.mrb[2].mxu1  ;;  %588 = sbr.rel (%p824_p11) target bundleno = 372 (0x174), region = 86  ;;  %v637_v25 = vsub.s32 (!%p824_p11), 0, %v636_v23 }
 0x11e   : > { %v850_v36 = vpop.f32.mrb[3].mxu0  ;;  %v856_v38 = vpop.f32.mrb[3].mxu1 }
 0x11f   : > { %v576_v39 = vadd.f32 %v848_v31, %v371_v27  ;;  %v578_v40 = vadd.f32 %v854_v32, %v373_v29  ;;  %v851_v41 = vadd.f32 %v850_v36, %v849_v33  ;;  %v857_v42 = vadd.f32 %v856_v38, %v855_v34  ;;  %v825_v29 = vld [vmem:[%s1198_s3] ss:$0 sm:$0xff] (!%p824_p11)  ;;  %v657_v36 = vld [vmem:[%s1199_s4 + $0x10] sm:$0xff] (!%p824_p11) }
 0x120   : > { %v655_v31 = vld [vmem:[%s1199_s4] sm:$0xff] (!%p824_p11) }
 0x121   : > { %581 = vst.msk [vmem:[%s1200_s5] sm:$0xff] %vm580_vm1, %v576_v39  ;;  %583 = vst.msk [vmem:[%s1200_s5 + $0x10] sm:$0xff] %vm580_vm1, %v578_v40  ;;  %v577_v43 = vadd.f32 %v851_v41, %v372_v35  ;;  %v579_v44 = vadd.f32 %v857_v42, %v374_v37  ;;  %v656_v35 = vld [vmem:[%s1199_s4 + $0x8] sm:$0xff] (!%p824_p11)  ;;  %v658_v37 = vld [vmem:[%s1199_s4 + $0x18] sm:$0xff] (!%p824_p11) }
 0x123   : > { %582 = vst.msk [vmem:[%s1200_s5 + $0x8] sm:$0xff] %vm580_vm1, %v577_v43  ;;  %584 = vst.msk [vmem:[%s1200_s5 + $0x18] sm:$0xff] %vm580_vm1, %v579_v44 }
 0x128   : > { %v589_v45 = vld [vmem:[%s1200_s5] sm:$0xff]  ;;  %v591_v47 = vld [vmem:[%s1200_s5 + $0x10] sm:$0xff] }
 0x129   : > { %v593_v49 = vsel %vm580_vm1, %v589_v45, 0.0  ;;  %v596_v51 = vsel %vm580_vm1, %v591_v47, 0.0 }
 0x12a   : > { %v590_v46 = vld [vmem:[%s1200_s5 + $0x8] sm:$0xff]  ;;  %v592_v48 = vld [vmem:[%s1200_s5 + $0x18] sm:$0xff] }
 0x12b   : > { %v594_v50 = vsel %vm580_vm1, %v590_v46, 0.0  ;;  %v598_v53 = vsel %vm580_vm1, %v592_v48, 0.0 }
 0x12c   : > { %v595_v52 = vadd.f32 %v594_v50, %v593_v49 }
 0x12e   : > { %v597_v54 = vadd.f32 %v596_v51, %v595_v52 }
 0x130   : > { %v599_v55 = vadd.f32 %v598_v53, %v597_v54 }
 0x132   : > { %v600_v56 = vrot.slane %v599_v55, 4 }
 0x134   : > { %v601_v57 = vadd.f32 %v600_v56, %v599_v55 }
 0x136   : > { %v602_v58 = vrot.slane %v601_v57, 2 }
 0x138   : > { %v603_v59 = vadd.f32 %v602_v58, %v601_v57 }
 0x13a   : > { %v604_v60 = vrot.slane %v603_v59, 1 }
 0x13c   : > { %v605_v61 = vadd.f32 %v604_v60, %v603_v59 }
 0x13e   : > { %v607_v62 = vmul.f32 0.03125, %v605_v61 }
 0x140   : > { %v608_v63 = vsub.f32 %v589_v45, %v607_v62  ;;  %v609_v0 = vsub.f32 %v590_v46, %v607_v62  ;;  %v610_v1 = vsub.f32 %v591_v47, %v607_v62  ;;  %v611_v2 = vsub.f32 %v592_v48, %v607_v62 }
 0x142   : > { %v612_v3 = vmul.f32 %v608_v63, %v608_v63  ;;  %v613_v4 = vmul.f32 %v609_v0, %v609_v0  ;;  %v614_v5 = vmul.f32 %v610_v1, %v610_v1  ;;  %v615_v6 = vmul.f32 %v611_v2, %v611_v2 }
 0x144   : > { %v616_v7 = vsel %vm580_vm1, %v612_v3, 0.0  ;;  %v617_v8 = vsel %vm580_vm1, %v613_v4, 0.0  ;;  %v619_v9 = vsel %vm580_vm1, %v614_v5, 0.0  ;;  %v621_v11 = vsel %vm580_vm1, %v615_v6, 0.0 }
 0x145   : > { %v618_v10 = vadd.f32 %v617_v8, %v616_v7 }
 0x147   : > { %v620_v12 = vadd.f32 %v619_v9, %v618_v10 }
 0x149   : > { %v622_v13 = vadd.f32 %v621_v11, %v620_v12 }
 0x14b   : > { %v623_v14 = vrot.slane %v622_v13, 4 }
 0x14d   : > { %v624_v15 = vadd.f32 %v623_v14, %v622_v13 }
 0x14f   : > { %v625_v16 = vrot.slane %v624_v15, 2 }
 0x151   : > { %v626_v17 = vadd.f32 %v625_v16, %v624_v15 }
 0x153   : > { %v627_v18 = vrot.slane %v626_v17, 1 }
 0x155   : > { %v628_v19 = vadd.f32 %v627_v18, %v626_v17 }
 0x157   : > { %v629_v20 = vmul.f32 0.03125, %v628_v19 }
 0x159   : > { %v631_v21 = vadd.f32 1e-05, %v629_v20 }
 0x15b   : > { %937 = vrsqrt.f32 %v631_v21 }
 0x165   : > { %v938_v26 = vpop.eup %937 }
 0x166   : > { %v633_v27 = vmul.f32 %v938_v26, %v630_v24 }
 0x168   : > { %v638_v28 = vrot.slane %v633_v27, %v637_v25 }
 0x16a   : > { %v640_v30 = vmul.f32 %v638_v28, %v608_v63  ;;  %v641_v32 = vmul.f32 %v638_v28, %v609_v0  ;;  %v642_v33 = vmul.f32 %v638_v28, %v610_v1  ;;  %v643_v34 = vmul.f32 %v638_v28, %v611_v2 }
 0x16c   : > { %v651_v38 = vadd.f32 %v825_v29, %v640_v30  ;;  %v652_v39 = vadd.f32 %v825_v29, %v641_v32  ;;  %v653_v40 = vadd.f32 %v825_v29, %v642_v33  ;;  %v654_v41 = vadd.f32 %v825_v29, %v643_v34 }
 0x16e   : > { %v659_v42 = vadd.f32 %v655_v31, %v651_v38  ;;  %v660_v43 = vadd.f32 %v656_v35, %v652_v39  ;;  %v661_v44 = vadd.f32 %v657_v36, %v653_v40  ;;  %v662_v45 = vadd.f32 %v658_v37, %v654_v41 }
 0x170   : > { %v663_v46 = vmax.f32 %v659_v42, 0.0  ;;  %v664_v47 = vmax.f32 %v660_v43, 0.0  ;;  %v665_v48 = vmax.f32 %v661_v44, 0.0  ;;  %v666_v49 = vmax.f32 %v662_v45, 0.0 }
 0x172   : > { %667 = vst.msk [vmem:[%s1200_s5] sm:$0xff] %vm580_vm1, %v663_v46  ;;  %668 = vst.msk [vmem:[%s1200_s5 + $0x8] sm:$0xff] %vm580_vm1, %v664_v47 }
 0x173   : > { %669 = vst.msk [vmem:[%s1200_s5 + $0x10] sm:$0xff] %vm580_vm1, %v665_v48  ;;  %670 = vst.msk [vmem:[%s1200_s5 + $0x18] sm:$0xff] %vm580_vm1, %v666_v49 }
 0x174 PF: > { %s15_s22 = sadd.s32 1, %s977_s22   ;;  %s1201_s18 = smov %s965_s19 }
 0x175   : > { %p12_p12 = scmp.ge.s32.totalorder %s15_s22, 5   ;;  %s1202_s19 = smov %s1045_s26 }
 0x176   : > { %s1203_s20 = smov %s973_s21  ;;  %s1204_s21 = smov %s1206_s23 }
 0x177   :  { %14 = sbr.rel (!%p12_p12) target bundleno = 3 (0x3), region = 133 }

// kernel: simsiam_forward.55
= control target key start
LH: loop header
LB: loop body
LE: loop exit
PB: predicated region body
PF: predicated region fallthrough
CT: control target
= control target key end

     0   :  { %s858_s15 = smov 0   ;;  %s860_s16 = smov 0   ;;  %s986_s0 = inlined_call_operand.vmem [shape: bf16[16,768], index: 0, kind: input, shape index: {}]   ;;  %s987_s1 = inlined_call_operand.vmem [shape: bf16[768,128], index: 1, kind: input, shape index: {}]   ;;  %s988_s2 = inlined_call_operand.vmem [shape: f32[1,128], index: 2, kind: input, shape index: {}]   ;;  %s989_s3 = inlined_call_operand.vmem [shape: f32[1,128], index: 3, kind: input, shape index: {}]   ;;  %s990_s4 = inlined_call_operand.vmem [shape: f32[16,128], index: 4, kind: output, shape index: {}]  }
   0x1   :  { %s862_s17 = smov 0   ;;  %s864_s18 = smov 0  }
   0x2   :  { %s866_s19 = smov 0  }
   0x3 LB: > { %s23_s20 = sadd.s32 1, %s826_s18  ;;  %p40_p1 = scmp.ne.s32.totalorder %s818_s16, %s814_s15  ;;  %s830_s19 = sphi %s866_s19, %s14_s19   ;;  %s826_s18 = sphi %s864_s18, %s994_s18   ;;  %s822_s17 = sphi %s862_s17, %s993_s17   ;;  %s818_s16 = sphi %s860_s16, %s992_s16   ;;  %s814_s15 = sphi %s858_s15, %s991_s15  }
   0x4   : > { %p24_p0 = scmp.ge.s32.totalorder %s23_s20, 3  ;;  %p41_p2 = scmp.eq.s32.totalorder %s830_s19, 0 }
   0x5   : > { %s33_s22 = sadd.s32 1, %s818_s16  ;;  %p675_p5 = scmp.ge.s32.totalorder %s830_s19, 3 }
   0x6   : > { %s996_s20 = smov (%p24_p0, %s23_s20), 0  ;;  %p42_p3 = por %p41_p2, %p40_p1 }
   0x7   : > { %s30_s21 = ssub.s32 %s826_s18, %s996_s20  ;;  %184 = sbr.rel (%p675_p5) target bundleno = 21 (0x15), region = 24 }
   0x8   : > { %p31_p4 = scmp.eq.s32.totalorder %s30_s21, 0 }
   0xa   : > { %s893_s23 = scalar_select %p31_p4, %s818_s16, %s33_s22  }
   0xe   : > { %187 = sbr.rel (!%p42_p3) target bundleno = 21 (0x15), region = 28  ;;  %s189_s24 = sand.u32 (%p42_p3), 1, %s818_s16  }
   0xf   : > { %s707_s25 = sshll.u32 (%p42_p3), %s826_s18, 3  ;;  %s676_s26 = sshll.u32 (%p42_p3), %s189_s24, 4 }
  0x10   : > { %s194_s29 = scalar_lea.vmem (%p42_p3), %s986_s0, %s707_s25  ;;  %s191_s30 = scalar_lea.vmem (%p42_p3), [#allocation2], %s676_s26 }
  0x11   : > { %v224_v0 = vld [vmem:[%s194_s29] sm:$0xff] (%p42_p3)  ;;  %v226_v1 = vld [vmem:[%s194_s29 + $0x18] sm:$0xff] (%p42_p3) }
  0x12   : > { %225 = vst [vmem:[%s191_s30] sm:$0xff] (%p42_p3), %v224_v0  ;;  %227 = vst [vmem:[%s191_s30 + $0x8] sm:$0xff] (%p42_p3), %v226_v1 }
  0x15 PF: > { %p679_p6 = scmp.ge.s32.totalorder %s830_s19, 1  ;;  %p244_p7 = scmp.lt.s32.totalorder %s830_s19, 4 }
  0x17   : > { %p245_p8 = pnand %p679_p6, %p244_p7 }
  0x18   : > { %s251_s5 = sand.u32 (!%p245_p8), 1, %s814_s15   ;;  %s681_s6 = sshll.u32 (!%p245_p8), %s822_s17, 5 }
  0x19   : > { %248 = sbr.rel (%p245_p8) target bundleno = 363 (0x16b), region = 70  ;;  %s905_s7 = sshll.u32 (!%p245_p8), %s251_s5, 4 }
  0x1a   : > { %p291_p9 = scmp.lt.s32.totalorder (!%p245_p8), %s681_s6, 95  ;;  %s253_s12 = scalar_lea.vmem (!%p245_p8), [#allocation2], %s905_s7 }
  0x1b   : > { %p683_p10 = scmp.ne.s32.totalorder (!%p245_p8), %s822_s17, 0 }
  0x20   : > { %s998_s6 = smov (!%p291_p9, %s681_s6), 95  ;;  %313 = sbr.rel (%p683_p10) target bundleno = 39 (0x27), region = 78 }
  0x21   : > { %s682_s8 = sshll.u32 %s998_s6, 2  ;;  %v832_v2 = vmov (!%p683_p10), 0.0  }
  0x22   : > { %s910_s11 = scalar_lea.vmem %s987_s1, %s682_s8  ;;  %314 = vst [vmem:[%s990_s4] sm:$0xff] (!%p683_p10), %v832_v2  ;;  %315 = vst [vmem:[%s990_s4 + $0x8] sm:$0xff] (!%p683_p10), %v832_v2 }
  0x27 PF: > { %v771_v3 = vld [vmem:[%s910_s11 + $0x40] sm:$0xff]   ;;  %v773_v5 = vld [vmem:[%s910_s11 + $0x48] sm:$0xff]   ;;  %v775_v7 = vld [vmem:[%s910_s11 + $0x50] sm:$0xff]   ;;  %p702_p11 = scmp.ne.s32.totalorder %s822_s17, 2 }
  0x28   : > { %v772_v4 = vld [vmem:[%s910_s11] sm:$0xff]   ;;  %708 = vmatprep.subr.bf16.mxu0 %v771_v3  ;;  %v774_v6 = vld [vmem:[%s910_s11 + $0x8] sm:$0xff]   ;;  %v776_v8 = vld [vmem:[%s910_s11 + $0x10] sm:$0xff]   ;;  %v547_v56 = vlaneseq (!%p702_p11) }
  0x29   : > { %709 = vmatpush3.bf16.msra.mxu0 %v772_v4  ;;  %v777_v9 = vld [vmem:[%s910_s11 + $0x58] sm:$0xff]   ;;  %v779_v11 = vld [vmem:[%s910_s11 + $0x60] sm:$0xff]   ;;  %v781_v13 = vld [vmem:[%s910_s11 + $0x68] sm:$0xff]  }
  0x2a   : > { %710 = vmatprep.subr.bf16.mxu0 %v773_v5  ;;  %v778_v10 = vld [vmem:[%s910_s11 + $0x18] sm:$0xff]   ;;  %v780_v12 = vld [vmem:[%s910_s11 + $0x20] sm:$0xff]   ;;  %v782_v15 = vld [vmem:[%s910_s11 + $0x28] sm:$0xff]   ;;  %v548_v57 = vshrl.u32 (!%p702_p11), %v547_v56, 7 }
  0x2b   : > { %v789_v14 = vld [vmem:[%s253_s12 + $0x4] ss:$8 sps:$4 sm:$0xff]   ;;  %v787_v20 = vld [vmem:[%s253_s12] ss:$8 sps:$4 sm:$0xff]  }
  0x2c   : > { %490 = vmatprep.mubr.bf16.mxu0 %v789_v14  ;;  %v783_v16 = vld [vmem:[%s910_s11 + $0x70] sm:$0xff]   ;;  %v785_v18 = vld [vmem:[%s910_s11 + $0x78] sm:$0xff]   ;;  %v316_v22 = vld [vmem:[%s990_s4] sm:$0xff]  ;;  %v549_v59 = vsub.s32 (!%p702_p11), 0, %v548_v57 }
  0x2d   : > { %711 = vmatpush3.bf16.msra.mxu0 %v774_v6  ;;  %v784_v17 = vld [vmem:[%s910_s11 + $0x30] sm:$0xff]   ;;  %v786_v19 = vld [vmem:[%s910_s11 + $0x38] sm:$0xff]   ;;  %v317_v26 = vld [vmem:[%s990_s4 + $0x8] sm:$0xff] }
  0x2e   : > { %712 = vmatprep.subr.bf16.mxu0 %v775_v7  ;;  %v542_v58 = vld [vmem:[%s988_s2] sm:$0x1] (!%p702_p11) }
  0x2f   : > { %v703_v63 = vld [vmem:[%s989_s3] ss:$0 sm:$0xff] (!%p702_p11) }
  0x31   : > { %713 = vmatpush3.bf16.msra.mxu0 %v776_v8 }
  0x32   : > { %714 = vmatprep.subr.bf16.mxu0 %v777_v9 }
  0x35   : > { %715 = vmatpush3.bf16.msra.mxu0 %v778_v10 }
  0x36   : > { %716 = vmatprep.subr.bf16.mxu0 %v779_v11 }
  0x39   : > { %717 = vmatpush3.bf16.msra.mxu0 %v780_v12 }
  0x3a   : > { %718 = vmatprep.subr.bf16.mxu0 %v781_v13 }
  0x3d   : > { %719 = vmatpush3.bf16.msra.mxu0 %v782_v15 }
  0x3e   : > { %720 = vmatprep.subr.bf16.mxu0 %v783_v16 }
  0x41   : > { %721 = vmatpush3.bf16.msra.mxu0 %v784_v17 }
  0x42   : > { %722 = vmatprep.subr.bf16.mxu0 %v785_v18 }
  0x45   : > { %723 = vmatpush3.bf16.msra.mxu0 %v786_v19 }
  0x48   : > { %491 = vmatmul.mubr.bf16.vlgmr.msra.gmra.mrb[0].mxu0 %v787_v20 }
 0x11b   : > { %v724_v21 = vpop.f32.mrb[0].mxu0 }
 0x11c   : > { %v725_v23 = vpop.f32.mrb[1].mxu0 }
 0x11d   : > { %v726_v24 = vadd.f32 %v725_v23, %v724_v21  ;;  %v727_v25 = vpop.f32.mrb[2].mxu0  ;;  %506 = sbr.rel (%p702_p11) target bundleno = 363 (0x16b), region = 82 }
 0x11e   : > { %v728_v27 = vpop.f32.mrb[3].mxu0 }
 0x11f   : > { %v499_v28 = vadd.f32 %v726_v24, %v316_v22  ;;  %v729_v29 = vadd.f32 %v728_v27, %v727_v25 }
 0x121   : > { %501 = vst [vmem:[%s990_s4] sm:$0xff] %v499_v28  ;;  %v500_v30 = vadd.f32 %v729_v29, %v317_v26 }
 0x123   : > { %502 = vst [vmem:[%s990_s4 + $0x8] sm:$0xff] %v500_v30 }
 0x128   : > { %v507_v31 = vld [vmem:[%s990_s4] sm:$0xff] }
 0x12a   : > { %v508_v32 = vld [vmem:[%s990_s4 + $0x8] sm:$0xff] }
 0x12b   : > { %v519_v33 = vmul.f32 0.0, %v508_v32 }
 0x12d   : > { %v520_v34 = vadd.f32 %v519_v33, %v507_v31 }
 0x12f   : > { %v521_v35 = vrot.slane %v520_v34, 4 }
 0x131   : > { %v522_v36 = vadd.f32 %v521_v35, %v520_v34 }
 0x133   : > { %v523_v37 = vrot.slane %v522_v36, 2 }
 0x135   : > { %v524_v38 = vadd.f32 %v523_v37, %v522_v36 }
 0x137   : > { %v525_v39 = vrot.slane %v524_v38, 1 }
 0x139   : > { %v526_v40 = vadd.f32 %v525_v39, %v524_v38 }
 0x13b   : > { %v527_v41 = vmul.f32 0.125, %v526_v40 }
 0x13d   : > { %v528_v42 = vsub.f32 %v507_v31, %v527_v41  ;;  %v529_v43 = vsub.f32 %v508_v32, %v527_v41 }
 0x13f   : > { %v531_v44 = vmul.f32 0.0, %v529_v43  ;;  %v532_v45 = vmul.f32 %v528_v42, %v528_v42 }
 0x141   : > { %v533_v46 = vmul.f32 %v531_v44, %v531_v44 }
 0x143   : > { %v534_v47 = vadd.f32 %v533_v46, %v532_v45 }
 0x145   : > { %v535_v48 = vrot.slane %v534_v47, 4 }
 0x147   : > { %v536_v49 = vadd.f32 %v535_v48, %v534_v47 }
 0x149   : > { %v537_v50 = vrot.slane %v536_v49, 2 }
 0x14b   : > { %v538_v51 = vadd.f32 %v537_v50, %v536_v49 }
 0x14d   : > { %v539_v52 = vrot.slane %v538_v51, 1 }
 0x14f   : > { %v540_v53 = vadd.f32 %v539_v52, %v538_v51 }
 0x151   : > { %v541_v54 = vmul.f32 0.125, %v540_v53 }
 0x153   : > { %v543_v55 = vadd.f32 1e-05, %v541_v54 }
 0x155   : > { %790 = vrsqrt.f32 %v543_v55 }
 0x15f   : > { %v791_v60 = vpop.eup %790 }
 0x160   : > { %v545_v61 = vmul.f32 %v791_v60, %v542_v58 }
 0x162   : > { %v550_v62 = vrot.slane %v545_v61, %v549_v59 }
 0x164   : > { %v552_v0 = vmul.f32 %v550_v62, %v528_v42  ;;  %v553_v1 = vmul.f32 %v550_v62, %v529_v43 }
 0x166   : > { %v561_v2 = vadd.f32 %v703_v63, %v552_v0  ;;  %v562_v3 = vadd.f32 %v703_v63, %v553_v1 }
 0x168   : > { %v563_v4 = vmax.f32 %v561_v2, 0.0  ;;  %v564_v5 = vmax.f32 %v562_v3, 0.0 }
 0x16a   : > { %565 = vst [vmem:[%s990_s4] sm:$0xff] %v563_v4  ;;  %566 = vst [vmem:[%s990_s4 + $0x8] sm:$0xff] %v564_v5 }
 0x16b PF: > { %s14_s19 = sadd.s32 1, %s830_s19   ;;  %s991_s15 = smov %s818_s16 }
 0x16c   : > { %p11_p12 = scmp.ge.s32.totalorder %s14_s19, 5   ;;  %s992_s16 = smov %s893_s23 }
 0x16d   : > { %s993_s17 = smov %s826_s18  ;;  %s994_s18 = smov %s996_s20 }
 0x16e   :  { %13 = sbr.rel (!%p11_p12) target bundleno = 3 (0x3), region = 126 }

// kernel: simsiam_forward.56
= control target key start
LH: loop header
LB: loop body
LE: loop exit
PB: predicated region body
PF: predicated region fallthrough
CT: control target
= control target key end

     0   :  { %v254_v47 = vlaneseq  ;;  %s430_s1 = inlined_call_operand.vmem [shape: bf16[256,128], index: 1, kind: input, shape index: {}]   ;;  %s431_s0 = inlined_call_operand.vmem [shape: bf16[16,256], index: 0, kind: input, shape index: {}]   ;;  %s432_s2 = inlined_call_operand.vmem [shape: f32[1,128], index: 2, kind: input, shape index: {}]   ;;  %s433_s3 = inlined_call_operand.vmem [shape: f32[1,128], index: 3, kind: input, shape index: {}]   ;;  %s434_s4 = inlined_call_operand.vmem [shape: f32[16,128], index: 4, kind: output, shape index: {}]  }
   0x1   :  { %v318_v0 = vld [vmem:[%s430_s1 + $0x40] sm:$0xff]   ;;  %v320_v2 = vld [vmem:[%s430_s1 + $0x48] sm:$0xff]   ;;  %v322_v4 = vld [vmem:[%s430_s1 + $0x50] sm:$0xff]  }
   0x2   :  { %v319_v1 = vld [vmem:[%s430_s1] sm:$0xff]   ;;  %295 = vmatprep.subr.bf16.mxu0 %v318_v0  ;;  %v321_v3 = vld [vmem:[%s430_s1 + $0x8] sm:$0xff]   ;;  %v323_v5 = vld [vmem:[%s430_s1 + $0x10] sm:$0xff]   ;;  %v255_v48 = vshrl.u32 %v254_v47, 7 }
   0x3   :  { %296 = vmatpush3.bf16.msra.mxu0 %v319_v1  ;;  %v324_v6 = vld [vmem:[%s430_s1 + $0x58] sm:$0xff]   ;;  %v326_v8 = vld [vmem:[%s430_s1 + $0x60] sm:$0xff]   ;;  %v328_v10 = vld [vmem:[%s430_s1 + $0x68] sm:$0xff]  }
   0x4   :  { %297 = vmatprep.subr.bf16.mxu0 %v320_v2  ;;  %v325_v7 = vld [vmem:[%s430_s1 + $0x18] sm:$0xff]   ;;  %v327_v9 = vld [vmem:[%s430_s1 + $0x20] sm:$0xff]   ;;  %v329_v12 = vld [vmem:[%s430_s1 + $0x28] sm:$0xff]   ;;  %v256_v50 = vsub.s32 0, %v255_v48 }
   0x5   :  { %v336_v11 = vld [vmem:[%s431_s0 + $0x4] ss:$8 sps:$4 sm:$0xff]   ;;  %v330_v13 = vld [vmem:[%s430_s1 + $0x70] sm:$0xff]   ;;  %v332_v15 = vld [vmem:[%s430_s1 + $0x78] sm:$0xff]  }
   0x6   :  { %198 = vmatprep.mubr.bf16.mxu0 %v336_v11  ;;  %v331_v14 = vld [vmem:[%s430_s1 + $0x30] sm:$0xff]   ;;  %v333_v16 = vld [vmem:[%s430_s1 + $0x38] sm:$0xff]   ;;  %v334_v17 = vld [vmem:[%s431_s0] ss:$8 sps:$4 sm:$0xff]  }
   0x7   :  { %298 = vmatpush3.bf16.msra.mxu0 %v321_v3  ;;  %v249_v49 = vld [vmem:[%s432_s2] sm:$0x1] }
   0x8   :  { %299 = vmatprep.subr.bf16.mxu0 %v322_v4  ;;  %v294_v54 = vld [vmem:[%s433_s3] ss:$0 sm:$0xff] }
   0xb   :  { %300 = vmatpush3.bf16.msra.mxu0 %v323_v5 }
   0xc   :  { %301 = vmatprep.subr.bf16.mxu0 %v324_v6 }
   0xf   :  { %302 = vmatpush3.bf16.msra.mxu0 %v325_v7 }
  0x10   :  { %303 = vmatprep.subr.bf16.mxu0 %v326_v8 }
  0x13   :  { %304 = vmatpush3.bf16.msra.mxu0 %v327_v9 }
  0x14   :  { %305 = vmatprep.subr.bf16.mxu0 %v328_v10 }
  0x17   :  { %306 = vmatpush3.bf16.msra.mxu0 %v329_v12 }
  0x18   :  { %307 = vmatprep.subr.bf16.mxu0 %v330_v13 }
  0x1b   :  { %308 = vmatpush3.bf16.msra.mxu0 %v331_v14 }
  0x1c   :  { %309 = vmatprep.subr.bf16.mxu0 %v332_v15 }
  0x1f   :  { %310 = vmatpush3.bf16.msra.mxu0 %v333_v16 }
  0x22   :  { %199 = vmatmul.mubr.bf16.vlgmr.msra.gmra.mrb[0].mxu0 %v334_v17 }
  0xf5   :  { %v311_v18 = vpop.f32.mrb[0].mxu0 }
  0xf6   :  { %v312_v19 = vpop.f32.mrb[1].mxu0 }
  0xf7   :  { %v313_v20 = vadd.f32 %v312_v19, %v311_v18  ;;  %v314_v21 = vpop.f32.mrb[2].mxu0 }
  0xf8   :  { %v315_v22 = vpop.f32.mrb[3].mxu0 }
  0xf9   :  { %v316_v23 = vadd.f32 %v315_v22, %v314_v21 }
  0xfb   :  { %v226_v24 = vmul.f32 0.0, %v316_v23 }
  0xfd   :  { %v227_v25 = vadd.f32 %v313_v20, %v226_v24 }
  0xff   :  { %v228_v26 = vrot.slane %v227_v25, 4 }
 0x101   :  { %v229_v27 = vadd.f32 %v228_v26, %v227_v25 }
 0x103   :  { %v230_v28 = vrot.slane %v229_v27, 2 }
 0x105   :  { %v231_v29 = vadd.f32 %v230_v28, %v229_v27 }
 0x107   :  { %v232_v30 = vrot.slane %v231_v29, 1 }
 0x109   :  { %v233_v31 = vadd.f32 %v232_v30, %v231_v29 }
 0x10b   :  { %v234_v32 = vmul.f32 0.125, %v233_v31 }
 0x10d   :  { %v235_v33 = vsub.f32 %v313_v20, %v234_v32  ;;  %v236_v34 = vsub.f32 %v316_v23, %v234_v32 }
 0x10f   :  { %v238_v35 = vmul.f32 0.0, %v236_v34  ;;  %v239_v36 = vmul.f32 %v235_v33, %v235_v33 }
 0x111   :  { %v240_v37 = vmul.f32 %v238_v35, %v238_v35 }
 0x113   :  { %v241_v38 = vadd.f32 %v240_v37, %v239_v36 }
 0x115   :  { %v242_v39 = vrot.slane %v241_v38, 4 }
 0x117   :  { %v243_v40 = vadd.f32 %v242_v39, %v241_v38 }
 0x119   :  { %v244_v41 = vrot.slane %v243_v40, 2 }
 0x11b   :  { %v245_v42 = vadd.f32 %v244_v41, %v243_v40 }
 0x11d   :  { %v246_v43 = vrot.slane %v245_v42, 1 }
 0x11f   :  { %v247_v44 = vadd.f32 %v246_v43, %v245_v42 }
 0x121   :  { %v248_v45 = vmul.f32 0.125, %v247_v44 }
 0x123   :  { %v250_v46 = vadd.f32 1e-05, %v248_v45 }
 0x125   :  { %337 = vrsqrt.f32 %v250_v46 }
 0x12f   :  { %v338_v51 = vpop.eup %337 }
 0x130   :  { %v252_v52 = vmul.f32 %v338_v51, %v249_v49 }
 0x132   :  { %v257_v53 = vrot.slane %v252_v52, %v256_v50 }
 0x134   :  { %v259_v55 = vmul.f32 %v257_v53, %v235_v33  ;;  %v260_v56 = vmul.f32 %v257_v53, %v236_v34 }
 0x136   :  { %v268_v57 = vadd.f32 %v294_v54, %v259_v55  ;;  %v269_v58 = vadd.f32 %v294_v54, %v260_v56 }
 0x138   :  { %270 = vst [vmem:[%s434_s4] sm:$0xff] %v268_v57  ;;  %271 = vst [vmem:[%s434_s4 + $0x8] sm:$0xff] %v269_v58 }

// kernel: simsiam_forward.58
= control target key start
LH: loop header
LB: loop body
LE: loop exit
PB: predicated region body
PF: predicated region fallthrough
CT: control target
= control target key end

     0   :  { %s858_s15 = smov 0   ;;  %s860_s16 = smov 0   ;;  %s986_s0 = inlined_call_operand.vmem [shape: bf16[16,1280], index: 0, kind: input, shape index: {}]   ;;  %s987_s1 = inlined_call_operand.vmem [shape: bf16[1280,128], index: 1, kind: input, shape index: {}]   ;;  %s988_s2 = inlined_call_operand.vmem [shape: f32[1,128], index: 2, kind: input, shape index: {}]   ;;  %s989_s3 = inlined_call_operand.vmem [shape: f32[1,128], index: 3, kind: input, shape index: {}]   ;;  %s990_s4 = inlined_call_operand.vmem [shape: f32[16,128], index: 4, kind: output, shape index: {}]  }
   0x1   :  { %s862_s17 = smov 0   ;;  %s864_s18 = smov 0  }
   0x2   :  { %s866_s19 = smov 0  }
   0x3 LB: > { %s23_s20 = sadd.s32 1, %s826_s18  ;;  %p40_p1 = scmp.ne.s32.totalorder %s818_s16, %s814_s15  ;;  %s830_s19 = sphi %s866_s19, %s14_s19   ;;  %s826_s18 = sphi %s864_s18, %s994_s18   ;;  %s822_s17 = sphi %s862_s17, %s993_s17   ;;  %s818_s16 = sphi %s860_s16, %s992_s16   ;;  %s814_s15 = sphi %s858_s15, %s991_s15  }
   0x4   : > { %p24_p0 = scmp.ge.s32.totalorder %s23_s20, 5  ;;  %p41_p2 = scmp.eq.s32.totalorder %s830_s19, 0 }
   0x5   : > { %s33_s22 = sadd.s32 1, %s818_s16  ;;  %p675_p5 = scmp.ge.s32.totalorder %s830_s19, 5 }
   0x6   : > { %s996_s20 = smov (%p24_p0, %s23_s20), 0  ;;  %p42_p3 = por %p41_p2, %p40_p1 }
   0x7   : > { %s30_s21 = ssub.s32 %s826_s18, %s996_s20  ;;  %184 = sbr.rel (%p675_p5) target bundleno = 21 (0x15), region = 24 }
   0x8   : > { %p31_p4 = scmp.eq.s32.totalorder %s30_s21, 0 }
   0xa   : > { %s893_s23 = scalar_select %p31_p4, %s818_s16, %s33_s22  }
   0xe   : > { %187 = sbr.rel (!%p42_p3) target bundleno = 21 (0x15), region = 28  ;;  %s189_s24 = sand.u32 (%p42_p3), 1, %s818_s16  }
   0xf   : > { %s707_s25 = sshll.u32 (%p42_p3), %s826_s18, 3  ;;  %s676_s26 = sshll.u32 (%p42_p3), %s189_s24, 4 }
  0x10   : > { %s194_s29 = scalar_lea.vmem (%p42_p3), %s986_s0, %s707_s25  ;;  %s191_s30 = scalar_lea.vmem (%p42_p3), [#allocation2], %s676_s26 }
  0x11   : > { %v224_v0 = vld [vmem:[%s194_s29] sm:$0xff] (%p42_p3)  ;;  %v226_v1 = vld [vmem:[%s194_s29 + $0x28] sm:$0xff] (%p42_p3) }
  0x12   : > { %225 = vst [vmem:[%s191_s30] sm:$0xff] (%p42_p3), %v224_v0  ;;  %227 = vst [vmem:[%s191_s30 + $0x8] sm:$0xff] (%p42_p3), %v226_v1 }
  0x15 PF: > { %p679_p6 = scmp.ge.s32.totalorder %s830_s19, 1  ;;  %p244_p7 = scmp.lt.s32.totalorder %s830_s19, 6 }
  0x17   : > { %p245_p8 = pnand %p679_p6, %p244_p7 }
  0x18   : > { %s251_s5 = sand.u32 (!%p245_p8), 1, %s814_s15   ;;  %s681_s6 = sshll.u32 (!%p245_p8), %s822_s17, 5 }
  0x19   : > { %248 = sbr.rel (%p245_p8) target bundleno = 363 (0x16b), region = 70  ;;  %s905_s7 = sshll.u32 (!%p245_p8), %s251_s5, 4 }
  0x1a   : > { %p291_p9 = scmp.lt.s32.totalorder (!%p245_p8), %s681_s6, 159  ;;  %s253_s12 = scalar_lea.vmem (!%p245_p8), [#allocation2], %s905_s7 }
  0x1b   : > { %p683_p10 = scmp.ne.s32.totalorder (!%p245_p8), %s822_s17, 0 }
  0x20   : > { %s998_s6 = smov (!%p291_p9, %s681_s6), 159  ;;  %313 = sbr.rel (%p683_p10) target bundleno = 39 (0x27), region = 78 }
  0x21   : > { %s682_s8 = sshll.u32 %s998_s6, 2  ;;  %v832_v2 = vmov (!%p683_p10), 0.0  }
  0x22   : > { %s910_s11 = scalar_lea.vmem %s987_s1, %s682_s8  ;;  %314 = vst [vmem:[%s990_s4] sm:$0xff] (!%p683_p10), %v832_v2  ;;  %315 = vst [vmem:[%s990_s4 + $0x8] sm:$0xff] (!%p683_p10), %v832_v2 }
  0x27 PF: > { %v771_v3 = vld [vmem:[%s910_s11 + $0x40] sm:$0xff]   ;;  %v773_v5 = vld [vmem:[%s910_s11 + $0x48] sm:$0xff]   ;;  %v775_v7 = vld [vmem:[%s910_s11 + $0x50] sm:$0xff]   ;;  %p702_p11 = scmp.ne.s32.totalorder %s822_s17, 4 }
  0x28   : > { %v772_v4 = vld [vmem:[%s910_s11] sm:$0xff]   ;;  %708 = vmatprep.subr.bf16.mxu0 %v771_v3  ;;  %v774_v6 = vld [vmem:[%s910_s11 + $0x8] sm:$0xff]   ;;  %v776_v8 = vld [vmem:[%s910_s11 + $0x10] sm:$0xff]   ;;  %v547_v56 = vlaneseq (!%p702_p11) }
  0x29   : > { %709 = vmatpush3.bf16.msra.mxu0 %v772_v4  ;;  %v777_v9 = vld [vmem:[%s910_s11 + $0x58] sm:$0xff]   ;;  %v779_v11 = vld [vmem:[%s910_s11 + $0x60] sm:$0xff]   ;;  %v781_v13 = vld [vmem:[%s910_s11 + $0x68] sm:$0xff]  }
  0x2a   : > { %710 = vmatprep.subr.bf16.mxu0 %v773_v5  ;;  %v778_v10 = vld [vmem:[%s910_s11 + $0x18] sm:$0xff]   ;;  %v780_v12 = vld [vmem:[%s910_s11 + $0x20] sm:$0xff]   ;;  %v782_v15 = vld [vmem:[%s910_s11 + $0x28] sm:$0xff]   ;;  %v548_v57 = vshrl.u32 (!%p702_p11), %v547_v56, 7 }
  0x2b   : > { %v789_v14 = vld [vmem:[%s253_s12 + $0x4] ss:$8 sps:$4 sm:$0xff]   ;;  %v787_v20 = vld [vmem:[%s253_s12] ss:$8 sps:$4 sm:$0xff]  }
  0x2c   : > { %490 = vmatprep.mubr.bf16.mxu0 %v789_v14  ;;  %v783_v16 = vld [vmem:[%s910_s11 + $0x70] sm:$0xff]   ;;  %v785_v18 = vld [vmem:[%s910_s11 + $0x78] sm:$0xff]   ;;  %v316_v22 = vld [vmem:[%s990_s4] sm:$0xff]  ;;  %v549_v59 = vsub.s32 (!%p702_p11), 0, %v548_v57 }
  0x2d   : > { %711 = vmatpush3.bf16.msra.mxu0 %v774_v6  ;;  %v784_v17 = vld [vmem:[%s910_s11 + $0x30] sm:$0xff]   ;;  %v786_v19 = vld [vmem:[%s910_s11 + $0x38] sm:$0xff]   ;;  %v317_v26 = vld [vmem:[%s990_s4 + $0x8] sm:$0xff] }
  0x2e   : > { %712 = vmatprep.subr.bf16.mxu0 %v775_v7  ;;  %v542_v58 = vld [vmem:[%s988_s2] sm:$0x1] (!%p702_p11) }
  0x2f   : > { %v703_v63 = vld [vmem:[%s989_s3] ss:$0 sm:$0xff] (!%p702_p11) }
  0x31   : > { %713 = vmatpush3.bf16.msra.mxu0 %v776_v8 }
  0x32   : > { %714 = vmatprep.subr.bf16.mxu0 %v777_v9 }
  0x35   : > { %715 = vmatpush3.bf16.msra.mxu0 %v778_v10 }
  0x36   : > { %716 = vmatprep.subr.bf16.mxu0 %v779_v11 }
  0x39   : > { %717 = vmatpush3.bf16.msra.mxu0 %v780_v12 }
  0x3a   : > { %718 = vmatprep.subr.bf16.mxu0 %v781_v13 }
  0x3d   : > { %719 = vmatpush3.bf16.msra.mxu0 %v782_v15 }
  0x3e   : > { %720 = vmatprep.subr.bf16.mxu0 %v783_v16 }
  0x41   : > { %721 = vmatpush3.bf16.msra.mxu0 %v784_v17 }
  0x42   : > { %722 = vmatprep.subr.bf16.mxu0 %v785_v18 }
  0x45   : > { %723 = vmatpush3.bf16.msra.mxu0 %v786_v19 }
  0x48   : > { %491 = vmatmul.mubr.bf16.vlgmr.msra.gmra.mrb[0].mxu0 %v787_v20 }
 0x11b   : > { %v724_v21 = vpop.f32.mrb[0].mxu0 }
 0x11c   : > { %v725_v23 = vpop.f32.mrb[1].mxu0 }
 0x11d   : > { %v726_v24 = vadd.f32 %v725_v23, %v724_v21  ;;  %v727_v25 = vpop.f32.mrb[2].mxu0  ;;  %506 = sbr.rel (%p702_p11) target bundleno = 363 (0x16b), region = 82 }
 0x11e   : > { %v728_v27 = vpop.f32.mrb[3].mxu0 }
 0x11f   : > { %v499_v28 = vadd.f32 %v726_v24, %v316_v22  ;;  %v729_v29 = vadd.f32 %v728_v27, %v727_v25 }
 0x121   : > { %501 = vst [vmem:[%s990_s4] sm:$0xff] %v499_v28  ;;  %v500_v30 = vadd.f32 %v729_v29, %v317_v26 }
 0x123   : > { %502 = vst [vmem:[%s990_s4 + $0x8] sm:$0xff] %v500_v30 }
 0x128   : > { %v507_v31 = vld [vmem:[%s990_s4] sm:$0xff] }
 0x12a   : > { %v508_v32 = vld [vmem:[%s990_s4 + $0x8] sm:$0xff] }
 0x12b   : > { %v519_v33 = vmul.f32 0.0, %v508_v32 }
 0x12d   : > { %v520_v34 = vadd.f32 %v519_v33, %v507_v31 }
 0x12f   : > { %v521_v35 = vrot.slane %v520_v34, 4 }
 0x131   : > { %v522_v36 = vadd.f32 %v521_v35, %v520_v34 }
 0x133   : > { %v523_v37 = vrot.slane %v522_v36, 2 }
 0x135   : > { %v524_v38 = vadd.f32 %v523_v37, %v522_v36 }
 0x137   : > { %v525_v39 = vrot.slane %v524_v38, 1 }
 0x139   : > { %v526_v40 = vadd.f32 %v525_v39, %v524_v38 }
 0x13b   : > { %v527_v41 = vmul.f32 0.125, %v526_v40 }
 0x13d   : > { %v528_v42 = vsub.f32 %v507_v31, %v527_v41  ;;  %v529_v43 = vsub.f32 %v508_v32, %v527_v41 }
 0x13f   : > { %v531_v44 = vmul.f32 0.0, %v529_v43  ;;  %v532_v45 = vmul.f32 %v528_v42, %v528_v42 }
 0x141   : > { %v533_v46 = vmul.f32 %v531_v44, %v531_v44 }
 0x143   : > { %v534_v47 = vadd.f32 %v533_v46, %v532_v45 }
 0x145   : > { %v535_v48 = vrot.slane %v534_v47, 4 }
 0x147   : > { %v536_v49 = vadd.f32 %v535_v48, %v534_v47 }
 0x149   : > { %v537_v50 = vrot.slane %v536_v49, 2 }
 0x14b   : > { %v538_v51 = vadd.f32 %v537_v50, %v536_v49 }
 0x14d   : > { %v539_v52 = vrot.slane %v538_v51, 1 }
 0x14f   : > { %v540_v53 = vadd.f32 %v539_v52, %v538_v51 }
 0x151   : > { %v541_v54 = vmul.f32 0.125, %v540_v53 }
 0x153   : > { %v543_v55 = vadd.f32 1e-05, %v541_v54 }
 0x155   : > { %790 = vrsqrt.f32 %v543_v55 }
 0x15f   : > { %v791_v60 = vpop.eup %790 }
 0x160   : > { %v545_v61 = vmul.f32 %v791_v60, %v542_v58 }
 0x162   : > { %v550_v62 = vrot.slane %v545_v61, %v549_v59 }
 0x164   : > { %v552_v0 = vmul.f32 %v550_v62, %v528_v42  ;;  %v553_v1 = vmul.f32 %v550_v62, %v529_v43 }
 0x166   : > { %v561_v2 = vadd.f32 %v703_v63, %v552_v0  ;;  %v562_v3 = vadd.f32 %v703_v63, %v553_v1 }
 0x168   : > { %v563_v4 = vmax.f32 %v561_v2, 0.0  ;;  %v564_v5 = vmax.f32 %v562_v3, 0.0 }
 0x16a   : > { %565 = vst [vmem:[%s990_s4] sm:$0xff] %v563_v4  ;;  %566 = vst [vmem:[%s990_s4 + $0x8] sm:$0xff] %v564_v5 }
 0x16b PF: > { %s14_s19 = sadd.s32 1, %s830_s19   ;;  %s991_s15 = smov %s818_s16 }
 0x16c   : > { %p11_p12 = scmp.ge.s32.totalorder %s14_s19, 7   ;;  %s992_s16 = smov %s893_s23 }
 0x16d   : > { %s993_s17 = smov %s826_s18  ;;  %s994_s18 = smov %s996_s20 }
 0x16e   :  { %13 = sbr.rel (!%p11_p12) target bundleno = 3 (0x3), region = 126 }

// kernel: simsiam_forward.57
= control target key start
LH: loop header
LB: loop body
LE: loop exit
PB: predicated region body
PF: predicated region fallthrough
CT: control target
= control target key end

     0   :  { %s927_s18 = smov 0   ;;  %s929_s19 = smov 0   ;;  %s1061_s0 = inlined_call_operand.vmem [shape: bf16[16,1280], index: 0, kind: input, shape index: {}]   ;;  %s1062_s1 = inlined_call_operand.vmem [shape: bf16[1280,128], index: 1, kind: input, shape index: {}]   ;;  %s1063_s2 = inlined_call_operand.vmem [shape: f32[1,128], index: 2, kind: input, shape index: {}]   ;;  %s1064_s3 = inlined_call_operand.vmem [shape: f32[1,128], index: 3, kind: input, shape index: {}]   ;;  %s1065_s4 = inlined_call_operand.vmem [shape: f32[16,128], index: 4, kind: input, shape index: {}]   ;;  %s1066_s5 = inlined_call_operand.vmem [shape: f32[16,128], index: 5, kind: output, shape index: {}]  }
   0x1   :  { %s931_s20 = smov 0   ;;  %s933_s21 = smov 0  }
   0x2   :  { %s935_s22 = smov 0  }
   0x3 LB: > { %s24_s23 = sadd.s32 1, %s890_s21  ;;  %p41_p1 = scmp.ne.s32.totalorder %s882_s19, %s878_s18  ;;  %s894_s22 = sphi %s935_s22, %s15_s22   ;;  %s890_s21 = sphi %s933_s21, %s1070_s21   ;;  %s886_s20 = sphi %s931_s20, %s1069_s20   ;;  %s882_s19 = sphi %s929_s19, %s1068_s19   ;;  %s878_s18 = sphi %s927_s18, %s1067_s18  }
   0x4   : > { %p25_p0 = scmp.ge.s32.totalorder %s24_s23, 5  ;;  %p42_p2 = scmp.eq.s32.totalorder %s894_s22, 0 }
   0x5   : > { %s34_s25 = sadd.s32 1, %s882_s19  ;;  %p739_p5 = scmp.ge.s32.totalorder %s894_s22, 5 }
   0x6   : > { %s1072_s23 = smov (%p25_p0, %s24_s23), 0  ;;  %p43_p3 = por %p42_p2, %p41_p1 }
   0x7   : > { %s31_s24 = ssub.s32 %s890_s21, %s1072_s23  ;;  %218 = sbr.rel (%p739_p5) target bundleno = 21 (0x15), region = 28 }
   0x8   : > { %p32_p4 = scmp.eq.s32.totalorder %s31_s24, 0 }
   0xa   : > { %s962_s26 = scalar_select %p32_p4, %s882_s19, %s34_s25  }
   0xe   : > { %221 = sbr.rel (!%p43_p3) target bundleno = 21 (0x15), region = 32  ;;  %s223_s27 = sand.u32 (%p43_p3), 1, %s882_s19  }
   0xf   : > { %s771_s28 = sshll.u32 (%p43_p3), %s890_s21, 3  ;;  %s740_s29 = sshll.u32 (%p43_p3), %s223_s27, 4 }
  0x10   : > { %s228_s7 = scalar_lea.vmem (%p43_p3), %s1061_s0, %s771_s28  ;;  %s225_s8 = scalar_lea.vmem (%p43_p3), [#allocation2], %s740_s29 }
  0x11   : > { %v258_v0 = vld [vmem:[%s228_s7] sm:$0xff] (%p43_p3)  ;;  %v260_v1 = vld [vmem:[%s228_s7 + $0x28] sm:$0xff] (%p43_p3) }
  0x12   : > { %259 = vst [vmem:[%s225_s8] sm:$0xff] (%p43_p3), %v258_v0  ;;  %261 = vst [vmem:[%s225_s8 + $0x8] sm:$0xff] (%p43_p3), %v260_v1 }
  0x15 PF: > { %p743_p6 = scmp.ge.s32.totalorder %s894_s22, 1  ;;  %p278_p7 = scmp.lt.s32.totalorder %s894_s22, 6 }
  0x17   : > { %p279_p8 = pnand %p743_p6, %p278_p7 }
  0x18   : > { %s285_s9 = sand.u32 (!%p279_p8), 1, %s878_s18   ;;  %s745_s10 = sshll.u32 (!%p279_p8), %s886_s20, 5 }
  0x19   : > { %282 = sbr.rel (%p279_p8) target bundleno = 365 (0x16d), region = 74  ;;  %s974_s11 = sshll.u32 (!%p279_p8), %s285_s9, 4 }
  0x1a   : > { %p331_p9 = scmp.lt.s32.totalorder (!%p279_p8), %s745_s10, 159  ;;  %s287_s16 = scalar_lea.vmem (!%p279_p8), [#allocation2], %s974_s11 }
  0x1b   : > { %p747_p10 = scmp.ne.s32.totalorder (!%p279_p8), %s886_s20, 0 }
  0x20   : > { %s1074_s10 = smov (!%p331_p9, %s745_s10), 159  ;;  %357 = sbr.rel (%p747_p10) target bundleno = 39 (0x27), region = 82 }
  0x21   : > { %s746_s12 = sshll.u32 %s1074_s10, 2  ;;  %v896_v2 = vmov (!%p747_p10), 0.0  }
  0x22   : > { %s979_s15 = scalar_lea.vmem %s1062_s1, %s746_s12  ;;  %358 = vst [vmem:[%s1066_s5] sm:$0xff] (!%p747_p10), %v896_v2  ;;  %359 = vst [vmem:[%s1066_s5 + $0x8] sm:$0xff] (!%p747_p10), %v896_v2 }
  0x27 PF: > { %v835_v3 = vld [vmem:[%s979_s15 + $0x40] sm:$0xff]   ;;  %v837_v5 = vld [vmem:[%s979_s15 + $0x48] sm:$0xff]   ;;  %v839_v7 = vld [vmem:[%s979_s15 + $0x50] sm:$0xff]   ;;  %p766_p11 = scmp.ne.s32.totalorder %s886_s20, 4 }
  0x28   : > { %v836_v4 = vld [vmem:[%s979_s15] sm:$0xff]   ;;  %772 = vmatprep.subr.bf16.mxu0 %v835_v3  ;;  %v838_v6 = vld [vmem:[%s979_s15 + $0x8] sm:$0xff]   ;;  %v840_v8 = vld [vmem:[%s979_s15 + $0x10] sm:$0xff]   ;;  %v591_v56 = vlaneseq (!%p766_p11) }
  0x29   : > { %773 = vmatpush3.bf16.msra.mxu0 %v836_v4  ;;  %v841_v9 = vld [vmem:[%s979_s15 + $0x58] sm:$0xff]   ;;  %v843_v11 = vld [vmem:[%s979_s15 + $0x60] sm:$0xff]   ;;  %v845_v13 = vld [vmem:[%s979_s15 + $0x68] sm:$0xff]  }
  0x2a   : > { %774 = vmatprep.subr.bf16.mxu0 %v837_v5  ;;  %v842_v10 = vld [vmem:[%s979_s15 + $0x18] sm:$0xff]   ;;  %v844_v12 = vld [vmem:[%s979_s15 + $0x20] sm:$0xff]   ;;  %v846_v15 = vld [vmem:[%s979_s15 + $0x28] sm:$0xff]   ;;  %v592_v57 = vshrl.u32 (!%p766_p11), %v591_v56, 7 }
  0x2b   : > { %v853_v14 = vld [vmem:[%s287_s16 + $0x4] ss:$8 sps:$4 sm:$0xff]   ;;  %v851_v20 = vld [vmem:[%s287_s16] ss:$8 sps:$4 sm:$0xff]  }
  0x2c   : > { %534 = vmatprep.mubr.bf16.mxu0 %v853_v14  ;;  %v847_v16 = vld [vmem:[%s979_s15 + $0x70] sm:$0xff]   ;;  %v849_v18 = vld [vmem:[%s979_s15 + $0x78] sm:$0xff]   ;;  %v360_v22 = vld [vmem:[%s1066_s5] sm:$0xff]  ;;  %v593_v59 = vsub.s32 (!%p766_p11), 0, %v592_v57 }
  0x2d   : > { %775 = vmatpush3.bf16.msra.mxu0 %v838_v6  ;;  %v848_v17 = vld [vmem:[%s979_s15 + $0x30] sm:$0xff]   ;;  %v850_v19 = vld [vmem:[%s979_s15 + $0x38] sm:$0xff]   ;;  %v361_v26 = vld [vmem:[%s1066_s5 + $0x8] sm:$0xff] }
  0x2e   : > { %776 = vmatprep.subr.bf16.mxu0 %v839_v7  ;;  %v586_v58 = vld [vmem:[%s1063_s2] sm:$0x1] (!%p766_p11)  ;;  %v608_v3 = vld [vmem:[%s1065_s4 + $0x8] sm:$0xff] (!%p766_p11) }
  0x2f   : > { %v767_v63 = vld [vmem:[%s1064_s3] ss:$0 sm:$0xff] (!%p766_p11) }
  0x30   : > { %v607_v2 = vld [vmem:[%s1065_s4] sm:$0xff] (!%p766_p11) }
  0x31   : > { %777 = vmatpush3.bf16.msra.mxu0 %v840_v8 }
  0x32   : > { %778 = vmatprep.subr.bf16.mxu0 %v841_v9 }
  0x35   : > { %779 = vmatpush3.bf16.msra.mxu0 %v842_v10 }
  0x36   : > { %780 = vmatprep.subr.bf16.mxu0 %v843_v11 }
  0x39   : > { %781 = vmatpush3.bf16.msra.mxu0 %v844_v12 }
  0x3a   : > { %782 = vmatprep.subr.bf16.mxu0 %v845_v13 }
  0x3d   : > { %783 = vmatpush3.bf16.msra.mxu0 %v846_v15 }
  0x3e   : > { %784 = vmatprep.subr.bf16.mxu0 %v847_v16 }
  0x41   : > { %785 = vmatpush3.bf16.msra.mxu0 %v848_v17 }
  0x42   : > { %786 = vmatprep.subr.bf16.mxu0 %v849_v18 }
  0x45   : > { %787 = vmatpush3.bf16.msra.mxu0 %v850_v19 }
  0x48   : > { %535 = vmatmul.mubr.bf16.vlgmr.msra.gmra.mrb[0].mxu0 %v851_v20 }
 0x11b   : > { %v788_v21 = vpop.f32.mrb[0].mxu0 }
 0x11c   : > { %v789_v23 = vpop.f32.mrb[1].mxu0 }
 0x11d   : > { %v790_v24 = vadd.f32 %v789_v23, %v788_v21  ;;  %v791_v25 = vpop.f32.mrb[2].mxu0  ;;  %550 = sbr.rel (%p766_p11) target bundleno = 365 (0x16d), region = 86 }
 0x11e   : > { %v792_v27 = vpop.f32.mrb[3].mxu0 }
 0x11f   : > { %v543_v28 = vadd.f32 %v790_v24, %v360_v22  ;;  %v793_v29 = vadd.f32 %v792_v27, %v791_v25 }
 0x121   : > { %545 = vst [vmem:[%s1066_s5] sm:$0xff] %v543_v28  ;;  %v544_v30 = vadd.f32 %v793_v29, %v361_v26 }
 0x123   : > { %546 = vst [vmem:[%s1066_s5 + $0x8] sm:$0xff] %v544_v30 }
 0x128   : > { %v551_v31 = vld [vmem:[%s1066_s5] sm:$0xff] }
 0x12a   : > { %v552_v32 = vld [vmem:[%s1066_s5 + $0x8] sm:$0xff] }
 0x12b   : > { %v563_v33 = vmul.f32 0.0, %v552_v32 }
 0x12d   : > { %v564_v34 = vadd.f32 %v563_v33, %v551_v31 }
 0x12f   : > { %v565_v35 = vrot.slane %v564_v34, 4 }
 0x131   : > { %v566_v36 = vadd.f32 %v565_v35, %v564_v34 }
 0x133   : > { %v567_v37 = vrot.slane %v566_v36, 2 }
 0x135   : > { %v568_v38 = vadd.f32 %v567_v37, %v566_v36 }
 0x137   : > { %v569_v39 = vrot.slane %v568_v38, 1 }
 0x139   : > { %v570_v40 = vadd.f32 %v569_v39, %v568_v38 }
 0x13b   : > { %v571_v41 = vmul.f32 0.125, %v570_v40 }
 0x13d   : > { %v572_v42 = vsub.f32 %v551_v31, %v571_v41  ;;  %v573_v43 = vsub.f32 %v552_v32, %v571_v41 }
 0x13f   : > { %v575_v44 = vmul.f32 0.0, %v573_v43  ;;  %v576_v45 = vmul.f32 %v572_v42, %v572_v42 }
 0x141   : > { %v577_v46 = vmul.f32 %v575_v44, %v575_v44 }
 0x143   : > { %v578_v47 = vadd.f32 %v577_v46, %v576_v45 }
 0x145   : > { %v579_v48 = vrot.slane %v578_v47, 4 }
 0x147   : > { %v580_v49 = vadd.f32 %v579_v48, %v578_v47 }
 0x149   : > { %v581_v50 = vrot.slane %v580_v49, 2 }
 0x14b   : > { %v582_v51 = vadd.f32 %v581_v50, %v580_v49 }
 0x14d   : > { %v583_v52 = vrot.slane %v582_v51, 1 }
 0x14f   : > { %v584_v53 = vadd.f32 %v583_v52, %v582_v51 }
 0x151   : > { %v585_v54 = vmul.f32 0.125, %v584_v53 }
 0x153   : > { %v587_v55 = vadd.f32 1e-05, %v585_v54 }
 0x155   : > { %854 = vrsqrt.f32 %v587_v55 }
 0x15f   : > { %v855_v60 = vpop.eup %854 }
 0x160   : > { %v589_v61 = vmul.f32 %v855_v60, %v586_v58 }
 0x162   : > { %v594_v62 = vrot.slane %v589_v61, %v593_v59 }
 0x164   : > { %v596_v0 = vmul.f32 %v594_v62, %v572_v42  ;;  %v597_v1 = vmul.f32 %v594_v62, %v573_v43 }
 0x166   : > { %v605_v4 = vadd.f32 %v767_v63, %v596_v0  ;;  %v606_v5 = vadd.f32 %v767_v63, %v597_v1 }
 0x168   : > { %v609_v6 = vadd.f32 %v607_v2, %v605_v4  ;;  %v610_v7 = vadd.f32 %v608_v3, %v606_v5 }
 0x16a   : > { %v611_v8 = vmax.f32 %v609_v6, 0.0  ;;  %v612_v9 = vmax.f32 %v610_v7, 0.0 }
 0x16c   : > { %613 = vst [vmem:[%s1066_s5] sm:$0xff] %v611_v8  ;;  %614 = vst [vmem:[%s1066_s5 + $0x8] sm:$0xff] %v612_v9 }
 0x16d PF: > { %s15_s22 = sadd.s32 1, %s894_s22   ;;  %s1067_s18 = smov %s882_s19 }
 0x16e   : > { %p12_p12 = scmp.ge.s32.totalorder %s15_s22, 7   ;;  %s1068_s19 = smov %s962_s26 }
 0x16f   : > { %s1069_s20 = smov %s890_s21  ;;  %s1070_s21 = smov %s1072_s23 }
 0x170   :  { %14 = sbr.rel (!%p12_p12) target bundleno = 3 (0x3), region = 133 }

// kernel: simsiam_forward.60
= control target key start
LH: loop header
LB: loop body
LE: loop exit
PB: predicated region body
PF: predicated region fallthrough
CT: control target
= control target key end

     0   :  { %s1057_s15 = smov 0   ;;  %s1059_s16 = smov 0   ;;  %s1237_s0 = inlined_call_operand.vmem [shape: bf16[16,1280], index: 0, kind: input, shape index: {}]   ;;  %s1238_s1 = inlined_call_operand.vmem [shape: bf16[1280,256], index: 1, kind: input, shape index: {}]   ;;  %s1239_s2 = inlined_call_operand.vmem [shape: f32[1,256], index: 2, kind: input, shape index: {}]   ;;  %s1240_s3 = inlined_call_operand.vmem [shape: f32[1,256], index: 3, kind: input, shape index: {}]   ;;  %s1241_s4 = inlined_call_operand.vmem [shape: f32[16,256], index: 4, kind: output, shape index: {}]  }
   0x1   :  { %s1061_s17 = smov 0   ;;  %s1063_s18 = smov 0  }
   0x2   :  { %s1065_s19 = smov 0  }
   0x3 LB: > { %s23_s20 = sadd.s32 1, %s1023_s18  ;;  %p40_p1 = scmp.ne.s32.totalorder %s1015_s16, %s1011_s15  ;;  %s1027_s19 = sphi %s1065_s19, %s14_s19   ;;  %s1023_s18 = sphi %s1063_s18, %s1245_s18   ;;  %s1019_s17 = sphi %s1061_s17, %s1244_s17   ;;  %s1015_s16 = sphi %s1059_s16, %s1243_s16   ;;  %s1011_s15 = sphi %s1057_s15, %s1242_s15  }
   0x4   : > { %p24_p0 = scmp.ge.s32.totalorder %s23_s20, 5  ;;  %p41_p2 = scmp.eq.s32.totalorder %s1027_s19, 0 }
   0x5   : > { %s33_s22 = sadd.s32 1, %s1015_s16  ;;  %p839_p5 = scmp.ge.s32.totalorder %s1027_s19, 5 }
   0x6   : > { %s1247_s20 = smov (%p24_p0, %s23_s20), 0  ;;  %p42_p3 = por %p41_p2, %p40_p1 }
   0x7   : > { %s30_s21 = ssub.s32 %s1023_s18, %s1247_s20  ;;  %188 = sbr.rel (%p839_p5) target bundleno = 21 (0x15), region = 24 }
   0x8   : > { %p31_p4 = scmp.eq.s32.totalorder %s30_s21, 0 }
   0xa   : > { %s1092_s23 = scalar_select %p31_p4, %s1015_s16, %s33_s22  }
   0xe   : > { %191 = sbr.rel (!%p42_p3) target bundleno = 21 (0x15), region = 28  ;;  %s193_s24 = sand.u32 (%p42_p3), 1, %s1015_s16  }
   0xf   : > { %s889_s25 = sshll.u32 (%p42_p3), %s1023_s18, 3  ;;  %s840_s26 = sshll.u32 (%p42_p3), %s193_s24, 4 }
  0x10   : > { %s198_s29 = scalar_lea.vmem (%p42_p3), %s1237_s0, %s889_s25  ;;  %s195_s30 = scalar_lea.vmem (%p42_p3), [#allocation2], %s840_s26 }
  0x11   : > { %v228_v0 = vld [vmem:[%s198_s29] sm:$0xff] (%p42_p3)  ;;  %v230_v1 = vld [vmem:[%s198_s29 + $0x28] sm:$0xff] (%p42_p3) }
  0x12   : > { %229 = vst [vmem:[%s195_s30] sm:$0xff] (%p42_p3), %v228_v0  ;;  %231 = vst [vmem:[%s195_s30 + $0x8] sm:$0xff] (%p42_p3), %v230_v1 }
  0x15 PF: > { %p843_p6 = scmp.ge.s32.totalorder %s1027_s19, 1  ;;  %p251_p7 = scmp.lt.s32.totalorder %s1027_s19, 6 }
  0x17   : > { %p252_p8 = pnand %p843_p6, %p251_p7 }
  0x18   : > { %s258_s5 = sand.u32 (!%p252_p8), 1, %s1011_s15   ;;  %s845_s6 = sshll.u32 (!%p252_p8), %s1019_s17, 5 }
  0x19   : > { %255 = sbr.rel (%p252_p8) target bundleno = 400 (0x190), region = 70  ;;  %s1104_s7 = sshll.u32 (!%p252_p8), %s258_s5, 4 }
  0x1a   : > { %p304_p9 = scmp.lt.s32.totalorder (!%p252_p8), %s845_s6, 159  ;;  %s260_s12 = scalar_lea.vmem (!%p252_p8), [#allocation2], %s1104_s7 }
  0x1b   : > { %p848_p10 = scmp.ne.s32.totalorder (!%p252_p8), %s1019_s17, 0 }
  0x20   : > { %s1249_s6 = smov (!%p304_p9, %s845_s6), 159  ;;  %333 = sbr.rel (%p848_p10) target bundleno = 39 (0x27), region = 78 }
  0x21   : > { %s890_s8 = sshll.u32 %s1249_s6, 3  ;;  %v1029_v2 = vmov (!%p848_p10), 0.0  }
  0x22   : > { %s1109_s11 = scalar_lea.vmem %s1238_s1, %s890_s8  ;;  %334 = vst [vmem:[%s1241_s4] sm:$0xff] (!%p848_p10), %v1029_v2  ;;  %335 = vst [vmem:[%s1241_s4 + $0x8] sm:$0xff] (!%p848_p10), %v1029_v2 }
  0x23   : > { %336 = vst [vmem:[%s1241_s4 + $0x10] sm:$0xff] (!%p848_p10), %v1029_v2  ;;  %337 = vst [vmem:[%s1241_s4 + $0x18] sm:$0xff] (!%p848_p10), %v1029_v2 }
  0x27 PF: > { %v934_v3 = vld [vmem:[%s1109_s11 + $0x4] ss:$8 sps:$4 sm:$0xff]   ;;  %v936_v4 = vld [vmem:[%s1109_s11] ss:$8 sps:$4 sm:$0xff]   ;;  %v937_v5 = vld [vmem:[%s1109_s11 + $0x14] ss:$8 sps:$4 sm:$0xff]  }
  0x28   : > { %546 = vmatprep.subr.bf16.mxu0 %v934_v3  ;;  %v939_v6 = vld [vmem:[%s1109_s11 + $0x10] ss:$8 sps:$4 sm:$0xff]   ;;  %v940_v7 = vld [vmem:[%s1109_s11 + $0x24] ss:$8 sps:$4 sm:$0xff]   ;;  %v942_v8 = vld [vmem:[%s1109_s11 + $0x20] ss:$8 sps:$4 sm:$0xff]  }
  0x29   : > { %547 = vmatpush1.bf16.msra.mxu0 %v936_v4  ;;  %v943_v9 = vld [vmem:[%s1109_s11 + $0x34] ss:$8 sps:$4 sm:$0xff]   ;;  %v945_v10 = vld [vmem:[%s1109_s11 + $0x30] ss:$8 sps:$4 sm:$0xff]   ;;  %v946_v11 = vld [vmem:[%s1109_s11 + $0x44] ss:$8 sps:$4 sm:$0xff]  }
  0x2a   : > { %548 = vmatprep.subr.bf16.mxu0 %v937_v5  ;;  %v948_v12 = vld [vmem:[%s1109_s11 + $0x40] ss:$8 sps:$4 sm:$0xff]   ;;  %v949_v13 = vld [vmem:[%s1109_s11 + $0x54] ss:$8 sps:$4 sm:$0xff]   ;;  %v951_v14 = vld [vmem:[%s1109_s11 + $0x50] ss:$8 sps:$4 sm:$0xff]  }
  0x2b   : > { %v952_v15 = vld [vmem:[%s1109_s11 + $0x64] ss:$8 sps:$4 sm:$0xff]   ;;  %v954_v17 = vld [vmem:[%s1109_s11 + $0x60] ss:$8 sps:$4 sm:$0xff]   ;;  %v955_v18 = vld [vmem:[%s1109_s11 + $0x74] ss:$8 sps:$4 sm:$0xff]  }
  0x2c   : > { %v984_v16 = vld [vmem:[%s260_s12 + $0x4] ss:$8 sps:$4 sm:$0xff]   ;;  %v957_v19 = vld [vmem:[%s1109_s11 + $0x70] ss:$8 sps:$4 sm:$0xff]   ;;  %v960_v21 = vld [vmem:[%s1109_s11 + $0x80] ss:$8 sps:$4 sm:$0xff]  }
  0x2d   : > { %549 = vmatpush1.bf16.msra.mxu0 %v939_v6  ;;  %578 = vmatprep.mubr.bf16.mxu0 %v984_v16  ;;  %v958_v20 = vld [vmem:[%s1109_s11 + $0x84] ss:$8 sps:$4 sm:$0xff]   ;;  %v961_v22 = vld [vmem:[%s1109_s11 + $0x94] ss:$8 sps:$4 sm:$0xff]   ;;  %v963_v23 = vld [vmem:[%s1109_s11 + $0x90] ss:$8 sps:$4 sm:$0xff]  }
  0x2e   : > { %550 = vmatprep.subr.bf16.mxu0 %v940_v7  ;;  %v964_v24 = vld [vmem:[%s1109_s11 + $0xa4] ss:$8 sps:$4 sm:$0xff]   ;;  %v966_v25 = vld [vmem:[%s1109_s11 + $0xa0] ss:$8 sps:$4 sm:$0xff]   ;;  %v967_v26 = vld [vmem:[%s1109_s11 + $0xb4] ss:$8 sps:$4 sm:$0xff]  }
  0x2f   : > { %v969_v27 = vld [vmem:[%s1109_s11 + $0xb0] ss:$8 sps:$4 sm:$0xff]   ;;  %v970_v28 = vld [vmem:[%s1109_s11 + $0xc4] ss:$8 sps:$4 sm:$0xff]   ;;  %v972_v29 = vld [vmem:[%s1109_s11 + $0xc0] ss:$8 sps:$4 sm:$0xff]  }
  0x30   : > { %v973_v30 = vld [vmem:[%s1109_s11 + $0xd4] ss:$8 sps:$4 sm:$0xff]   ;;  %v975_v31 = vld [vmem:[%s1109_s11 + $0xd0] ss:$8 sps:$4 sm:$0xff]   ;;  %v976_v32 = vld [vmem:[%s1109_s11 + $0xe4] ss:$8 sps:$4 sm:$0xff]  }
  0x31   : > { %551 = vmatpush1.bf16.msra.mxu0 %v942_v8  ;;  %v978_v33 = vld [vmem:[%s1109_s11 + $0xe0] ss:$8 sps:$4 sm:$0xff]   ;;  %v979_v34 = vld [vmem:[%s1109_s11 + $0xf4] ss:$8 sps:$4 sm:$0xff]   ;;  %v981_v35 = vld [vmem:[%s1109_s11 + $0xf0] ss:$8 sps:$4 sm:$0xff]  }
  0x32   : > { %552 = vmatprep.subr.bf16.mxu0 %v943_v9  ;;  %v982_v36 = vld [vmem:[%s260_s12] ss:$8 sps:$4 sm:$0xff]   ;;  %p883_p11 = scmp.ne.s32.totalorder %s1019_s17, 4 }
  0x33   : > { %v338_v37 = vld [vmem:[%s1241_s4] sm:$0xff]  ;;  %v339_v38 = vld [vmem:[%s1241_s4 + $0x8] sm:$0xff]  ;;  %v340_v40 = vld [vmem:[%s1241_s4 + $0x10] sm:$0xff]  ;;  %v605_v49 = vlaneseq (!%p883_p11)  ;;  %v1030_v57 = vmov (!%p883_p11), 0.0  }
  0x34   : > { %v341_v43 = vld [vmem:[%s1241_s4 + $0x18] sm:$0xff] }
  0x35   : > { %553 = vmatpush1.bf16.msra.mxu0 %v945_v10  ;;  %v1192_v52 = vshrl.u32 (!%p883_p11), %v605_v49, 7 }
  0x36   : > { %554 = vmatprep.subr.bf16.mxu0 %v946_v11 }
  0x37   : > { %vm608_vm0 = vcmp.lt.s32.totalorder (!%p883_p11), %v1192_v52, 2 }
  0x38   : > { %v884_v58 = vsel (!%p883_p11), %vm608_vm0, 1.0, %v1030_v57 }
  0x39   : > { %555 = vmatpush1.bf16.msra.mxu0 %v948_v12 }
  0x3a   : > { %556 = vmatprep.subr.bf16.mxu0 %v949_v13 }
  0x3d   : > { %557 = vmatpush1.bf16.msra.mxu0 %v951_v14 }
  0x3e   : > { %558 = vmatprep.subr.bf16.mxu0 %v952_v15 }
  0x41   : > { %559 = vmatpush1.bf16.msra.mxu0 %v954_v17 }
  0x42   : > { %560 = vmatprep.subr.bf16.mxu0 %v955_v18 }
  0x45   : > { %561 = vmatpush1.bf16.msra.mxu0 %v957_v19 }
  0x46   : > { %562 = vmatprep.subr.bf16.mxu0 %v958_v20 }
  0x49   : > { %563 = vmatpush1.bf16.msra.mxu0 %v960_v21 }
  0x4a   : > { %564 = vmatprep.subr.bf16.mxu0 %v961_v22 }
  0x4d   : > { %565 = vmatpush1.bf16.msra.mxu0 %v963_v23 }
  0x4e   : > { %566 = vmatprep.subr.bf16.mxu0 %v964_v24 }
  0x51   : > { %567 = vmatpush1.bf16.msra.mxu0 %v966_v25 }
  0x52   : > { %568 = vmatprep.subr.bf16.mxu0 %v967_v26 }
  0x55   : > { %569 = vmatpush1.bf16.msra.mxu0 %v969_v27 }
  0x56   : > { %570 = vmatprep.subr.bf16.mxu0 %v970_v28 }
  0x59   : > { %571 = vmatpush1.bf16.msra.mxu0 %v972_v29 }
  0x5a   : > { %572 = vmatprep.subr.bf16.mxu0 %v973_v30 }
  0x5d   : > { %573 = vmatpush1.bf16.msra.mxu0 %v975_v31 }
  0x5e   : > { %574 = vmatprep.subr.bf16.mxu0 %v976_v32 }
  0x61   : > { %575 = vmatpush1.bf16.msra.mxu0 %v978_v33 }
  0x62   : > { %576 = vmatprep.subr.bf16.mxu0 %v979_v34 }
  0x65   : > { %577 = vmatpush1.bf16.msra.mxu0 %v981_v35 }
  0x68   : > { %579 = vmatmul.mubr.bf16.vlgmr.msra.gmra.mrb[0].mxu0 %v982_v36 }
 0x13b   : > { %v580_v39 = vpop.f32.mrb[0].mxu0  ;;  %600 = sbr.rel (%p883_p11) target bundleno = 400 (0x190), region = 82 }
 0x13c   : > { %v589_v41 = vadd.f32 %v580_v39, %v338_v37  ;;  %v582_v42 = vpop.f32.mrb[1].mxu0 }
 0x13d   : > { %v590_v44 = vadd.f32 %v582_v42, %v339_v38  ;;  %v584_v45 = vpop.f32.mrb[2].mxu0 }
 0x13e   : > { %593 = vst [vmem:[%s1241_s4] sm:$0xff] %v589_v41  ;;  %v591_v46 = vadd.f32 %v584_v45, %v340_v40  ;;  %v586_v47 = vpop.f32.mrb[3].mxu0 }
 0x13f   : > { %594 = vst [vmem:[%s1241_s4 + $0x8] sm:$0xff] %v590_v44  ;;  %v592_v48 = vadd.f32 %v586_v47, %v341_v43  ;;  %v1031_v43 = vmov (!%p883_p11), 1966171168  }
 0x140   : > { %595 = vst [vmem:[%s1241_s4 + $0x10] sm:$0xff] %v591_v46  ;;  %v671_v44 = vunpack.c.l.s4 (!%p883_p11), %v1031_v43 }
 0x141   : > { %596 = vst [vmem:[%s1241_s4 + $0x18] sm:$0xff] %v592_v48 }
 0x142   : > { %v672_v45 = vunpack.c.0.s8 %v671_v44 }
 0x144   : > { %v675_v47 = vsub.s32 %v672_v45, %v1192_v52 }
 0x145   : > { %v601_v53 = vld [vmem:[%s1241_s4] sm:$0xff] }
 0x146   : > { %v602_v54 = vld [vmem:[%s1241_s4 + $0x8] sm:$0xff]  ;;  %v614_v59 = vmul.f32 %v884_v58, %v601_v53 }
 0x147   : > { %v603_v50 = vld [vmem:[%s1241_s4 + $0x10] sm:$0xff]  ;;  %v615_v60 = vmul.f32 %v884_v58, %v602_v54 }
 0x148   : > { %v604_v51 = vld [vmem:[%s1241_s4 + $0x18] sm:$0xff]  ;;  %v616_v55 = vmul.f32 0.0, %v603_v50 }
 0x149   : > { %v617_v56 = vmul.f32 0.0, %v604_v51 }
 0x14a   : > { %v618_v61 = vadd.f32 %v616_v55, %v614_v59  ;;  %v693_v55 = vsub.s32 1, %v1192_v52 }
 0x14b   : > { %v625_v62 = vadd.f32 %v617_v56, %v615_v60  ;;  %v701_v56 = vld [vmem:[%s1240_s3] sm:$0x3] }
 0x14c   : > { %v619_v63 = vrot.slane %v618_v61, 4 }
 0x14d   : > { %v626_v0 = vrot.slane %v625_v62, 4 }
 0x14e   : > { %v620_v1 = vadd.f32 %v619_v63, %v618_v61  ;;  %v710_v61 = vrot.slane %v701_v56, %v693_v55 }
 0x14f   : > { %v627_v2 = vadd.f32 %v626_v0, %v625_v62 }
 0x150   : > { %v621_v3 = vrot.slane %v620_v1, 2 }
 0x151   : > { %v628_v4 = vrot.slane %v627_v2, 2 }
 0x152   : > { %v622_v5 = vadd.f32 %v621_v3, %v620_v1 }
 0x153   : > { %v629_v6 = vadd.f32 %v628_v4, %v627_v2 }
 0x154   : > { %v623_v7 = vrot.slane %v622_v5, 1 }
 0x155   : > { %v630_v8 = vrot.slane %v629_v6, 1 }
 0x156   : > { %v624_v9 = vadd.f32 %v623_v7, %v622_v5 }
 0x157   : > { %v631_v10 = vadd.f32 %v630_v8, %v629_v6 }
 0x158   : > { %v632_v11 = vmul.f32 0.5, %v624_v9 }
 0x159   : > { %v633_v12 = vmul.f32 0.5, %v631_v10 }
 0x15a   : > { %v634_v13 = vsub.f32 %v601_v53, %v632_v11  ;;  %v636_v15 = vsub.f32 %v603_v50, %v632_v11 }
 0x15b   : > { %v635_v14 = vsub.f32 %v602_v54, %v633_v12  ;;  %v637_v16 = vsub.f32 %v604_v51, %v633_v12  ;;  %v662_v51 = vld [vmem:[%s1239_s2] sm:$0x3]  ;;  %v689_v54 = vsub.s32 0, %v1192_v52 }
 0x15c   : > { %v638_v17 = vmul.f32 %v884_v58, %v634_v13  ;;  %v640_v19 = vmul.f32 0.0, %v636_v15 }
 0x15d   : > { %v639_v18 = vmul.f32 %v884_v58, %v635_v14  ;;  %v641_v20 = vmul.f32 0.0, %v637_v16  ;;  %v706_v59 = vrot.slane %v701_v56, %v689_v54 }
 0x15e   : > { %v642_v21 = vmul.f32 %v638_v17, %v638_v17  ;;  %v644_v23 = vmul.f32 %v640_v19, %v640_v19 }
 0x15f   : > { %v643_v22 = vmul.f32 %v639_v18, %v639_v18  ;;  %v645_v24 = vmul.f32 %v641_v20, %v641_v20 }
 0x160   : > { %v646_v25 = vadd.f32 %v644_v23, %v642_v21 }
 0x161   : > { %v653_v26 = vadd.f32 %v645_v24, %v643_v22 }
 0x162   : > { %v647_v27 = vrot.slane %v646_v25, 4 }
 0x163   : > { %v654_v28 = vrot.slane %v653_v26, 4 }
 0x164   : > { %v648_v29 = vadd.f32 %v647_v27, %v646_v25 }
 0x165   : > { %v655_v30 = vadd.f32 %v654_v28, %v653_v26 }
 0x166   : > { %v649_v31 = vrot.slane %v648_v29, 2 }
 0x167   : > { %v656_v32 = vrot.slane %v655_v30, 2 }
 0x168   : > { %v650_v33 = vadd.f32 %v649_v31, %v648_v29 }
 0x169   : > { %v657_v34 = vadd.f32 %v656_v32, %v655_v30 }
 0x16a   : > { %v651_v35 = vrot.slane %v650_v33, 1 }
 0x16b   : > { %v658_v36 = vrot.slane %v657_v34, 1 }
 0x16c   : > { %v652_v37 = vadd.f32 %v651_v35, %v650_v33 }
 0x16d   : > { %v659_v38 = vadd.f32 %v658_v36, %v657_v34 }
 0x16e   : > { %v660_v39 = vmul.f32 0.5, %v652_v37 }
 0x16f   : > { %v661_v40 = vmul.f32 0.5, %v659_v38 }
 0x170   : > { %v663_v41 = vadd.f32 1e-05, %v660_v39 }
 0x171   : > { %v664_v42 = vadd.f32 1e-05, %v661_v40 }
 0x172   : > { %985 = vrsqrt.f32 %v663_v41 }
 0x173   : > { %987 = vrsqrt.f32 %v664_v42 }
 0x17c   : > { %v986_v46 = vpop.eup %985 }
 0x17d   : > { %v988_v48 = vpop.eup %987 }
 0x17e   : > { %v669_v49 = vcombine.low %v986_v46, %v988_v48 }
 0x180   : > { %v676_v50 = vrot.slane %v669_v49, %v675_v47 }
 0x182   : > { %v683_v53 = vrot.slane %v676_v50, %v675_v47 }
 0x184   : > { %v685_v57 = vmul.f32 %v683_v53, %v662_v51 }
 0x186   : > { %v690_v58 = vrot.slane %v685_v57, %v689_v54  ;;  %v694_v60 = vrot.slane %v685_v57, %v693_v55 }
 0x188   : > { %v697_v62 = vmul.f32 %v690_v58, %v634_v13  ;;  %v698_v63 = vmul.f32 %v694_v60, %v635_v14  ;;  %v699_v0 = vmul.f32 %v690_v58, %v636_v15  ;;  %v700_v1 = vmul.f32 %v694_v60, %v637_v16 }
 0x18a   : > { %v713_v2 = vadd.f32 %v706_v59, %v697_v62  ;;  %v714_v3 = vadd.f32 %v710_v61, %v698_v63  ;;  %v715_v4 = vadd.f32 %v706_v59, %v699_v0  ;;  %v716_v5 = vadd.f32 %v710_v61, %v700_v1 }
 0x18c   : > { %v717_v6 = vmax.f32 %v713_v2, 0.0  ;;  %v718_v7 = vmax.f32 %v714_v3, 0.0  ;;  %v719_v52 = vmax.f32 %v715_v4, 0.0  ;;  %v720_v8 = vmax.f32 %v716_v5, 0.0 }
 0x18e   : > { %721 = vst [vmem:[%s1241_s4] sm:$0xff] %v717_v6  ;;  %722 = vst [vmem:[%s1241_s4 + $0x8] sm:$0xff] %v718_v7 }
 0x18f   : > { %723 = vst [vmem:[%s1241_s4 + $0x10] sm:$0xff] %v719_v52  ;;  %724 = vst [vmem:[%s1241_s4 + $0x18] sm:$0xff] %v720_v8 }
 0x190 PF: > { %s14_s19 = sadd.s32 1, %s1027_s19   ;;  %s1242_s15 = smov %s1015_s16 }
 0x191   : > { %p11_p12 = scmp.ge.s32.totalorder %s14_s19, 7   ;;  %s1243_s16 = smov %s1092_s23 }
 0x192   : > { %s1244_s17 = smov %s1023_s18  ;;  %s1245_s18 = smov %s1247_s20 }
 0x193   :  { %13 = sbr.rel (!%p11_p12) target bundleno = 3 (0x3), region = 126 }

// kernel: simsiam_forward.61
= control target key start
LH: loop header
LB: loop body
LE: loop exit
PB: predicated region body
PF: predicated region fallthrough
CT: control target
= control target key end

     0   :  { %v291_v34 = vlaneseq  ;;  %v503_v38 = vmov 0.0   ;;  %s656_s1 = inlined_call_operand.vmem [shape: bf16[256,256], index: 1, kind: input, shape index: {}]   ;;  %s657_s0 = inlined_call_operand.vmem [shape: bf16[16,256], index: 0, kind: input, shape index: {}]   ;;  %s658_s2 = inlined_call_operand.vmem [shape: f32[1,256], index: 2, kind: input, shape index: {}]   ;;  %s659_s3 = inlined_call_operand.vmem [shape: f32[1,256], index: 3, kind: input, shape index: {}]   ;;  %s660_s4 = inlined_call_operand.vmem [shape: f32[16,256], index: 4, kind: output, shape index: {}]  }
   0x1   :  { %v448_v0 = vld [vmem:[%s656_s1 + $0x4] ss:$8 sps:$4 sm:$0xff]   ;;  %v450_v1 = vld [vmem:[%s656_s1] ss:$8 sps:$4 sm:$0xff]   ;;  %v451_v2 = vld [vmem:[%s656_s1 + $0x14] ss:$8 sps:$4 sm:$0xff]  }
   0x2   :  { %233 = vmatprep.subr.bf16.mxu0 %v448_v0  ;;  %v453_v3 = vld [vmem:[%s656_s1 + $0x10] ss:$8 sps:$4 sm:$0xff]   ;;  %v454_v4 = vld [vmem:[%s656_s1 + $0x24] ss:$8 sps:$4 sm:$0xff]   ;;  %v456_v5 = vld [vmem:[%s656_s1 + $0x20] ss:$8 sps:$4 sm:$0xff]  }
   0x3   :  { %234 = vmatpush1.bf16.msra.mxu0 %v450_v1  ;;  %v457_v6 = vld [vmem:[%s656_s1 + $0x34] ss:$8 sps:$4 sm:$0xff]   ;;  %v459_v7 = vld [vmem:[%s656_s1 + $0x30] ss:$8 sps:$4 sm:$0xff]   ;;  %v460_v8 = vld [vmem:[%s656_s1 + $0x44] ss:$8 sps:$4 sm:$0xff]  }
   0x4   :  { %235 = vmatprep.subr.bf16.mxu0 %v451_v2  ;;  %v462_v9 = vld [vmem:[%s656_s1 + $0x40] ss:$8 sps:$4 sm:$0xff]   ;;  %v463_v10 = vld [vmem:[%s656_s1 + $0x54] ss:$8 sps:$4 sm:$0xff]   ;;  %v465_v11 = vld [vmem:[%s656_s1 + $0x50] ss:$8 sps:$4 sm:$0xff]  }
   0x5   :  { %v466_v12 = vld [vmem:[%s656_s1 + $0x64] ss:$8 sps:$4 sm:$0xff]   ;;  %v468_v14 = vld [vmem:[%s656_s1 + $0x60] ss:$8 sps:$4 sm:$0xff]   ;;  %v469_v15 = vld [vmem:[%s656_s1 + $0x74] ss:$8 sps:$4 sm:$0xff]  }
   0x6   :  { %v498_v13 = vld [vmem:[%s657_s0 + $0x4] ss:$8 sps:$4 sm:$0xff]   ;;  %v471_v16 = vld [vmem:[%s656_s1 + $0x70] ss:$8 sps:$4 sm:$0xff]   ;;  %v474_v18 = vld [vmem:[%s656_s1 + $0x80] ss:$8 sps:$4 sm:$0xff]  }
   0x7   :  { %236 = vmatpush1.bf16.msra.mxu0 %v453_v3  ;;  %265 = vmatprep.mubr.bf16.mxu0 %v498_v13  ;;  %v472_v17 = vld [vmem:[%s656_s1 + $0x84] ss:$8 sps:$4 sm:$0xff]   ;;  %v475_v19 = vld [vmem:[%s656_s1 + $0x94] ss:$8 sps:$4 sm:$0xff]   ;;  %v477_v20 = vld [vmem:[%s656_s1 + $0x90] ss:$8 sps:$4 sm:$0xff]  }
   0x8   :  { %237 = vmatprep.subr.bf16.mxu0 %v454_v4  ;;  %v478_v21 = vld [vmem:[%s656_s1 + $0xa4] ss:$8 sps:$4 sm:$0xff]   ;;  %v480_v22 = vld [vmem:[%s656_s1 + $0xa0] ss:$8 sps:$4 sm:$0xff]   ;;  %v481_v23 = vld [vmem:[%s656_s1 + $0xb4] ss:$8 sps:$4 sm:$0xff]  }
   0x9   :  { %v483_v24 = vld [vmem:[%s656_s1 + $0xb0] ss:$8 sps:$4 sm:$0xff]   ;;  %v484_v25 = vld [vmem:[%s656_s1 + $0xc4] ss:$8 sps:$4 sm:$0xff]   ;;  %v486_v26 = vld [vmem:[%s656_s1 + $0xc0] ss:$8 sps:$4 sm:$0xff]  }
   0xa   :  { %v487_v27 = vld [vmem:[%s656_s1 + $0xd4] ss:$8 sps:$4 sm:$0xff]   ;;  %v489_v28 = vld [vmem:[%s656_s1 + $0xd0] ss:$8 sps:$4 sm:$0xff]   ;;  %v490_v29 = vld [vmem:[%s656_s1 + $0xe4] ss:$8 sps:$4 sm:$0xff]  }
   0xb   :  { %238 = vmatpush1.bf16.msra.mxu0 %v456_v5  ;;  %v492_v30 = vld [vmem:[%s656_s1 + $0xe0] ss:$8 sps:$4 sm:$0xff]   ;;  %v493_v31 = vld [vmem:[%s656_s1 + $0xf4] ss:$8 sps:$4 sm:$0xff]   ;;  %v495_v32 = vld [vmem:[%s656_s1 + $0xf0] ss:$8 sps:$4 sm:$0xff]  }
   0xc   :  { %239 = vmatprep.subr.bf16.mxu0 %v457_v6  ;;  %v496_v33 = vld [vmem:[%s657_s0] ss:$8 sps:$4 sm:$0xff]   ;;  %v632_v35 = vshrl.u32 %v291_v34, 7 }
   0xe   :  { %vm294_vm0 = vcmp.lt.s32.totalorder %v632_v35, 2 }
   0xf   :  { %240 = vmatpush1.bf16.msra.mxu0 %v459_v7  ;;  %v445_v39 = vsel %vm294_vm0, 1.0, %v503_v38 }
  0x10   :  { %241 = vmatprep.subr.bf16.mxu0 %v460_v8 }
  0x13   :  { %242 = vmatpush1.bf16.msra.mxu0 %v462_v9 }
  0x14   :  { %243 = vmatprep.subr.bf16.mxu0 %v463_v10 }
  0x17   :  { %244 = vmatpush1.bf16.msra.mxu0 %v465_v11 }
  0x18   :  { %245 = vmatprep.subr.bf16.mxu0 %v466_v12 }
  0x1b   :  { %246 = vmatpush1.bf16.msra.mxu0 %v468_v14 }
  0x1c   :  { %247 = vmatprep.subr.bf16.mxu0 %v469_v15 }
  0x1f   :  { %248 = vmatpush1.bf16.msra.mxu0 %v471_v16 }
  0x20   :  { %249 = vmatprep.subr.bf16.mxu0 %v472_v17 }
  0x23   :  { %250 = vmatpush1.bf16.msra.mxu0 %v474_v18 }
  0x24   :  { %251 = vmatprep.subr.bf16.mxu0 %v475_v19 }
  0x27   :  { %252 = vmatpush1.bf16.msra.mxu0 %v477_v20 }
  0x28   :  { %253 = vmatprep.subr.bf16.mxu0 %v478_v21 }
  0x2b   :  { %254 = vmatpush1.bf16.msra.mxu0 %v480_v22 }
  0x2c   :  { %255 = vmatprep.subr.bf16.mxu0 %v481_v23 }
  0x2f   :  { %256 = vmatpush1.bf16.msra.mxu0 %v483_v24 }
  0x30   :  { %257 = vmatprep.subr.bf16.mxu0 %v484_v25 }
  0x33   :  { %258 = vmatpush1.bf16.msra.mxu0 %v486_v26 }
  0x34   :  { %259 = vmatprep.subr.bf16.mxu0 %v487_v27 }
  0x37   :  { %260 = vmatpush1.bf16.msra.mxu0 %v489_v28  ;;  %v504_v28 = vmov 1966171168  }
  0x38   :  { %261 = vmatprep.subr.bf16.mxu0 %v490_v29  ;;  %v357_v29 = vunpack.c.l.s4 %v504_v28 }
  0x3b   :  { %262 = vmatpush1.bf16.msra.mxu0 %v492_v30  ;;  %v358_v30 = vunpack.c.0.s8 %v357_v29 }
  0x3c   :  { %263 = vmatprep.subr.bf16.mxu0 %v493_v31 }
  0x3f   :  { %264 = vmatpush1.bf16.msra.mxu0 %v495_v32  ;;  %v361_v32 = vsub.s32 %v358_v30, %v632_v35 }
  0x42   :  { %266 = vmatmul.mubr.bf16.vlgmr.msra.gmra.mrb[0].mxu0 %v496_v33 }
 0x115   :  { %v267_v36 = vpop.f32.mrb[0].mxu0 }
 0x116   :  { %v269_v37 = vpop.f32.mrb[1].mxu0  ;;  %v300_v42 = vmul.f32 %v445_v39, %v267_v36 }
 0x117   :  { %v271_v40 = vpop.f32.mrb[2].mxu0  ;;  %v301_v44 = vmul.f32 %v445_v39, %v269_v37 }
 0x118   :  { %v273_v41 = vpop.f32.mrb[3].mxu0  ;;  %v302_v43 = vmul.f32 0.0, %v271_v40 }
 0x119   :  { %v303_v45 = vmul.f32 0.0, %v273_v41 }
 0x11a   :  { %v304_v46 = vadd.f32 %v302_v43, %v300_v42 }
 0x11b   :  { %v311_v47 = vadd.f32 %v303_v45, %v301_v44 }
 0x11c   :  { %v305_v48 = vrot.slane %v304_v46, 4 }
 0x11d   :  { %v312_v49 = vrot.slane %v311_v47, 4 }
 0x11e   :  { %v306_v50 = vadd.f32 %v305_v48, %v304_v46 }
 0x11f   :  { %v313_v51 = vadd.f32 %v312_v49, %v311_v47 }
 0x120   :  { %v307_v52 = vrot.slane %v306_v50, 2 }
 0x121   :  { %v314_v53 = vrot.slane %v313_v51, 2 }
 0x122   :  { %v308_v54 = vadd.f32 %v307_v52, %v306_v50 }
 0x123   :  { %v315_v55 = vadd.f32 %v314_v53, %v313_v51 }
 0x124   :  { %v309_v56 = vrot.slane %v308_v54, 1 }
 0x125   :  { %v316_v57 = vrot.slane %v315_v55, 1 }
 0x126   :  { %v310_v58 = vadd.f32 %v309_v56, %v308_v54 }
 0x127   :  { %v317_v59 = vadd.f32 %v316_v57, %v315_v55 }
 0x128   :  { %v318_v60 = vmul.f32 0.5, %v310_v58 }
 0x129   :  { %v319_v61 = vmul.f32 0.5, %v317_v59 }
 0x12a   :  { %v320_v62 = vsub.f32 %v267_v36, %v318_v60  ;;  %v322_v63 = vsub.f32 %v271_v40, %v318_v60  ;;  %v379_v40 = vsub.s32 1, %v632_v35 }
 0x12b   :  { %v321_v0 = vsub.f32 %v269_v37, %v319_v61  ;;  %v323_v1 = vsub.f32 %v273_v41, %v319_v61  ;;  %v348_v37 = vld [vmem:[%s658_s2] sm:$0x3] }
 0x12c   :  { %v324_v2 = vmul.f32 %v445_v39, %v320_v62  ;;  %v326_v3 = vmul.f32 0.0, %v322_v63  ;;  %v387_v41 = vld [vmem:[%s659_s3] sm:$0x3] }
 0x12d   :  { %v325_v4 = vmul.f32 %v445_v39, %v321_v0  ;;  %v327_v5 = vmul.f32 0.0, %v323_v1  ;;  %v375_v39 = vsub.s32 0, %v632_v35  ;;  %v396_v46 = vrot.slane %v387_v41, %v379_v40 }
 0x12e   :  { %v328_v6 = vmul.f32 %v324_v2, %v324_v2  ;;  %v330_v7 = vmul.f32 %v326_v3, %v326_v3 }
 0x12f   :  { %v329_v8 = vmul.f32 %v325_v4, %v325_v4  ;;  %v331_v9 = vmul.f32 %v327_v5, %v327_v5  ;;  %v392_v45 = vrot.slane %v387_v41, %v375_v39 }
 0x130   :  { %v332_v10 = vadd.f32 %v330_v7, %v328_v6 }
 0x131   :  { %v339_v11 = vadd.f32 %v331_v9, %v329_v8 }
 0x132   :  { %v333_v12 = vrot.slane %v332_v10, 4 }
 0x133   :  { %v340_v13 = vrot.slane %v339_v11, 4 }
 0x134   :  { %v334_v14 = vadd.f32 %v333_v12, %v332_v10 }
 0x135   :  { %v341_v15 = vadd.f32 %v340_v13, %v339_v11 }
 0x136   :  { %v335_v16 = vrot.slane %v334_v14, 2 }
 0x137   :  { %v342_v17 = vrot.slane %v341_v15, 2 }
 0x138   :  { %v336_v18 = vadd.f32 %v335_v16, %v334_v14 }
 0x139   :  { %v343_v19 = vadd.f32 %v342_v17, %v341_v15 }
 0x13a   :  { %v337_v20 = vrot.slane %v336_v18, 1 }
 0x13b   :  { %v344_v21 = vrot.slane %v343_v19, 1 }
 0x13c   :  { %v338_v22 = vadd.f32 %v337_v20, %v336_v18 }
 0x13d   :  { %v345_v23 = vadd.f32 %v344_v21, %v343_v19 }
 0x13e   :  { %v346_v24 = vmul.f32 0.5, %v338_v22 }
 0x13f   :  { %v347_v25 = vmul.f32 0.5, %v345_v23 }
 0x140   :  { %v349_v26 = vadd.f32 1e-05, %v346_v24 }
 0x141   :  { %v350_v27 = vadd.f32 1e-05, %v347_v25 }
 0x142   :  { %499 = vrsqrt.f32 %v349_v26 }
 0x143   :  { %501 = vrsqrt.f32 %v350_v27 }
 0x14c   :  { %v500_v31 = vpop.eup %499 }
 0x14d   :  { %v502_v33 = vpop.eup %501 }
 0x14e   :  { %v355_v34 = vcombine.low %v500_v31, %v502_v33 }
 0x150   :  { %v362_v36 = vrot.slane %v355_v34, %v361_v32 }
 0x152   :  { %v369_v38 = vrot.slane %v362_v36, %v361_v32 }
 0x154   :  { %v371_v42 = vmul.f32 %v369_v38, %v348_v37 }
 0x156   :  { %v376_v43 = vrot.slane %v371_v42, %v375_v39  ;;  %v380_v44 = vrot.slane %v371_v42, %v379_v40 }
 0x158   :  { %v383_v47 = vmul.f32 %v376_v43, %v320_v62  ;;  %v384_v48 = vmul.f32 %v380_v44, %v321_v0  ;;  %v385_v49 = vmul.f32 %v376_v43, %v322_v63  ;;  %v386_v50 = vmul.f32 %v380_v44, %v323_v1 }
 0x15a   :  { %v399_v51 = vadd.f32 %v392_v45, %v383_v47  ;;  %v400_v52 = vadd.f32 %v396_v46, %v384_v48  ;;  %v401_v53 = vadd.f32 %v392_v45, %v385_v49  ;;  %v402_v54 = vadd.f32 %v396_v46, %v386_v50 }
 0x15c   :  { %403 = vst [vmem:[%s660_s4] sm:$0xff] %v399_v51  ;;  %404 = vst [vmem:[%s660_s4 + $0x8] sm:$0xff] %v400_v52 }
 0x15d   :  { %405 = vst [vmem:[%s660_s4 + $0x10] sm:$0xff] %v401_v53  ;;  %406 = vst [vmem:[%s660_s4 + $0x18] sm:$0xff] %v402_v54 }

// kernel: simsiam_forward.63
= control target key start
LH: loop header
LB: loop body
LE: loop exit
PB: predicated region body
PF: predicated region fallthrough
CT: control target
= control target key end

     0   :  { %s1057_s15 = smov 0   ;;  %s1059_s16 = smov 0   ;;  %s1237_s0 = inlined_call_operand.vmem [shape: bf16[16,2304], index: 0, kind: input, shape index: {}]   ;;  %s1238_s1 = inlined_call_operand.vmem [shape: bf16[2304,256], index: 1, kind: input, shape index: {}]   ;;  %s1239_s2 = inlined_call_operand.vmem [shape: f32[1,256], index: 2, kind: input, shape index: {}]   ;;  %s1240_s3 = inlined_call_operand.vmem [shape: f32[1,256], index: 3, kind: input, shape index: {}]   ;;  %s1241_s4 = inlined_call_operand.vmem [shape: f32[16,256], index: 4, kind: output, shape index: {}]  }
   0x1   :  { %s1061_s17 = smov 0   ;;  %s1063_s18 = smov 0  }
   0x2   :  { %s1065_s19 = smov 0  }
   0x3 LB: > { %s23_s20 = sadd.s32 1, %s1023_s18  ;;  %p40_p1 = scmp.ne.s32.totalorder %s1015_s16, %s1011_s15  ;;  %s1027_s19 = sphi %s1065_s19, %s14_s19   ;;  %s1023_s18 = sphi %s1063_s18, %s1245_s18   ;;  %s1019_s17 = sphi %s1061_s17, %s1244_s17   ;;  %s1015_s16 = sphi %s1059_s16, %s1243_s16   ;;  %s1011_s15 = sphi %s1057_s15, %s1242_s15  }
   0x4   : > { %p24_p0 = scmp.ge.s32.totalorder %s23_s20, 9  ;;  %p41_p2 = scmp.eq.s32.totalorder %s1027_s19, 0 }
   0x5   : > { %s33_s22 = sadd.s32 1, %s1015_s16  ;;  %p839_p5 = scmp.ge.s32.totalorder %s1027_s19, 9 }
   0x6   : > { %s1247_s20 = smov (%p24_p0, %s23_s20), 0  ;;  %p42_p3 = por %p41_p2, %p40_p1 }
   0x7   : > { %s30_s21 = ssub.s32 %s1023_s18, %s1247_s20  ;;  %188 = sbr.rel (%p839_p5) target bundleno = 21 (0x15), region = 24 }
   0x8   : > { %p31_p4 = scmp.eq.s32.totalorder %s30_s21, 0 }
   0xa   : > { %s1092_s23 = scalar_select %p31_p4, %s1015_s16, %s33_s22  }
   0xe   : > { %191 = sbr.rel (!%p42_p3) target bundleno = 21 (0x15), region = 28  ;;  %s193_s24 = sand.u32 (%p42_p3), 1, %s1015_s16  }
   0xf   : > { %s889_s25 = sshll.u32 (%p42_p3), %s1023_s18, 3  ;;  %s840_s26 = sshll.u32 (%p42_p3), %s193_s24, 4 }
  0x10   : > { %s198_s29 = scalar_lea.vmem (%p42_p3), %s1237_s0, %s889_s25  ;;  %s195_s30 = scalar_lea.vmem (%p42_p3), [#allocation2], %s840_s26 }
  0x11   : > { %v228_v0 = vld [vmem:[%s198_s29] sm:$0xff] (%p42_p3)  ;;  %v230_v1 = vld [vmem:[%s198_s29 + $0x48] sm:$0xff] (%p42_p3) }
  0x12   : > { %229 = vst [vmem:[%s195_s30] sm:$0xff] (%p42_p3), %v228_v0  ;;  %231 = vst [vmem:[%s195_s30 + $0x8] sm:$0xff] (%p42_p3), %v230_v1 }
  0x15 PF: > { %p843_p6 = scmp.ge.s32.totalorder %s1027_s19, 1  ;;  %p251_p7 = scmp.lt.s32.totalorder %s1027_s19, 10 }
  0x17   : > { %p252_p8 = pnand %p843_p6, %p251_p7 }
  0x18   : > { %s258_s5 = sand.u32 (!%p252_p8), 1, %s1011_s15   ;;  %s845_s6 = sshll.u32 (!%p252_p8), %s1019_s17, 5 }
  0x19   : > { %255 = sbr.rel (%p252_p8) target bundleno = 400 (0x190), region = 70  ;;  %s1104_s7 = sshll.u32 (!%p252_p8), %s258_s5, 4 }
  0x1a   : > { %p304_p9 = scmp.lt.s32.totalorder (!%p252_p8), %s845_s6, 287  ;;  %s260_s12 = scalar_lea.vmem (!%p252_p8), [#allocation2], %s1104_s7 }
  0x1b   : > { %p848_p10 = scmp.ne.s32.totalorder (!%p252_p8), %s1019_s17, 0 }
  0x20   : > { %s1249_s6 = smov (!%p304_p9, %s845_s6), 287  ;;  %333 = sbr.rel (%p848_p10) target bundleno = 39 (0x27), region = 78 }
  0x21   : > { %s890_s8 = sshll.u32 %s1249_s6, 3  ;;  %v1029_v2 = vmov (!%p848_p10), 0.0  }
  0x22   : > { %s1109_s11 = scalar_lea.vmem %s1238_s1, %s890_s8  ;;  %334 = vst [vmem:[%s1241_s4] sm:$0xff] (!%p848_p10), %v1029_v2  ;;  %335 = vst [vmem:[%s1241_s4 + $0x8] sm:$0xff] (!%p848_p10), %v1029_v2 }
  0x23   : > { %336 = vst [vmem:[%s1241_s4 + $0x10] sm:$0xff] (!%p848_p10), %v1029_v2  ;;  %337 = vst [vmem:[%s1241_s4 + $0x18] sm:$0xff] (!%p848_p10), %v1029_v2 }
  0x27 PF: > { %v934_v3 = vld [vmem:[%s1109_s11 + $0x4] ss:$8 sps:$4 sm:$0xff]   ;;  %v936_v4 = vld [vmem:[%s1109_s11] ss:$8 sps:$4 sm:$0xff]   ;;  %v937_v5 = vld [vmem:[%s1109_s11 + $0x14] ss:$8 sps:$4 sm:$0xff]  }
  0x28   : > { %546 = vmatprep.subr.bf16.mxu0 %v934_v3  ;;  %v939_v6 = vld [vmem:[%s1109_s11 + $0x10] ss:$8 sps:$4 sm:$0xff]   ;;  %v940_v7 = vld [vmem:[%s1109_s11 + $0x24] ss:$8 sps:$4 sm:$0xff]   ;;  %v942_v8 = vld [vmem:[%s1109_s11 + $0x20] ss:$8 sps:$4 sm:$0xff]  }
  0x29   : > { %547 = vmatpush1.bf16.msra.mxu0 %v936_v4  ;;  %v943_v9 = vld [vmem:[%s1109_s11 + $0x34] ss:$8 sps:$4 sm:$0xff]   ;;  %v945_v10 = vld [vmem:[%s1109_s11 + $0x30] ss:$8 sps:$4 sm:$0xff]   ;;  %v946_v11 = vld [vmem:[%s1109_s11 + $0x44] ss:$8 sps:$4 sm:$0xff]  }
  0x2a   : > { %548 = vmatprep.subr.bf16.mxu0 %v937_v5  ;;  %v948_v12 = vld [vmem:[%s1109_s11 + $0x40] ss:$8 sps:$4 sm:$0xff]   ;;  %v949_v13 = vld [vmem:[%s1109_s11 + $0x54] ss:$8 sps:$4 sm:$0xff]   ;;  %v951_v14 = vld [vmem:[%s1109_s11 + $0x50] ss:$8 sps:$4 sm:$0xff]  }
  0x2b   : > { %v952_v15 = vld [vmem:[%s1109_s11 + $0x64] ss:$8 sps:$4 sm:$0xff]   ;;  %v954_v17 = vld [vmem:[%s1109_s11 + $0x60] ss:$8 sps:$4 sm:$0xff]   ;;  %v955_v18 = vld [vmem:[%s1109_s11 + $0x74] ss:$8 sps:$4 sm:$0xff]  }
  0x2c   : > { %v984_v16 = vld [vmem:[%s260_s12 + $0x4] ss:$8 sps:$4 sm:$0xff]   ;;  %v957_v19 = vld [vmem:[%s1109_s11 + $0x70] ss:$8 sps:$4 sm:$0xff]   ;;  %v960_v21 = vld [vmem:[%s1109_s11 + $0x80] ss:$8 sps:$4 sm:$0xff]  }
  0x2d   : > { %549 = vmatpush1.bf16.msra.mxu0 %v939_v6  ;;  %578 = vmatprep.mubr.bf16.mxu0 %v984_v16  ;;  %v958_v20 = vld [vmem:[%s1109_s11 + $0x84] ss:$8 sps:$4 sm:$0xff]   ;;  %v961_v22 = vld [vmem:[%s1109_s11 + $0x94] ss:$8 sps:$4 sm:$0xff]   ;;  %v963_v23 = vld [vmem:[%s1109_s11 + $0x90] ss:$8 sps:$4 sm:$0xff]  }
  0x2e   : > { %550 = vmatprep.subr.bf16.mxu0 %v940_v7  ;;  %v964_v24 = vld [vmem:[%s1109_s11 + $0xa4] ss:$8 sps:$4 sm:$0xff]   ;;  %v966_v25 = vld [vmem:[%s1109_s11 + $0xa0] ss:$8 sps:$4 sm:$0xff]   ;;  %v967_v26 = vld [vmem:[%s1109_s11 + $0xb4] ss:$8 sps:$4 sm:$0xff]  }
  0x2f   : > { %v969_v27 = vld [vmem:[%s1109_s11 + $0xb0] ss:$8 sps:$4 sm:$0xff]   ;;  %v970_v28 = vld [vmem:[%s1109_s11 + $0xc4] ss:$8 sps:$4 sm:$0xff]   ;;  %v972_v29 = vld [vmem:[%s1109_s11 + $0xc0] ss:$8 sps:$4 sm:$0xff]  }
  0x30   : > { %v973_v30 = vld [vmem:[%s1109_s11 + $0xd4] ss:$8 sps:$4 sm:$0xff]   ;;  %v975_v31 = vld [vmem:[%s1109_s11 + $0xd0] ss:$8 sps:$4 sm:$0xff]   ;;  %v976_v32 = vld [vmem:[%s1109_s11 + $0xe4] ss:$8 sps:$4 sm:$0xff]  }
  0x31   : > { %551 = vmatpush1.bf16.msra.mxu0 %v942_v8  ;;  %v978_v33 = vld [vmem:[%s1109_s11 + $0xe0] ss:$8 sps:$4 sm:$0xff]   ;;  %v979_v34 = vld [vmem:[%s1109_s11 + $0xf4] ss:$8 sps:$4 sm:$0xff]   ;;  %v981_v35 = vld [vmem:[%s1109_s11 + $0xf0] ss:$8 sps:$4 sm:$0xff]  }
  0x32   : > { %552 = vmatprep.subr.bf16.mxu0 %v943_v9  ;;  %v982_v36 = vld [vmem:[%s260_s12] ss:$8 sps:$4 sm:$0xff]   ;;  %p883_p11 = scmp.ne.s32.totalorder %s1019_s17, 8 }
  0x33   : > { %v338_v37 = vld [vmem:[%s1241_s4] sm:$0xff]  ;;  %v339_v38 = vld [vmem:[%s1241_s4 + $0x8] sm:$0xff]  ;;  %v340_v40 = vld [vmem:[%s1241_s4 + $0x10] sm:$0xff]  ;;  %v605_v49 = vlaneseq (!%p883_p11)  ;;  %v1030_v57 = vmov (!%p883_p11), 0.0  }
  0x34   : > { %v341_v43 = vld [vmem:[%s1241_s4 + $0x18] sm:$0xff] }
  0x35   : > { %553 = vmatpush1.bf16.msra.mxu0 %v945_v10  ;;  %v1192_v52 = vshrl.u32 (!%p883_p11), %v605_v49, 7 }
  0x36   : > { %554 = vmatprep.subr.bf16.mxu0 %v946_v11 }
  0x37   : > { %vm608_vm0 = vcmp.lt.s32.totalorder (!%p883_p11), %v1192_v52, 2 }
  0x38   : > { %v884_v58 = vsel (!%p883_p11), %vm608_vm0, 1.0, %v1030_v57 }
  0x39   : > { %555 = vmatpush1.bf16.msra.mxu0 %v948_v12 }
  0x3a   : > { %556 = vmatprep.subr.bf16.mxu0 %v949_v13 }
  0x3d   : > { %557 = vmatpush1.bf16.msra.mxu0 %v951_v14 }
  0x3e   : > { %558 = vmatprep.subr.bf16.mxu0 %v952_v15 }
  0x41   : > { %559 = vmatpush1.bf16.msra.mxu0 %v954_v17 }
  0x42   : > { %560 = vmatprep.subr.bf16.mxu0 %v955_v18 }
  0x45   : > { %561 = vmatpush1.bf16.msra.mxu0 %v957_v19 }
  0x46   : > { %562 = vmatprep.subr.bf16.mxu0 %v958_v20 }
  0x49   : > { %563 = vmatpush1.bf16.msra.mxu0 %v960_v21 }
  0x4a   : > { %564 = vmatprep.subr.bf16.mxu0 %v961_v22 }
  0x4d   : > { %565 = vmatpush1.bf16.msra.mxu0 %v963_v23 }
  0x4e   : > { %566 = vmatprep.subr.bf16.mxu0 %v964_v24 }
  0x51   : > { %567 = vmatpush1.bf16.msra.mxu0 %v966_v25 }
  0x52   : > { %568 = vmatprep.subr.bf16.mxu0 %v967_v26 }
  0x55   : > { %569 = vmatpush1.bf16.msra.mxu0 %v969_v27 }
  0x56   : > { %570 = vmatprep.subr.bf16.mxu0 %v970_v28 }
  0x59   : > { %571 = vmatpush1.bf16.msra.mxu0 %v972_v29 }
  0x5a   : > { %572 = vmatprep.subr.bf16.mxu0 %v973_v30 }
  0x5d   : > { %573 = vmatpush1.bf16.msra.mxu0 %v975_v31 }
  0x5e   : > { %574 = vmatprep.subr.bf16.mxu0 %v976_v32 }
  0x61   : > { %575 = vmatpush1.bf16.msra.mxu0 %v978_v33 }
  0x62   : > { %576 = vmatprep.subr.bf16.mxu0 %v979_v34 }
  0x65   : > { %577 = vmatpush1.bf16.msra.mxu0 %v981_v35 }
  0x68   : > { %579 = vmatmul.mubr.bf16.vlgmr.msra.gmra.mrb[0].mxu0 %v982_v36 }
 0x13b   : > { %v580_v39 = vpop.f32.mrb[0].mxu0  ;;  %600 = sbr.rel (%p883_p11) target bundleno = 400 (0x190), region = 82 }
 0x13c   : > { %v589_v41 = vadd.f32 %v580_v39, %v338_v37  ;;  %v582_v42 = vpop.f32.mrb[1].mxu0 }
 0x13d   : > { %v590_v44 = vadd.f32 %v582_v42, %v339_v38  ;;  %v584_v45 = vpop.f32.mrb[2].mxu0 }
 0x13e   : > { %593 = vst [vmem:[%s1241_s4] sm:$0xff] %v589_v41  ;;  %v591_v46 = vadd.f32 %v584_v45, %v340_v40  ;;  %v586_v47 = vpop.f32.mrb[3].mxu0 }
 0x13f   : > { %594 = vst [vmem:[%s1241_s4 + $0x8] sm:$0xff] %v590_v44  ;;  %v592_v48 = vadd.f32 %v586_v47, %v341_v43  ;;  %v1031_v43 = vmov (!%p883_p11), 1966171168  }
 0x140   : > { %595 = vst [vmem:[%s1241_s4 + $0x10] sm:$0xff] %v591_v46  ;;  %v671_v44 = vunpack.c.l.s4 (!%p883_p11), %v1031_v43 }
 0x141   : > { %596 = vst [vmem:[%s1241_s4 + $0x18] sm:$0xff] %v592_v48 }
 0x142   : > { %v672_v45 = vunpack.c.0.s8 %v671_v44 }
 0x144   : > { %v675_v47 = vsub.s32 %v672_v45, %v1192_v52 }
 0x145   : > { %v601_v53 = vld [vmem:[%s1241_s4] sm:$0xff] }
 0x146   : > { %v602_v54 = vld [vmem:[%s1241_s4 + $0x8] sm:$0xff]  ;;  %v614_v59 = vmul.f32 %v884_v58, %v601_v53 }
 0x147   : > { %v603_v50 = vld [vmem:[%s1241_s4 + $0x10] sm:$0xff]  ;;  %v615_v60 = vmul.f32 %v884_v58, %v602_v54 }
 0x148   : > { %v604_v51 = vld [vmem:[%s1241_s4 + $0x18] sm:$0xff]  ;;  %v616_v55 = vmul.f32 0.0, %v603_v50 }
 0x149   : > { %v617_v56 = vmul.f32 0.0, %v604_v51 }
 0x14a   : > { %v618_v61 = vadd.f32 %v616_v55, %v614_v59  ;;  %v693_v55 = vsub.s32 1, %v1192_v52 }
 0x14b   : > { %v625_v62 = vadd.f32 %v617_v56, %v615_v60  ;;  %v701_v56 = vld [vmem:[%s1240_s3] sm:$0x3] }
 0x14c   : > { %v619_v63 = vrot.slane %v618_v61, 4 }
 0x14d   : > { %v626_v0 = vrot.slane %v625_v62, 4 }
 0x14e   : > { %v620_v1 = vadd.f32 %v619_v63, %v618_v61  ;;  %v710_v61 = vrot.slane %v701_v56, %v693_v55 }
 0x14f   : > { %v627_v2 = vadd.f32 %v626_v0, %v625_v62 }
 0x150   : > { %v621_v3 = vrot.slane %v620_v1, 2 }
 0x151   : > { %v628_v4 = vrot.slane %v627_v2, 2 }
 0x152   : > { %v622_v5 = vadd.f32 %v621_v3, %v620_v1 }
 0x153   : > { %v629_v6 = vadd.f32 %v628_v4, %v627_v2 }
 0x154   : > { %v623_v7 = vrot.slane %v622_v5, 1 }
 0x155   : > { %v630_v8 = vrot.slane %v629_v6, 1 }
 0x156   : > { %v624_v9 = vadd.f32 %v623_v7, %v622_v5 }
 0x157   : > { %v631_v10 = vadd.f32 %v630_v8, %v629_v6 }
 0x158   : > { %v632_v11 = vmul.f32 0.5, %v624_v9 }
 0x159   : > { %v633_v12 = vmul.f32 0.5, %v631_v10 }
 0x15a   : > { %v634_v13 = vsub.f32 %v601_v53, %v632_v11  ;;  %v636_v15 = vsub.f32 %v603_v50, %v632_v11 }
 0x15b   : > { %v635_v14 = vsub.f32 %v602_v54, %v633_v12  ;;  %v637_v16 = vsub.f32 %v604_v51, %v633_v12  ;;  %v662_v51 = vld [vmem:[%s1239_s2] sm:$0x3]  ;;  %v689_v54 = vsub.s32 0, %v1192_v52 }
 0x15c   : > { %v638_v17 = vmul.f32 %v884_v58, %v634_v13  ;;  %v640_v19 = vmul.f32 0.0, %v636_v15 }
 0x15d   : > { %v639_v18 = vmul.f32 %v884_v58, %v635_v14  ;;  %v641_v20 = vmul.f32 0.0, %v637_v16  ;;  %v706_v59 = vrot.slane %v701_v56, %v689_v54 }
 0x15e   : > { %v642_v21 = vmul.f32 %v638_v17, %v638_v17  ;;  %v644_v23 = vmul.f32 %v640_v19, %v640_v19 }
 0x15f   : > { %v643_v22 = vmul.f32 %v639_v18, %v639_v18  ;;  %v645_v24 = vmul.f32 %v641_v20, %v641_v20 }
 0x160   : > { %v646_v25 = vadd.f32 %v644_v23, %v642_v21 }
 0x161   : > { %v653_v26 = vadd.f32 %v645_v24, %v643_v22 }
 0x162   : > { %v647_v27 = vrot.slane %v646_v25, 4 }
 0x163   : > { %v654_v28 = vrot.slane %v653_v26, 4 }
 0x164   : > { %v648_v29 = vadd.f32 %v647_v27, %v646_v25 }
 0x165   : > { %v655_v30 = vadd.f32 %v654_v28, %v653_v26 }
 0x166   : > { %v649_v31 = vrot.slane %v648_v29, 2 }
 0x167   : > { %v656_v32 = vrot.slane %v655_v30, 2 }
 0x168   : > { %v650_v33 = vadd.f32 %v649_v31, %v648_v29 }
 0x169   : > { %v657_v34 = vadd.f32 %v656_v32, %v655_v30 }
 0x16a   : > { %v651_v35 = vrot.slane %v650_v33, 1 }
 0x16b   : > { %v658_v36 = vrot.slane %v657_v34, 1 }
 0x16c   : > { %v652_v37 = vadd.f32 %v651_v35, %v650_v33 }
 0x16d   : > { %v659_v38 = vadd.f32 %v658_v36, %v657_v34 }
 0x16e   : > { %v660_v39 = vmul.f32 0.5, %v652_v37 }
 0x16f   : > { %v661_v40 = vmul.f32 0.5, %v659_v38 }
 0x170   : > { %v663_v41 = vadd.f32 1e-05, %v660_v39 }
 0x171   : > { %v664_v42 = vadd.f32 1e-05, %v661_v40 }
 0x172   : > { %985 = vrsqrt.f32 %v663_v41 }
 0x173   : > { %987 = vrsqrt.f32 %v664_v42 }
 0x17c   : > { %v986_v46 = vpop.eup %985 }
 0x17d   : > { %v988_v48 = vpop.eup %987 }
 0x17e   : > { %v669_v49 = vcombine.low %v986_v46, %v988_v48 }
 0x180   : > { %v676_v50 = vrot.slane %v669_v49, %v675_v47 }
 0x182   : > { %v683_v53 = vrot.slane %v676_v50, %v675_v47 }
 0x184   : > { %v685_v57 = vmul.f32 %v683_v53, %v662_v51 }
 0x186   : > { %v690_v58 = vrot.slane %v685_v57, %v689_v54  ;;  %v694_v60 = vrot.slane %v685_v57, %v693_v55 }
 0x188   : > { %v697_v62 = vmul.f32 %v690_v58, %v634_v13  ;;  %v698_v63 = vmul.f32 %v694_v60, %v635_v14  ;;  %v699_v0 = vmul.f32 %v690_v58, %v636_v15  ;;  %v700_v1 = vmul.f32 %v694_v60, %v637_v16 }
 0x18a   : > { %v713_v2 = vadd.f32 %v706_v59, %v697_v62  ;;  %v714_v3 = vadd.f32 %v710_v61, %v698_v63  ;;  %v715_v4 = vadd.f32 %v706_v59, %v699_v0  ;;  %v716_v5 = vadd.f32 %v710_v61, %v700_v1 }
 0x18c   : > { %v717_v6 = vmax.f32 %v713_v2, 0.0  ;;  %v718_v7 = vmax.f32 %v714_v3, 0.0  ;;  %v719_v52 = vmax.f32 %v715_v4, 0.0  ;;  %v720_v8 = vmax.f32 %v716_v5, 0.0 }
 0x18e   : > { %721 = vst [vmem:[%s1241_s4] sm:$0xff] %v717_v6  ;;  %722 = vst [vmem:[%s1241_s4 + $0x8] sm:$0xff] %v718_v7 }
 0x18f   : > { %723 = vst [vmem:[%s1241_s4 + $0x10] sm:$0xff] %v719_v52  ;;  %724 = vst [vmem:[%s1241_s4 + $0x18] sm:$0xff] %v720_v8 }
 0x190 PF: > { %s14_s19 = sadd.s32 1, %s1027_s19   ;;  %s1242_s15 = smov %s1015_s16 }
 0x191   : > { %p11_p12 = scmp.ge.s32.totalorder %s14_s19, 11   ;;  %s1243_s16 = smov %s1092_s23 }
 0x192   : > { %s1244_s17 = smov %s1023_s18  ;;  %s1245_s18 = smov %s1247_s20 }
 0x193   :  { %13 = sbr.rel (!%p11_p12) target bundleno = 3 (0x3), region = 126 }

// kernel: simsiam_forward.62
= control target key start
LH: loop header
LB: loop body
LE: loop exit
PB: predicated region body
PF: predicated region fallthrough
CT: control target
= control target key end

     0   :  { %s1135_s18 = smov 0   ;;  %s1137_s19 = smov 0   ;;  %s1327_s0 = inlined_call_operand.vmem [shape: bf16[16,2304], index: 0, kind: input, shape index: {}]   ;;  %s1328_s1 = inlined_call_operand.vmem [shape: bf16[2304,256], index: 1, kind: input, shape index: {}]   ;;  %s1329_s2 = inlined_call_operand.vmem [shape: f32[1,256], index: 2, kind: input, shape index: {}]   ;;  %s1330_s3 = inlined_call_operand.vmem [shape: f32[1,256], index: 3, kind: input, shape index: {}]   ;;  %s1331_s4 = inlined_call_operand.vmem [shape: f32[16,256], index: 4, kind: input, shape index: {}]   ;;  %s1332_s5 = inlined_call_operand.vmem [shape: f32[16,256], index: 5, kind: output, shape index: {}]  }
   0x1   :  { %s1139_s20 = smov 0   ;;  %s1141_s21 = smov 0  }
   0x2   :  { %s1143_s22 = smov 0  }
   0x3 LB: > { %s24_s23 = sadd.s32 1, %s1096_s21  ;;  %p41_p1 = scmp.ne.s32.totalorder %s1088_s19, %s1084_s18  ;;  %s1100_s22 = sphi %s1143_s22, %s15_s22   ;;  %s1096_s21 = sphi %s1141_s21, %s1336_s21   ;;  %s1092_s20 = sphi %s1139_s20, %s1335_s20   ;;  %s1088_s19 = sphi %s1137_s19, %s1334_s19   ;;  %s1084_s18 = sphi %s1135_s18, %s1333_s18  }
   0x4   : > { %p25_p0 = scmp.ge.s32.totalorder %s24_s23, 9  ;;  %p42_p2 = scmp.eq.s32.totalorder %s1100_s22, 0 }
   0x5   : > { %s34_s25 = sadd.s32 1, %s1088_s19  ;;  %p912_p5 = scmp.ge.s32.totalorder %s1100_s22, 9 }
   0x6   : > { %s1338_s23 = smov (%p25_p0, %s24_s23), 0  ;;  %p43_p3 = por %p42_p2, %p41_p1 }
   0x7   : > { %s31_s24 = ssub.s32 %s1096_s21, %s1338_s23  ;;  %224 = sbr.rel (%p912_p5) target bundleno = 21 (0x15), region = 28 }
   0x8   : > { %p32_p4 = scmp.eq.s32.totalorder %s31_s24, 0 }
   0xa   : > { %s1170_s26 = scalar_select %p32_p4, %s1088_s19, %s34_s25  }
   0xe   : > { %227 = sbr.rel (!%p43_p3) target bundleno = 21 (0x15), region = 32  ;;  %s229_s27 = sand.u32 (%p43_p3), 1, %s1088_s19  }
   0xf   : > { %s962_s28 = sshll.u32 (%p43_p3), %s1096_s21, 3  ;;  %s913_s29 = sshll.u32 (%p43_p3), %s229_s27, 4 }
  0x10   : > { %s234_s7 = scalar_lea.vmem (%p43_p3), %s1327_s0, %s962_s28  ;;  %s231_s8 = scalar_lea.vmem (%p43_p3), [#allocation2], %s913_s29 }
  0x11   : > { %v264_v0 = vld [vmem:[%s234_s7] sm:$0xff] (%p43_p3)  ;;  %v266_v1 = vld [vmem:[%s234_s7 + $0x48] sm:$0xff] (%p43_p3) }
  0x12   : > { %265 = vst [vmem:[%s231_s8] sm:$0xff] (%p43_p3), %v264_v0  ;;  %267 = vst [vmem:[%s231_s8 + $0x8] sm:$0xff] (%p43_p3), %v266_v1 }
  0x15 PF: > { %p916_p6 = scmp.ge.s32.totalorder %s1100_s22, 1  ;;  %p287_p7 = scmp.lt.s32.totalorder %s1100_s22, 10 }
  0x17   : > { %p288_p8 = pnand %p916_p6, %p287_p7 }
  0x18   : > { %s294_s9 = sand.u32 (!%p288_p8), 1, %s1084_s18   ;;  %s918_s10 = sshll.u32 (!%p288_p8), %s1092_s20, 5 }
  0x19   : > { %291 = sbr.rel (%p288_p8) target bundleno = 402 (0x192), region = 74  ;;  %s1182_s11 = sshll.u32 (!%p288_p8), %s294_s9, 4 }
  0x1a   : > { %p347_p9 = scmp.lt.s32.totalorder (!%p288_p8), %s918_s10, 287  ;;  %s296_s16 = scalar_lea.vmem (!%p288_p8), [#allocation2], %s1182_s11 }
  0x1b   : > { %p921_p10 = scmp.ne.s32.totalorder (!%p288_p8), %s1092_s20, 0 }
  0x20   : > { %s1340_s10 = smov (!%p347_p9, %s918_s10), 287  ;;  %382 = sbr.rel (%p921_p10) target bundleno = 39 (0x27), region = 82 }
  0x21   : > { %s963_s12 = sshll.u32 %s1340_s10, 3  ;;  %v1102_v2 = vmov (!%p921_p10), 0.0  }
  0x22   : > { %s1187_s15 = scalar_lea.vmem %s1328_s1, %s963_s12  ;;  %383 = vst [vmem:[%s1332_s5] sm:$0xff] (!%p921_p10), %v1102_v2  ;;  %384 = vst [vmem:[%s1332_s5 + $0x8] sm:$0xff] (!%p921_p10), %v1102_v2 }
  0x23   : > { %385 = vst [vmem:[%s1332_s5 + $0x10] sm:$0xff] (!%p921_p10), %v1102_v2  ;;  %386 = vst [vmem:[%s1332_s5 + $0x18] sm:$0xff] (!%p921_p10), %v1102_v2 }
  0x27 PF: > { %v1007_v3 = vld [vmem:[%s1187_s15 + $0x4] ss:$8 sps:$4 sm:$0xff]   ;;  %v1009_v4 = vld [vmem:[%s1187_s15] ss:$8 sps:$4 sm:$0xff]   ;;  %v1010_v5 = vld [vmem:[%s1187_s15 + $0x14] ss:$8 sps:$4 sm:$0xff]  }
  0x28   : > { %595 = vmatprep.subr.bf16.mxu0 %v1007_v3  ;;  %v1012_v6 = vld [vmem:[%s1187_s15 + $0x10] ss:$8 sps:$4 sm:$0xff]   ;;  %v1013_v7 = vld [vmem:[%s1187_s15 + $0x24] ss:$8 sps:$4 sm:$0xff]   ;;  %v1015_v8 = vld [vmem:[%s1187_s15 + $0x20] ss:$8 sps:$4 sm:$0xff]  }
  0x29   : > { %596 = vmatpush1.bf16.msra.mxu0 %v1009_v4  ;;  %v1016_v9 = vld [vmem:[%s1187_s15 + $0x34] ss:$8 sps:$4 sm:$0xff]   ;;  %v1018_v10 = vld [vmem:[%s1187_s15 + $0x30] ss:$8 sps:$4 sm:$0xff]   ;;  %v1019_v11 = vld [vmem:[%s1187_s15 + $0x44] ss:$8 sps:$4 sm:$0xff]  }
  0x2a   : > { %597 = vmatprep.subr.bf16.mxu0 %v1010_v5  ;;  %v1021_v12 = vld [vmem:[%s1187_s15 + $0x40] ss:$8 sps:$4 sm:$0xff]   ;;  %v1022_v13 = vld [vmem:[%s1187_s15 + $0x54] ss:$8 sps:$4 sm:$0xff]   ;;  %v1024_v14 = vld [vmem:[%s1187_s15 + $0x50] ss:$8 sps:$4 sm:$0xff]  }
  0x2b   : > { %v1025_v15 = vld [vmem:[%s1187_s15 + $0x64] ss:$8 sps:$4 sm:$0xff]   ;;  %v1027_v17 = vld [vmem:[%s1187_s15 + $0x60] ss:$8 sps:$4 sm:$0xff]   ;;  %v1028_v18 = vld [vmem:[%s1187_s15 + $0x74] ss:$8 sps:$4 sm:$0xff]  }
  0x2c   : > { %v1057_v16 = vld [vmem:[%s296_s16 + $0x4] ss:$8 sps:$4 sm:$0xff]   ;;  %v1030_v19 = vld [vmem:[%s1187_s15 + $0x70] ss:$8 sps:$4 sm:$0xff]   ;;  %v1033_v21 = vld [vmem:[%s1187_s15 + $0x80] ss:$8 sps:$4 sm:$0xff]  }
  0x2d   : > { %598 = vmatpush1.bf16.msra.mxu0 %v1012_v6  ;;  %627 = vmatprep.mubr.bf16.mxu0 %v1057_v16  ;;  %v1031_v20 = vld [vmem:[%s1187_s15 + $0x84] ss:$8 sps:$4 sm:$0xff]   ;;  %v1034_v22 = vld [vmem:[%s1187_s15 + $0x94] ss:$8 sps:$4 sm:$0xff]   ;;  %v1036_v23 = vld [vmem:[%s1187_s15 + $0x90] ss:$8 sps:$4 sm:$0xff]  }
  0x2e   : > { %599 = vmatprep.subr.bf16.mxu0 %v1013_v7  ;;  %v1037_v24 = vld [vmem:[%s1187_s15 + $0xa4] ss:$8 sps:$4 sm:$0xff]   ;;  %v1039_v25 = vld [vmem:[%s1187_s15 + $0xa0] ss:$8 sps:$4 sm:$0xff]   ;;  %v1040_v26 = vld [vmem:[%s1187_s15 + $0xb4] ss:$8 sps:$4 sm:$0xff]  }
  0x2f   : > { %v1042_v27 = vld [vmem:[%s1187_s15 + $0xb0] ss:$8 sps:$4 sm:$0xff]   ;;  %v1043_v28 = vld [vmem:[%s1187_s15 + $0xc4] ss:$8 sps:$4 sm:$0xff]   ;;  %v1045_v29 = vld [vmem:[%s1187_s15 + $0xc0] ss:$8 sps:$4 sm:$0xff]  }
  0x30   : > { %v1046_v30 = vld [vmem:[%s1187_s15 + $0xd4] ss:$8 sps:$4 sm:$0xff]   ;;  %v1048_v31 = vld [vmem:[%s1187_s15 + $0xd0] ss:$8 sps:$4 sm:$0xff]   ;;  %v1049_v32 = vld [vmem:[%s1187_s15 + $0xe4] ss:$8 sps:$4 sm:$0xff]  }
  0x31   : > { %600 = vmatpush1.bf16.msra.mxu0 %v1015_v8  ;;  %v1051_v33 = vld [vmem:[%s1187_s15 + $0xe0] ss:$8 sps:$4 sm:$0xff]   ;;  %v1052_v34 = vld [vmem:[%s1187_s15 + $0xf4] ss:$8 sps:$4 sm:$0xff]   ;;  %v1054_v35 = vld [vmem:[%s1187_s15 + $0xf0] ss:$8 sps:$4 sm:$0xff]  }
  0x32   : > { %601 = vmatprep.subr.bf16.mxu0 %v1016_v9  ;;  %v1055_v36 = vld [vmem:[%s296_s16] ss:$8 sps:$4 sm:$0xff]   ;;  %p956_p11 = scmp.ne.s32.totalorder %s1092_s20, 8 }
  0x33   : > { %v387_v37 = vld [vmem:[%s1332_s5] sm:$0xff]  ;;  %v388_v38 = vld [vmem:[%s1332_s5 + $0x8] sm:$0xff]  ;;  %v389_v40 = vld [vmem:[%s1332_s5 + $0x10] sm:$0xff]  ;;  %v654_v49 = vlaneseq (!%p956_p11)  ;;  %v1103_v57 = vmov (!%p956_p11), 0.0  }
  0x34   : > { %v390_v43 = vld [vmem:[%s1332_s5 + $0x18] sm:$0xff] }
  0x35   : > { %602 = vmatpush1.bf16.msra.mxu0 %v1018_v10  ;;  %v1270_v52 = vshrl.u32 (!%p956_p11), %v654_v49, 7 }
  0x36   : > { %603 = vmatprep.subr.bf16.mxu0 %v1019_v11 }
  0x37   : > { %vm657_vm0 = vcmp.lt.s32.totalorder (!%p956_p11), %v1270_v52, 2 }
  0x38   : > { %v957_v58 = vsel (!%p956_p11), %vm657_vm0, 1.0, %v1103_v57 }
  0x39   : > { %604 = vmatpush1.bf16.msra.mxu0 %v1021_v12 }
  0x3a   : > { %605 = vmatprep.subr.bf16.mxu0 %v1022_v13 }
  0x3d   : > { %606 = vmatpush1.bf16.msra.mxu0 %v1024_v14 }
  0x3e   : > { %607 = vmatprep.subr.bf16.mxu0 %v1025_v15 }
  0x41   : > { %608 = vmatpush1.bf16.msra.mxu0 %v1027_v17 }
  0x42   : > { %609 = vmatprep.subr.bf16.mxu0 %v1028_v18 }
  0x45   : > { %610 = vmatpush1.bf16.msra.mxu0 %v1030_v19 }
  0x46   : > { %611 = vmatprep.subr.bf16.mxu0 %v1031_v20 }
  0x49   : > { %612 = vmatpush1.bf16.msra.mxu0 %v1033_v21 }
  0x4a   : > { %613 = vmatprep.subr.bf16.mxu0 %v1034_v22 }
  0x4d   : > { %614 = vmatpush1.bf16.msra.mxu0 %v1036_v23 }
  0x4e   : > { %615 = vmatprep.subr.bf16.mxu0 %v1037_v24 }
  0x51   : > { %616 = vmatpush1.bf16.msra.mxu0 %v1039_v25 }
  0x52   : > { %617 = vmatprep.subr.bf16.mxu0 %v1040_v26 }
  0x55   : > { %618 = vmatpush1.bf16.msra.mxu0 %v1042_v27 }
  0x56   : > { %619 = vmatprep.subr.bf16.mxu0 %v1043_v28 }
  0x59   : > { %620 = vmatpush1.bf16.msra.mxu0 %v1045_v29 }
  0x5a   : > { %621 = vmatprep.subr.bf16.mxu0 %v1046_v30 }
  0x5d   : > { %622 = vmatpush1.bf16.msra.mxu0 %v1048_v31 }
  0x5e   : > { %623 = vmatprep.subr.bf16.mxu0 %v1049_v32 }
  0x61   : > { %624 = vmatpush1.bf16.msra.mxu0 %v1051_v33 }
  0x62   : > { %625 = vmatprep.subr.bf16.mxu0 %v1052_v34 }
  0x65   : > { %626 = vmatpush1.bf16.msra.mxu0 %v1054_v35 }
  0x68   : > { %628 = vmatmul.mubr.bf16.vlgmr.msra.gmra.mrb[0].mxu0 %v1055_v36 }
 0x13b   : > { %v629_v39 = vpop.f32.mrb[0].mxu0  ;;  %649 = sbr.rel (%p956_p11) target bundleno = 402 (0x192), region = 86 }
 0x13c   : > { %v638_v41 = vadd.f32 %v629_v39, %v387_v37  ;;  %v631_v42 = vpop.f32.mrb[1].mxu0 }
 0x13d   : > { %v639_v44 = vadd.f32 %v631_v42, %v388_v38  ;;  %v633_v45 = vpop.f32.mrb[2].mxu0 }
 0x13e   : > { %642 = vst [vmem:[%s1332_s5] sm:$0xff] %v638_v41  ;;  %v640_v46 = vadd.f32 %v633_v45, %v389_v40  ;;  %v635_v47 = vpop.f32.mrb[3].mxu0 }
 0x13f   : > { %643 = vst [vmem:[%s1332_s5 + $0x8] sm:$0xff] %v639_v44  ;;  %v641_v48 = vadd.f32 %v635_v47, %v390_v43  ;;  %v1104_v43 = vmov (!%p956_p11), 1966171168  }
 0x140   : > { %644 = vst [vmem:[%s1332_s5 + $0x10] sm:$0xff] %v640_v46  ;;  %v720_v44 = vunpack.c.l.s4 (!%p956_p11), %v1104_v43 }
 0x141   : > { %645 = vst [vmem:[%s1332_s5 + $0x18] sm:$0xff] %v641_v48 }
 0x142   : > { %v721_v45 = vunpack.c.0.s8 %v720_v44 }
 0x144   : > { %v724_v47 = vsub.s32 %v721_v45, %v1270_v52 }
 0x145   : > { %v650_v53 = vld [vmem:[%s1332_s5] sm:$0xff] }
 0x146   : > { %v651_v54 = vld [vmem:[%s1332_s5 + $0x8] sm:$0xff]  ;;  %v663_v59 = vmul.f32 %v957_v58, %v650_v53 }
 0x147   : > { %v652_v50 = vld [vmem:[%s1332_s5 + $0x10] sm:$0xff]  ;;  %v664_v60 = vmul.f32 %v957_v58, %v651_v54 }
 0x148   : > { %v653_v51 = vld [vmem:[%s1332_s5 + $0x18] sm:$0xff]  ;;  %v665_v55 = vmul.f32 0.0, %v652_v50 }
 0x149   : > { %v666_v56 = vmul.f32 0.0, %v653_v51 }
 0x14a   : > { %v667_v61 = vadd.f32 %v665_v55, %v663_v59  ;;  %v742_v55 = vsub.s32 1, %v1270_v52 }
 0x14b   : > { %v674_v62 = vadd.f32 %v666_v56, %v664_v60  ;;  %v750_v56 = vld [vmem:[%s1330_s3] sm:$0x3] }
 0x14c   : > { %v668_v63 = vrot.slane %v667_v61, 4 }
 0x14d   : > { %v675_v0 = vrot.slane %v674_v62, 4 }
 0x14e   : > { %v669_v1 = vadd.f32 %v668_v63, %v667_v61  ;;  %v759_v61 = vrot.slane %v750_v56, %v742_v55  ;;  %v766_v63 = vld [vmem:[%s1331_s4] sm:$0xff] }
 0x14f   : > { %v676_v2 = vadd.f32 %v675_v0, %v674_v62 }
 0x150   : > { %v670_v3 = vrot.slane %v669_v1, 2 }
 0x151   : > { %v677_v4 = vrot.slane %v676_v2, 2 }
 0x152   : > { %v671_v5 = vadd.f32 %v670_v3, %v669_v1  ;;  %v768_v3 = vld [vmem:[%s1331_s4 + $0x10] sm:$0xff] }
 0x153   : > { %v678_v6 = vadd.f32 %v677_v4, %v676_v2  ;;  %v769_v4 = vld [vmem:[%s1331_s4 + $0x18] sm:$0xff] }
 0x154   : > { %v672_v7 = vrot.slane %v671_v5, 1 }
 0x155   : > { %v679_v8 = vrot.slane %v678_v6, 1 }
 0x156   : > { %v673_v9 = vadd.f32 %v672_v7, %v671_v5 }
 0x157   : > { %v680_v10 = vadd.f32 %v679_v8, %v678_v6 }
 0x158   : > { %v681_v11 = vmul.f32 0.5, %v673_v9 }
 0x159   : > { %v682_v12 = vmul.f32 0.5, %v680_v10 }
 0x15a   : > { %v683_v13 = vsub.f32 %v650_v53, %v681_v11  ;;  %v685_v15 = vsub.f32 %v652_v50, %v681_v11 }
 0x15b   : > { %v684_v14 = vsub.f32 %v651_v54, %v682_v12  ;;  %v686_v16 = vsub.f32 %v653_v51, %v682_v12  ;;  %v711_v51 = vld [vmem:[%s1329_s2] sm:$0x3]  ;;  %v738_v54 = vsub.s32 0, %v1270_v52  ;;  %v767_v52 = vld [vmem:[%s1331_s4 + $0x8] sm:$0xff] }
 0x15c   : > { %v687_v17 = vmul.f32 %v957_v58, %v683_v13  ;;  %v689_v19 = vmul.f32 0.0, %v685_v15 }
 0x15d   : > { %v688_v18 = vmul.f32 %v957_v58, %v684_v14  ;;  %v690_v20 = vmul.f32 0.0, %v686_v16  ;;  %v755_v59 = vrot.slane %v750_v56, %v738_v54 }
 0x15e   : > { %v691_v21 = vmul.f32 %v687_v17, %v687_v17  ;;  %v693_v23 = vmul.f32 %v689_v19, %v689_v19 }
 0x15f   : > { %v692_v22 = vmul.f32 %v688_v18, %v688_v18  ;;  %v694_v24 = vmul.f32 %v690_v20, %v690_v20 }
 0x160   : > { %v695_v25 = vadd.f32 %v693_v23, %v691_v21 }
 0x161   : > { %v702_v26 = vadd.f32 %v694_v24, %v692_v22 }
 0x162   : > { %v696_v27 = vrot.slane %v695_v25, 4 }
 0x163   : > { %v703_v28 = vrot.slane %v702_v26, 4 }
 0x164   : > { %v697_v29 = vadd.f32 %v696_v27, %v695_v25 }
 0x165   : > { %v704_v30 = vadd.f32 %v703_v28, %v702_v26 }
 0x166   : > { %v698_v31 = vrot.slane %v697_v29, 2 }
 0x167   : > { %v705_v32 = vrot.slane %v704_v30, 2 }
 0x168   : > { %v699_v33 = vadd.f32 %v698_v31, %v697_v29 }
 0x169   : > { %v706_v34 = vadd.f32 %v705_v32, %v704_v30 }
 0x16a   : > { %v700_v35 = vrot.slane %v699_v33, 1 }
 0x16b   : > { %v707_v36 = vrot.slane %v706_v34, 1 }
 0x16c   : > { %v701_v37 = vadd.f32 %v700_v35, %v699_v33 }
 0x16d   : > { %v708_v38 = vadd.f32 %v707_v36, %v706_v34 }
 0x16e   : > { %v709_v39 = vmul.f32 0.5, %v701_v37 }
 0x16f   : > { %v710_v40 = vmul.f32 0.5, %v708_v38 }
 0x170   : > { %v712_v41 = vadd.f32 1e-05, %v709_v39 }
 0x171   : > { %v713_v42 = vadd.f32 1e-05, %v710_v40 }
 0x172   : > { %1058 = vrsqrt.f32 %v712_v41 }
 0x173   : > { %1060 = vrsqrt.f32 %v713_v42 }
 0x17c   : > { %v1059_v46 = vpop.eup %1058 }
 0x17d   : > { %v1061_v48 = vpop.eup %1060 }
 0x17e   : > { %v718_v49 = vcombine.low %v1059_v46, %v1061_v48 }
 0x180   : > { %v725_v50 = vrot.slane %v718_v49, %v724_v47 }
 0x182   : > { %v732_v53 = vrot.slane %v725_v50, %v724_v47 }
 0x184   : > { %v734_v57 = vmul.f32 %v732_v53, %v711_v51 }
 0x186   : > { %v739_v58 = vrot.slane %v734_v57, %v738_v54  ;;  %v743_v60 = vrot.slane %v734_v57, %v742_v55 }
 0x188   : > { %v746_v62 = vmul.f32 %v739_v58, %v683_v13  ;;  %v747_v0 = vmul.f32 %v743_v60, %v684_v14  ;;  %v748_v1 = vmul.f32 %v739_v58, %v685_v15  ;;  %v749_v2 = vmul.f32 %v743_v60, %v686_v16 }
 0x18a   : > { %v762_v5 = vadd.f32 %v755_v59, %v746_v62  ;;  %v763_v6 = vadd.f32 %v759_v61, %v747_v0  ;;  %v764_v7 = vadd.f32 %v755_v59, %v748_v1  ;;  %v765_v8 = vadd.f32 %v759_v61, %v749_v2 }
 0x18c   : > { %v770_v9 = vadd.f32 %v766_v63, %v762_v5  ;;  %v771_v10 = vadd.f32 %v767_v52, %v763_v6  ;;  %v772_v11 = vadd.f32 %v768_v3, %v764_v7  ;;  %v773_v12 = vadd.f32 %v769_v4, %v765_v8 }
 0x18e   : > { %v774_v13 = vmax.f32 %v770_v9, 0.0  ;;  %v775_v14 = vmax.f32 %v771_v10, 0.0  ;;  %v776_v15 = vmax.f32 %v772_v11, 0.0  ;;  %v777_v16 = vmax.f32 %v773_v12, 0.0 }
 0x190   : > { %778 = vst [vmem:[%s1332_s5] sm:$0xff] %v774_v13  ;;  %779 = vst [vmem:[%s1332_s5 + $0x8] sm:$0xff] %v775_v14 }
 0x191   : > { %780 = vst [vmem:[%s1332_s5 + $0x10] sm:$0xff] %v776_v15  ;;  %781 = vst [vmem:[%s1332_s5 + $0x18] sm:$0xff] %v777_v16 }
 0x192 PF: > { %s15_s22 = sadd.s32 1, %s1100_s22   ;;  %s1333_s18 = smov %s1088_s19 }
 0x193   : > { %p12_p12 = scmp.ge.s32.totalorder %s15_s22, 11   ;;  %s1334_s19 = smov %s1170_s26 }
 0x194   : > { %s1335_s20 = smov %s1096_s21  ;;  %s1336_s21 = smov %s1338_s23 }
 0x195   :  { %14 = sbr.rel (!%p12_p12) target bundleno = 3 (0x3), region = 133 }

// kernel: simsiam_forward.86
= control target key start
LH: loop header
LB: loop body
LE: loop exit
PB: predicated region body
PF: predicated region fallthrough
CT: control target
= control target key end

     0   :  { %s1232_s1 = inlined_call_operand.vmem [shape: bf16[256,512], index: 1, kind: input, shape index: {}]   ;;  %s1233_s0 = inlined_call_operand.vmem [shape: bf16[16,256], index: 0, kind: input, shape index: {}]   ;;  %s1234_s2 = inlined_call_operand.vmem [shape: f32[1,512], index: 2, kind: input, shape index: {}]   ;;  %s1235_s3 = inlined_call_operand.vmem [shape: f32[1,512], index: 3, kind: input, shape index: {}]   ;;  %s1236_s4 = inlined_call_operand.vmem [shape: f32[16,512], index: 4, kind: output, shape index: {}]  }
   0x1   :  { %v830_v0 = vld [vmem:[%s1232_s1 + $0x4] ss:$16 sps:$4 sm:$0xff]   ;;  %v832_v1 = vld [vmem:[%s1232_s1 + $0xc] ss:$16 sps:$4 sm:$0xff]   ;;  %v834_v2 = vld [vmem:[%s1232_s1] ss:$16 sps:$4 sm:$0xff]  }
   0x2   :  { %433 = vmatprep.subr.bf16.mxu0 %v830_v0  ;;  %v835_v3 = vld [vmem:[%s1232_s1 + $0x8] ss:$16 sps:$4 sm:$0xff]   ;;  %476 = vmatprep.subr.bf16.mxu1 %v832_v1  ;;  %v836_v4 = vld [vmem:[%s1232_s1 + $0x24] ss:$16 sps:$4 sm:$0xff]   ;;  %v838_v5 = vld [vmem:[%s1232_s1 + $0x2c] ss:$16 sps:$4 sm:$0xff]  }
   0x3   :  { %434 = vmatpush1.bf16.msra.mxu0 %v834_v2  ;;  %477 = vmatpush1.bf16.msra.mxu1 %v835_v3  ;;  %v840_v6 = vld [vmem:[%s1232_s1 + $0x20] ss:$16 sps:$4 sm:$0xff]   ;;  %v841_v7 = vld [vmem:[%s1232_s1 + $0x28] ss:$16 sps:$4 sm:$0xff]   ;;  %v842_v8 = vld [vmem:[%s1232_s1 + $0x44] ss:$16 sps:$4 sm:$0xff]   ;;  %v546_v2 = vlaneseq }
   0x4   :  { %435 = vmatprep.subr.bf16.mxu0 %v836_v4  ;;  %478 = vmatprep.subr.bf16.mxu1 %v838_v5  ;;  %v844_v9 = vld [vmem:[%s1232_s1 + $0x4c] ss:$16 sps:$4 sm:$0xff]   ;;  %v846_v10 = vld [vmem:[%s1232_s1 + $0x40] ss:$16 sps:$4 sm:$0xff]   ;;  %v847_v11 = vld [vmem:[%s1232_s1 + $0x48] ss:$16 sps:$4 sm:$0xff]  }
   0x5   :  { %v848_v12 = vld [vmem:[%s1232_s1 + $0x64] ss:$16 sps:$4 sm:$0xff]   ;;  %v850_v13 = vld [vmem:[%s1232_s1 + $0x6c] ss:$16 sps:$4 sm:$0xff]   ;;  %v852_v14 = vld [vmem:[%s1232_s1 + $0x60] ss:$16 sps:$4 sm:$0xff]  }
   0x6   :  { %v853_v15 = vld [vmem:[%s1232_s1 + $0x68] ss:$16 sps:$4 sm:$0xff]   ;;  %v854_v16 = vld [vmem:[%s1232_s1 + $0x84] ss:$16 sps:$4 sm:$0xff]   ;;  %v856_v17 = vld [vmem:[%s1232_s1 + $0x8c] ss:$16 sps:$4 sm:$0xff]  }
   0x7   :  { %436 = vmatpush1.bf16.msra.mxu0 %v840_v6  ;;  %479 = vmatpush1.bf16.msra.mxu1 %v841_v7  ;;  %v858_v18 = vld [vmem:[%s1232_s1 + $0x80] ss:$16 sps:$4 sm:$0xff]   ;;  %v859_v19 = vld [vmem:[%s1232_s1 + $0x88] ss:$16 sps:$4 sm:$0xff]   ;;  %v860_v20 = vld [vmem:[%s1232_s1 + $0xa4] ss:$16 sps:$4 sm:$0xff]  }
   0x8   :  { %437 = vmatprep.subr.bf16.mxu0 %v842_v8  ;;  %480 = vmatprep.subr.bf16.mxu1 %v844_v9  ;;  %v862_v21 = vld [vmem:[%s1232_s1 + $0xac] ss:$16 sps:$4 sm:$0xff]   ;;  %v864_v22 = vld [vmem:[%s1232_s1 + $0xa0] ss:$16 sps:$4 sm:$0xff]   ;;  %v865_v23 = vld [vmem:[%s1232_s1 + $0xa8] ss:$16 sps:$4 sm:$0xff]  }
   0x9   :  { %v866_v24 = vld [vmem:[%s1232_s1 + $0xc4] ss:$16 sps:$4 sm:$0xff]   ;;  %v868_v25 = vld [vmem:[%s1232_s1 + $0xcc] ss:$16 sps:$4 sm:$0xff]   ;;  %v870_v26 = vld [vmem:[%s1232_s1 + $0xc0] ss:$16 sps:$4 sm:$0xff]  }
   0xa   :  { %v871_v27 = vld [vmem:[%s1232_s1 + $0xc8] ss:$16 sps:$4 sm:$0xff]   ;;  %v872_v28 = vld [vmem:[%s1232_s1 + $0xe4] ss:$16 sps:$4 sm:$0xff]   ;;  %v874_v29 = vld [vmem:[%s1232_s1 + $0xec] ss:$16 sps:$4 sm:$0xff]  }
   0xb   :  { %438 = vmatpush1.bf16.msra.mxu0 %v846_v10  ;;  %481 = vmatpush1.bf16.msra.mxu1 %v847_v11  ;;  %v876_v30 = vld [vmem:[%s1232_s1 + $0xe0] ss:$16 sps:$4 sm:$0xff]   ;;  %v877_v31 = vld [vmem:[%s1232_s1 + $0xe8] ss:$16 sps:$4 sm:$0xff]   ;;  %v878_v32 = vld [vmem:[%s1232_s1 + $0x104] ss:$16 sps:$4 sm:$0xff]  }
   0xc   :  { %439 = vmatprep.subr.bf16.mxu0 %v848_v12  ;;  %482 = vmatprep.subr.bf16.mxu1 %v850_v13  ;;  %v880_v33 = vld [vmem:[%s1232_s1 + $0x10c] ss:$16 sps:$4 sm:$0xff]   ;;  %v882_v34 = vld [vmem:[%s1232_s1 + $0x100] ss:$16 sps:$4 sm:$0xff]   ;;  %v883_v35 = vld [vmem:[%s1232_s1 + $0x108] ss:$16 sps:$4 sm:$0xff]  }
   0xd   :  { %v884_v36 = vld [vmem:[%s1232_s1 + $0x124] ss:$16 sps:$4 sm:$0xff]   ;;  %v886_v37 = vld [vmem:[%s1232_s1 + $0x12c] ss:$16 sps:$4 sm:$0xff]   ;;  %v888_v38 = vld [vmem:[%s1232_s1 + $0x120] ss:$16 sps:$4 sm:$0xff]  }
   0xe   :  { %v889_v39 = vld [vmem:[%s1232_s1 + $0x128] ss:$16 sps:$4 sm:$0xff]   ;;  %v890_v40 = vld [vmem:[%s1232_s1 + $0x144] ss:$16 sps:$4 sm:$0xff]   ;;  %v892_v41 = vld [vmem:[%s1232_s1 + $0x14c] ss:$16 sps:$4 sm:$0xff]  }
   0xf   :  { %440 = vmatpush1.bf16.msra.mxu0 %v852_v14  ;;  %483 = vmatpush1.bf16.msra.mxu1 %v853_v15  ;;  %v894_v42 = vld [vmem:[%s1232_s1 + $0x140] ss:$16 sps:$4 sm:$0xff]   ;;  %v895_v43 = vld [vmem:[%s1232_s1 + $0x148] ss:$16 sps:$4 sm:$0xff]   ;;  %v896_v44 = vld [vmem:[%s1232_s1 + $0x164] ss:$16 sps:$4 sm:$0xff]  }
  0x10   :  { %441 = vmatprep.subr.bf16.mxu0 %v854_v16  ;;  %484 = vmatprep.subr.bf16.mxu1 %v856_v17  ;;  %v898_v45 = vld [vmem:[%s1232_s1 + $0x16c] ss:$16 sps:$4 sm:$0xff]   ;;  %v900_v47 = vld [vmem:[%s1232_s1 + $0x160] ss:$16 sps:$4 sm:$0xff]   ;;  %v901_v48 = vld [vmem:[%s1232_s1 + $0x168] ss:$16 sps:$4 sm:$0xff]  }
  0x11   :  { %v928_v46 = vld [vmem:[%s1233_s0 + $0x4] ss:$8 sps:$4 sm:$0xff]   ;;  %v906_v51 = vld [vmem:[%s1232_s1 + $0x180] ss:$16 sps:$4 sm:$0xff]   ;;  %v907_v52 = vld [vmem:[%s1232_s1 + $0x188] ss:$16 sps:$4 sm:$0xff]  }
  0x12   :  { %v902_v49 = vld [vmem:[%s1232_s1 + $0x184] ss:$16 sps:$4 sm:$0xff]   ;;  %v904_v50 = vld [vmem:[%s1232_s1 + $0x18c] ss:$16 sps:$4 sm:$0xff]   ;;  %465 = vmatprep.mubr.bf16.mxu0 %v928_v46  ;;  %508 = vmatprep.mubr.bf16.mxu1 %v928_v46  ;;  %v912_v55 = vld [vmem:[%s1232_s1 + $0x1a0] ss:$16 sps:$4 sm:$0xff]  }
  0x13   :  { %442 = vmatpush1.bf16.msra.mxu0 %v858_v18  ;;  %485 = vmatpush1.bf16.msra.mxu1 %v859_v19  ;;  %v908_v53 = vld [vmem:[%s1232_s1 + $0x1a4] ss:$16 sps:$4 sm:$0xff]   ;;  %v910_v54 = vld [vmem:[%s1232_s1 + $0x1ac] ss:$16 sps:$4 sm:$0xff]   ;;  %v913_v56 = vld [vmem:[%s1232_s1 + $0x1a8] ss:$16 sps:$4 sm:$0xff]  }
  0x14   :  { %443 = vmatprep.subr.bf16.mxu0 %v860_v20  ;;  %486 = vmatprep.subr.bf16.mxu1 %v862_v21  ;;  %v914_v57 = vld [vmem:[%s1232_s1 + $0x1c4] ss:$16 sps:$4 sm:$0xff]   ;;  %v916_v58 = vld [vmem:[%s1232_s1 + $0x1cc] ss:$16 sps:$4 sm:$0xff]   ;;  %v918_v59 = vld [vmem:[%s1232_s1 + $0x1c0] ss:$16 sps:$4 sm:$0xff]  }
  0x15   :  { %v919_v60 = vld [vmem:[%s1232_s1 + $0x1c8] ss:$16 sps:$4 sm:$0xff]   ;;  %v920_v61 = vld [vmem:[%s1232_s1 + $0x1e4] ss:$16 sps:$4 sm:$0xff]   ;;  %v922_v62 = vld [vmem:[%s1232_s1 + $0x1ec] ss:$16 sps:$4 sm:$0xff]  }
  0x16   :  { %v924_v63 = vld [vmem:[%s1232_s1 + $0x1e0] ss:$16 sps:$4 sm:$0xff]   ;;  %v925_v0 = vld [vmem:[%s1232_s1 + $0x1e8] ss:$16 sps:$4 sm:$0xff]   ;;  %v1162_v3 = vshrl.u32 %v546_v2, 7  ;;  %v937_v10 = vmov 0.0  }
  0x17   :  { %444 = vmatpush1.bf16.msra.mxu0 %v864_v22  ;;  %487 = vmatpush1.bf16.msra.mxu1 %v865_v23  ;;  %v926_v1 = vld [vmem:[%s1233_s0] ss:$8 sps:$4 sm:$0xff]  }
  0x18   :  { %445 = vmatprep.subr.bf16.mxu0 %v866_v24  ;;  %488 = vmatprep.subr.bf16.mxu1 %v868_v25  ;;  %vm549_vm0 = vcmp.lt.s32.totalorder %v1162_v3, 2 }
  0x19   :  { %v827_v11 = vsel %vm549_vm0, 1.0, %v937_v10 }
  0x1b   :  { %446 = vmatpush1.bf16.msra.mxu0 %v870_v26  ;;  %489 = vmatpush1.bf16.msra.mxu1 %v871_v27 }
  0x1c   :  { %447 = vmatprep.subr.bf16.mxu0 %v872_v28  ;;  %490 = vmatprep.subr.bf16.mxu1 %v874_v29 }
  0x1f   :  { %448 = vmatpush1.bf16.msra.mxu0 %v876_v30  ;;  %491 = vmatpush1.bf16.msra.mxu1 %v877_v31 }
  0x20   :  { %449 = vmatprep.subr.bf16.mxu0 %v878_v32  ;;  %492 = vmatprep.subr.bf16.mxu1 %v880_v33 }
  0x23   :  { %450 = vmatpush1.bf16.msra.mxu0 %v882_v34  ;;  %493 = vmatpush1.bf16.msra.mxu1 %v883_v35 }
  0x24   :  { %451 = vmatprep.subr.bf16.mxu0 %v884_v36  ;;  %494 = vmatprep.subr.bf16.mxu1 %v886_v37 }
  0x27   :  { %452 = vmatpush1.bf16.msra.mxu0 %v888_v38  ;;  %495 = vmatpush1.bf16.msra.mxu1 %v889_v39 }
  0x28   :  { %453 = vmatprep.subr.bf16.mxu0 %v890_v40  ;;  %496 = vmatprep.subr.bf16.mxu1 %v892_v41 }
  0x2b   :  { %454 = vmatpush1.bf16.msra.mxu0 %v894_v42  ;;  %497 = vmatpush1.bf16.msra.mxu1 %v895_v43 }
  0x2c   :  { %455 = vmatprep.subr.bf16.mxu0 %v896_v44  ;;  %498 = vmatprep.subr.bf16.mxu1 %v898_v45 }
  0x2f   :  { %456 = vmatpush1.bf16.msra.mxu0 %v900_v47  ;;  %499 = vmatpush1.bf16.msra.mxu1 %v901_v48 }
  0x30   :  { %457 = vmatprep.subr.bf16.mxu0 %v902_v49  ;;  %500 = vmatprep.subr.bf16.mxu1 %v904_v50 }
  0x33   :  { %458 = vmatpush1.bf16.msra.mxu0 %v906_v51  ;;  %501 = vmatpush1.bf16.msra.mxu1 %v907_v52 }
  0x34   :  { %459 = vmatprep.subr.bf16.mxu0 %v908_v53  ;;  %502 = vmatprep.subr.bf16.mxu1 %v910_v54 }
  0x37   :  { %460 = vmatpush1.bf16.msra.mxu0 %v912_v55  ;;  %503 = vmatpush1.bf16.msra.mxu1 %v913_v56 }
  0x38   :  { %461 = vmatprep.subr.bf16.mxu0 %v914_v57  ;;  %504 = vmatprep.subr.bf16.mxu1 %v916_v58 }
  0x3b   :  { %462 = vmatpush1.bf16.msra.mxu0 %v918_v59  ;;  %505 = vmatpush1.bf16.msra.mxu1 %v919_v60 }
  0x3c   :  { %463 = vmatprep.subr.bf16.mxu0 %v920_v61  ;;  %506 = vmatprep.subr.bf16.mxu1 %v922_v62 }
  0x3f   :  { %464 = vmatpush1.bf16.msra.mxu0 %v924_v63  ;;  %507 = vmatpush1.bf16.msra.mxu1 %v925_v0 }
  0x42   :  { %466 = vmatmul.mubr.bf16.vlgmr.msra.gmra.mrb[0].mxu0 %v926_v1  ;;  %509 = vmatmul.mubr.bf16.vlgmr.msra.gmra.mrb[0].mxu1 %v926_v1 }
 0x115   :  { %v467_v4 = vpop.f32.mrb[0].mxu0  ;;  %v510_v5 = vpop.f32.mrb[0].mxu1 }
 0x116   :  { %v469_v6 = vpop.f32.mrb[1].mxu0  ;;  %v512_v7 = vpop.f32.mrb[1].mxu1  ;;  %v555_v14 = vmul.f32 %v827_v11, %v467_v4  ;;  %v557_v15 = vmul.f32 %v827_v11, %v510_v5 }
 0x117   :  { %v471_v8 = vpop.f32.mrb[2].mxu0  ;;  %v514_v9 = vpop.f32.mrb[2].mxu1  ;;  %v556_v18 = vmul.f32 %v827_v11, %v469_v6  ;;  %v558_v19 = vmul.f32 %v827_v11, %v512_v7 }
 0x118   :  { %v473_v12 = vpop.f32.mrb[3].mxu0  ;;  %v516_v13 = vpop.f32.mrb[3].mxu1  ;;  %v559_v16 = vmul.f32 0.0, %v471_v8  ;;  %v561_v17 = vmul.f32 0.0, %v514_v9 }
 0x119   :  { %v560_v20 = vmul.f32 0.0, %v473_v12  ;;  %v562_v21 = vmul.f32 0.0, %v516_v13 }
 0x11a   :  { %v563_v22 = vadd.f32 %v559_v16, %v555_v14  ;;  %v577_v23 = vadd.f32 %v561_v17, %v557_v15 }
 0x11b   :  { %v570_v24 = vadd.f32 %v560_v20, %v556_v18  ;;  %v584_v25 = vadd.f32 %v562_v21, %v558_v19 }
 0x11c   :  { %v564_v26 = vrot.slane %v563_v22, 4  ;;  %v578_v27 = vrot.slane %v577_v23, 4 }
 0x11d   :  { %v571_v28 = vrot.slane %v570_v24, 4  ;;  %v585_v29 = vrot.slane %v584_v25, 4 }
 0x11e   :  { %v565_v30 = vadd.f32 %v564_v26, %v563_v22  ;;  %v579_v31 = vadd.f32 %v578_v27, %v577_v23 }
 0x11f   :  { %v572_v32 = vadd.f32 %v571_v28, %v570_v24  ;;  %v586_v33 = vadd.f32 %v585_v29, %v584_v25 }
 0x120   :  { %v566_v34 = vrot.slane %v565_v30, 2  ;;  %v580_v35 = vrot.slane %v579_v31, 2 }
 0x121   :  { %v573_v36 = vrot.slane %v572_v32, 2  ;;  %v587_v37 = vrot.slane %v586_v33, 2 }
 0x122   :  { %v567_v38 = vadd.f32 %v566_v34, %v565_v30  ;;  %v581_v39 = vadd.f32 %v580_v35, %v579_v31 }
 0x123   :  { %v574_v40 = vadd.f32 %v573_v36, %v572_v32  ;;  %v588_v41 = vadd.f32 %v587_v37, %v586_v33 }
 0x124   :  { %v568_v42 = vrot.slane %v567_v38, 1  ;;  %v582_v43 = vrot.slane %v581_v39, 1 }
 0x125   :  { %v575_v44 = vrot.slane %v574_v40, 1  ;;  %v589_v45 = vrot.slane %v588_v41, 1 }
 0x126   :  { %v569_v46 = vadd.f32 %v568_v42, %v567_v38  ;;  %v583_v47 = vadd.f32 %v582_v43, %v581_v39 }
 0x127   :  { %v576_v48 = vadd.f32 %v575_v44, %v574_v40  ;;  %v590_v49 = vadd.f32 %v589_v45, %v588_v41 }
 0x128   :  { %v591_v50 = vmul.f32 0.5, %v569_v46  ;;  %v593_v51 = vmul.f32 0.5, %v583_v47 }
 0x129   :  { %v592_v52 = vmul.f32 0.5, %v576_v48  ;;  %v594_v53 = vmul.f32 0.5, %v590_v49 }
 0x12a   :  { %v1165_v54 = vsub.f32 %v467_v4, %v591_v50  ;;  %v1167_v55 = vsub.f32 %v510_v5, %v593_v51  ;;  %v1169_v56 = vsub.f32 %v471_v8, %v591_v50  ;;  %v1171_v57 = vsub.f32 %v514_v9, %v593_v51 }
 0x12b   :  { %v1173_v58 = vsub.f32 %v469_v6, %v592_v52  ;;  %v1175_v59 = vsub.f32 %v512_v7, %v594_v53  ;;  %v1177_v60 = vsub.f32 %v473_v12, %v592_v52  ;;  %v1179_v61 = vsub.f32 %v516_v13, %v594_v53 }
 0x12c   :  { %v603_v62 = vmul.f32 %v827_v11, %v1165_v54  ;;  %v605_v63 = vmul.f32 %v827_v11, %v1167_v55  ;;  %v607_v0 = vmul.f32 0.0, %v1169_v56  ;;  %v609_v1 = vmul.f32 0.0, %v1171_v57 }
 0x12d   :  { %v604_v2 = vmul.f32 %v827_v11, %v1173_v58  ;;  %v606_v4 = vmul.f32 %v827_v11, %v1175_v59  ;;  %v608_v5 = vmul.f32 0.0, %v1177_v60  ;;  %v610_v6 = vmul.f32 0.0, %v1179_v61 }
 0x12e   :  { %v611_v7 = vmul.f32 %v603_v62, %v603_v62  ;;  %v613_v8 = vmul.f32 %v605_v63, %v605_v63  ;;  %v615_v9 = vmul.f32 %v607_v0, %v607_v0  ;;  %v617_v10 = vmul.f32 %v609_v1, %v609_v1 }
 0x12f   :  { %v612_v12 = vmul.f32 %v604_v2, %v604_v2  ;;  %v614_v13 = vmul.f32 %v606_v4, %v606_v4  ;;  %v616_v14 = vmul.f32 %v608_v5, %v608_v5  ;;  %v618_v15 = vmul.f32 %v610_v6, %v610_v6 }
 0x130   :  { %v619_v16 = vadd.f32 %v615_v9, %v611_v7  ;;  %v633_v17 = vadd.f32 %v617_v10, %v613_v8  ;;  %v938_v51 = vmov 1966171168   ;;  %v651_v9 = vld [vmem:[%s1234_s2] sm:$0xf]  ;;  %v693_v10 = vsub.s32 0, %v1162_v3 }
 0x131   :  { %v626_v18 = vadd.f32 %v616_v14, %v612_v12  ;;  %v640_v19 = vadd.f32 %v618_v15, %v614_v13  ;;  %v667_v52 = vunpack.c.l.s4 %v938_v51  ;;  %v697_v13 = vsub.s32 1, %v1162_v3 }
 0x132   :  { %v620_v20 = vrot.slane %v619_v16, 4  ;;  %v634_v21 = vrot.slane %v633_v17, 4  ;;  %v701_v14 = vsub.s32 2, %v1162_v3  ;;  %v705_v15 = vsub.s32 3, %v1162_v3 }
 0x133   :  { %v627_v22 = vrot.slane %v626_v18, 4  ;;  %v641_v11 = vrot.slane %v640_v19, 4  ;;  %v668_v53 = vunpack.c.0.s8 %v667_v52 }
 0x134   :  { %v621_v23 = vadd.f32 %v620_v20, %v619_v16  ;;  %v635_v24 = vadd.f32 %v634_v21, %v633_v17  ;;  %v719_v16 = vld [vmem:[%s1235_s3] sm:$0xf] }
 0x135   :  { %v628_v25 = vadd.f32 %v627_v22, %v626_v18  ;;  %v642_v26 = vadd.f32 %v641_v11, %v640_v19  ;;  %v671_v63 = vsub.s32 %v668_v53, %v1162_v3  ;;  %v724_v18 = vrot.slane %v719_v16, %v693_v10 }
 0x136   :  { %v622_v27 = vrot.slane %v621_v23, 2  ;;  %v636_v28 = vrot.slane %v635_v24, 2  ;;  %v728_v19 = vrot.slane %v719_v16, %v697_v13  ;;  %v732_v20 = vrot.slane %v719_v16, %v701_v14 }
 0x137   :  { %v629_v29 = vrot.slane %v628_v25, 2  ;;  %v643_v30 = vrot.slane %v642_v26, 2  ;;  %v736_v21 = vrot.slane %v719_v16, %v705_v15 }
 0x138   :  { %v623_v31 = vadd.f32 %v622_v27, %v621_v23  ;;  %v637_v32 = vadd.f32 %v636_v28, %v635_v24 }
 0x139   :  { %v630_v33 = vadd.f32 %v629_v29, %v628_v25  ;;  %v644_v34 = vadd.f32 %v643_v30, %v642_v26 }
 0x13a   :  { %v624_v35 = vrot.slane %v623_v31, 1  ;;  %v638_v36 = vrot.slane %v637_v32, 1 }
 0x13b   :  { %v631_v37 = vrot.slane %v630_v33, 1  ;;  %v645_v38 = vrot.slane %v644_v34, 1 }
 0x13c   :  { %v625_v39 = vadd.f32 %v624_v35, %v623_v31  ;;  %v639_v40 = vadd.f32 %v638_v36, %v637_v32 }
 0x13d   :  { %v632_v41 = vadd.f32 %v631_v37, %v630_v33  ;;  %v646_v42 = vadd.f32 %v645_v38, %v644_v34 }
 0x13e   :  { %v647_v43 = vmul.f32 0.5, %v625_v39  ;;  %v649_v44 = vmul.f32 0.5, %v639_v40 }
 0x13f   :  { %v648_v45 = vmul.f32 0.5, %v632_v41  ;;  %v650_v46 = vmul.f32 0.5, %v646_v42 }
 0x140   :  { %v652_v47 = vadd.f32 1e-05, %v647_v43  ;;  %v654_v48 = vadd.f32 1e-05, %v649_v44 }
 0x141   :  { %v653_v49 = vadd.f32 1e-05, %v648_v45  ;;  %v655_v50 = vadd.f32 1e-05, %v650_v46 }
 0x142   :  { %929 = vrsqrt.f32 %v652_v47 }
 0x143   :  { %931 = vrsqrt.f32 %v653_v49 }
 0x144   :  { %933 = vrsqrt.f32 %v654_v48 }
 0x145   :  { %935 = vrsqrt.f32 %v655_v50 }
 0x14c   :  { %v930_v62 = vpop.eup %929 }
 0x14d   :  { %v932_v0 = vpop.eup %931 }
 0x14e   :  { %v934_v1 = vpop.eup %933  ;;  %v664_v2 = vcombine.low %v930_v62, %v932_v0 }
 0x14f   :  { %v936_v4 = vpop.eup %935 }
 0x150   :  { %v665_v5 = vcombine.low %v934_v1, %v936_v4  ;;  %v672_v6 = vrot.slane %v664_v2, %v671_v63 }
 0x152   :  { %v679_v7 = vrot.slane %v665_v5, %v671_v63 }
 0x154   :  { %v680_v8 = vcombine.low %v672_v6, %v679_v7 }
 0x156   :  { %v687_v12 = vrot.slane %v680_v8, %v671_v63 }
 0x158   :  { %v689_v17 = vmul.f32 %v687_v12, %v651_v9 }
 0x15a   :  { %v694_v22 = vrot.slane %v689_v17, %v693_v10  ;;  %v698_v11 = vrot.slane %v689_v17, %v697_v13  ;;  %v702_v23 = vrot.slane %v689_v17, %v701_v14  ;;  %v706_v24 = vrot.slane %v689_v17, %v705_v15 }
 0x15c   :  { %v711_v25 = vmul.f32 %v694_v22, %v1165_v54  ;;  %v712_v26 = vmul.f32 %v698_v11, %v1173_v58  ;;  %v713_v27 = vmul.f32 %v702_v23, %v1167_v55  ;;  %v714_v3 = vmul.f32 %v706_v24, %v1175_v59 }
 0x15d   :  { %v715_v28 = vmul.f32 %v694_v22, %v1169_v56  ;;  %v716_v29 = vmul.f32 %v698_v11, %v1177_v60  ;;  %v717_v30 = vmul.f32 %v702_v23, %v1171_v57  ;;  %v718_v31 = vmul.f32 %v706_v24, %v1179_v61 }
 0x15e   :  { %v741_v32 = vadd.f32 %v724_v18, %v711_v25  ;;  %v742_v33 = vadd.f32 %v728_v19, %v712_v26  ;;  %v743_v34 = vadd.f32 %v732_v20, %v713_v27  ;;  %v744_v35 = vadd.f32 %v736_v21, %v714_v3 }
 0x15f   :  { %v745_v36 = vadd.f32 %v724_v18, %v715_v28  ;;  %v746_v54 = vadd.f32 %v728_v19, %v716_v29  ;;  %v747_v37 = vadd.f32 %v732_v20, %v717_v30  ;;  %v748_v58 = vadd.f32 %v736_v21, %v718_v31 }
 0x160   :  { %749 = vst [vmem:[%s1236_s4] sm:$0xff] %v741_v32  ;;  %750 = vst [vmem:[%s1236_s4 + $0x8] sm:$0xff] %v742_v33 }
 0x161   :  { %751 = vst [vmem:[%s1236_s4 + $0x10] sm:$0xff] %v743_v34  ;;  %752 = vst [vmem:[%s1236_s4 + $0x18] sm:$0xff] %v744_v35 }
 0x162   :  { %753 = vst [vmem:[%s1236_s4 + $0x20] sm:$0xff] %v745_v36  ;;  %754 = vst [vmem:[%s1236_s4 + $0x28] sm:$0xff] %v746_v54 }
 0x163   :  { %755 = vst [vmem:[%s1236_s4 + $0x30] sm:$0xff] %v747_v37  ;;  %756 = vst [vmem:[%s1236_s4 + $0x38] sm:$0xff] %v748_v58 }

// kernel: simsiam_forward.85
= control target key start
LH: loop header
LB: loop body
LE: loop exit
PB: predicated region body
PF: predicated region fallthrough
CT: control target
= control target key end

     0   :  { %s1495_s15 = smov 0   ;;  %s1497_s16 = smov 0   ;;  %s1801_s0 = inlined_call_operand.vmem [shape: bf16[16,2304], index: 0, kind: input, shape index: {}]   ;;  %s1802_s1 = inlined_call_operand.vmem [shape: bf16[2304,512], index: 1, kind: input, shape index: {}]   ;;  %s1803_s2 = inlined_call_operand.vmem [shape: f32[1,512], index: 2, kind: input, shape index: {}]   ;;  %s1804_s3 = inlined_call_operand.vmem [shape: f32[1,512], index: 3, kind: input, shape index: {}]   ;;  %s1805_s4 = inlined_call_operand.vmem [shape: f32[16,512], index: 4, kind: output, shape index: {}]  }
   0x1   :  { %s1499_s17 = smov 0   ;;  %s1501_s18 = smov 0  }
   0x2   :  { %s1503_s19 = smov 0  }
   0x3 LB: > { %s23_s20 = sadd.s32 1, %s1461_s18  ;;  %p40_p1 = scmp.ne.s32.totalorder %s1453_s16, %s1449_s15  ;;  %s1465_s19 = sphi %s1503_s19, %s14_s19   ;;  %s1461_s18 = sphi %s1501_s18, %s1809_s18   ;;  %s1457_s17 = sphi %s1499_s17, %s1808_s17   ;;  %s1453_s16 = sphi %s1497_s16, %s1807_s16   ;;  %s1449_s15 = sphi %s1495_s15, %s1806_s15  }
   0x4   : > { %p24_p0 = scmp.ge.s32.totalorder %s23_s20, 9  ;;  %p41_p2 = scmp.eq.s32.totalorder %s1465_s19, 0 }
   0x5   : > { %s33_s22 = sadd.s32 1, %s1453_s16  ;;  %p1193_p5 = scmp.ge.s32.totalorder %s1465_s19, 9 }
   0x6   : > { %s1811_s20 = smov (%p24_p0, %s23_s20), 0  ;;  %p42_p3 = por %p41_p2, %p40_p1 }
   0x7   : > { %s30_s21 = ssub.s32 %s1461_s18, %s1811_s20  ;;  %188 = sbr.rel (%p1193_p5) target bundleno = 21 (0x15), region = 24 }
   0x8   : > { %p31_p4 = scmp.eq.s32.totalorder %s30_s21, 0 }
   0xa   : > { %s1530_s23 = scalar_select %p31_p4, %s1453_s16, %s33_s22  }
   0xe   : > { %191 = sbr.rel (!%p42_p3) target bundleno = 21 (0x15), region = 28  ;;  %s193_s24 = sand.u32 (%p42_p3), 1, %s1453_s16  }
   0xf   : > { %s1275_s25 = sshll.u32 (%p42_p3), %s1461_s18, 3  ;;  %s1194_s26 = sshll.u32 (%p42_p3), %s193_s24, 4 }
  0x10   : > { %s198_s29 = scalar_lea.vmem (%p42_p3), %s1801_s0, %s1275_s25  ;;  %s195_s30 = scalar_lea.vmem (%p42_p3), [#allocation2], %s1194_s26 }
  0x11   : > { %v228_v0 = vld [vmem:[%s198_s29] sm:$0xff] (%p42_p3)  ;;  %v230_v1 = vld [vmem:[%s198_s29 + $0x48] sm:$0xff] (%p42_p3) }
  0x12   : > { %229 = vst [vmem:[%s195_s30] sm:$0xff] (%p42_p3), %v228_v0  ;;  %231 = vst [vmem:[%s195_s30 + $0x8] sm:$0xff] (%p42_p3), %v230_v1 }
  0x15 PF: > { %p1197_p6 = scmp.ge.s32.totalorder %s1465_s19, 1  ;;  %p251_p7 = scmp.lt.s32.totalorder %s1465_s19, 10 }
  0x17   : > { %p252_p8 = pnand %p1197_p6, %p251_p7 }
  0x18   : > { %s258_s5 = sand.u32 (!%p252_p8), 1, %s1449_s15   ;;  %s1199_s6 = sshll.u32 (!%p252_p8), %s1457_s17, 5 }
  0x19   : > { %255 = sbr.rel (%p252_p8) target bundleno = 406 (0x196), region = 70  ;;  %s1542_s7 = sshll.u32 (!%p252_p8), %s258_s5, 4 }
  0x1a   : > { %p304_p9 = scmp.lt.s32.totalorder (!%p252_p8), %s1199_s6, 287  ;;  %s260_s12 = scalar_lea.vmem (!%p252_p8), [#allocation2], %s1542_s7 }
  0x1b   : > { %p1202_p10 = scmp.ne.s32.totalorder (!%p252_p8), %s1457_s17, 0 }
  0x20   : > { %s1813_s6 = smov (!%p304_p9, %s1199_s6), 287  ;;  %333 = sbr.rel (%p1202_p10) target bundleno = 39 (0x27), region = 78 }
  0x21   : > { %s1276_s8 = sshll.u32 %s1813_s6, 4  ;;  %v1467_v2 = vmov (!%p1202_p10), 0.0  }
  0x22   : > { %s1547_s11 = scalar_lea.vmem %s1802_s1, %s1276_s8  ;;  %334 = vst [vmem:[%s1805_s4] sm:$0xff] (!%p1202_p10), %v1467_v2  ;;  %335 = vst [vmem:[%s1805_s4 + $0x8] sm:$0xff] (!%p1202_p10), %v1467_v2 }
  0x23   : > { %336 = vst [vmem:[%s1805_s4 + $0x10] sm:$0xff] (!%p1202_p10), %v1467_v2  ;;  %337 = vst [vmem:[%s1805_s4 + $0x18] sm:$0xff] (!%p1202_p10), %v1467_v2 }
  0x24   : > { %338 = vst [vmem:[%s1805_s4 + $0x20] sm:$0xff] (!%p1202_p10), %v1467_v2  ;;  %339 = vst [vmem:[%s1805_s4 + $0x28] sm:$0xff] (!%p1202_p10), %v1467_v2 }
  0x25   : > { %340 = vst [vmem:[%s1805_s4 + $0x30] sm:$0xff] (!%p1202_p10), %v1467_v2  ;;  %341 = vst [vmem:[%s1805_s4 + $0x38] sm:$0xff] (!%p1202_p10), %v1467_v2 }
  0x27 PF: > { %v1320_v3 = vld [vmem:[%s1547_s11 + $0x4] ss:$16 sps:$4 sm:$0xff]   ;;  %v1322_v4 = vld [vmem:[%s1547_s11 + $0xc] ss:$16 sps:$4 sm:$0xff]   ;;  %v1324_v5 = vld [vmem:[%s1547_s11] ss:$16 sps:$4 sm:$0xff]  }
  0x28   : > { %746 = vmatprep.subr.bf16.mxu0 %v1320_v3  ;;  %v1325_v6 = vld [vmem:[%s1547_s11 + $0x8] ss:$16 sps:$4 sm:$0xff]   ;;  %789 = vmatprep.subr.bf16.mxu1 %v1322_v4  ;;  %v1326_v7 = vld [vmem:[%s1547_s11 + $0x24] ss:$16 sps:$4 sm:$0xff]   ;;  %v1328_v8 = vld [vmem:[%s1547_s11 + $0x2c] ss:$16 sps:$4 sm:$0xff]  }
  0x29   : > { %747 = vmatpush1.bf16.msra.mxu0 %v1324_v5  ;;  %790 = vmatpush1.bf16.msra.mxu1 %v1325_v6  ;;  %v1330_v9 = vld [vmem:[%s1547_s11 + $0x20] ss:$16 sps:$4 sm:$0xff]   ;;  %v1331_v10 = vld [vmem:[%s1547_s11 + $0x28] ss:$16 sps:$4 sm:$0xff]   ;;  %v1332_v11 = vld [vmem:[%s1547_s11 + $0x44] ss:$16 sps:$4 sm:$0xff]  }
  0x2a   : > { %748 = vmatprep.subr.bf16.mxu0 %v1326_v7  ;;  %791 = vmatprep.subr.bf16.mxu1 %v1328_v8  ;;  %v1334_v12 = vld [vmem:[%s1547_s11 + $0x4c] ss:$16 sps:$4 sm:$0xff]   ;;  %v1336_v13 = vld [vmem:[%s1547_s11 + $0x40] ss:$16 sps:$4 sm:$0xff]   ;;  %v1337_v14 = vld [vmem:[%s1547_s11 + $0x48] ss:$16 sps:$4 sm:$0xff]  }
  0x2b   : > { %v1338_v15 = vld [vmem:[%s1547_s11 + $0x64] ss:$16 sps:$4 sm:$0xff]   ;;  %v1340_v16 = vld [vmem:[%s1547_s11 + $0x6c] ss:$16 sps:$4 sm:$0xff]   ;;  %v1342_v17 = vld [vmem:[%s1547_s11 + $0x60] ss:$16 sps:$4 sm:$0xff]  }
  0x2c   : > { %v1343_v18 = vld [vmem:[%s1547_s11 + $0x68] ss:$16 sps:$4 sm:$0xff]   ;;  %v1344_v19 = vld [vmem:[%s1547_s11 + $0x84] ss:$16 sps:$4 sm:$0xff]   ;;  %v1346_v20 = vld [vmem:[%s1547_s11 + $0x8c] ss:$16 sps:$4 sm:$0xff]  }
  0x2d   : > { %749 = vmatpush1.bf16.msra.mxu0 %v1330_v9  ;;  %792 = vmatpush1.bf16.msra.mxu1 %v1331_v10  ;;  %v1348_v21 = vld [vmem:[%s1547_s11 + $0x80] ss:$16 sps:$4 sm:$0xff]   ;;  %v1349_v22 = vld [vmem:[%s1547_s11 + $0x88] ss:$16 sps:$4 sm:$0xff]   ;;  %v1350_v23 = vld [vmem:[%s1547_s11 + $0xa4] ss:$16 sps:$4 sm:$0xff]  }
  0x2e   : > { %750 = vmatprep.subr.bf16.mxu0 %v1332_v11  ;;  %793 = vmatprep.subr.bf16.mxu1 %v1334_v12  ;;  %v1352_v24 = vld [vmem:[%s1547_s11 + $0xac] ss:$16 sps:$4 sm:$0xff]   ;;  %v1354_v25 = vld [vmem:[%s1547_s11 + $0xa0] ss:$16 sps:$4 sm:$0xff]   ;;  %v1355_v26 = vld [vmem:[%s1547_s11 + $0xa8] ss:$16 sps:$4 sm:$0xff]  }
  0x2f   : > { %v1356_v27 = vld [vmem:[%s1547_s11 + $0xc4] ss:$16 sps:$4 sm:$0xff]   ;;  %v1358_v28 = vld [vmem:[%s1547_s11 + $0xcc] ss:$16 sps:$4 sm:$0xff]   ;;  %v1360_v29 = vld [vmem:[%s1547_s11 + $0xc0] ss:$16 sps:$4 sm:$0xff]  }
  0x30   : > { %v1361_v30 = vld [vmem:[%s1547_s11 + $0xc8] ss:$16 sps:$4 sm:$0xff]   ;;  %v1362_v31 = vld [vmem:[%s1547_s11 + $0xe4] ss:$16 sps:$4 sm:$0xff]   ;;  %v1364_v32 = vld [vmem:[%s1547_s11 + $0xec] ss:$16 sps:$4 sm:$0xff]  }
  0x31   : > { %751 = vmatpush1.bf16.msra.mxu0 %v1336_v13  ;;  %794 = vmatpush1.bf16.msra.mxu1 %v1337_v14  ;;  %v1366_v33 = vld [vmem:[%s1547_s11 + $0xe0] ss:$16 sps:$4 sm:$0xff]   ;;  %v1367_v34 = vld [vmem:[%s1547_s11 + $0xe8] ss:$16 sps:$4 sm:$0xff]   ;;  %v1368_v35 = vld [vmem:[%s1547_s11 + $0x104] ss:$16 sps:$4 sm:$0xff]  }
  0x32   : > { %752 = vmatprep.subr.bf16.mxu0 %v1338_v15  ;;  %795 = vmatprep.subr.bf16.mxu1 %v1340_v16  ;;  %v1370_v36 = vld [vmem:[%s1547_s11 + $0x10c] ss:$16 sps:$4 sm:$0xff]   ;;  %v1372_v37 = vld [vmem:[%s1547_s11 + $0x100] ss:$16 sps:$4 sm:$0xff]   ;;  %v1373_v38 = vld [vmem:[%s1547_s11 + $0x108] ss:$16 sps:$4 sm:$0xff]  }
  0x33   : > { %v1374_v39 = vld [vmem:[%s1547_s11 + $0x124] ss:$16 sps:$4 sm:$0xff]   ;;  %v1376_v40 = vld [vmem:[%s1547_s11 + $0x12c] ss:$16 sps:$4 sm:$0xff]   ;;  %v1378_v41 = vld [vmem:[%s1547_s11 + $0x120] ss:$16 sps:$4 sm:$0xff]  }
  0x34   : > { %v1379_v42 = vld [vmem:[%s1547_s11 + $0x128] ss:$16 sps:$4 sm:$0xff]   ;;  %v1380_v43 = vld [vmem:[%s1547_s11 + $0x144] ss:$16 sps:$4 sm:$0xff]   ;;  %v1382_v44 = vld [vmem:[%s1547_s11 + $0x14c] ss:$16 sps:$4 sm:$0xff]  }
  0x35   : > { %753 = vmatpush1.bf16.msra.mxu0 %v1342_v17  ;;  %796 = vmatpush1.bf16.msra.mxu1 %v1343_v18  ;;  %v1384_v45 = vld [vmem:[%s1547_s11 + $0x140] ss:$16 sps:$4 sm:$0xff]   ;;  %v1385_v46 = vld [vmem:[%s1547_s11 + $0x148] ss:$16 sps:$4 sm:$0xff]   ;;  %v1386_v47 = vld [vmem:[%s1547_s11 + $0x164] ss:$16 sps:$4 sm:$0xff]  }
  0x36   : > { %754 = vmatprep.subr.bf16.mxu0 %v1344_v19  ;;  %797 = vmatprep.subr.bf16.mxu1 %v1346_v20  ;;  %v1388_v48 = vld [vmem:[%s1547_s11 + $0x16c] ss:$16 sps:$4 sm:$0xff]   ;;  %v1390_v50 = vld [vmem:[%s1547_s11 + $0x160] ss:$16 sps:$4 sm:$0xff]   ;;  %v1391_v51 = vld [vmem:[%s1547_s11 + $0x168] ss:$16 sps:$4 sm:$0xff]  }
  0x37   : > { %v1418_v49 = vld [vmem:[%s260_s12 + $0x4] ss:$8 sps:$4 sm:$0xff]   ;;  %v1396_v54 = vld [vmem:[%s1547_s11 + $0x180] ss:$16 sps:$4 sm:$0xff]   ;;  %v1397_v55 = vld [vmem:[%s1547_s11 + $0x188] ss:$16 sps:$4 sm:$0xff]  }
  0x38   : > { %v1392_v52 = vld [vmem:[%s1547_s11 + $0x184] ss:$16 sps:$4 sm:$0xff]   ;;  %v1394_v53 = vld [vmem:[%s1547_s11 + $0x18c] ss:$16 sps:$4 sm:$0xff]   ;;  %778 = vmatprep.mubr.bf16.mxu0 %v1418_v49  ;;  %821 = vmatprep.mubr.bf16.mxu1 %v1418_v49  ;;  %v1402_v58 = vld [vmem:[%s1547_s11 + $0x1a0] ss:$16 sps:$4 sm:$0xff]  }
  0x39   : > { %755 = vmatpush1.bf16.msra.mxu0 %v1348_v21  ;;  %798 = vmatpush1.bf16.msra.mxu1 %v1349_v22  ;;  %v1398_v56 = vld [vmem:[%s1547_s11 + $0x1a4] ss:$16 sps:$4 sm:$0xff]   ;;  %v1400_v57 = vld [vmem:[%s1547_s11 + $0x1ac] ss:$16 sps:$4 sm:$0xff]   ;;  %v1403_v59 = vld [vmem:[%s1547_s11 + $0x1a8] ss:$16 sps:$4 sm:$0xff]  }
  0x3a   : > { %756 = vmatprep.subr.bf16.mxu0 %v1350_v23  ;;  %799 = vmatprep.subr.bf16.mxu1 %v1352_v24  ;;  %v1404_v60 = vld [vmem:[%s1547_s11 + $0x1c4] ss:$16 sps:$4 sm:$0xff]   ;;  %v1406_v61 = vld [vmem:[%s1547_s11 + $0x1cc] ss:$16 sps:$4 sm:$0xff]   ;;  %v1408_v62 = vld [vmem:[%s1547_s11 + $0x1c0] ss:$16 sps:$4 sm:$0xff]  }
  0x3b   : > { %v1409_v63 = vld [vmem:[%s1547_s11 + $0x1c8] ss:$16 sps:$4 sm:$0xff]   ;;  %v1410_v0 = vld [vmem:[%s1547_s11 + $0x1e4] ss:$16 sps:$4 sm:$0xff]   ;;  %v1412_v1 = vld [vmem:[%s1547_s11 + $0x1ec] ss:$16 sps:$4 sm:$0xff]  }
  0x3c   : > { %v1414_v2 = vld [vmem:[%s1547_s11 + $0x1e0] ss:$16 sps:$4 sm:$0xff]   ;;  %v1415_v3 = vld [vmem:[%s1547_s11 + $0x1e8] ss:$16 sps:$4 sm:$0xff]   ;;  %p1269_p11 = scmp.ne.s32.totalorder %s1457_s17, 8 }
  0x3d   : > { %757 = vmatpush1.bf16.msra.mxu0 %v1354_v25  ;;  %800 = vmatpush1.bf16.msra.mxu1 %v1355_v26  ;;  %v1416_v4 = vld [vmem:[%s260_s12] ss:$8 sps:$4 sm:$0xff]  }
  0x3e   : > { %758 = vmatprep.subr.bf16.mxu0 %v1356_v27  ;;  %801 = vmatprep.subr.bf16.mxu1 %v1358_v28  ;;  %v342_v5 = vld [vmem:[%s1805_s4] sm:$0xff]  ;;  %v344_v6 = vld [vmem:[%s1805_s4 + $0x10] sm:$0xff]  ;;  %v343_v7 = vld [vmem:[%s1805_s4 + $0x8] sm:$0xff] }
  0x3f   : > { %v345_v8 = vld [vmem:[%s1805_s4 + $0x18] sm:$0xff]  ;;  %v346_v11 = vld [vmem:[%s1805_s4 + $0x20] sm:$0xff]  ;;  %v348_v12 = vld [vmem:[%s1805_s4 + $0x30] sm:$0xff] }
  0x40   : > { %v347_v17 = vld [vmem:[%s1805_s4 + $0x28] sm:$0xff]  ;;  %v349_v18 = vld [vmem:[%s1805_s4 + $0x38] sm:$0xff] }
  0x41   : > { %759 = vmatpush1.bf16.msra.mxu0 %v1360_v29  ;;  %802 = vmatpush1.bf16.msra.mxu1 %v1361_v30  ;;  %v860_v29 = vlaneseq (!%p1269_p11) }
  0x42   : > { %760 = vmatprep.subr.bf16.mxu0 %v1362_v31  ;;  %803 = vmatprep.subr.bf16.mxu1 %v1364_v32 }
  0x45   : > { %761 = vmatpush1.bf16.msra.mxu0 %v1366_v33  ;;  %804 = vmatpush1.bf16.msra.mxu1 %v1367_v34 }
  0x46   : > { %762 = vmatprep.subr.bf16.mxu0 %v1368_v35  ;;  %805 = vmatprep.subr.bf16.mxu1 %v1370_v36  ;;  %v1707_v35 = vshrl.u32 (!%p1269_p11), %v860_v29, 7 }
  0x48   : > { %vm863_vm0 = vcmp.lt.s32.totalorder (!%p1269_p11), %v1707_v35, 2 }
  0x49   : > { %763 = vmatpush1.bf16.msra.mxu0 %v1372_v37  ;;  %806 = vmatpush1.bf16.msra.mxu1 %v1373_v38 }
  0x4a   : > { %764 = vmatprep.subr.bf16.mxu0 %v1374_v39  ;;  %807 = vmatprep.subr.bf16.mxu1 %v1376_v40 }
  0x4d   : > { %765 = vmatpush1.bf16.msra.mxu0 %v1378_v41  ;;  %808 = vmatpush1.bf16.msra.mxu1 %v1379_v42 }
  0x4e   : > { %766 = vmatprep.subr.bf16.mxu0 %v1380_v43  ;;  %809 = vmatprep.subr.bf16.mxu1 %v1382_v44  ;;  %v1468_v43 = vmov (!%p1269_p11), 0.0  }
  0x4f   : > { %v1270_v44 = vsel (!%p1269_p11), %vm863_vm0, 1.0, %v1468_v43 }
  0x51   : > { %767 = vmatpush1.bf16.msra.mxu0 %v1384_v45  ;;  %810 = vmatpush1.bf16.msra.mxu1 %v1385_v46 }
  0x52   : > { %768 = vmatprep.subr.bf16.mxu0 %v1386_v47  ;;  %811 = vmatprep.subr.bf16.mxu1 %v1388_v48 }
  0x55   : > { %769 = vmatpush1.bf16.msra.mxu0 %v1390_v50  ;;  %812 = vmatpush1.bf16.msra.mxu1 %v1391_v51 }
  0x56   : > { %770 = vmatprep.subr.bf16.mxu0 %v1392_v52  ;;  %813 = vmatprep.subr.bf16.mxu1 %v1394_v53 }
  0x59   : > { %771 = vmatpush1.bf16.msra.mxu0 %v1396_v54  ;;  %814 = vmatpush1.bf16.msra.mxu1 %v1397_v55 }
  0x5a   : > { %772 = vmatprep.subr.bf16.mxu0 %v1398_v56  ;;  %815 = vmatprep.subr.bf16.mxu1 %v1400_v57 }
  0x5d   : > { %773 = vmatpush1.bf16.msra.mxu0 %v1402_v58  ;;  %816 = vmatpush1.bf16.msra.mxu1 %v1403_v59 }
  0x5e   : > { %774 = vmatprep.subr.bf16.mxu0 %v1404_v60  ;;  %817 = vmatprep.subr.bf16.mxu1 %v1406_v61 }
  0x61   : > { %775 = vmatpush1.bf16.msra.mxu0 %v1408_v62  ;;  %818 = vmatpush1.bf16.msra.mxu1 %v1409_v63 }
  0x62   : > { %776 = vmatprep.subr.bf16.mxu0 %v1410_v0  ;;  %819 = vmatprep.subr.bf16.mxu1 %v1412_v1 }
  0x65   : > { %777 = vmatpush1.bf16.msra.mxu0 %v1414_v2  ;;  %820 = vmatpush1.bf16.msra.mxu1 %v1415_v3 }
  0x68   : > { %779 = vmatmul.mubr.bf16.vlgmr.msra.gmra.mrb[0].mxu0 %v1416_v4  ;;  %822 = vmatmul.mubr.bf16.vlgmr.msra.gmra.mrb[0].mxu1 %v1416_v4 }
 0x13b   : > { %v780_v9 = vpop.f32.mrb[0].mxu0  ;;  %v823_v10 = vpop.f32.mrb[0].mxu1  ;;  %851 = sbr.rel (%p1269_p11) target bundleno = 406 (0x196), region = 82 }
 0x13c   : > { %v832_v13 = vadd.f32 %v780_v9, %v342_v5  ;;  %v834_v14 = vadd.f32 %v823_v10, %v344_v6  ;;  %v782_v15 = vpop.f32.mrb[1].mxu0  ;;  %v825_v16 = vpop.f32.mrb[1].mxu1 }
 0x13d   : > { %v833_v19 = vadd.f32 %v782_v15, %v343_v7  ;;  %v835_v20 = vadd.f32 %v825_v16, %v345_v8  ;;  %v784_v21 = vpop.f32.mrb[2].mxu0  ;;  %v827_v22 = vpop.f32.mrb[2].mxu1 }
 0x13e   : > { %840 = vst [vmem:[%s1805_s4] sm:$0xff] %v832_v13  ;;  %842 = vst [vmem:[%s1805_s4 + $0x10] sm:$0xff] %v834_v14  ;;  %v836_v23 = vadd.f32 %v784_v21, %v346_v11  ;;  %v838_v24 = vadd.f32 %v827_v22, %v348_v12  ;;  %v786_v25 = vpop.f32.mrb[3].mxu0  ;;  %v829_v26 = vpop.f32.mrb[3].mxu1 }
 0x13f   : > { %841 = vst [vmem:[%s1805_s4 + $0x8] sm:$0xff] %v833_v19  ;;  %843 = vst [vmem:[%s1805_s4 + $0x18] sm:$0xff] %v835_v20  ;;  %v837_v27 = vadd.f32 %v786_v25, %v347_v17  ;;  %v839_v28 = vadd.f32 %v829_v26, %v349_v18 }
 0x140   : > { %844 = vst [vmem:[%s1805_s4 + $0x20] sm:$0xff] %v836_v23  ;;  %846 = vst [vmem:[%s1805_s4 + $0x30] sm:$0xff] %v838_v24 }
 0x141   : > { %845 = vst [vmem:[%s1805_s4 + $0x28] sm:$0xff] %v837_v27  ;;  %847 = vst [vmem:[%s1805_s4 + $0x38] sm:$0xff] %v839_v28 }
 0x145   : > { %v852_v32 = vld [vmem:[%s1805_s4] sm:$0xff]  ;;  %v854_v37 = vld [vmem:[%s1805_s4 + $0x10] sm:$0xff] }
 0x146   : > { %v853_v36 = vld [vmem:[%s1805_s4 + $0x8] sm:$0xff]  ;;  %v855_v38 = vld [vmem:[%s1805_s4 + $0x18] sm:$0xff]  ;;  %v869_v45 = vmul.f32 %v1270_v44, %v852_v32  ;;  %v871_v47 = vmul.f32 %v1270_v44, %v854_v37 }
 0x147   : > { %v856_v30 = vld [vmem:[%s1805_s4 + $0x20] sm:$0xff]  ;;  %v858_v33 = vld [vmem:[%s1805_s4 + $0x30] sm:$0xff]  ;;  %v870_v46 = vmul.f32 %v1270_v44, %v853_v36  ;;  %v872_v48 = vmul.f32 %v1270_v44, %v855_v38 }
 0x148   : > { %v857_v31 = vld [vmem:[%s1805_s4 + $0x28] sm:$0xff]  ;;  %v859_v34 = vld [vmem:[%s1805_s4 + $0x38] sm:$0xff]  ;;  %v873_v39 = vmul.f32 0.0, %v856_v30  ;;  %v875_v41 = vmul.f32 0.0, %v858_v33 }
 0x149   : > { %v874_v40 = vmul.f32 0.0, %v857_v31  ;;  %v876_v42 = vmul.f32 0.0, %v859_v34 }
 0x14a   : > { %v877_v49 = vadd.f32 %v873_v39, %v869_v45  ;;  %v891_v51 = vadd.f32 %v875_v41, %v871_v47 }
 0x14b   : > { %v884_v50 = vadd.f32 %v874_v40, %v870_v46  ;;  %v898_v52 = vadd.f32 %v876_v42, %v872_v48 }
 0x14c   : > { %v878_v53 = vrot.slane %v877_v49, 4  ;;  %v892_v55 = vrot.slane %v891_v51, 4 }
 0x14d   : > { %v885_v54 = vrot.slane %v884_v50, 4  ;;  %v899_v56 = vrot.slane %v898_v52, 4 }
 0x14e   : > { %v879_v57 = vadd.f32 %v878_v53, %v877_v49  ;;  %v893_v59 = vadd.f32 %v892_v55, %v891_v51 }
 0x14f   : > { %v886_v58 = vadd.f32 %v885_v54, %v884_v50  ;;  %v900_v60 = vadd.f32 %v899_v56, %v898_v52 }
 0x150   : > { %v880_v61 = vrot.slane %v879_v57, 2  ;;  %v894_v63 = vrot.slane %v893_v59, 2 }
 0x151   : > { %v887_v62 = vrot.slane %v886_v58, 2  ;;  %v901_v0 = vrot.slane %v900_v60, 2 }
 0x152   : > { %v881_v1 = vadd.f32 %v880_v61, %v879_v57  ;;  %v895_v3 = vadd.f32 %v894_v63, %v893_v59 }
 0x153   : > { %v888_v2 = vadd.f32 %v887_v62, %v886_v58  ;;  %v902_v4 = vadd.f32 %v901_v0, %v900_v60 }
 0x154   : > { %v882_v5 = vrot.slane %v881_v1, 1  ;;  %v896_v7 = vrot.slane %v895_v3, 1 }
 0x155   : > { %v889_v6 = vrot.slane %v888_v2, 1  ;;  %v903_v8 = vrot.slane %v902_v4, 1 }
 0x156   : > { %v883_v9 = vadd.f32 %v882_v5, %v881_v1  ;;  %v897_v11 = vadd.f32 %v896_v7, %v895_v3 }
 0x157   : > { %v890_v10 = vadd.f32 %v889_v6, %v888_v2  ;;  %v904_v12 = vadd.f32 %v903_v8, %v902_v4 }
 0x158   : > { %v905_v13 = vmul.f32 0.5, %v883_v9  ;;  %v907_v15 = vmul.f32 0.5, %v897_v11 }
 0x159   : > { %v906_v14 = vmul.f32 0.5, %v890_v10  ;;  %v908_v16 = vmul.f32 0.5, %v904_v12 }
 0x15a   : > { %v1719_v17 = vsub.f32 %v852_v32, %v905_v13  ;;  %v1723_v19 = vsub.f32 %v854_v37, %v907_v15  ;;  %v1727_v21 = vsub.f32 %v856_v30, %v905_v13  ;;  %v1731_v23 = vsub.f32 %v858_v33, %v907_v15 }
 0x15b   : > { %v1721_v18 = vsub.f32 %v853_v36, %v906_v14  ;;  %v1725_v20 = vsub.f32 %v855_v38, %v908_v16  ;;  %v1729_v22 = vsub.f32 %v857_v31, %v906_v14  ;;  %v1733_v24 = vsub.f32 %v859_v34, %v908_v16 }
 0x15c   : > { %v917_v25 = vmul.f32 %v1270_v44, %v1719_v17  ;;  %v919_v27 = vmul.f32 %v1270_v44, %v1723_v19  ;;  %v921_v29 = vmul.f32 0.0, %v1727_v21  ;;  %v923_v30 = vmul.f32 0.0, %v1731_v23 }
 0x15d   : > { %v918_v26 = vmul.f32 %v1270_v44, %v1721_v18  ;;  %v920_v28 = vmul.f32 %v1270_v44, %v1725_v20  ;;  %v922_v32 = vmul.f32 0.0, %v1729_v22  ;;  %v924_v31 = vmul.f32 0.0, %v1733_v24 }
 0x15e   : > { %v925_v33 = vmul.f32 %v917_v25, %v917_v25  ;;  %v927_v34 = vmul.f32 %v919_v27, %v919_v27  ;;  %v929_v38 = vmul.f32 %v921_v29, %v921_v29  ;;  %v931_v40 = vmul.f32 %v923_v30, %v923_v30 }
 0x15f   : > { %v926_v36 = vmul.f32 %v918_v26, %v918_v26  ;;  %v928_v37 = vmul.f32 %v920_v28, %v920_v28  ;;  %v930_v39 = vmul.f32 %v922_v32, %v922_v32  ;;  %v932_v41 = vmul.f32 %v924_v31, %v924_v31 }
 0x160   : > { %v933_v42 = vadd.f32 %v929_v38, %v925_v33  ;;  %v947_v45 = vadd.f32 %v931_v40, %v927_v34  ;;  %v1469_v14 = vmov 1966171168   ;;  %v965_v34 = vld [vmem:[%s1803_s2] sm:$0xf]  ;;  %v1011_v40 = vsub.s32 1, %v1707_v35 }
 0x161   : > { %v940_v43 = vadd.f32 %v930_v39, %v926_v36  ;;  %v954_v44 = vadd.f32 %v932_v41, %v928_v37  ;;  %v981_v15 = vunpack.c.l.s4 %v1469_v14  ;;  %v1007_v37 = vsub.s32 0, %v1707_v35  ;;  %v1033_v39 = vld [vmem:[%s1804_s3] sm:$0xf] }
 0x162   : > { %v934_v46 = vrot.slane %v933_v42, 4  ;;  %v948_v48 = vrot.slane %v947_v45, 4  ;;  %v1015_v41 = vsub.s32 2, %v1707_v35 }
 0x163   : > { %v941_v47 = vrot.slane %v940_v43, 4  ;;  %v955_v49 = vrot.slane %v954_v44, 4  ;;  %v982_v16 = vunpack.c.0.s8 %v981_v15 }
 0x164   : > { %v935_v50 = vadd.f32 %v934_v46, %v933_v42  ;;  %v949_v52 = vadd.f32 %v948_v48, %v947_v45  ;;  %v1019_v42 = vsub.s32 3, %v1707_v35  ;;  %v1038_v45 = vrot.slane %v1033_v39, %v1007_v37 }
 0x165   : > { %v942_v51 = vadd.f32 %v941_v47, %v940_v43  ;;  %v956_v53 = vadd.f32 %v955_v49, %v954_v44  ;;  %v985_v26 = vsub.s32 %v982_v16, %v1707_v35  ;;  %v1042_v44 = vrot.slane %v1033_v39, %v1011_v40 }
 0x166   : > { %v936_v54 = vrot.slane %v935_v50, 2  ;;  %v950_v56 = vrot.slane %v949_v52, 2  ;;  %v1046_v46 = vrot.slane %v1033_v39, %v1015_v41  ;;  %v1050_v47 = vrot.slane %v1033_v39, %v1019_v42 }
 0x167   : > { %v943_v55 = vrot.slane %v942_v51, 2  ;;  %v957_v57 = vrot.slane %v956_v53, 2 }
 0x168   : > { %v937_v58 = vadd.f32 %v936_v54, %v935_v50  ;;  %v951_v60 = vadd.f32 %v950_v56, %v949_v52 }
 0x169   : > { %v944_v59 = vadd.f32 %v943_v55, %v942_v51  ;;  %v958_v61 = vadd.f32 %v957_v57, %v956_v53 }
 0x16a   : > { %v938_v62 = vrot.slane %v937_v58, 1  ;;  %v952_v0 = vrot.slane %v951_v60, 1 }
 0x16b   : > { %v945_v63 = vrot.slane %v944_v59, 1  ;;  %v959_v1 = vrot.slane %v958_v61, 1 }
 0x16c   : > { %v939_v2 = vadd.f32 %v938_v62, %v937_v58  ;;  %v953_v4 = vadd.f32 %v952_v0, %v951_v60 }
 0x16d   : > { %v946_v3 = vadd.f32 %v945_v63, %v944_v59  ;;  %v960_v5 = vadd.f32 %v959_v1, %v958_v61 }
 0x16e   : > { %v961_v6 = vmul.f32 0.5, %v939_v2  ;;  %v963_v8 = vmul.f32 0.5, %v953_v4 }
 0x16f   : > { %v962_v7 = vmul.f32 0.5, %v946_v3  ;;  %v964_v9 = vmul.f32 0.5, %v960_v5 }
 0x170   : > { %v966_v10 = vadd.f32 1e-05, %v961_v6  ;;  %v968_v12 = vadd.f32 1e-05, %v963_v8 }
 0x171   : > { %v967_v11 = vadd.f32 1e-05, %v962_v7  ;;  %v969_v13 = vadd.f32 1e-05, %v964_v9 }
 0x172   : > { %1419 = vrsqrt.f32 %v966_v10 }
 0x173   : > { %1421 = vrsqrt.f32 %v967_v11 }
 0x174   : > { %1423 = vrsqrt.f32 %v968_v12 }
 0x175   : > { %1425 = vrsqrt.f32 %v969_v13 }
 0x17c   : > { %v1420_v25 = vpop.eup %1419 }
 0x17d   : > { %v1422_v27 = vpop.eup %1421 }
 0x17e   : > { %v1424_v28 = vpop.eup %1423  ;;  %v978_v29 = vcombine.low %v1420_v25, %v1422_v27 }
 0x17f   : > { %v1426_v32 = vpop.eup %1425 }
 0x180   : > { %v979_v30 = vcombine.low %v1424_v28, %v1426_v32  ;;  %v986_v31 = vrot.slane %v978_v29, %v985_v26 }
 0x182   : > { %v993_v33 = vrot.slane %v979_v30, %v985_v26 }
 0x184   : > { %v994_v36 = vcombine.low %v986_v31, %v993_v33 }
 0x186   : > { %v1001_v38 = vrot.slane %v994_v36, %v985_v26 }
 0x188   : > { %v1003_v43 = vmul.f32 %v1001_v38, %v965_v34 }
 0x18a   : > { %v1008_v48 = vrot.slane %v1003_v43, %v1007_v37  ;;  %v1012_v49 = vrot.slane %v1003_v43, %v1011_v40  ;;  %v1016_v50 = vrot.slane %v1003_v43, %v1015_v41  ;;  %v1020_v51 = vrot.slane %v1003_v43, %v1019_v42 }
 0x18c   : > { %v1025_v52 = vmul.f32 %v1008_v48, %v1719_v17  ;;  %v1026_v53 = vmul.f32 %v1012_v49, %v1721_v18  ;;  %v1027_v54 = vmul.f32 %v1016_v50, %v1723_v19  ;;  %v1028_v55 = vmul.f32 %v1020_v51, %v1725_v20 }
 0x18d   : > { %v1029_v56 = vmul.f32 %v1008_v48, %v1727_v21  ;;  %v1030_v35 = vmul.f32 %v1012_v49, %v1729_v22  ;;  %v1031_v57 = vmul.f32 %v1016_v50, %v1731_v23  ;;  %v1032_v58 = vmul.f32 %v1020_v51, %v1733_v24 }
 0x18e   : > { %v1055_v59 = vadd.f32 %v1038_v45, %v1025_v52  ;;  %v1056_v60 = vadd.f32 %v1042_v44, %v1026_v53  ;;  %v1057_v61 = vadd.f32 %v1046_v46, %v1027_v54  ;;  %v1058_v62 = vadd.f32 %v1050_v47, %v1028_v55 }
 0x18f   : > { %v1059_v63 = vadd.f32 %v1038_v45, %v1029_v56  ;;  %v1060_v17 = vadd.f32 %v1042_v44, %v1030_v35  ;;  %v1061_v0 = vadd.f32 %v1046_v46, %v1031_v57  ;;  %v1062_v18 = vadd.f32 %v1050_v47, %v1032_v58 }
 0x190   : > { %v1063_v1 = vmax.f32 %v1055_v59, 0.0  ;;  %v1064_v19 = vmax.f32 %v1056_v60, 0.0  ;;  %v1065_v2 = vmax.f32 %v1057_v61, 0.0  ;;  %v1066_v20 = vmax.f32 %v1058_v62, 0.0 }
 0x191   : > { %v1067_v3 = vmax.f32 %v1059_v63, 0.0  ;;  %v1068_v21 = vmax.f32 %v1060_v17, 0.0  ;;  %v1069_v4 = vmax.f32 %v1061_v0, 0.0  ;;  %v1070_v22 = vmax.f32 %v1062_v18, 0.0 }
 0x192   : > { %1071 = vst [vmem:[%s1805_s4] sm:$0xff] %v1063_v1  ;;  %1072 = vst [vmem:[%s1805_s4 + $0x8] sm:$0xff] %v1064_v19 }
 0x193   : > { %1073 = vst [vmem:[%s1805_s4 + $0x10] sm:$0xff] %v1065_v2  ;;  %1074 = vst [vmem:[%s1805_s4 + $0x18] sm:$0xff] %v1066_v20 }
 0x194   : > { %1075 = vst [vmem:[%s1805_s4 + $0x20] sm:$0xff] %v1067_v3  ;;  %1076 = vst [vmem:[%s1805_s4 + $0x28] sm:$0xff] %v1068_v21 }
 0x195   : > { %1077 = vst [vmem:[%s1805_s4 + $0x30] sm:$0xff] %v1069_v4  ;;  %1078 = vst [vmem:[%s1805_s4 + $0x38] sm:$0xff] %v1070_v22 }
 0x196 PF: > { %s14_s19 = sadd.s32 1, %s1465_s19   ;;  %s1806_s15 = smov %s1453_s16 }
 0x197   : > { %p11_p12 = scmp.ge.s32.totalorder %s14_s19, 11   ;;  %s1807_s16 = smov %s1530_s23 }
 0x198   : > { %s1808_s17 = smov %s1461_s18  ;;  %s1809_s18 = smov %s1811_s20 }
 0x199   :  { %13 = sbr.rel (!%p11_p12) target bundleno = 3 (0x3), region = 126 }

// kernel: simsiam_forward.68
= control target key start
LH: loop header
LB: loop body
LE: loop exit
PB: predicated region body
PF: predicated region fallthrough
CT: control target
= control target key end

     0   :  { %s1495_s15 = smov 0   ;;  %s1497_s16 = smov 0   ;;  %s1801_s0 = inlined_call_operand.vmem [shape: bf16[16,4608], index: 0, kind: input, shape index: {}]   ;;  %s1802_s1 = inlined_call_operand.vmem [shape: bf16[4608,512], index: 1, kind: input, shape index: {}]   ;;  %s1803_s2 = inlined_call_operand.vmem [shape: f32[1,512], index: 2, kind: input, shape index: {}]   ;;  %s1804_s3 = inlined_call_operand.vmem [shape: f32[1,512], index: 3, kind: input, shape index: {}]   ;;  %s1805_s4 = inlined_call_operand.vmem [shape: f32[16,512], index: 4, kind: output, shape index: {}]  }
   0x1   :  { %s1499_s17 = smov 0   ;;  %s1501_s18 = smov 0  }
   0x2   :  { %s1503_s19 = smov 0  }
   0x3 LB: > { %s23_s20 = sadd.s32 1, %s1461_s18  ;;  %p40_p1 = scmp.ne.s32.totalorder %s1453_s16, %s1449_s15  ;;  %s1465_s19 = sphi %s1503_s19, %s14_s19   ;;  %s1461_s18 = sphi %s1501_s18, %s1809_s18   ;;  %s1457_s17 = sphi %s1499_s17, %s1808_s17   ;;  %s1453_s16 = sphi %s1497_s16, %s1807_s16   ;;  %s1449_s15 = sphi %s1495_s15, %s1806_s15  }
   0x4   : > { %p24_p0 = scmp.ge.s32.totalorder %s23_s20, 18  ;;  %p41_p2 = scmp.eq.s32.totalorder %s1465_s19, 0 }
   0x5   : > { %s33_s22 = sadd.s32 1, %s1453_s16  ;;  %p1193_p5 = scmp.ge.s32.totalorder %s1465_s19, 18 }
   0x6   : > { %s1811_s20 = smov (%p24_p0, %s23_s20), 0  ;;  %p42_p3 = por %p41_p2, %p40_p1 }
   0x7   : > { %s30_s21 = ssub.s32 %s1461_s18, %s1811_s20  ;;  %188 = sbr.rel (%p1193_p5) target bundleno = 21 (0x15), region = 24 }
   0x8   : > { %p31_p4 = scmp.eq.s32.totalorder %s30_s21, 0 }
   0xa   : > { %s1530_s23 = scalar_select %p31_p4, %s1453_s16, %s33_s22  }
   0xe   : > { %191 = sbr.rel (!%p42_p3) target bundleno = 21 (0x15), region = 28  ;;  %s193_s24 = sand.u32 (%p42_p3), 1, %s1453_s16  }
   0xf   : > { %s1275_s25 = sshll.u32 (%p42_p3), %s1461_s18, 3  ;;  %s1194_s26 = sshll.u32 (%p42_p3), %s193_s24, 4 }
  0x10   : > { %s198_s29 = scalar_lea.vmem (%p42_p3), %s1801_s0, %s1275_s25  ;;  %s195_s30 = scalar_lea.vmem (%p42_p3), [#allocation2], %s1194_s26 }
  0x11   : > { %v228_v0 = vld [vmem:[%s198_s29] sm:$0xff] (%p42_p3)  ;;  %v230_v1 = vld [vmem:[%s198_s29 + $0x90] sm:$0xff] (%p42_p3) }
  0x12   : > { %229 = vst [vmem:[%s195_s30] sm:$0xff] (%p42_p3), %v228_v0  ;;  %231 = vst [vmem:[%s195_s30 + $0x8] sm:$0xff] (%p42_p3), %v230_v1 }
  0x15 PF: > { %p1197_p6 = scmp.ge.s32.totalorder %s1465_s19, 1  ;;  %p251_p7 = scmp.lt.s32.totalorder %s1465_s19, 19 }
  0x17   : > { %p252_p8 = pnand %p1197_p6, %p251_p7 }
  0x18   : > { %s258_s5 = sand.u32 (!%p252_p8), 1, %s1449_s15   ;;  %s1199_s6 = sshll.u32 (!%p252_p8), %s1457_s17, 5 }
  0x19   : > { %255 = sbr.rel (%p252_p8) target bundleno = 406 (0x196), region = 70  ;;  %s1542_s7 = sshll.u32 (!%p252_p8), %s258_s5, 4 }
  0x1a   : > { %p304_p9 = scmp.lt.s32.totalorder (!%p252_p8), %s1199_s6, 575  ;;  %s260_s12 = scalar_lea.vmem (!%p252_p8), [#allocation2], %s1542_s7 }
  0x1b   : > { %p1202_p10 = scmp.ne.s32.totalorder (!%p252_p8), %s1457_s17, 0 }
  0x20   : > { %s1813_s6 = smov (!%p304_p9, %s1199_s6), 575  ;;  %333 = sbr.rel (%p1202_p10) target bundleno = 39 (0x27), region = 78 }
  0x21   : > { %s1276_s8 = sshll.u32 %s1813_s6, 4  ;;  %v1467_v2 = vmov (!%p1202_p10), 0.0  }
  0x22   : > { %s1547_s11 = scalar_lea.vmem %s1802_s1, %s1276_s8  ;;  %334 = vst [vmem:[%s1805_s4] sm:$0xff] (!%p1202_p10), %v1467_v2  ;;  %335 = vst [vmem:[%s1805_s4 + $0x8] sm:$0xff] (!%p1202_p10), %v1467_v2 }
  0x23   : > { %336 = vst [vmem:[%s1805_s4 + $0x10] sm:$0xff] (!%p1202_p10), %v1467_v2  ;;  %337 = vst [vmem:[%s1805_s4 + $0x18] sm:$0xff] (!%p1202_p10), %v1467_v2 }
  0x24   : > { %338 = vst [vmem:[%s1805_s4 + $0x20] sm:$0xff] (!%p1202_p10), %v1467_v2  ;;  %339 = vst [vmem:[%s1805_s4 + $0x28] sm:$0xff] (!%p1202_p10), %v1467_v2 }
  0x25   : > { %340 = vst [vmem:[%s1805_s4 + $0x30] sm:$0xff] (!%p1202_p10), %v1467_v2  ;;  %341 = vst [vmem:[%s1805_s4 + $0x38] sm:$0xff] (!%p1202_p10), %v1467_v2 }
  0x27 PF: > { %v1320_v3 = vld [vmem:[%s1547_s11 + $0x4] ss:$16 sps:$4 sm:$0xff]   ;;  %v1322_v4 = vld [vmem:[%s1547_s11 + $0xc] ss:$16 sps:$4 sm:$0xff]   ;;  %v1324_v5 = vld [vmem:[%s1547_s11] ss:$16 sps:$4 sm:$0xff]  }
  0x28   : > { %746 = vmatprep.subr.bf16.mxu0 %v1320_v3  ;;  %v1325_v6 = vld [vmem:[%s1547_s11 + $0x8] ss:$16 sps:$4 sm:$0xff]   ;;  %789 = vmatprep.subr.bf16.mxu1 %v1322_v4  ;;  %v1326_v7 = vld [vmem:[%s1547_s11 + $0x24] ss:$16 sps:$4 sm:$0xff]   ;;  %v1328_v8 = vld [vmem:[%s1547_s11 + $0x2c] ss:$16 sps:$4 sm:$0xff]  }
  0x29   : > { %747 = vmatpush1.bf16.msra.mxu0 %v1324_v5  ;;  %790 = vmatpush1.bf16.msra.mxu1 %v1325_v6  ;;  %v1330_v9 = vld [vmem:[%s1547_s11 + $0x20] ss:$16 sps:$4 sm:$0xff]   ;;  %v1331_v10 = vld [vmem:[%s1547_s11 + $0x28] ss:$16 sps:$4 sm:$0xff]   ;;  %v1332_v11 = vld [vmem:[%s1547_s11 + $0x44] ss:$16 sps:$4 sm:$0xff]  }
  0x2a   : > { %748 = vmatprep.subr.bf16.mxu0 %v1326_v7  ;;  %791 = vmatprep.subr.bf16.mxu1 %v1328_v8  ;;  %v1334_v12 = vld [vmem:[%s1547_s11 + $0x4c] ss:$16 sps:$4 sm:$0xff]   ;;  %v1336_v13 = vld [vmem:[%s1547_s11 + $0x40] ss:$16 sps:$4 sm:$0xff]   ;;  %v1337_v14 = vld [vmem:[%s1547_s11 + $0x48] ss:$16 sps:$4 sm:$0xff]  }
  0x2b   : > { %v1338_v15 = vld [vmem:[%s1547_s11 + $0x64] ss:$16 sps:$4 sm:$0xff]   ;;  %v1340_v16 = vld [vmem:[%s1547_s11 + $0x6c] ss:$16 sps:$4 sm:$0xff]   ;;  %v1342_v17 = vld [vmem:[%s1547_s11 + $0x60] ss:$16 sps:$4 sm:$0xff]  }
  0x2c   : > { %v1343_v18 = vld [vmem:[%s1547_s11 + $0x68] ss:$16 sps:$4 sm:$0xff]   ;;  %v1344_v19 = vld [vmem:[%s1547_s11 + $0x84] ss:$16 sps:$4 sm:$0xff]   ;;  %v1346_v20 = vld [vmem:[%s1547_s11 + $0x8c] ss:$16 sps:$4 sm:$0xff]  }
  0x2d   : > { %749 = vmatpush1.bf16.msra.mxu0 %v1330_v9  ;;  %792 = vmatpush1.bf16.msra.mxu1 %v1331_v10  ;;  %v1348_v21 = vld [vmem:[%s1547_s11 + $0x80] ss:$16 sps:$4 sm:$0xff]   ;;  %v1349_v22 = vld [vmem:[%s1547_s11 + $0x88] ss:$16 sps:$4 sm:$0xff]   ;;  %v1350_v23 = vld [vmem:[%s1547_s11 + $0xa4] ss:$16 sps:$4 sm:$0xff]  }
  0x2e   : > { %750 = vmatprep.subr.bf16.mxu0 %v1332_v11  ;;  %793 = vmatprep.subr.bf16.mxu1 %v1334_v12  ;;  %v1352_v24 = vld [vmem:[%s1547_s11 + $0xac] ss:$16 sps:$4 sm:$0xff]   ;;  %v1354_v25 = vld [vmem:[%s1547_s11 + $0xa0] ss:$16 sps:$4 sm:$0xff]   ;;  %v1355_v26 = vld [vmem:[%s1547_s11 + $0xa8] ss:$16 sps:$4 sm:$0xff]  }
  0x2f   : > { %v1356_v27 = vld [vmem:[%s1547_s11 + $0xc4] ss:$16 sps:$4 sm:$0xff]   ;;  %v1358_v28 = vld [vmem:[%s1547_s11 + $0xcc] ss:$16 sps:$4 sm:$0xff]   ;;  %v1360_v29 = vld [vmem:[%s1547_s11 + $0xc0] ss:$16 sps:$4 sm:$0xff]  }
  0x30   : > { %v1361_v30 = vld [vmem:[%s1547_s11 + $0xc8] ss:$16 sps:$4 sm:$0xff]   ;;  %v1362_v31 = vld [vmem:[%s1547_s11 + $0xe4] ss:$16 sps:$4 sm:$0xff]   ;;  %v1364_v32 = vld [vmem:[%s1547_s11 + $0xec] ss:$16 sps:$4 sm:$0xff]  }
  0x31   : > { %751 = vmatpush1.bf16.msra.mxu0 %v1336_v13  ;;  %794 = vmatpush1.bf16.msra.mxu1 %v1337_v14  ;;  %v1366_v33 = vld [vmem:[%s1547_s11 + $0xe0] ss:$16 sps:$4 sm:$0xff]   ;;  %v1367_v34 = vld [vmem:[%s1547_s11 + $0xe8] ss:$16 sps:$4 sm:$0xff]   ;;  %v1368_v35 = vld [vmem:[%s1547_s11 + $0x104] ss:$16 sps:$4 sm:$0xff]  }
  0x32   : > { %752 = vmatprep.subr.bf16.mxu0 %v1338_v15  ;;  %795 = vmatprep.subr.bf16.mxu1 %v1340_v16  ;;  %v1370_v36 = vld [vmem:[%s1547_s11 + $0x10c] ss:$16 sps:$4 sm:$0xff]   ;;  %v1372_v37 = vld [vmem:[%s1547_s11 + $0x100] ss:$16 sps:$4 sm:$0xff]   ;;  %v1373_v38 = vld [vmem:[%s1547_s11 + $0x108] ss:$16 sps:$4 sm:$0xff]  }
  0x33   : > { %v1374_v39 = vld [vmem:[%s1547_s11 + $0x124] ss:$16 sps:$4 sm:$0xff]   ;;  %v1376_v40 = vld [vmem:[%s1547_s11 + $0x12c] ss:$16 sps:$4 sm:$0xff]   ;;  %v1378_v41 = vld [vmem:[%s1547_s11 + $0x120] ss:$16 sps:$4 sm:$0xff]  }
  0x34   : > { %v1379_v42 = vld [vmem:[%s1547_s11 + $0x128] ss:$16 sps:$4 sm:$0xff]   ;;  %v1380_v43 = vld [vmem:[%s1547_s11 + $0x144] ss:$16 sps:$4 sm:$0xff]   ;;  %v1382_v44 = vld [vmem:[%s1547_s11 + $0x14c] ss:$16 sps:$4 sm:$0xff]  }
  0x35   : > { %753 = vmatpush1.bf16.msra.mxu0 %v1342_v17  ;;  %796 = vmatpush1.bf16.msra.mxu1 %v1343_v18  ;;  %v1384_v45 = vld [vmem:[%s1547_s11 + $0x140] ss:$16 sps:$4 sm:$0xff]   ;;  %v1385_v46 = vld [vmem:[%s1547_s11 + $0x148] ss:$16 sps:$4 sm:$0xff]   ;;  %v1386_v47 = vld [vmem:[%s1547_s11 + $0x164] ss:$16 sps:$4 sm:$0xff]  }
  0x36   : > { %754 = vmatprep.subr.bf16.mxu0 %v1344_v19  ;;  %797 = vmatprep.subr.bf16.mxu1 %v1346_v20  ;;  %v1388_v48 = vld [vmem:[%s1547_s11 + $0x16c] ss:$16 sps:$4 sm:$0xff]   ;;  %v1390_v50 = vld [vmem:[%s1547_s11 + $0x160] ss:$16 sps:$4 sm:$0xff]   ;;  %v1391_v51 = vld [vmem:[%s1547_s11 + $0x168] ss:$16 sps:$4 sm:$0xff]  }
  0x37   : > { %v1418_v49 = vld [vmem:[%s260_s12 + $0x4] ss:$8 sps:$4 sm:$0xff]   ;;  %v1396_v54 = vld [vmem:[%s1547_s11 + $0x180] ss:$16 sps:$4 sm:$0xff]   ;;  %v1397_v55 = vld [vmem:[%s1547_s11 + $0x188] ss:$16 sps:$4 sm:$0xff]  }
  0x38   : > { %v1392_v52 = vld [vmem:[%s1547_s11 + $0x184] ss:$16 sps:$4 sm:$0xff]   ;;  %v1394_v53 = vld [vmem:[%s1547_s11 + $0x18c] ss:$16 sps:$4 sm:$0xff]   ;;  %778 = vmatprep.mubr.bf16.mxu0 %v1418_v49  ;;  %821 = vmatprep.mubr.bf16.mxu1 %v1418_v49  ;;  %v1402_v58 = vld [vmem:[%s1547_s11 + $0x1a0] ss:$16 sps:$4 sm:$0xff]  }
  0x39   : > { %755 = vmatpush1.bf16.msra.mxu0 %v1348_v21  ;;  %798 = vmatpush1.bf16.msra.mxu1 %v1349_v22  ;;  %v1398_v56 = vld [vmem:[%s1547_s11 + $0x1a4] ss:$16 sps:$4 sm:$0xff]   ;;  %v1400_v57 = vld [vmem:[%s1547_s11 + $0x1ac] ss:$16 sps:$4 sm:$0xff]   ;;  %v1403_v59 = vld [vmem:[%s1547_s11 + $0x1a8] ss:$16 sps:$4 sm:$0xff]  }
  0x3a   : > { %756 = vmatprep.subr.bf16.mxu0 %v1350_v23  ;;  %799 = vmatprep.subr.bf16.mxu1 %v1352_v24  ;;  %v1404_v60 = vld [vmem:[%s1547_s11 + $0x1c4] ss:$16 sps:$4 sm:$0xff]   ;;  %v1406_v61 = vld [vmem:[%s1547_s11 + $0x1cc] ss:$16 sps:$4 sm:$0xff]   ;;  %v1408_v62 = vld [vmem:[%s1547_s11 + $0x1c0] ss:$16 sps:$4 sm:$0xff]  }
  0x3b   : > { %v1409_v63 = vld [vmem:[%s1547_s11 + $0x1c8] ss:$16 sps:$4 sm:$0xff]   ;;  %v1410_v0 = vld [vmem:[%s1547_s11 + $0x1e4] ss:$16 sps:$4 sm:$0xff]   ;;  %v1412_v1 = vld [vmem:[%s1547_s11 + $0x1ec] ss:$16 sps:$4 sm:$0xff]  }
  0x3c   : > { %v1414_v2 = vld [vmem:[%s1547_s11 + $0x1e0] ss:$16 sps:$4 sm:$0xff]   ;;  %v1415_v3 = vld [vmem:[%s1547_s11 + $0x1e8] ss:$16 sps:$4 sm:$0xff]   ;;  %p1269_p11 = scmp.ne.s32.totalorder %s1457_s17, 17 }
  0x3d   : > { %757 = vmatpush1.bf16.msra.mxu0 %v1354_v25  ;;  %800 = vmatpush1.bf16.msra.mxu1 %v1355_v26  ;;  %v1416_v4 = vld [vmem:[%s260_s12] ss:$8 sps:$4 sm:$0xff]  }
  0x3e   : > { %758 = vmatprep.subr.bf16.mxu0 %v1356_v27  ;;  %801 = vmatprep.subr.bf16.mxu1 %v1358_v28  ;;  %v342_v5 = vld [vmem:[%s1805_s4] sm:$0xff]  ;;  %v344_v6 = vld [vmem:[%s1805_s4 + $0x10] sm:$0xff]  ;;  %v343_v7 = vld [vmem:[%s1805_s4 + $0x8] sm:$0xff] }
  0x3f   : > { %v345_v8 = vld [vmem:[%s1805_s4 + $0x18] sm:$0xff]  ;;  %v346_v11 = vld [vmem:[%s1805_s4 + $0x20] sm:$0xff]  ;;  %v348_v12 = vld [vmem:[%s1805_s4 + $0x30] sm:$0xff] }
  0x40   : > { %v347_v17 = vld [vmem:[%s1805_s4 + $0x28] sm:$0xff]  ;;  %v349_v18 = vld [vmem:[%s1805_s4 + $0x38] sm:$0xff] }
  0x41   : > { %759 = vmatpush1.bf16.msra.mxu0 %v1360_v29  ;;  %802 = vmatpush1.bf16.msra.mxu1 %v1361_v30  ;;  %v860_v29 = vlaneseq (!%p1269_p11) }
  0x42   : > { %760 = vmatprep.subr.bf16.mxu0 %v1362_v31  ;;  %803 = vmatprep.subr.bf16.mxu1 %v1364_v32 }
  0x45   : > { %761 = vmatpush1.bf16.msra.mxu0 %v1366_v33  ;;  %804 = vmatpush1.bf16.msra.mxu1 %v1367_v34 }
  0x46   : > { %762 = vmatprep.subr.bf16.mxu0 %v1368_v35  ;;  %805 = vmatprep.subr.bf16.mxu1 %v1370_v36  ;;  %v1707_v35 = vshrl.u32 (!%p1269_p11), %v860_v29, 7 }
  0x48   : > { %vm863_vm0 = vcmp.lt.s32.totalorder (!%p1269_p11), %v1707_v35, 2 }
  0x49   : > { %763 = vmatpush1.bf16.msra.mxu0 %v1372_v37  ;;  %806 = vmatpush1.bf16.msra.mxu1 %v1373_v38 }
  0x4a   : > { %764 = vmatprep.subr.bf16.mxu0 %v1374_v39  ;;  %807 = vmatprep.subr.bf16.mxu1 %v1376_v40 }
  0x4d   : > { %765 = vmatpush1.bf16.msra.mxu0 %v1378_v41  ;;  %808 = vmatpush1.bf16.msra.mxu1 %v1379_v42 }
  0x4e   : > { %766 = vmatprep.subr.bf16.mxu0 %v1380_v43  ;;  %809 = vmatprep.subr.bf16.mxu1 %v1382_v44  ;;  %v1468_v43 = vmov (!%p1269_p11), 0.0  }
  0x4f   : > { %v1270_v44 = vsel (!%p1269_p11), %vm863_vm0, 1.0, %v1468_v43 }
  0x51   : > { %767 = vmatpush1.bf16.msra.mxu0 %v1384_v45  ;;  %810 = vmatpush1.bf16.msra.mxu1 %v1385_v46 }
  0x52   : > { %768 = vmatprep.subr.bf16.mxu0 %v1386_v47  ;;  %811 = vmatprep.subr.bf16.mxu1 %v1388_v48 }
  0x55   : > { %769 = vmatpush1.bf16.msra.mxu0 %v1390_v50  ;;  %812 = vmatpush1.bf16.msra.mxu1 %v1391_v51 }
  0x56   : > { %770 = vmatprep.subr.bf16.mxu0 %v1392_v52  ;;  %813 = vmatprep.subr.bf16.mxu1 %v1394_v53 }
  0x59   : > { %771 = vmatpush1.bf16.msra.mxu0 %v1396_v54  ;;  %814 = vmatpush1.bf16.msra.mxu1 %v1397_v55 }
  0x5a   : > { %772 = vmatprep.subr.bf16.mxu0 %v1398_v56  ;;  %815 = vmatprep.subr.bf16.mxu1 %v1400_v57 }
  0x5d   : > { %773 = vmatpush1.bf16.msra.mxu0 %v1402_v58  ;;  %816 = vmatpush1.bf16.msra.mxu1 %v1403_v59 }
  0x5e   : > { %774 = vmatprep.subr.bf16.mxu0 %v1404_v60  ;;  %817 = vmatprep.subr.bf16.mxu1 %v1406_v61 }
  0x61   : > { %775 = vmatpush1.bf16.msra.mxu0 %v1408_v62  ;;  %818 = vmatpush1.bf16.msra.mxu1 %v1409_v63 }
  0x62   : > { %776 = vmatprep.subr.bf16.mxu0 %v1410_v0  ;;  %819 = vmatprep.subr.bf16.mxu1 %v1412_v1 }
  0x65   : > { %777 = vmatpush1.bf16.msra.mxu0 %v1414_v2  ;;  %820 = vmatpush1.bf16.msra.mxu1 %v1415_v3 }
  0x68   : > { %779 = vmatmul.mubr.bf16.vlgmr.msra.gmra.mrb[0].mxu0 %v1416_v4  ;;  %822 = vmatmul.mubr.bf16.vlgmr.msra.gmra.mrb[0].mxu1 %v1416_v4 }
 0x13b   : > { %v780_v9 = vpop.f32.mrb[0].mxu0  ;;  %v823_v10 = vpop.f32.mrb[0].mxu1  ;;  %851 = sbr.rel (%p1269_p11) target bundleno = 406 (0x196), region = 82 }
 0x13c   : > { %v832_v13 = vadd.f32 %v780_v9, %v342_v5  ;;  %v834_v14 = vadd.f32 %v823_v10, %v344_v6  ;;  %v782_v15 = vpop.f32.mrb[1].mxu0  ;;  %v825_v16 = vpop.f32.mrb[1].mxu1 }
 0x13d   : > { %v833_v19 = vadd.f32 %v782_v15, %v343_v7  ;;  %v835_v20 = vadd.f32 %v825_v16, %v345_v8  ;;  %v784_v21 = vpop.f32.mrb[2].mxu0  ;;  %v827_v22 = vpop.f32.mrb[2].mxu1 }
 0x13e   : > { %840 = vst [vmem:[%s1805_s4] sm:$0xff] %v832_v13  ;;  %842 = vst [vmem:[%s1805_s4 + $0x10] sm:$0xff] %v834_v14  ;;  %v836_v23 = vadd.f32 %v784_v21, %v346_v11  ;;  %v838_v24 = vadd.f32 %v827_v22, %v348_v12  ;;  %v786_v25 = vpop.f32.mrb[3].mxu0  ;;  %v829_v26 = vpop.f32.mrb[3].mxu1 }
 0x13f   : > { %841 = vst [vmem:[%s1805_s4 + $0x8] sm:$0xff] %v833_v19  ;;  %843 = vst [vmem:[%s1805_s4 + $0x18] sm:$0xff] %v835_v20  ;;  %v837_v27 = vadd.f32 %v786_v25, %v347_v17  ;;  %v839_v28 = vadd.f32 %v829_v26, %v349_v18 }
 0x140   : > { %844 = vst [vmem:[%s1805_s4 + $0x20] sm:$0xff] %v836_v23  ;;  %846 = vst [vmem:[%s1805_s4 + $0x30] sm:$0xff] %v838_v24 }
 0x141   : > { %845 = vst [vmem:[%s1805_s4 + $0x28] sm:$0xff] %v837_v27  ;;  %847 = vst [vmem:[%s1805_s4 + $0x38] sm:$0xff] %v839_v28 }
 0x145   : > { %v852_v32 = vld [vmem:[%s1805_s4] sm:$0xff]  ;;  %v854_v37 = vld [vmem:[%s1805_s4 + $0x10] sm:$0xff] }
 0x146   : > { %v853_v36 = vld [vmem:[%s1805_s4 + $0x8] sm:$0xff]  ;;  %v855_v38 = vld [vmem:[%s1805_s4 + $0x18] sm:$0xff]  ;;  %v869_v45 = vmul.f32 %v1270_v44, %v852_v32  ;;  %v871_v47 = vmul.f32 %v1270_v44, %v854_v37 }
 0x147   : > { %v856_v30 = vld [vmem:[%s1805_s4 + $0x20] sm:$0xff]  ;;  %v858_v33 = vld [vmem:[%s1805_s4 + $0x30] sm:$0xff]  ;;  %v870_v46 = vmul.f32 %v1270_v44, %v853_v36  ;;  %v872_v48 = vmul.f32 %v1270_v44, %v855_v38 }
 0x148   : > { %v857_v31 = vld [vmem:[%s1805_s4 + $0x28] sm:$0xff]  ;;  %v859_v34 = vld [vmem:[%s1805_s4 + $0x38] sm:$0xff]  ;;  %v873_v39 = vmul.f32 0.0, %v856_v30  ;;  %v875_v41 = vmul.f32 0.0, %v858_v33 }
 0x149   : > { %v874_v40 = vmul.f32 0.0, %v857_v31  ;;  %v876_v42 = vmul.f32 0.0, %v859_v34 }
 0x14a   : > { %v877_v49 = vadd.f32 %v873_v39, %v869_v45  ;;  %v891_v51 = vadd.f32 %v875_v41, %v871_v47 }
 0x14b   : > { %v884_v50 = vadd.f32 %v874_v40, %v870_v46  ;;  %v898_v52 = vadd.f32 %v876_v42, %v872_v48 }
 0x14c   : > { %v878_v53 = vrot.slane %v877_v49, 4  ;;  %v892_v55 = vrot.slane %v891_v51, 4 }
 0x14d   : > { %v885_v54 = vrot.slane %v884_v50, 4  ;;  %v899_v56 = vrot.slane %v898_v52, 4 }
 0x14e   : > { %v879_v57 = vadd.f32 %v878_v53, %v877_v49  ;;  %v893_v59 = vadd.f32 %v892_v55, %v891_v51 }
 0x14f   : > { %v886_v58 = vadd.f32 %v885_v54, %v884_v50  ;;  %v900_v60 = vadd.f32 %v899_v56, %v898_v52 }
 0x150   : > { %v880_v61 = vrot.slane %v879_v57, 2  ;;  %v894_v63 = vrot.slane %v893_v59, 2 }
 0x151   : > { %v887_v62 = vrot.slane %v886_v58, 2  ;;  %v901_v0 = vrot.slane %v900_v60, 2 }
 0x152   : > { %v881_v1 = vadd.f32 %v880_v61, %v879_v57  ;;  %v895_v3 = vadd.f32 %v894_v63, %v893_v59 }
 0x153   : > { %v888_v2 = vadd.f32 %v887_v62, %v886_v58  ;;  %v902_v4 = vadd.f32 %v901_v0, %v900_v60 }
 0x154   : > { %v882_v5 = vrot.slane %v881_v1, 1  ;;  %v896_v7 = vrot.slane %v895_v3, 1 }
 0x155   : > { %v889_v6 = vrot.slane %v888_v2, 1  ;;  %v903_v8 = vrot.slane %v902_v4, 1 }
 0x156   : > { %v883_v9 = vadd.f32 %v882_v5, %v881_v1  ;;  %v897_v11 = vadd.f32 %v896_v7, %v895_v3 }
 0x157   : > { %v890_v10 = vadd.f32 %v889_v6, %v888_v2  ;;  %v904_v12 = vadd.f32 %v903_v8, %v902_v4 }
 0x158   : > { %v905_v13 = vmul.f32 0.5, %v883_v9  ;;  %v907_v15 = vmul.f32 0.5, %v897_v11 }
 0x159   : > { %v906_v14 = vmul.f32 0.5, %v890_v10  ;;  %v908_v16 = vmul.f32 0.5, %v904_v12 }
 0x15a   : > { %v1719_v17 = vsub.f32 %v852_v32, %v905_v13  ;;  %v1723_v19 = vsub.f32 %v854_v37, %v907_v15  ;;  %v1727_v21 = vsub.f32 %v856_v30, %v905_v13  ;;  %v1731_v23 = vsub.f32 %v858_v33, %v907_v15 }
 0x15b   : > { %v1721_v18 = vsub.f32 %v853_v36, %v906_v14  ;;  %v1725_v20 = vsub.f32 %v855_v38, %v908_v16  ;;  %v1729_v22 = vsub.f32 %v857_v31, %v906_v14  ;;  %v1733_v24 = vsub.f32 %v859_v34, %v908_v16 }
 0x15c   : > { %v917_v25 = vmul.f32 %v1270_v44, %v1719_v17  ;;  %v919_v27 = vmul.f32 %v1270_v44, %v1723_v19  ;;  %v921_v29 = vmul.f32 0.0, %v1727_v21  ;;  %v923_v30 = vmul.f32 0.0, %v1731_v23 }
 0x15d   : > { %v918_v26 = vmul.f32 %v1270_v44, %v1721_v18  ;;  %v920_v28 = vmul.f32 %v1270_v44, %v1725_v20  ;;  %v922_v32 = vmul.f32 0.0, %v1729_v22  ;;  %v924_v31 = vmul.f32 0.0, %v1733_v24 }
 0x15e   : > { %v925_v33 = vmul.f32 %v917_v25, %v917_v25  ;;  %v927_v34 = vmul.f32 %v919_v27, %v919_v27  ;;  %v929_v38 = vmul.f32 %v921_v29, %v921_v29  ;;  %v931_v40 = vmul.f32 %v923_v30, %v923_v30 }
 0x15f   : > { %v926_v36 = vmul.f32 %v918_v26, %v918_v26  ;;  %v928_v37 = vmul.f32 %v920_v28, %v920_v28  ;;  %v930_v39 = vmul.f32 %v922_v32, %v922_v32  ;;  %v932_v41 = vmul.f32 %v924_v31, %v924_v31 }
 0x160   : > { %v933_v42 = vadd.f32 %v929_v38, %v925_v33  ;;  %v947_v45 = vadd.f32 %v931_v40, %v927_v34  ;;  %v1469_v14 = vmov 1966171168   ;;  %v965_v34 = vld [vmem:[%s1803_s2] sm:$0xf]  ;;  %v1011_v40 = vsub.s32 1, %v1707_v35 }
 0x161   : > { %v940_v43 = vadd.f32 %v930_v39, %v926_v36  ;;  %v954_v44 = vadd.f32 %v932_v41, %v928_v37  ;;  %v981_v15 = vunpack.c.l.s4 %v1469_v14  ;;  %v1007_v37 = vsub.s32 0, %v1707_v35  ;;  %v1033_v39 = vld [vmem:[%s1804_s3] sm:$0xf] }
 0x162   : > { %v934_v46 = vrot.slane %v933_v42, 4  ;;  %v948_v48 = vrot.slane %v947_v45, 4  ;;  %v1015_v41 = vsub.s32 2, %v1707_v35 }
 0x163   : > { %v941_v47 = vrot.slane %v940_v43, 4  ;;  %v955_v49 = vrot.slane %v954_v44, 4  ;;  %v982_v16 = vunpack.c.0.s8 %v981_v15 }
 0x164   : > { %v935_v50 = vadd.f32 %v934_v46, %v933_v42  ;;  %v949_v52 = vadd.f32 %v948_v48, %v947_v45  ;;  %v1019_v42 = vsub.s32 3, %v1707_v35  ;;  %v1038_v45 = vrot.slane %v1033_v39, %v1007_v37 }
 0x165   : > { %v942_v51 = vadd.f32 %v941_v47, %v940_v43  ;;  %v956_v53 = vadd.f32 %v955_v49, %v954_v44  ;;  %v985_v26 = vsub.s32 %v982_v16, %v1707_v35  ;;  %v1042_v44 = vrot.slane %v1033_v39, %v1011_v40 }
 0x166   : > { %v936_v54 = vrot.slane %v935_v50, 2  ;;  %v950_v56 = vrot.slane %v949_v52, 2  ;;  %v1046_v46 = vrot.slane %v1033_v39, %v1015_v41  ;;  %v1050_v47 = vrot.slane %v1033_v39, %v1019_v42 }
 0x167   : > { %v943_v55 = vrot.slane %v942_v51, 2  ;;  %v957_v57 = vrot.slane %v956_v53, 2 }
 0x168   : > { %v937_v58 = vadd.f32 %v936_v54, %v935_v50  ;;  %v951_v60 = vadd.f32 %v950_v56, %v949_v52 }
 0x169   : > { %v944_v59 = vadd.f32 %v943_v55, %v942_v51  ;;  %v958_v61 = vadd.f32 %v957_v57, %v956_v53 }
 0x16a   : > { %v938_v62 = vrot.slane %v937_v58, 1  ;;  %v952_v0 = vrot.slane %v951_v60, 1 }
 0x16b   : > { %v945_v63 = vrot.slane %v944_v59, 1  ;;  %v959_v1 = vrot.slane %v958_v61, 1 }
 0x16c   : > { %v939_v2 = vadd.f32 %v938_v62, %v937_v58  ;;  %v953_v4 = vadd.f32 %v952_v0, %v951_v60 }
 0x16d   : > { %v946_v3 = vadd.f32 %v945_v63, %v944_v59  ;;  %v960_v5 = vadd.f32 %v959_v1, %v958_v61 }
 0x16e   : > { %v961_v6 = vmul.f32 0.5, %v939_v2  ;;  %v963_v8 = vmul.f32 0.5, %v953_v4 }
 0x16f   : > { %v962_v7 = vmul.f32 0.5, %v946_v3  ;;  %v964_v9 = vmul.f32 0.5, %v960_v5 }
 0x170   : > { %v966_v10 = vadd.f32 1e-05, %v961_v6  ;;  %v968_v12 = vadd.f32 1e-05, %v963_v8 }
 0x171   : > { %v967_v11 = vadd.f32 1e-05, %v962_v7  ;;  %v969_v13 = vadd.f32 1e-05, %v964_v9 }
 0x172   : > { %1419 = vrsqrt.f32 %v966_v10 }
 0x173   : > { %1421 = vrsqrt.f32 %v967_v11 }
 0x174   : > { %1423 = vrsqrt.f32 %v968_v12 }
 0x175   : > { %1425 = vrsqrt.f32 %v969_v13 }
 0x17c   : > { %v1420_v25 = vpop.eup %1419 }
 0x17d   : > { %v1422_v27 = vpop.eup %1421 }
 0x17e   : > { %v1424_v28 = vpop.eup %1423  ;;  %v978_v29 = vcombine.low %v1420_v25, %v1422_v27 }
 0x17f   : > { %v1426_v32 = vpop.eup %1425 }
 0x180   : > { %v979_v30 = vcombine.low %v1424_v28, %v1426_v32  ;;  %v986_v31 = vrot.slane %v978_v29, %v985_v26 }
 0x182   : > { %v993_v33 = vrot.slane %v979_v30, %v985_v26 }
 0x184   : > { %v994_v36 = vcombine.low %v986_v31, %v993_v33 }
 0x186   : > { %v1001_v38 = vrot.slane %v994_v36, %v985_v26 }
 0x188   : > { %v1003_v43 = vmul.f32 %v1001_v38, %v965_v34 }
 0x18a   : > { %v1008_v48 = vrot.slane %v1003_v43, %v1007_v37  ;;  %v1012_v49 = vrot.slane %v1003_v43, %v1011_v40  ;;  %v1016_v50 = vrot.slane %v1003_v43, %v1015_v41  ;;  %v1020_v51 = vrot.slane %v1003_v43, %v1019_v42 }
 0x18c   : > { %v1025_v52 = vmul.f32 %v1008_v48, %v1719_v17  ;;  %v1026_v53 = vmul.f32 %v1012_v49, %v1721_v18  ;;  %v1027_v54 = vmul.f32 %v1016_v50, %v1723_v19  ;;  %v1028_v55 = vmul.f32 %v1020_v51, %v1725_v20 }
 0x18d   : > { %v1029_v56 = vmul.f32 %v1008_v48, %v1727_v21  ;;  %v1030_v35 = vmul.f32 %v1012_v49, %v1729_v22  ;;  %v1031_v57 = vmul.f32 %v1016_v50, %v1731_v23  ;;  %v1032_v58 = vmul.f32 %v1020_v51, %v1733_v24 }
 0x18e   : > { %v1055_v59 = vadd.f32 %v1038_v45, %v1025_v52  ;;  %v1056_v60 = vadd.f32 %v1042_v44, %v1026_v53  ;;  %v1057_v61 = vadd.f32 %v1046_v46, %v1027_v54  ;;  %v1058_v62 = vadd.f32 %v1050_v47, %v1028_v55 }
 0x18f   : > { %v1059_v63 = vadd.f32 %v1038_v45, %v1029_v56  ;;  %v1060_v17 = vadd.f32 %v1042_v44, %v1030_v35  ;;  %v1061_v0 = vadd.f32 %v1046_v46, %v1031_v57  ;;  %v1062_v18 = vadd.f32 %v1050_v47, %v1032_v58 }
 0x190   : > { %v1063_v1 = vmax.f32 %v1055_v59, 0.0  ;;  %v1064_v19 = vmax.f32 %v1056_v60, 0.0  ;;  %v1065_v2 = vmax.f32 %v1057_v61, 0.0  ;;  %v1066_v20 = vmax.f32 %v1058_v62, 0.0 }
 0x191   : > { %v1067_v3 = vmax.f32 %v1059_v63, 0.0  ;;  %v1068_v21 = vmax.f32 %v1060_v17, 0.0  ;;  %v1069_v4 = vmax.f32 %v1061_v0, 0.0  ;;  %v1070_v22 = vmax.f32 %v1062_v18, 0.0 }
 0x192   : > { %1071 = vst [vmem:[%s1805_s4] sm:$0xff] %v1063_v1  ;;  %1072 = vst [vmem:[%s1805_s4 + $0x8] sm:$0xff] %v1064_v19 }
 0x193   : > { %1073 = vst [vmem:[%s1805_s4 + $0x10] sm:$0xff] %v1065_v2  ;;  %1074 = vst [vmem:[%s1805_s4 + $0x18] sm:$0xff] %v1066_v20 }
 0x194   : > { %1075 = vst [vmem:[%s1805_s4 + $0x20] sm:$0xff] %v1067_v3  ;;  %1076 = vst [vmem:[%s1805_s4 + $0x28] sm:$0xff] %v1068_v21 }
 0x195   : > { %1077 = vst [vmem:[%s1805_s4 + $0x30] sm:$0xff] %v1069_v4  ;;  %1078 = vst [vmem:[%s1805_s4 + $0x38] sm:$0xff] %v1070_v22 }
 0x196 PF: > { %s14_s19 = sadd.s32 1, %s1465_s19   ;;  %s1806_s15 = smov %s1453_s16 }
 0x197   : > { %p11_p12 = scmp.ge.s32.totalorder %s14_s19, 20   ;;  %s1807_s16 = smov %s1530_s23 }
 0x198   : > { %s1808_s17 = smov %s1461_s18  ;;  %s1809_s18 = smov %s1811_s20 }
 0x199   :  { %13 = sbr.rel (!%p11_p12) target bundleno = 3 (0x3), region = 126 }

// kernel: simsiam_forward.87
= control target key start
LH: loop header
LB: loop body
LE: loop exit
PB: predicated region body
PF: predicated region fallthrough
CT: control target
= control target key end

     0   :  { %s1581_s18 = smov 0   ;;  %s1583_s19 = smov 0   ;;  %s1911_s0 = inlined_call_operand.vmem [shape: bf16[16,4608], index: 0, kind: input, shape index: {}]   ;;  %s1912_s1 = inlined_call_operand.vmem [shape: bf16[4608,512], index: 1, kind: input, shape index: {}]   ;;  %s1913_s2 = inlined_call_operand.vmem [shape: f32[1,512], index: 2, kind: input, shape index: {}]   ;;  %s1914_s3 = inlined_call_operand.vmem [shape: f32[1,512], index: 3, kind: input, shape index: {}]   ;;  %s1915_s4 = inlined_call_operand.vmem [shape: f32[16,512], index: 4, kind: input, shape index: {}]   ;;  %s1916_s5 = inlined_call_operand.vmem [shape: f32[16,512], index: 5, kind: output, shape index: {}]  }
   0x1   :  { %s1585_s20 = smov 0   ;;  %s1587_s21 = smov 0  }
   0x2   :  { %s1589_s22 = smov 0  }
   0x3 LB: > { %s24_s23 = sadd.s32 1, %s1542_s21  ;;  %p41_p1 = scmp.ne.s32.totalorder %s1534_s19, %s1530_s18  ;;  %s1546_s22 = sphi %s1589_s22, %s15_s22   ;;  %s1542_s21 = sphi %s1587_s21, %s1920_s21   ;;  %s1538_s20 = sphi %s1585_s20, %s1919_s20   ;;  %s1534_s19 = sphi %s1583_s19, %s1918_s19   ;;  %s1530_s18 = sphi %s1581_s18, %s1917_s18  }
   0x4   : > { %p25_p0 = scmp.ge.s32.totalorder %s24_s23, 18  ;;  %p42_p2 = scmp.eq.s32.totalorder %s1546_s22, 0 }
   0x5   : > { %s34_s25 = sadd.s32 1, %s1534_s19  ;;  %p1274_p5 = scmp.ge.s32.totalorder %s1546_s22, 18 }
   0x6   : > { %s1922_s23 = smov (%p25_p0, %s24_s23), 0  ;;  %p43_p3 = por %p42_p2, %p41_p1 }
   0x7   : > { %s31_s24 = ssub.s32 %s1542_s21, %s1922_s23  ;;  %224 = sbr.rel (%p1274_p5) target bundleno = 21 (0x15), region = 28 }
   0x8   : > { %p32_p4 = scmp.eq.s32.totalorder %s31_s24, 0 }
   0xa   : > { %s1616_s26 = scalar_select %p32_p4, %s1534_s19, %s34_s25  }
   0xe   : > { %227 = sbr.rel (!%p43_p3) target bundleno = 21 (0x15), region = 32  ;;  %s229_s27 = sand.u32 (%p43_p3), 1, %s1534_s19  }
   0xf   : > { %s1356_s28 = sshll.u32 (%p43_p3), %s1542_s21, 3  ;;  %s1275_s29 = sshll.u32 (%p43_p3), %s229_s27, 4 }
  0x10   : > { %s234_s7 = scalar_lea.vmem (%p43_p3), %s1911_s0, %s1356_s28  ;;  %s231_s8 = scalar_lea.vmem (%p43_p3), [#allocation2], %s1275_s29 }
  0x11   : > { %v264_v0 = vld [vmem:[%s234_s7] sm:$0xff] (%p43_p3)  ;;  %v266_v1 = vld [vmem:[%s234_s7 + $0x90] sm:$0xff] (%p43_p3) }
  0x12   : > { %265 = vst [vmem:[%s231_s8] sm:$0xff] (%p43_p3), %v264_v0  ;;  %267 = vst [vmem:[%s231_s8 + $0x8] sm:$0xff] (%p43_p3), %v266_v1 }
  0x15 PF: > { %p1278_p6 = scmp.ge.s32.totalorder %s1546_s22, 1  ;;  %p287_p7 = scmp.lt.s32.totalorder %s1546_s22, 19 }
  0x17   : > { %p288_p8 = pnand %p1278_p6, %p287_p7 }
  0x18   : > { %s294_s9 = sand.u32 (!%p288_p8), 1, %s1530_s18   ;;  %s1280_s10 = sshll.u32 (!%p288_p8), %s1538_s20, 5 }
  0x19   : > { %291 = sbr.rel (%p288_p8) target bundleno = 408 (0x198), region = 74  ;;  %s1628_s11 = sshll.u32 (!%p288_p8), %s294_s9, 4 }
  0x1a   : > { %p347_p9 = scmp.lt.s32.totalorder (!%p288_p8), %s1280_s10, 575  ;;  %s296_s16 = scalar_lea.vmem (!%p288_p8), [#allocation2], %s1628_s11 }
  0x1b   : > { %p1283_p10 = scmp.ne.s32.totalorder (!%p288_p8), %s1538_s20, 0 }
  0x20   : > { %s1924_s10 = smov (!%p347_p9, %s1280_s10), 575  ;;  %382 = sbr.rel (%p1283_p10) target bundleno = 39 (0x27), region = 82 }
  0x21   : > { %s1357_s12 = sshll.u32 %s1924_s10, 4  ;;  %v1548_v2 = vmov (!%p1283_p10), 0.0  }
  0x22   : > { %s1633_s15 = scalar_lea.vmem %s1912_s1, %s1357_s12  ;;  %383 = vst [vmem:[%s1916_s5] sm:$0xff] (!%p1283_p10), %v1548_v2  ;;  %384 = vst [vmem:[%s1916_s5 + $0x8] sm:$0xff] (!%p1283_p10), %v1548_v2 }
  0x23   : > { %385 = vst [vmem:[%s1916_s5 + $0x10] sm:$0xff] (!%p1283_p10), %v1548_v2  ;;  %386 = vst [vmem:[%s1916_s5 + $0x18] sm:$0xff] (!%p1283_p10), %v1548_v2 }
  0x24   : > { %387 = vst [vmem:[%s1916_s5 + $0x20] sm:$0xff] (!%p1283_p10), %v1548_v2  ;;  %388 = vst [vmem:[%s1916_s5 + $0x28] sm:$0xff] (!%p1283_p10), %v1548_v2 }
  0x25   : > { %389 = vst [vmem:[%s1916_s5 + $0x30] sm:$0xff] (!%p1283_p10), %v1548_v2  ;;  %390 = vst [vmem:[%s1916_s5 + $0x38] sm:$0xff] (!%p1283_p10), %v1548_v2 }
  0x27 PF: > { %v1401_v3 = vld [vmem:[%s1633_s15 + $0x4] ss:$16 sps:$4 sm:$0xff]   ;;  %v1403_v4 = vld [vmem:[%s1633_s15 + $0xc] ss:$16 sps:$4 sm:$0xff]   ;;  %v1405_v5 = vld [vmem:[%s1633_s15] ss:$16 sps:$4 sm:$0xff]  }
  0x28   : > { %795 = vmatprep.subr.bf16.mxu0 %v1401_v3  ;;  %v1406_v6 = vld [vmem:[%s1633_s15 + $0x8] ss:$16 sps:$4 sm:$0xff]   ;;  %838 = vmatprep.subr.bf16.mxu1 %v1403_v4  ;;  %v1407_v7 = vld [vmem:[%s1633_s15 + $0x24] ss:$16 sps:$4 sm:$0xff]   ;;  %v1409_v8 = vld [vmem:[%s1633_s15 + $0x2c] ss:$16 sps:$4 sm:$0xff]  }
  0x29   : > { %796 = vmatpush1.bf16.msra.mxu0 %v1405_v5  ;;  %839 = vmatpush1.bf16.msra.mxu1 %v1406_v6  ;;  %v1411_v9 = vld [vmem:[%s1633_s15 + $0x20] ss:$16 sps:$4 sm:$0xff]   ;;  %v1412_v10 = vld [vmem:[%s1633_s15 + $0x28] ss:$16 sps:$4 sm:$0xff]   ;;  %v1413_v11 = vld [vmem:[%s1633_s15 + $0x44] ss:$16 sps:$4 sm:$0xff]  }
  0x2a   : > { %797 = vmatprep.subr.bf16.mxu0 %v1407_v7  ;;  %840 = vmatprep.subr.bf16.mxu1 %v1409_v8  ;;  %v1415_v12 = vld [vmem:[%s1633_s15 + $0x4c] ss:$16 sps:$4 sm:$0xff]   ;;  %v1417_v13 = vld [vmem:[%s1633_s15 + $0x40] ss:$16 sps:$4 sm:$0xff]   ;;  %v1418_v14 = vld [vmem:[%s1633_s15 + $0x48] ss:$16 sps:$4 sm:$0xff]  }
  0x2b   : > { %v1419_v15 = vld [vmem:[%s1633_s15 + $0x64] ss:$16 sps:$4 sm:$0xff]   ;;  %v1421_v16 = vld [vmem:[%s1633_s15 + $0x6c] ss:$16 sps:$4 sm:$0xff]   ;;  %v1423_v17 = vld [vmem:[%s1633_s15 + $0x60] ss:$16 sps:$4 sm:$0xff]  }
  0x2c   : > { %v1424_v18 = vld [vmem:[%s1633_s15 + $0x68] ss:$16 sps:$4 sm:$0xff]   ;;  %v1425_v19 = vld [vmem:[%s1633_s15 + $0x84] ss:$16 sps:$4 sm:$0xff]   ;;  %v1427_v20 = vld [vmem:[%s1633_s15 + $0x8c] ss:$16 sps:$4 sm:$0xff]  }
  0x2d   : > { %798 = vmatpush1.bf16.msra.mxu0 %v1411_v9  ;;  %841 = vmatpush1.bf16.msra.mxu1 %v1412_v10  ;;  %v1429_v21 = vld [vmem:[%s1633_s15 + $0x80] ss:$16 sps:$4 sm:$0xff]   ;;  %v1430_v22 = vld [vmem:[%s1633_s15 + $0x88] ss:$16 sps:$4 sm:$0xff]   ;;  %v1431_v23 = vld [vmem:[%s1633_s15 + $0xa4] ss:$16 sps:$4 sm:$0xff]  }
  0x2e   : > { %799 = vmatprep.subr.bf16.mxu0 %v1413_v11  ;;  %842 = vmatprep.subr.bf16.mxu1 %v1415_v12  ;;  %v1433_v24 = vld [vmem:[%s1633_s15 + $0xac] ss:$16 sps:$4 sm:$0xff]   ;;  %v1435_v25 = vld [vmem:[%s1633_s15 + $0xa0] ss:$16 sps:$4 sm:$0xff]   ;;  %v1436_v26 = vld [vmem:[%s1633_s15 + $0xa8] ss:$16 sps:$4 sm:$0xff]  }
  0x2f   : > { %v1437_v27 = vld [vmem:[%s1633_s15 + $0xc4] ss:$16 sps:$4 sm:$0xff]   ;;  %v1439_v28 = vld [vmem:[%s1633_s15 + $0xcc] ss:$16 sps:$4 sm:$0xff]   ;;  %v1441_v29 = vld [vmem:[%s1633_s15 + $0xc0] ss:$16 sps:$4 sm:$0xff]  }
  0x30   : > { %v1442_v30 = vld [vmem:[%s1633_s15 + $0xc8] ss:$16 sps:$4 sm:$0xff]   ;;  %v1443_v31 = vld [vmem:[%s1633_s15 + $0xe4] ss:$16 sps:$4 sm:$0xff]   ;;  %v1445_v32 = vld [vmem:[%s1633_s15 + $0xec] ss:$16 sps:$4 sm:$0xff]  }
  0x31   : > { %800 = vmatpush1.bf16.msra.mxu0 %v1417_v13  ;;  %843 = vmatpush1.bf16.msra.mxu1 %v1418_v14  ;;  %v1447_v33 = vld [vmem:[%s1633_s15 + $0xe0] ss:$16 sps:$4 sm:$0xff]   ;;  %v1448_v34 = vld [vmem:[%s1633_s15 + $0xe8] ss:$16 sps:$4 sm:$0xff]   ;;  %v1449_v35 = vld [vmem:[%s1633_s15 + $0x104] ss:$16 sps:$4 sm:$0xff]  }
  0x32   : > { %801 = vmatprep.subr.bf16.mxu0 %v1419_v15  ;;  %844 = vmatprep.subr.bf16.mxu1 %v1421_v16  ;;  %v1451_v36 = vld [vmem:[%s1633_s15 + $0x10c] ss:$16 sps:$4 sm:$0xff]   ;;  %v1453_v37 = vld [vmem:[%s1633_s15 + $0x100] ss:$16 sps:$4 sm:$0xff]   ;;  %v1454_v38 = vld [vmem:[%s1633_s15 + $0x108] ss:$16 sps:$4 sm:$0xff]  }
  0x33   : > { %v1455_v39 = vld [vmem:[%s1633_s15 + $0x124] ss:$16 sps:$4 sm:$0xff]   ;;  %v1457_v40 = vld [vmem:[%s1633_s15 + $0x12c] ss:$16 sps:$4 sm:$0xff]   ;;  %v1459_v41 = vld [vmem:[%s1633_s15 + $0x120] ss:$16 sps:$4 sm:$0xff]  }
  0x34   : > { %v1460_v42 = vld [vmem:[%s1633_s15 + $0x128] ss:$16 sps:$4 sm:$0xff]   ;;  %v1461_v43 = vld [vmem:[%s1633_s15 + $0x144] ss:$16 sps:$4 sm:$0xff]   ;;  %v1463_v44 = vld [vmem:[%s1633_s15 + $0x14c] ss:$16 sps:$4 sm:$0xff]  }
  0x35   : > { %802 = vmatpush1.bf16.msra.mxu0 %v1423_v17  ;;  %845 = vmatpush1.bf16.msra.mxu1 %v1424_v18  ;;  %v1465_v45 = vld [vmem:[%s1633_s15 + $0x140] ss:$16 sps:$4 sm:$0xff]   ;;  %v1466_v46 = vld [vmem:[%s1633_s15 + $0x148] ss:$16 sps:$4 sm:$0xff]   ;;  %v1467_v47 = vld [vmem:[%s1633_s15 + $0x164] ss:$16 sps:$4 sm:$0xff]  }
  0x36   : > { %803 = vmatprep.subr.bf16.mxu0 %v1425_v19  ;;  %846 = vmatprep.subr.bf16.mxu1 %v1427_v20  ;;  %v1469_v48 = vld [vmem:[%s1633_s15 + $0x16c] ss:$16 sps:$4 sm:$0xff]   ;;  %v1471_v50 = vld [vmem:[%s1633_s15 + $0x160] ss:$16 sps:$4 sm:$0xff]   ;;  %v1472_v51 = vld [vmem:[%s1633_s15 + $0x168] ss:$16 sps:$4 sm:$0xff]  }
  0x37   : > { %v1499_v49 = vld [vmem:[%s296_s16 + $0x4] ss:$8 sps:$4 sm:$0xff]   ;;  %v1477_v54 = vld [vmem:[%s1633_s15 + $0x180] ss:$16 sps:$4 sm:$0xff]   ;;  %v1478_v55 = vld [vmem:[%s1633_s15 + $0x188] ss:$16 sps:$4 sm:$0xff]  }
  0x38   : > { %v1473_v52 = vld [vmem:[%s1633_s15 + $0x184] ss:$16 sps:$4 sm:$0xff]   ;;  %v1475_v53 = vld [vmem:[%s1633_s15 + $0x18c] ss:$16 sps:$4 sm:$0xff]   ;;  %827 = vmatprep.mubr.bf16.mxu0 %v1499_v49  ;;  %870 = vmatprep.mubr.bf16.mxu1 %v1499_v49  ;;  %v1483_v58 = vld [vmem:[%s1633_s15 + $0x1a0] ss:$16 sps:$4 sm:$0xff]  }
  0x39   : > { %804 = vmatpush1.bf16.msra.mxu0 %v1429_v21  ;;  %847 = vmatpush1.bf16.msra.mxu1 %v1430_v22  ;;  %v1479_v56 = vld [vmem:[%s1633_s15 + $0x1a4] ss:$16 sps:$4 sm:$0xff]   ;;  %v1481_v57 = vld [vmem:[%s1633_s15 + $0x1ac] ss:$16 sps:$4 sm:$0xff]   ;;  %v1484_v59 = vld [vmem:[%s1633_s15 + $0x1a8] ss:$16 sps:$4 sm:$0xff]  }
  0x3a   : > { %805 = vmatprep.subr.bf16.mxu0 %v1431_v23  ;;  %848 = vmatprep.subr.bf16.mxu1 %v1433_v24  ;;  %v1485_v60 = vld [vmem:[%s1633_s15 + $0x1c4] ss:$16 sps:$4 sm:$0xff]   ;;  %v1487_v61 = vld [vmem:[%s1633_s15 + $0x1cc] ss:$16 sps:$4 sm:$0xff]   ;;  %v1489_v62 = vld [vmem:[%s1633_s15 + $0x1c0] ss:$16 sps:$4 sm:$0xff]  }
  0x3b   : > { %v1490_v63 = vld [vmem:[%s1633_s15 + $0x1c8] ss:$16 sps:$4 sm:$0xff]   ;;  %v1491_v0 = vld [vmem:[%s1633_s15 + $0x1e4] ss:$16 sps:$4 sm:$0xff]   ;;  %v1493_v1 = vld [vmem:[%s1633_s15 + $0x1ec] ss:$16 sps:$4 sm:$0xff]  }
  0x3c   : > { %v1495_v2 = vld [vmem:[%s1633_s15 + $0x1e0] ss:$16 sps:$4 sm:$0xff]   ;;  %v1496_v3 = vld [vmem:[%s1633_s15 + $0x1e8] ss:$16 sps:$4 sm:$0xff]   ;;  %p1350_p11 = scmp.ne.s32.totalorder %s1538_s20, 17 }
  0x3d   : > { %806 = vmatpush1.bf16.msra.mxu0 %v1435_v25  ;;  %849 = vmatpush1.bf16.msra.mxu1 %v1436_v26  ;;  %v1497_v4 = vld [vmem:[%s296_s16] ss:$8 sps:$4 sm:$0xff]  }
  0x3e   : > { %807 = vmatprep.subr.bf16.mxu0 %v1437_v27  ;;  %850 = vmatprep.subr.bf16.mxu1 %v1439_v28  ;;  %v391_v5 = vld [vmem:[%s1916_s5] sm:$0xff]  ;;  %v393_v6 = vld [vmem:[%s1916_s5 + $0x10] sm:$0xff]  ;;  %v392_v7 = vld [vmem:[%s1916_s5 + $0x8] sm:$0xff] }
  0x3f   : > { %v394_v8 = vld [vmem:[%s1916_s5 + $0x18] sm:$0xff]  ;;  %v395_v11 = vld [vmem:[%s1916_s5 + $0x20] sm:$0xff]  ;;  %v397_v12 = vld [vmem:[%s1916_s5 + $0x30] sm:$0xff] }
  0x40   : > { %v396_v17 = vld [vmem:[%s1916_s5 + $0x28] sm:$0xff]  ;;  %v398_v18 = vld [vmem:[%s1916_s5 + $0x38] sm:$0xff] }
  0x41   : > { %808 = vmatpush1.bf16.msra.mxu0 %v1441_v29  ;;  %851 = vmatpush1.bf16.msra.mxu1 %v1442_v30  ;;  %v909_v29 = vlaneseq (!%p1350_p11) }
  0x42   : > { %809 = vmatprep.subr.bf16.mxu0 %v1443_v31  ;;  %852 = vmatprep.subr.bf16.mxu1 %v1445_v32 }
  0x45   : > { %810 = vmatpush1.bf16.msra.mxu0 %v1447_v33  ;;  %853 = vmatpush1.bf16.msra.mxu1 %v1448_v34 }
  0x46   : > { %811 = vmatprep.subr.bf16.mxu0 %v1449_v35  ;;  %854 = vmatprep.subr.bf16.mxu1 %v1451_v36  ;;  %v1793_v35 = vshrl.u32 (!%p1350_p11), %v909_v29, 7 }
  0x48   : > { %vm912_vm0 = vcmp.lt.s32.totalorder (!%p1350_p11), %v1793_v35, 2 }
  0x49   : > { %812 = vmatpush1.bf16.msra.mxu0 %v1453_v37  ;;  %855 = vmatpush1.bf16.msra.mxu1 %v1454_v38 }
  0x4a   : > { %813 = vmatprep.subr.bf16.mxu0 %v1455_v39  ;;  %856 = vmatprep.subr.bf16.mxu1 %v1457_v40 }
  0x4d   : > { %814 = vmatpush1.bf16.msra.mxu0 %v1459_v41  ;;  %857 = vmatpush1.bf16.msra.mxu1 %v1460_v42 }
  0x4e   : > { %815 = vmatprep.subr.bf16.mxu0 %v1461_v43  ;;  %858 = vmatprep.subr.bf16.mxu1 %v1463_v44  ;;  %v1549_v43 = vmov (!%p1350_p11), 0.0  }
  0x4f   : > { %v1351_v44 = vsel (!%p1350_p11), %vm912_vm0, 1.0, %v1549_v43 }
  0x51   : > { %816 = vmatpush1.bf16.msra.mxu0 %v1465_v45  ;;  %859 = vmatpush1.bf16.msra.mxu1 %v1466_v46 }
  0x52   : > { %817 = vmatprep.subr.bf16.mxu0 %v1467_v47  ;;  %860 = vmatprep.subr.bf16.mxu1 %v1469_v48 }
  0x55   : > { %818 = vmatpush1.bf16.msra.mxu0 %v1471_v50  ;;  %861 = vmatpush1.bf16.msra.mxu1 %v1472_v51 }
  0x56   : > { %819 = vmatprep.subr.bf16.mxu0 %v1473_v52  ;;  %862 = vmatprep.subr.bf16.mxu1 %v1475_v53 }
  0x59   : > { %820 = vmatpush1.bf16.msra.mxu0 %v1477_v54  ;;  %863 = vmatpush1.bf16.msra.mxu1 %v1478_v55 }
  0x5a   : > { %821 = vmatprep.subr.bf16.mxu0 %v1479_v56  ;;  %864 = vmatprep.subr.bf16.mxu1 %v1481_v57 }
  0x5d   : > { %822 = vmatpush1.bf16.msra.mxu0 %v1483_v58  ;;  %865 = vmatpush1.bf16.msra.mxu1 %v1484_v59 }
  0x5e   : > { %823 = vmatprep.subr.bf16.mxu0 %v1485_v60  ;;  %866 = vmatprep.subr.bf16.mxu1 %v1487_v61 }
  0x61   : > { %824 = vmatpush1.bf16.msra.mxu0 %v1489_v62  ;;  %867 = vmatpush1.bf16.msra.mxu1 %v1490_v63 }
  0x62   : > { %825 = vmatprep.subr.bf16.mxu0 %v1491_v0  ;;  %868 = vmatprep.subr.bf16.mxu1 %v1493_v1 }
  0x65   : > { %826 = vmatpush1.bf16.msra.mxu0 %v1495_v2  ;;  %869 = vmatpush1.bf16.msra.mxu1 %v1496_v3 }
  0x68   : > { %828 = vmatmul.mubr.bf16.vlgmr.msra.gmra.mrb[0].mxu0 %v1497_v4  ;;  %871 = vmatmul.mubr.bf16.vlgmr.msra.gmra.mrb[0].mxu1 %v1497_v4 }
 0x13b   : > { %v829_v9 = vpop.f32.mrb[0].mxu0  ;;  %v872_v10 = vpop.f32.mrb[0].mxu1  ;;  %900 = sbr.rel (%p1350_p11) target bundleno = 408 (0x198), region = 86 }
 0x13c   : > { %v881_v13 = vadd.f32 %v829_v9, %v391_v5  ;;  %v883_v14 = vadd.f32 %v872_v10, %v393_v6  ;;  %v831_v15 = vpop.f32.mrb[1].mxu0  ;;  %v874_v16 = vpop.f32.mrb[1].mxu1 }
 0x13d   : > { %v882_v19 = vadd.f32 %v831_v15, %v392_v7  ;;  %v884_v20 = vadd.f32 %v874_v16, %v394_v8  ;;  %v833_v21 = vpop.f32.mrb[2].mxu0  ;;  %v876_v22 = vpop.f32.mrb[2].mxu1 }
 0x13e   : > { %889 = vst [vmem:[%s1916_s5] sm:$0xff] %v881_v13  ;;  %891 = vst [vmem:[%s1916_s5 + $0x10] sm:$0xff] %v883_v14  ;;  %v885_v23 = vadd.f32 %v833_v21, %v395_v11  ;;  %v887_v24 = vadd.f32 %v876_v22, %v397_v12  ;;  %v835_v25 = vpop.f32.mrb[3].mxu0  ;;  %v878_v26 = vpop.f32.mrb[3].mxu1 }
 0x13f   : > { %890 = vst [vmem:[%s1916_s5 + $0x8] sm:$0xff] %v882_v19  ;;  %892 = vst [vmem:[%s1916_s5 + $0x18] sm:$0xff] %v884_v20  ;;  %v886_v27 = vadd.f32 %v835_v25, %v396_v17  ;;  %v888_v28 = vadd.f32 %v878_v26, %v398_v18 }
 0x140   : > { %893 = vst [vmem:[%s1916_s5 + $0x20] sm:$0xff] %v885_v23  ;;  %895 = vst [vmem:[%s1916_s5 + $0x30] sm:$0xff] %v887_v24 }
 0x141   : > { %894 = vst [vmem:[%s1916_s5 + $0x28] sm:$0xff] %v886_v27  ;;  %896 = vst [vmem:[%s1916_s5 + $0x38] sm:$0xff] %v888_v28 }
 0x145   : > { %v901_v32 = vld [vmem:[%s1916_s5] sm:$0xff]  ;;  %v903_v37 = vld [vmem:[%s1916_s5 + $0x10] sm:$0xff] }
 0x146   : > { %v902_v36 = vld [vmem:[%s1916_s5 + $0x8] sm:$0xff]  ;;  %v904_v38 = vld [vmem:[%s1916_s5 + $0x18] sm:$0xff]  ;;  %v918_v45 = vmul.f32 %v1351_v44, %v901_v32  ;;  %v920_v47 = vmul.f32 %v1351_v44, %v903_v37 }
 0x147   : > { %v905_v30 = vld [vmem:[%s1916_s5 + $0x20] sm:$0xff]  ;;  %v907_v33 = vld [vmem:[%s1916_s5 + $0x30] sm:$0xff]  ;;  %v919_v46 = vmul.f32 %v1351_v44, %v902_v36  ;;  %v921_v48 = vmul.f32 %v1351_v44, %v904_v38 }
 0x148   : > { %v906_v31 = vld [vmem:[%s1916_s5 + $0x28] sm:$0xff]  ;;  %v908_v34 = vld [vmem:[%s1916_s5 + $0x38] sm:$0xff]  ;;  %v922_v39 = vmul.f32 0.0, %v905_v30  ;;  %v924_v41 = vmul.f32 0.0, %v907_v33 }
 0x149   : > { %v923_v40 = vmul.f32 0.0, %v906_v31  ;;  %v925_v42 = vmul.f32 0.0, %v908_v34 }
 0x14a   : > { %v926_v49 = vadd.f32 %v922_v39, %v918_v45  ;;  %v940_v51 = vadd.f32 %v924_v41, %v920_v47 }
 0x14b   : > { %v933_v50 = vadd.f32 %v923_v40, %v919_v46  ;;  %v947_v52 = vadd.f32 %v925_v42, %v921_v48 }
 0x14c   : > { %v927_v53 = vrot.slane %v926_v49, 4  ;;  %v941_v55 = vrot.slane %v940_v51, 4 }
 0x14d   : > { %v934_v54 = vrot.slane %v933_v50, 4  ;;  %v948_v56 = vrot.slane %v947_v52, 4 }
 0x14e   : > { %v928_v57 = vadd.f32 %v927_v53, %v926_v49  ;;  %v942_v59 = vadd.f32 %v941_v55, %v940_v51 }
 0x14f   : > { %v935_v58 = vadd.f32 %v934_v54, %v933_v50  ;;  %v949_v60 = vadd.f32 %v948_v56, %v947_v52 }
 0x150   : > { %v929_v61 = vrot.slane %v928_v57, 2  ;;  %v943_v63 = vrot.slane %v942_v59, 2 }
 0x151   : > { %v936_v62 = vrot.slane %v935_v58, 2  ;;  %v950_v0 = vrot.slane %v949_v60, 2 }
 0x152   : > { %v930_v1 = vadd.f32 %v929_v61, %v928_v57  ;;  %v944_v3 = vadd.f32 %v943_v63, %v942_v59 }
 0x153   : > { %v937_v2 = vadd.f32 %v936_v62, %v935_v58  ;;  %v951_v4 = vadd.f32 %v950_v0, %v949_v60 }
 0x154   : > { %v931_v5 = vrot.slane %v930_v1, 1  ;;  %v945_v7 = vrot.slane %v944_v3, 1 }
 0x155   : > { %v938_v6 = vrot.slane %v937_v2, 1  ;;  %v952_v8 = vrot.slane %v951_v4, 1 }
 0x156   : > { %v932_v9 = vadd.f32 %v931_v5, %v930_v1  ;;  %v946_v11 = vadd.f32 %v945_v7, %v944_v3 }
 0x157   : > { %v939_v10 = vadd.f32 %v938_v6, %v937_v2  ;;  %v953_v12 = vadd.f32 %v952_v8, %v951_v4 }
 0x158   : > { %v954_v13 = vmul.f32 0.5, %v932_v9  ;;  %v956_v15 = vmul.f32 0.5, %v946_v11 }
 0x159   : > { %v955_v14 = vmul.f32 0.5, %v939_v10  ;;  %v957_v16 = vmul.f32 0.5, %v953_v12 }
 0x15a   : > { %v1805_v17 = vsub.f32 %v901_v32, %v954_v13  ;;  %v1809_v19 = vsub.f32 %v903_v37, %v956_v15  ;;  %v1813_v21 = vsub.f32 %v905_v30, %v954_v13  ;;  %v1817_v23 = vsub.f32 %v907_v33, %v956_v15 }
 0x15b   : > { %v1807_v18 = vsub.f32 %v902_v36, %v955_v14  ;;  %v1811_v20 = vsub.f32 %v904_v38, %v957_v16  ;;  %v1815_v22 = vsub.f32 %v906_v31, %v955_v14  ;;  %v1819_v24 = vsub.f32 %v908_v34, %v957_v16 }
 0x15c   : > { %v966_v25 = vmul.f32 %v1351_v44, %v1805_v17  ;;  %v968_v27 = vmul.f32 %v1351_v44, %v1809_v19  ;;  %v970_v29 = vmul.f32 0.0, %v1813_v21  ;;  %v972_v30 = vmul.f32 0.0, %v1817_v23 }
 0x15d   : > { %v967_v26 = vmul.f32 %v1351_v44, %v1807_v18  ;;  %v969_v28 = vmul.f32 %v1351_v44, %v1811_v20  ;;  %v971_v32 = vmul.f32 0.0, %v1815_v22  ;;  %v973_v31 = vmul.f32 0.0, %v1819_v24 }
 0x15e   : > { %v974_v33 = vmul.f32 %v966_v25, %v966_v25  ;;  %v976_v34 = vmul.f32 %v968_v27, %v968_v27  ;;  %v978_v38 = vmul.f32 %v970_v29, %v970_v29  ;;  %v980_v40 = vmul.f32 %v972_v30, %v972_v30 }
 0x15f   : > { %v975_v36 = vmul.f32 %v967_v26, %v967_v26  ;;  %v977_v37 = vmul.f32 %v969_v28, %v969_v28  ;;  %v979_v39 = vmul.f32 %v971_v32, %v971_v32  ;;  %v981_v41 = vmul.f32 %v973_v31, %v973_v31 }
 0x160   : > { %v982_v42 = vadd.f32 %v978_v38, %v974_v33  ;;  %v996_v45 = vadd.f32 %v980_v40, %v976_v34  ;;  %v1550_v14 = vmov 1966171168   ;;  %v1014_v34 = vld [vmem:[%s1913_s2] sm:$0xf]  ;;  %v1060_v40 = vsub.s32 1, %v1793_v35 }
 0x161   : > { %v989_v43 = vadd.f32 %v979_v39, %v975_v36  ;;  %v1003_v44 = vadd.f32 %v981_v41, %v977_v37  ;;  %v1030_v15 = vunpack.c.l.s4 %v1550_v14  ;;  %v1056_v37 = vsub.s32 0, %v1793_v35  ;;  %v1082_v39 = vld [vmem:[%s1914_s3] sm:$0xf] }
 0x162   : > { %v983_v46 = vrot.slane %v982_v42, 4  ;;  %v997_v48 = vrot.slane %v996_v45, 4  ;;  %v1064_v41 = vsub.s32 2, %v1793_v35 }
 0x163   : > { %v990_v47 = vrot.slane %v989_v43, 4  ;;  %v1004_v49 = vrot.slane %v1003_v44, 4  ;;  %v1031_v16 = vunpack.c.0.s8 %v1030_v15 }
 0x164   : > { %v984_v50 = vadd.f32 %v983_v46, %v982_v42  ;;  %v998_v52 = vadd.f32 %v997_v48, %v996_v45  ;;  %v1068_v42 = vsub.s32 3, %v1793_v35  ;;  %v1087_v45 = vrot.slane %v1082_v39, %v1056_v37 }
 0x165   : > { %v991_v51 = vadd.f32 %v990_v47, %v989_v43  ;;  %v1005_v53 = vadd.f32 %v1004_v49, %v1003_v44  ;;  %v1034_v26 = vsub.s32 %v1031_v16, %v1793_v35  ;;  %v1091_v44 = vrot.slane %v1082_v39, %v1060_v40  ;;  %v1113_v35 = vld [vmem:[%s1915_s4 + $0x8] sm:$0xff] }
 0x166   : > { %v985_v54 = vrot.slane %v984_v50, 2  ;;  %v999_v56 = vrot.slane %v998_v52, 2  ;;  %v1095_v46 = vrot.slane %v1082_v39, %v1064_v41  ;;  %v1099_v47 = vrot.slane %v1082_v39, %v1068_v42 }
 0x167   : > { %v992_v55 = vrot.slane %v991_v51, 2  ;;  %v1006_v57 = vrot.slane %v1005_v53, 2 }
 0x168   : > { %v986_v58 = vadd.f32 %v985_v54, %v984_v50  ;;  %v1000_v60 = vadd.f32 %v999_v56, %v998_v52 }
 0x169   : > { %v993_v59 = vadd.f32 %v992_v55, %v991_v51  ;;  %v1007_v61 = vadd.f32 %v1006_v57, %v1005_v53  ;;  %v1112_v53 = vld [vmem:[%s1915_s4] sm:$0xff]  ;;  %v1114_v57 = vld [vmem:[%s1915_s4 + $0x10] sm:$0xff] }
 0x16a   : > { %v987_v62 = vrot.slane %v986_v58, 1  ;;  %v1001_v0 = vrot.slane %v1000_v60, 1 }
 0x16b   : > { %v994_v63 = vrot.slane %v993_v59, 1  ;;  %v1008_v1 = vrot.slane %v1007_v61, 1 }
 0x16c   : > { %v988_v2 = vadd.f32 %v987_v62, %v986_v58  ;;  %v1002_v4 = vadd.f32 %v1001_v0, %v1000_v60  ;;  %v1117_v0 = vld [vmem:[%s1915_s4 + $0x28] sm:$0xff] }
 0x16d   : > { %v995_v3 = vadd.f32 %v994_v63, %v993_v59  ;;  %v1009_v5 = vadd.f32 %v1008_v1, %v1007_v61 }
 0x16e   : > { %v1010_v6 = vmul.f32 0.5, %v988_v2  ;;  %v1012_v8 = vmul.f32 0.5, %v1002_v4 }
 0x16f   : > { %v1011_v7 = vmul.f32 0.5, %v995_v3  ;;  %v1013_v9 = vmul.f32 0.5, %v1009_v5 }
 0x170   : > { %v1015_v10 = vadd.f32 1e-05, %v1010_v6  ;;  %v1017_v12 = vadd.f32 1e-05, %v1012_v8 }
 0x171   : > { %v1016_v11 = vadd.f32 1e-05, %v1011_v7  ;;  %v1018_v13 = vadd.f32 1e-05, %v1013_v9 }
 0x172   : > { %1500 = vrsqrt.f32 %v1015_v10 }
 0x173   : > { %1502 = vrsqrt.f32 %v1016_v11 }
 0x174   : > { %1504 = vrsqrt.f32 %v1017_v12 }
 0x175   : > { %1506 = vrsqrt.f32 %v1018_v13 }
 0x17c   : > { %v1501_v25 = vpop.eup %1500 }
 0x17d   : > { %v1503_v27 = vpop.eup %1502 }
 0x17e   : > { %v1505_v28 = vpop.eup %1504  ;;  %v1027_v29 = vcombine.low %v1501_v25, %v1503_v27 }
 0x17f   : > { %v1507_v32 = vpop.eup %1506 }
 0x180   : > { %v1028_v30 = vcombine.low %v1505_v28, %v1507_v32  ;;  %v1035_v31 = vrot.slane %v1027_v29, %v1034_v26 }
 0x182   : > { %v1042_v33 = vrot.slane %v1028_v30, %v1034_v26 }
 0x184   : > { %v1043_v36 = vcombine.low %v1035_v31, %v1042_v33 }
 0x186   : > { %v1050_v38 = vrot.slane %v1043_v36, %v1034_v26 }
 0x188   : > { %v1052_v43 = vmul.f32 %v1050_v38, %v1014_v34 }
 0x18a   : > { %v1057_v48 = vrot.slane %v1052_v43, %v1056_v37  ;;  %v1061_v49 = vrot.slane %v1052_v43, %v1060_v40  ;;  %v1065_v50 = vrot.slane %v1052_v43, %v1064_v41  ;;  %v1069_v51 = vrot.slane %v1052_v43, %v1068_v42 }
 0x18c   : > { %v1074_v52 = vmul.f32 %v1057_v48, %v1805_v17  ;;  %v1075_v54 = vmul.f32 %v1061_v49, %v1807_v18  ;;  %v1076_v55 = vmul.f32 %v1065_v50, %v1809_v19  ;;  %v1077_v56 = vmul.f32 %v1069_v51, %v1811_v20  ;;  %v1115_v17 = vld [vmem:[%s1915_s4 + $0x18] sm:$0xff]  ;;  %v1116_v18 = vld [vmem:[%s1915_s4 + $0x20] sm:$0xff] }
 0x18d   : > { %v1078_v58 = vmul.f32 %v1057_v48, %v1813_v21  ;;  %v1079_v59 = vmul.f32 %v1061_v49, %v1815_v22  ;;  %v1080_v19 = vmul.f32 %v1065_v50, %v1817_v23  ;;  %v1081_v20 = vmul.f32 %v1069_v51, %v1819_v24  ;;  %v1118_v21 = vld [vmem:[%s1915_s4 + $0x30] sm:$0xff]  ;;  %v1119_v22 = vld [vmem:[%s1915_s4 + $0x38] sm:$0xff] }
 0x18e   : > { %v1104_v60 = vadd.f32 %v1087_v45, %v1074_v52  ;;  %v1105_v61 = vadd.f32 %v1091_v44, %v1075_v54  ;;  %v1106_v62 = vadd.f32 %v1095_v46, %v1076_v55  ;;  %v1107_v63 = vadd.f32 %v1099_v47, %v1077_v56 }
 0x18f   : > { %v1108_v1 = vadd.f32 %v1087_v45, %v1078_v58  ;;  %v1109_v23 = vadd.f32 %v1091_v44, %v1079_v59  ;;  %v1110_v2 = vadd.f32 %v1095_v46, %v1080_v19  ;;  %v1111_v24 = vadd.f32 %v1099_v47, %v1081_v20 }
 0x190   : > { %v1120_v3 = vadd.f32 %v1112_v53, %v1104_v60  ;;  %v1121_v4 = vadd.f32 %v1113_v35, %v1105_v61  ;;  %v1122_v5 = vadd.f32 %v1114_v57, %v1106_v62  ;;  %v1123_v6 = vadd.f32 %v1115_v17, %v1107_v63 }
 0x191   : > { %v1124_v7 = vadd.f32 %v1116_v18, %v1108_v1  ;;  %v1125_v8 = vadd.f32 %v1117_v0, %v1109_v23  ;;  %v1126_v9 = vadd.f32 %v1118_v21, %v1110_v2  ;;  %v1127_v10 = vadd.f32 %v1119_v22, %v1111_v24 }
 0x192   : > { %v1128_v11 = vmax.f32 %v1120_v3, 0.0  ;;  %v1129_v12 = vmax.f32 %v1121_v4, 0.0  ;;  %v1130_v13 = vmax.f32 %v1122_v5, 0.0  ;;  %v1131_v14 = vmax.f32 %v1123_v6, 0.0 }
 0x193   : > { %v1132_v15 = vmax.f32 %v1124_v7, 0.0  ;;  %v1133_v16 = vmax.f32 %v1125_v8, 0.0  ;;  %v1134_v25 = vmax.f32 %v1126_v9, 0.0  ;;  %v1135_v26 = vmax.f32 %v1127_v10, 0.0 }
 0x194   : > { %1136 = vst [vmem:[%s1916_s5] sm:$0xff] %v1128_v11  ;;  %1137 = vst [vmem:[%s1916_s5 + $0x8] sm:$0xff] %v1129_v12 }
 0x195   : > { %1138 = vst [vmem:[%s1916_s5 + $0x10] sm:$0xff] %v1130_v13  ;;  %1139 = vst [vmem:[%s1916_s5 + $0x18] sm:$0xff] %v1131_v14 }
 0x196   : > { %1140 = vst [vmem:[%s1916_s5 + $0x20] sm:$0xff] %v1132_v15  ;;  %1141 = vst [vmem:[%s1916_s5 + $0x28] sm:$0xff] %v1133_v16 }
 0x197   : > { %1142 = vst [vmem:[%s1916_s5 + $0x30] sm:$0xff] %v1134_v25  ;;  %1143 = vst [vmem:[%s1916_s5 + $0x38] sm:$0xff] %v1135_v26 }
 0x198 PF: > { %s15_s22 = sadd.s32 1, %s1546_s22   ;;  %s1917_s18 = smov %s1534_s19 }
 0x199   : > { %p12_p12 = scmp.ge.s32.totalorder %s15_s22, 20   ;;  %s1918_s19 = smov %s1616_s26 }
 0x19a   : > { %s1919_s20 = smov %s1542_s21  ;;  %s1920_s21 = smov %s1922_s23 }
 0x19b   :  { %14 = sbr.rel (!%p12_p12) target bundleno = 3 (0x3), region = 133 }

// kernel: simsiam_forward.92
= control target key start
LH: loop header
LB: loop body
LE: loop exit
PB: predicated region body
PF: predicated region fallthrough
CT: control target
= control target key end

     0   :  { %s1853_s18 = smov 0   ;;  %s1855_s19 = smov 0   ;;  %s2358_s0 = inlined_call_operand.vmem [shape: bf16[16,512], index: 0, kind: input, shape index: {}]   ;;  %s2359_s1 = inlined_call_operand.vmem [shape: bf16[512,2048], index: 1, kind: input, shape index: {}]   ;;  %s2360_s2 = inlined_call_operand.vmem [shape: f32[1,2048], index: 2, kind: input, shape index: {}]   ;;  %s2361_s3 = inlined_call_operand.vmem [shape: f32[1,2048], index: 3, kind: input, shape index: {}]   ;;  %s2362_s4 = inlined_call_operand.vmem [shape: f32[1,2048], index: 4, kind: input, shape index: {}]   ;;  %s2363_s5 = inlined_call_operand.vmem [shape: f32[16,2048], index: 5, kind: output, shape index: {}]  }
   0x1   :  { %s1857_s20 = smov 0   ;;  %s1859_s21 = smov 0  }
   0x2   :  { %s1861_s22 = smov 0   ;;  %s1863_s23 = smov 0  }
   0x3   :  { %s1865_s24 = smov 0   ;;  %s1867_s25 = smov 0  }
   0x4   :  { %s1869_s26 = smov 0   ;;  %s1871_s27 = smov 0  }
   0x5   :  { %s1873_s28 = smov 0  }
   0x6 LB: > { %2367 = sst [smem:[#allocation5_spill]] %s1798_s23  ;;  %s1438_s29 = sadd.s32 4294967295, %s1818_s28   ;;  %s1818_s28 = sphi %s1873_s28, %s15_s28   ;;  %s1814_s27 = sphi %s1871_s27, %s2387_s27   ;;  %s1810_s26 = sphi %s1869_s26, %s2386_s26   ;;  %s1806_s25 = sphi %s1867_s25, %s2385_s25   ;;  %s1802_s24 = sphi %s1865_s24, %s2384_s24   ;;  %s1798_s23 = sphi %s1863_s23, %s2377_s23   ;;  %s1794_s22 = sphi %s1861_s22, %s2376_s22   ;;  %s1790_s21 = sphi %s1859_s21, %s2383_s21   ;;  %s1786_s20 = sphi %s1857_s20, %s2382_s20   ;;  %s1782_s19 = sphi %s1855_s19, %s2381_s19   ;;  %s1778_s18 = sphi %s1853_s18, %s2380_s18  }
   0x7   : > { %s24_s30 = sadd.s32 1, %s1810_s26  ;;  %s27_s6 = sadd.s32 1, %s1814_s27 }
   0x8   : > { %p25_p0 = scmp.ge.s32.totalorder %s24_s30, 2  ;;  %s34_s7 = sadd.s32 1, %s1798_s23 }
   0x9   : > { %p41_p1 = scmp.ne.s32.totalorder %s1798_s23, %s1794_s22  ;;  %p42_p2 = scmp.eq.s32.totalorder %s1818_s28, 0 }
   0xa   : > { %s2389_s30 = smov (%p25_p0, %s24_s30), 0  ;;  %s2391_s6 = smov (!%p25_p0, %s27_s6), %s1814_s27 }
   0xb   : > { %2368 = sst [smem:[#allocation6_spill]] %s2389_s30  ;;  %s31_s8 = ssub.s32 %s1810_s26, %s2389_s30 }
   0xc   : > { %p29_p3 = scmp.ge.s32.totalorder %s2391_s6, 4  ;;  %p32_p4 = scmp.eq.s32.totalorder %s31_s8, 0 }
   0xd   : > { %p1920_p5 = por %p42_p2, %p41_p1  ;;  %s62_s10 = sadd.s32 1, %s1790_s21 }
   0xe   : > { %s2393_s6 = smov (%p29_p3, %s2391_s6), 0  ;;  %p69_p6 = scmp.ne.s32.totalorder %s1790_s21, %s1786_s20 }
   0xf   : > { %2370 = sst [smem:[#allocation7_spill]] %s2393_s6  ;;  %s58_s12 = ssub.s32 %s1814_s27, %s2393_s6 }
  0x10   : > { %s1928_s11 = scalar_select %p32_p4, %s1798_s23, %s34_s7  }
  0x11   : > { %s59_s13 = sor.u32 %s58_s12, %s31_s8  ;;  %p164_p7 = scmp.eq.s32.totalorder %s58_s12, 0 }
  0x12   : > { %2371 = sst [smem:[#allocation8_spill]] %s1928_s11  ;;  %p60_p8 = scmp.eq.s32.totalorder %s59_s13, 0 }
  0x13   : > { %p1934_p9 = por %p69_p6, %p42_p2  ;;  %s166_s15 = sadd.s32 1, %s1782_s19 }
  0x14   : > { %p176_p10 = scmp.ne.s32.totalorder %s1782_s19, %s1778_s18  ;;  %p177_p11 = scmp.eq.s32.totalorder %s1438_s29, 7 }
  0x15   : > { %s1942_s16 = scalar_select %p60_p8, %s1790_s21, %s62_s10  }
  0x16   : > { %s1945_s17 = scalar_select %p164_p7, %s1782_s19, %s166_s15  }
  0x17   : > { %2373 = sst [smem:[#allocation9_spill]] %s1942_s16  ;;  %p1947_p12 = por %p177_p11, %p176_p10 }
  0x18   : > { %p1441_p13 = scmp.ge.s32.totalorder %s1818_s28, 8 }
  0x1a   : > { %199 = sbr.rel (%p1441_p13) target bundleno = 79 (0x4f), region = 16 }
  0x21   : > { %202 = sbr.rel (!%p1920_p5) target bundleno = 40 (0x28), region = 20  ;;  %s204_s7 = sand.u32 (%p1920_p5), 1, %s1798_s23  }
  0x22   : > { %s1531_s8 = sshll.u32 (%p1920_p5), %s1810_s26, 3  ;;  %s1442_s12 = sshll.u32 (%p1920_p5), %s204_s7, 4 }
  0x23   : > { %s209_s15 = scalar_lea.vmem (%p1920_p5), %s2358_s0, %s1531_s8  ;;  %s206_s29 = scalar_lea.vmem (%p1920_p5), [#allocation2], %s1442_s12 }
  0x24   : > { %v239_v0 = vld [vmem:[%s209_s15] sm:$0xff] (%p1920_p5)  ;;  %v241_v1 = vld [vmem:[%s209_s15 + $0x10] sm:$0xff] (%p1920_p5) }
  0x25   : > { %240 = vst [vmem:[%s206_s29] sm:$0xff] (%p1920_p5), %v239_v0  ;;  %242 = vst [vmem:[%s206_s29 + $0x8] sm:$0xff] (%p1920_p5), %v241_v1 }
  0x28 PF: > { %248 = sbr.rel (!%p1934_p9) target bundleno = 79 (0x4f), region = 58  ;;  %s250_s9 = sand.u32 (%p1934_p9), 1, %s1790_s21  }
  0x29   : > { %s1447_s6 = sshll.u32 (%p1934_p9), %s1814_s27, 2  ;;  %s1445_s11 = sshll.u32 (%p1934_p9), %s250_s9, 9 }
  0x2a   : > { %s1532_s7 = sshll.u32 (%p1934_p9), %s1810_s26, 9  ;;  %s1972_s14 = scalar_lea.vmem (%p1934_p9), [#allocation3], %s1445_s11 }
  0x2b   : > { %s256_s23 = sadd.s32 (%p1934_p9), %s1532_s7, %s1447_s6 }
  0x2c   : > { %s1449_s16 = sshll.u32 (%p1934_p9), %s256_s23, 2 }
  0x2d   : > { %s1967_s13 = scalar_lea.vmem (%p1934_p9), %s2359_s1, %s1449_s16 }
  0x2e   : > { %v271_v2 = vld [vmem:[%s1967_s13] sm:$0xff] (%p1934_p9)  ;;  %v273_v3 = vld [vmem:[%s1967_s13 + $0x8] sm:$0xff] (%p1934_p9) }
  0x2f   : > { %v275_v4 = vld [vmem:[%s1967_s13 + $0x40] sm:$0xff]  ;;  %272 = vst [vmem:[%s1972_s14] sm:$0xff] %v271_v2  ;;  %274 = vst [vmem:[%s1972_s14 + $0x8] sm:$0xff] %v273_v3  ;;  %v277_v5 = vld [vmem:[%s1967_s13 + $0x48] sm:$0xff] }
  0x30   : > { %276 = vst [vmem:[%s1972_s14 + $0x10] sm:$0xff] %v275_v4  ;;  %v279_v6 = vld [vmem:[%s1967_s13 + $0x80] sm:$0xff]  ;;  %v281_v7 = vld [vmem:[%s1967_s13 + $0x88] sm:$0xff]  ;;  %278 = vst [vmem:[%s1972_s14 + $0x18] sm:$0xff] %v277_v5 }
  0x31   : > { %280 = vst [vmem:[%s1972_s14 + $0x20] sm:$0xff] %v279_v6  ;;  %282 = vst [vmem:[%s1972_s14 + $0x28] sm:$0xff] %v281_v7  ;;  %v283_v8 = vld [vmem:[%s1967_s13 + $0xc0] sm:$0xff]  ;;  %v285_v9 = vld [vmem:[%s1967_s13 + $0xc8] sm:$0xff] }
  0x32   : > { %v287_v10 = vld [vmem:[%s1967_s13 + $0x100] sm:$0xff]  ;;  %284 = vst [vmem:[%s1972_s14 + $0x30] sm:$0xff] %v283_v8  ;;  %286 = vst [vmem:[%s1972_s14 + $0x38] sm:$0xff] %v285_v9  ;;  %v289_v11 = vld [vmem:[%s1967_s13 + $0x108] sm:$0xff] }
  0x33   : > { %288 = vst [vmem:[%s1972_s14 + $0x40] sm:$0xff] %v287_v10  ;;  %v291_v12 = vld [vmem:[%s1967_s13 + $0x140] sm:$0xff]  ;;  %v293_v13 = vld [vmem:[%s1967_s13 + $0x148] sm:$0xff]  ;;  %290 = vst [vmem:[%s1972_s14 + $0x48] sm:$0xff] %v289_v11 }
  0x34   : > { %292 = vst [vmem:[%s1972_s14 + $0x50] sm:$0xff] %v291_v12  ;;  %294 = vst [vmem:[%s1972_s14 + $0x58] sm:$0xff] %v293_v13  ;;  %v295_v14 = vld [vmem:[%s1967_s13 + $0x180] sm:$0xff]  ;;  %v297_v15 = vld [vmem:[%s1967_s13 + $0x188] sm:$0xff] }
  0x35   : > { %v299_v16 = vld [vmem:[%s1967_s13 + $0x1c0] sm:$0xff]  ;;  %296 = vst [vmem:[%s1972_s14 + $0x60] sm:$0xff] %v295_v14  ;;  %298 = vst [vmem:[%s1972_s14 + $0x68] sm:$0xff] %v297_v15  ;;  %v301_v17 = vld [vmem:[%s1967_s13 + $0x1c8] sm:$0xff] }
  0x36   : > { %300 = vst [vmem:[%s1972_s14 + $0x70] sm:$0xff] %v299_v16  ;;  %v303_v18 = vld [vmem:[%s1967_s13 + $0x200] sm:$0xff]  ;;  %v305_v19 = vld [vmem:[%s1967_s13 + $0x208] sm:$0xff]  ;;  %302 = vst [vmem:[%s1972_s14 + $0x78] sm:$0xff] %v301_v17 }
  0x37   : > { %304 = vst [vmem:[%s1972_s14 + $0x80] sm:$0xff] %v303_v18  ;;  %306 = vst [vmem:[%s1972_s14 + $0x88] sm:$0xff] %v305_v19  ;;  %v307_v20 = vld [vmem:[%s1967_s13 + $0x240] sm:$0xff]  ;;  %v309_v21 = vld [vmem:[%s1967_s13 + $0x248] sm:$0xff] }
  0x38   : > { %v311_v22 = vld [vmem:[%s1967_s13 + $0x280] sm:$0xff]  ;;  %308 = vst [vmem:[%s1972_s14 + $0x90] sm:$0xff] %v307_v20  ;;  %310 = vst [vmem:[%s1972_s14 + $0x98] sm:$0xff] %v309_v21  ;;  %v313_v23 = vld [vmem:[%s1967_s13 + $0x288] sm:$0xff] }
  0x39   : > { %312 = vst [vmem:[%s1972_s14 + $0xa0] sm:$0xff] %v311_v22  ;;  %v315_v24 = vld [vmem:[%s1967_s13 + $0x2c0] sm:$0xff]  ;;  %v317_v25 = vld [vmem:[%s1967_s13 + $0x2c8] sm:$0xff]  ;;  %314 = vst [vmem:[%s1972_s14 + $0xa8] sm:$0xff] %v313_v23 }
  0x3a   : > { %316 = vst [vmem:[%s1972_s14 + $0xb0] sm:$0xff] %v315_v24  ;;  %318 = vst [vmem:[%s1972_s14 + $0xb8] sm:$0xff] %v317_v25  ;;  %v319_v26 = vld [vmem:[%s1967_s13 + $0x300] sm:$0xff]  ;;  %v321_v27 = vld [vmem:[%s1967_s13 + $0x308] sm:$0xff] }
  0x3b   : > { %v323_v28 = vld [vmem:[%s1967_s13 + $0x340] sm:$0xff]  ;;  %320 = vst [vmem:[%s1972_s14 + $0xc0] sm:$0xff] %v319_v26  ;;  %322 = vst [vmem:[%s1972_s14 + $0xc8] sm:$0xff] %v321_v27  ;;  %v325_v29 = vld [vmem:[%s1967_s13 + $0x348] sm:$0xff] }
  0x3c   : > { %324 = vst [vmem:[%s1972_s14 + $0xd0] sm:$0xff] %v323_v28  ;;  %v327_v30 = vld [vmem:[%s1967_s13 + $0x380] sm:$0xff]  ;;  %v329_v31 = vld [vmem:[%s1967_s13 + $0x388] sm:$0xff]  ;;  %326 = vst [vmem:[%s1972_s14 + $0xd8] sm:$0xff] %v325_v29 }
  0x3d   : > { %328 = vst [vmem:[%s1972_s14 + $0xe0] sm:$0xff] %v327_v30  ;;  %330 = vst [vmem:[%s1972_s14 + $0xe8] sm:$0xff] %v329_v31  ;;  %v331_v32 = vld [vmem:[%s1967_s13 + $0x3c0] sm:$0xff]  ;;  %v333_v33 = vld [vmem:[%s1967_s13 + $0x3c8] sm:$0xff] }
  0x3e   : > { %v335_v34 = vld [vmem:[%s1967_s13 + $0x400] sm:$0xff]  ;;  %332 = vst [vmem:[%s1972_s14 + $0xf0] sm:$0xff] %v331_v32  ;;  %334 = vst [vmem:[%s1972_s14 + $0xf8] sm:$0xff] %v333_v33  ;;  %v337_v35 = vld [vmem:[%s1967_s13 + $0x408] sm:$0xff] }
  0x3f   : > { %336 = vst [vmem:[%s1972_s14 + $0x100] sm:$0xff] %v335_v34  ;;  %v339_v36 = vld [vmem:[%s1967_s13 + $0x440] sm:$0xff]  ;;  %v341_v37 = vld [vmem:[%s1967_s13 + $0x448] sm:$0xff]  ;;  %338 = vst [vmem:[%s1972_s14 + $0x108] sm:$0xff] %v337_v35 }
  0x40   : > { %340 = vst [vmem:[%s1972_s14 + $0x110] sm:$0xff] %v339_v36  ;;  %342 = vst [vmem:[%s1972_s14 + $0x118] sm:$0xff] %v341_v37  ;;  %v343_v38 = vld [vmem:[%s1967_s13 + $0x480] sm:$0xff]  ;;  %v345_v39 = vld [vmem:[%s1967_s13 + $0x488] sm:$0xff] }
  0x41   : > { %v347_v40 = vld [vmem:[%s1967_s13 + $0x4c0] sm:$0xff]  ;;  %344 = vst [vmem:[%s1972_s14 + $0x120] sm:$0xff] %v343_v38  ;;  %346 = vst [vmem:[%s1972_s14 + $0x128] sm:$0xff] %v345_v39  ;;  %v349_v41 = vld [vmem:[%s1967_s13 + $0x4c8] sm:$0xff] }
  0x42   : > { %348 = vst [vmem:[%s1972_s14 + $0x130] sm:$0xff] %v347_v40  ;;  %v351_v42 = vld [vmem:[%s1967_s13 + $0x500] sm:$0xff]  ;;  %v353_v43 = vld [vmem:[%s1967_s13 + $0x508] sm:$0xff]  ;;  %350 = vst [vmem:[%s1972_s14 + $0x138] sm:$0xff] %v349_v41 }
  0x43   : > { %352 = vst [vmem:[%s1972_s14 + $0x140] sm:$0xff] %v351_v42  ;;  %354 = vst [vmem:[%s1972_s14 + $0x148] sm:$0xff] %v353_v43  ;;  %v355_v44 = vld [vmem:[%s1967_s13 + $0x540] sm:$0xff]  ;;  %v357_v45 = vld [vmem:[%s1967_s13 + $0x548] sm:$0xff] }
  0x44   : > { %v359_v46 = vld [vmem:[%s1967_s13 + $0x580] sm:$0xff]  ;;  %356 = vst [vmem:[%s1972_s14 + $0x150] sm:$0xff] %v355_v44  ;;  %358 = vst [vmem:[%s1972_s14 + $0x158] sm:$0xff] %v357_v45  ;;  %v361_v47 = vld [vmem:[%s1967_s13 + $0x588] sm:$0xff] }
  0x45   : > { %360 = vst [vmem:[%s1972_s14 + $0x160] sm:$0xff] %v359_v46  ;;  %v363_v48 = vld [vmem:[%s1967_s13 + $0x5c0] sm:$0xff]  ;;  %v365_v49 = vld [vmem:[%s1967_s13 + $0x5c8] sm:$0xff]  ;;  %362 = vst [vmem:[%s1972_s14 + $0x168] sm:$0xff] %v361_v47 }
  0x46   : > { %364 = vst [vmem:[%s1972_s14 + $0x170] sm:$0xff] %v363_v48  ;;  %366 = vst [vmem:[%s1972_s14 + $0x178] sm:$0xff] %v365_v49  ;;  %v367_v50 = vld [vmem:[%s1967_s13 + $0x600] sm:$0xff]  ;;  %v369_v51 = vld [vmem:[%s1967_s13 + $0x608] sm:$0xff] }
  0x47   : > { %v371_v52 = vld [vmem:[%s1967_s13 + $0x640] sm:$0xff]  ;;  %368 = vst [vmem:[%s1972_s14 + $0x180] sm:$0xff] %v367_v50  ;;  %370 = vst [vmem:[%s1972_s14 + $0x188] sm:$0xff] %v369_v51  ;;  %v373_v53 = vld [vmem:[%s1967_s13 + $0x648] sm:$0xff] }
  0x48   : > { %372 = vst [vmem:[%s1972_s14 + $0x190] sm:$0xff] %v371_v52  ;;  %v375_v54 = vld [vmem:[%s1967_s13 + $0x680] sm:$0xff]  ;;  %v377_v55 = vld [vmem:[%s1967_s13 + $0x688] sm:$0xff]  ;;  %374 = vst [vmem:[%s1972_s14 + $0x198] sm:$0xff] %v373_v53 }
  0x49   : > { %376 = vst [vmem:[%s1972_s14 + $0x1a0] sm:$0xff] %v375_v54  ;;  %378 = vst [vmem:[%s1972_s14 + $0x1a8] sm:$0xff] %v377_v55  ;;  %v379_v56 = vld [vmem:[%s1967_s13 + $0x6c0] sm:$0xff]  ;;  %v381_v57 = vld [vmem:[%s1967_s13 + $0x6c8] sm:$0xff] }
  0x4a   : > { %v383_v58 = vld [vmem:[%s1967_s13 + $0x700] sm:$0xff]  ;;  %380 = vst [vmem:[%s1972_s14 + $0x1b0] sm:$0xff] %v379_v56  ;;  %382 = vst [vmem:[%s1972_s14 + $0x1b8] sm:$0xff] %v381_v57  ;;  %v385_v59 = vld [vmem:[%s1967_s13 + $0x708] sm:$0xff] }
  0x4b   : > { %384 = vst [vmem:[%s1972_s14 + $0x1c0] sm:$0xff] %v383_v58  ;;  %v387_v60 = vld [vmem:[%s1967_s13 + $0x740] sm:$0xff]  ;;  %v389_v61 = vld [vmem:[%s1967_s13 + $0x748] sm:$0xff]  ;;  %386 = vst [vmem:[%s1972_s14 + $0x1c8] sm:$0xff] %v385_v59 }
  0x4c   : > { %388 = vst [vmem:[%s1972_s14 + $0x1d0] sm:$0xff] %v387_v60  ;;  %390 = vst [vmem:[%s1972_s14 + $0x1d8] sm:$0xff] %v389_v61  ;;  %v391_v62 = vld [vmem:[%s1967_s13 + $0x780] sm:$0xff]  ;;  %v393_v63 = vld [vmem:[%s1967_s13 + $0x788] sm:$0xff] }
  0x4d   : > { %v395_v0 = vld [vmem:[%s1967_s13 + $0x7c0] sm:$0xff]  ;;  %392 = vst [vmem:[%s1972_s14 + $0x1e0] sm:$0xff] %v391_v62  ;;  %394 = vst [vmem:[%s1972_s14 + $0x1e8] sm:$0xff] %v393_v63  ;;  %v397_v1 = vld [vmem:[%s1967_s13 + $0x7c8] sm:$0xff] }
  0x4e   : > { %396 = vst [vmem:[%s1972_s14 + $0x1f0] sm:$0xff] %v395_v0  ;;  %398 = vst [vmem:[%s1972_s14 + $0x1f8] sm:$0xff] %v397_v1 }
  0x4f PF: > { %p1450_p0 = scmp.ge.s32.totalorder %s1818_s28, 1  ;;  %p427_p1 = scmp.lt.s32.totalorder %s1818_s28, 9 }
  0x51   : > { %p428_p2 = pnand %p1450_p0, %p427_p1 }
  0x52   : > { %s434_s23 = sand.u32 (!%p428_p2), 1, %s1794_s22   ;;  %s441_s6 = sand.u32 (!%p428_p2), 1, %s1786_s20  }
  0x53   : > { %431 = sbr.rel (%p428_p2) target bundleno = 475 (0x1db), region = 93  ;;  %s2103_s11 = sshll.u32 (!%p428_p2), %s434_s23, 4 }
  0x54   : > { %s1452_s16 = sshll.u32 (!%p428_p2), %s441_s6, 9  ;;  %s480_s12 = sand.u32 (!%p428_p2), 1, %s1778_s18  }
  0x55   : > { %s1454_s15 = sshll.u32 (!%p428_p2), %s1806_s25, 2  ;;  %s1453_s29 = sshll.u32 (!%p428_p2), %s480_s12, 6 }
  0x56   : > { %p487_p3 = scmp.lt.s32.totalorder (!%p428_p2), %s1454_s15, 15  ;;  %s436_s23 = scalar_lea.vmem (!%p428_p2), [#allocation2], %s2103_s11 }
  0x57   : > { %s2122_s6 = scalar_lea.vmem (!%p428_p2), [#allocation3], %s1452_s16  ;;  %s2124_s12 = scalar_lea.vmem (!%p428_p2), [#allocation4], %s1453_s29 }
  0x58   : > { %p1457_p4 = scmp.ne.s32.totalorder (!%p428_p2), %s1802_s24, 0 }
  0x5a   : > { %s2395_s15 = smov (!%p487_p3, %s1454_s15), 15  ;;  %505 = sbr.rel (%p1457_p4) target bundleno = 97 (0x61), region = 105 }
  0x5b   : > { %s489_s10 = scalar_lea.vmem %s2360_s2, %s2395_s15  ;;  %s494_s20 = scalar_lea.vmem %s2361_s3, %s2395_s15  ;;  %v1820_v2 = vmov (!%p1457_p4), 0.0  }
  0x5c   : > { %s499_s18 = scalar_lea.vmem %s2362_s4, %s2395_s15  ;;  %506 = vst [vmem:[%s2124_s12] sm:$0xff] (!%p1457_p4), %v1820_v2  ;;  %507 = vst [vmem:[%s2124_s12 + $0x8] sm:$0xff] (!%p1457_p4), %v1820_v2 }
  0x5d   : > { %508 = vst [vmem:[%s2124_s12 + $0x10] sm:$0xff] (!%p1457_p4), %v1820_v2  ;;  %509 = vst [vmem:[%s2124_s12 + $0x18] sm:$0xff] (!%p1457_p4), %v1820_v2 }
  0x5e   : > { %510 = vst [vmem:[%s2124_s12 + $0x20] sm:$0xff] (!%p1457_p4), %v1820_v2  ;;  %511 = vst [vmem:[%s2124_s12 + $0x28] sm:$0xff] (!%p1457_p4), %v1820_v2 }
  0x5f   : > { %512 = vst [vmem:[%s2124_s12 + $0x30] sm:$0xff] (!%p1457_p4), %v1820_v2  ;;  %513 = vst [vmem:[%s2124_s12 + $0x38] sm:$0xff] (!%p1457_p4), %v1820_v2 }
  0x61 PF: > { %v1625_v3 = vld [vmem:[%s2122_s6 + $0x4] ss:$16 sps:$4 sm:$0xff]   ;;  %v1627_v4 = vld [vmem:[%s2122_s6 + $0xc] ss:$16 sps:$4 sm:$0xff]   ;;  %v1629_v5 = vld [vmem:[%s2122_s6] ss:$16 sps:$4 sm:$0xff]  }
  0x62   : > { %918 = vmatprep.subr.bf16.mxu0 %v1625_v3  ;;  %v1630_v6 = vld [vmem:[%s2122_s6 + $0x8] ss:$16 sps:$4 sm:$0xff]   ;;  %961 = vmatprep.subr.bf16.mxu1 %v1627_v4  ;;  %v1631_v7 = vld [vmem:[%s2122_s6 + $0x24] ss:$16 sps:$4 sm:$0xff]   ;;  %v1633_v8 = vld [vmem:[%s2122_s6 + $0x2c] ss:$16 sps:$4 sm:$0xff]  }
  0x63   : > { %919 = vmatpush1.bf16.msra.mxu0 %v1629_v5  ;;  %962 = vmatpush1.bf16.msra.mxu1 %v1630_v6  ;;  %v1635_v9 = vld [vmem:[%s2122_s6 + $0x20] ss:$16 sps:$4 sm:$0xff]   ;;  %v1636_v10 = vld [vmem:[%s2122_s6 + $0x28] ss:$16 sps:$4 sm:$0xff]   ;;  %v1637_v11 = vld [vmem:[%s2122_s6 + $0x44] ss:$16 sps:$4 sm:$0xff]  }
  0x64   : > { %920 = vmatprep.subr.bf16.mxu0 %v1631_v7  ;;  %963 = vmatprep.subr.bf16.mxu1 %v1633_v8  ;;  %v1639_v12 = vld [vmem:[%s2122_s6 + $0x4c] ss:$16 sps:$4 sm:$0xff]   ;;  %v1641_v13 = vld [vmem:[%s2122_s6 + $0x40] ss:$16 sps:$4 sm:$0xff]   ;;  %v1642_v14 = vld [vmem:[%s2122_s6 + $0x48] ss:$16 sps:$4 sm:$0xff]  }
  0x65   : > { %v1643_v15 = vld [vmem:[%s2122_s6 + $0x64] ss:$16 sps:$4 sm:$0xff]   ;;  %v1645_v16 = vld [vmem:[%s2122_s6 + $0x6c] ss:$16 sps:$4 sm:$0xff]   ;;  %v1647_v17 = vld [vmem:[%s2122_s6 + $0x60] ss:$16 sps:$4 sm:$0xff]  }
  0x66   : > { %v1648_v18 = vld [vmem:[%s2122_s6 + $0x68] ss:$16 sps:$4 sm:$0xff]   ;;  %v1649_v19 = vld [vmem:[%s2122_s6 + $0x84] ss:$16 sps:$4 sm:$0xff]   ;;  %v1651_v20 = vld [vmem:[%s2122_s6 + $0x8c] ss:$16 sps:$4 sm:$0xff]  }
  0x67   : > { %921 = vmatpush1.bf16.msra.mxu0 %v1635_v9  ;;  %964 = vmatpush1.bf16.msra.mxu1 %v1636_v10  ;;  %v1653_v21 = vld [vmem:[%s2122_s6 + $0x80] ss:$16 sps:$4 sm:$0xff]   ;;  %v1654_v22 = vld [vmem:[%s2122_s6 + $0x88] ss:$16 sps:$4 sm:$0xff]   ;;  %v1655_v23 = vld [vmem:[%s2122_s6 + $0xa4] ss:$16 sps:$4 sm:$0xff]  }
  0x68   : > { %922 = vmatprep.subr.bf16.mxu0 %v1637_v11  ;;  %965 = vmatprep.subr.bf16.mxu1 %v1639_v12  ;;  %v1657_v24 = vld [vmem:[%s2122_s6 + $0xac] ss:$16 sps:$4 sm:$0xff]   ;;  %v1659_v25 = vld [vmem:[%s2122_s6 + $0xa0] ss:$16 sps:$4 sm:$0xff]   ;;  %v1660_v26 = vld [vmem:[%s2122_s6 + $0xa8] ss:$16 sps:$4 sm:$0xff]  }
  0x69   : > { %v1661_v27 = vld [vmem:[%s2122_s6 + $0xc4] ss:$16 sps:$4 sm:$0xff]   ;;  %v1663_v28 = vld [vmem:[%s2122_s6 + $0xcc] ss:$16 sps:$4 sm:$0xff]   ;;  %v1665_v29 = vld [vmem:[%s2122_s6 + $0xc0] ss:$16 sps:$4 sm:$0xff]  }
  0x6a   : > { %v1666_v30 = vld [vmem:[%s2122_s6 + $0xc8] ss:$16 sps:$4 sm:$0xff]   ;;  %v1667_v31 = vld [vmem:[%s2122_s6 + $0xe4] ss:$16 sps:$4 sm:$0xff]   ;;  %v1669_v32 = vld [vmem:[%s2122_s6 + $0xec] ss:$16 sps:$4 sm:$0xff]  }
  0x6b   : > { %923 = vmatpush1.bf16.msra.mxu0 %v1641_v13  ;;  %966 = vmatpush1.bf16.msra.mxu1 %v1642_v14  ;;  %v1671_v33 = vld [vmem:[%s2122_s6 + $0xe0] ss:$16 sps:$4 sm:$0xff]   ;;  %v1672_v34 = vld [vmem:[%s2122_s6 + $0xe8] ss:$16 sps:$4 sm:$0xff]   ;;  %v1673_v35 = vld [vmem:[%s2122_s6 + $0x104] ss:$16 sps:$4 sm:$0xff]  }
  0x6c   : > { %924 = vmatprep.subr.bf16.mxu0 %v1643_v15  ;;  %967 = vmatprep.subr.bf16.mxu1 %v1645_v16  ;;  %v1675_v36 = vld [vmem:[%s2122_s6 + $0x10c] ss:$16 sps:$4 sm:$0xff]   ;;  %v1677_v37 = vld [vmem:[%s2122_s6 + $0x100] ss:$16 sps:$4 sm:$0xff]   ;;  %v1678_v38 = vld [vmem:[%s2122_s6 + $0x108] ss:$16 sps:$4 sm:$0xff]  }
  0x6d   : > { %v1679_v39 = vld [vmem:[%s2122_s6 + $0x124] ss:$16 sps:$4 sm:$0xff]   ;;  %v1681_v40 = vld [vmem:[%s2122_s6 + $0x12c] ss:$16 sps:$4 sm:$0xff]   ;;  %v1683_v41 = vld [vmem:[%s2122_s6 + $0x120] ss:$16 sps:$4 sm:$0xff]  }
  0x6e   : > { %v1684_v42 = vld [vmem:[%s2122_s6 + $0x128] ss:$16 sps:$4 sm:$0xff]   ;;  %v1685_v43 = vld [vmem:[%s2122_s6 + $0x144] ss:$16 sps:$4 sm:$0xff]   ;;  %v1687_v44 = vld [vmem:[%s2122_s6 + $0x14c] ss:$16 sps:$4 sm:$0xff]  }
  0x6f   : > { %925 = vmatpush1.bf16.msra.mxu0 %v1647_v17  ;;  %968 = vmatpush1.bf16.msra.mxu1 %v1648_v18  ;;  %v1689_v45 = vld [vmem:[%s2122_s6 + $0x140] ss:$16 sps:$4 sm:$0xff]   ;;  %v1690_v46 = vld [vmem:[%s2122_s6 + $0x148] ss:$16 sps:$4 sm:$0xff]   ;;  %v1691_v47 = vld [vmem:[%s2122_s6 + $0x164] ss:$16 sps:$4 sm:$0xff]  }
  0x70   : > { %926 = vmatprep.subr.bf16.mxu0 %v1649_v19  ;;  %969 = vmatprep.subr.bf16.mxu1 %v1651_v20  ;;  %v1693_v48 = vld [vmem:[%s2122_s6 + $0x16c] ss:$16 sps:$4 sm:$0xff]   ;;  %v1695_v50 = vld [vmem:[%s2122_s6 + $0x160] ss:$16 sps:$4 sm:$0xff]   ;;  %v1696_v51 = vld [vmem:[%s2122_s6 + $0x168] ss:$16 sps:$4 sm:$0xff]  }
  0x71   : > { %v1723_v49 = vld [vmem:[%s436_s23 + $0x4] ss:$8 sps:$4 sm:$0xff]   ;;  %v1701_v54 = vld [vmem:[%s2122_s6 + $0x180] ss:$16 sps:$4 sm:$0xff]   ;;  %v1702_v55 = vld [vmem:[%s2122_s6 + $0x188] ss:$16 sps:$4 sm:$0xff]  }
  0x72   : > { %v1697_v52 = vld [vmem:[%s2122_s6 + $0x184] ss:$16 sps:$4 sm:$0xff]   ;;  %v1699_v53 = vld [vmem:[%s2122_s6 + $0x18c] ss:$16 sps:$4 sm:$0xff]   ;;  %950 = vmatprep.mubr.bf16.mxu0 %v1723_v49  ;;  %993 = vmatprep.mubr.bf16.mxu1 %v1723_v49  ;;  %v1707_v58 = vld [vmem:[%s2122_s6 + $0x1a0] ss:$16 sps:$4 sm:$0xff]  }
  0x73   : > { %927 = vmatpush1.bf16.msra.mxu0 %v1653_v21  ;;  %970 = vmatpush1.bf16.msra.mxu1 %v1654_v22  ;;  %v1703_v56 = vld [vmem:[%s2122_s6 + $0x1a4] ss:$16 sps:$4 sm:$0xff]   ;;  %v1705_v57 = vld [vmem:[%s2122_s6 + $0x1ac] ss:$16 sps:$4 sm:$0xff]   ;;  %v1708_v59 = vld [vmem:[%s2122_s6 + $0x1a8] ss:$16 sps:$4 sm:$0xff]  }
  0x74   : > { %928 = vmatprep.subr.bf16.mxu0 %v1655_v23  ;;  %971 = vmatprep.subr.bf16.mxu1 %v1657_v24  ;;  %v1709_v60 = vld [vmem:[%s2122_s6 + $0x1c4] ss:$16 sps:$4 sm:$0xff]   ;;  %v1711_v61 = vld [vmem:[%s2122_s6 + $0x1cc] ss:$16 sps:$4 sm:$0xff]   ;;  %v1713_v62 = vld [vmem:[%s2122_s6 + $0x1c0] ss:$16 sps:$4 sm:$0xff]  }
  0x75   : > { %v1714_v63 = vld [vmem:[%s2122_s6 + $0x1c8] ss:$16 sps:$4 sm:$0xff]   ;;  %v1715_v0 = vld [vmem:[%s2122_s6 + $0x1e4] ss:$16 sps:$4 sm:$0xff]   ;;  %v1717_v1 = vld [vmem:[%s2122_s6 + $0x1ec] ss:$16 sps:$4 sm:$0xff]  }
  0x76   : > { %v1719_v2 = vld [vmem:[%s2122_s6 + $0x1e0] ss:$16 sps:$4 sm:$0xff]   ;;  %v1720_v3 = vld [vmem:[%s2122_s6 + $0x1e8] ss:$16 sps:$4 sm:$0xff]   ;;  %p1524_p5 = scmp.ne.s32.totalorder %s1802_s24, 1 }
  0x77   : > { %929 = vmatpush1.bf16.msra.mxu0 %v1659_v25  ;;  %972 = vmatpush1.bf16.msra.mxu1 %v1660_v26  ;;  %v1721_v4 = vld [vmem:[%s436_s23] ss:$8 sps:$4 sm:$0xff]  }
  0x78   : > { %930 = vmatprep.subr.bf16.mxu0 %v1661_v27  ;;  %973 = vmatprep.subr.bf16.mxu1 %v1663_v28  ;;  %v514_v5 = vld [vmem:[%s2124_s12] sm:$0xff]  ;;  %v516_v6 = vld [vmem:[%s2124_s12 + $0x10] sm:$0xff]  ;;  %v515_v7 = vld [vmem:[%s2124_s12 + $0x8] sm:$0xff] }
  0x79   : > { %v517_v8 = vld [vmem:[%s2124_s12 + $0x18] sm:$0xff]  ;;  %v518_v11 = vld [vmem:[%s2124_s12 + $0x20] sm:$0xff]  ;;  %v520_v12 = vld [vmem:[%s2124_s12 + $0x30] sm:$0xff] }
  0x7a   : > { %v519_v17 = vld [vmem:[%s2124_s12 + $0x28] sm:$0xff]  ;;  %v521_v18 = vld [vmem:[%s2124_s12 + $0x38] sm:$0xff] }
  0x7b   : > { %931 = vmatpush1.bf16.msra.mxu0 %v1665_v29  ;;  %974 = vmatpush1.bf16.msra.mxu1 %v1666_v30  ;;  %v1034_v29 = vlaneseq (!%p1524_p5) }
  0x7c   : > { %932 = vmatprep.subr.bf16.mxu0 %v1667_v31  ;;  %975 = vmatprep.subr.bf16.mxu1 %v1669_v32  ;;  %v1032_v31 = vld [vmem:[%s489_s10] sm:$0xf] (!%p1524_p5) }
  0x7d   : > { %v2220_v30 = vshrl.u32 (!%p1524_p5), %v1034_v29, 7 }
  0x7f   : > { %933 = vmatpush1.bf16.msra.mxu0 %v1671_v33  ;;  %976 = vmatpush1.bf16.msra.mxu1 %v1672_v34  ;;  %v2230_v34 = vsub.s32 (!%p1524_p5), 0, %v2220_v30  ;;  %vm1065_vm0 = vcmp.lt.s32.totalorder (!%p1524_p5), %v2220_v30, 2 }
  0x80   : > { %934 = vmatprep.subr.bf16.mxu0 %v1673_v35  ;;  %977 = vmatprep.subr.bf16.mxu1 %v1675_v36  ;;  %v2233_v35 = vsub.s32 (!%p1524_p5), 1, %v2220_v30  ;;  %v2236_v36 = vsub.s32 (!%p1524_p5), 2, %v2220_v30 }
  0x83   : > { %935 = vmatpush1.bf16.msra.mxu0 %v1677_v37  ;;  %978 = vmatpush1.bf16.msra.mxu1 %v1678_v38  ;;  %v2239_v37 = vsub.s32 (!%p1524_p5), 3, %v2220_v30 }
  0x84   : > { %936 = vmatprep.subr.bf16.mxu0 %v1679_v39  ;;  %979 = vmatprep.subr.bf16.mxu1 %v1681_v40 }
  0x87   : > { %937 = vmatpush1.bf16.msra.mxu0 %v1683_v41  ;;  %980 = vmatpush1.bf16.msra.mxu1 %v1684_v42 }
  0x88   : > { %938 = vmatprep.subr.bf16.mxu0 %v1685_v43  ;;  %981 = vmatprep.subr.bf16.mxu1 %v1687_v44  ;;  %v1037_v44 = vrot.slane (!%p1524_p5), %v1032_v31, %v2230_v34 }
  0x8b   : > { %939 = vmatpush1.bf16.msra.mxu0 %v1689_v45  ;;  %982 = vmatpush1.bf16.msra.mxu1 %v1690_v46  ;;  %v1041_v45 = vrot.slane (!%p1524_p5), %v1032_v31, %v2233_v35  ;;  %v1045_v46 = vrot.slane (!%p1524_p5), %v1032_v31, %v2236_v36 }
  0x8c   : > { %940 = vmatprep.subr.bf16.mxu0 %v1691_v47  ;;  %983 = vmatprep.subr.bf16.mxu1 %v1693_v48  ;;  %v1049_v47 = vrot.slane (!%p1524_p5), %v1032_v31, %v2239_v37  ;;  %v1821_v48 = vmov (!%p1524_p5), 0.0  }
  0x8d   : > { %v1525_v49 = vsel (!%p1524_p5), %vm1065_vm0, 1.0, %v1821_v48 }
  0x8f   : > { %941 = vmatpush1.bf16.msra.mxu0 %v1695_v50  ;;  %984 = vmatpush1.bf16.msra.mxu1 %v1696_v51 }
  0x90   : > { %942 = vmatprep.subr.bf16.mxu0 %v1697_v52  ;;  %985 = vmatprep.subr.bf16.mxu1 %v1699_v53 }
  0x93   : > { %943 = vmatpush1.bf16.msra.mxu0 %v1701_v54  ;;  %986 = vmatpush1.bf16.msra.mxu1 %v1702_v55 }
  0x94   : > { %944 = vmatprep.subr.bf16.mxu0 %v1703_v56  ;;  %987 = vmatprep.subr.bf16.mxu1 %v1705_v57 }
  0x97   : > { %945 = vmatpush1.bf16.msra.mxu0 %v1707_v58  ;;  %988 = vmatpush1.bf16.msra.mxu1 %v1708_v59 }
  0x98   : > { %946 = vmatprep.subr.bf16.mxu0 %v1709_v60  ;;  %989 = vmatprep.subr.bf16.mxu1 %v1711_v61 }
  0x9b   : > { %947 = vmatpush1.bf16.msra.mxu0 %v1713_v62  ;;  %990 = vmatpush1.bf16.msra.mxu1 %v1714_v63 }
  0x9c   : > { %948 = vmatprep.subr.bf16.mxu0 %v1715_v0  ;;  %991 = vmatprep.subr.bf16.mxu1 %v1717_v1 }
  0x9f   : > { %949 = vmatpush1.bf16.msra.mxu0 %v1719_v2  ;;  %992 = vmatpush1.bf16.msra.mxu1 %v1720_v3 }
  0xa2   : > { %951 = vmatmul.mubr.bf16.vlgmr.msra.gmra.mrb[0].mxu0 %v1721_v4  ;;  %994 = vmatmul.mubr.bf16.vlgmr.msra.gmra.mrb[0].mxu1 %v1721_v4 }
 0x175   : > { %v952_v9 = vpop.f32.mrb[0].mxu0  ;;  %v995_v10 = vpop.f32.mrb[0].mxu1  ;;  %1023 = sbr.rel (%p1524_p5) target bundleno = 466 (0x1d2), region = 109 }
 0x176   : > { %v1004_v13 = vadd.f32 %v952_v9, %v514_v5  ;;  %v1006_v14 = vadd.f32 %v995_v10, %v516_v6  ;;  %v954_v15 = vpop.f32.mrb[1].mxu0  ;;  %v997_v16 = vpop.f32.mrb[1].mxu1 }
 0x177   : > { %v1005_v19 = vadd.f32 %v954_v15, %v515_v7  ;;  %v1007_v20 = vadd.f32 %v997_v16, %v517_v8  ;;  %v956_v21 = vpop.f32.mrb[2].mxu0  ;;  %v999_v22 = vpop.f32.mrb[2].mxu1 }
 0x178   : > { %1012 = vst [vmem:[%s2124_s12] sm:$0xff] %v1004_v13  ;;  %1014 = vst [vmem:[%s2124_s12 + $0x10] sm:$0xff] %v1006_v14  ;;  %v1008_v23 = vadd.f32 %v956_v21, %v518_v11  ;;  %v1010_v24 = vadd.f32 %v999_v22, %v520_v12  ;;  %v958_v25 = vpop.f32.mrb[3].mxu0  ;;  %v1001_v26 = vpop.f32.mrb[3].mxu1 }
 0x179   : > { %1013 = vst [vmem:[%s2124_s12 + $0x8] sm:$0xff] %v1005_v19  ;;  %1015 = vst [vmem:[%s2124_s12 + $0x18] sm:$0xff] %v1007_v20  ;;  %v1009_v27 = vadd.f32 %v958_v25, %v519_v17  ;;  %v1011_v28 = vadd.f32 %v1001_v26, %v521_v18 }
 0x17a   : > { %1016 = vst [vmem:[%s2124_s12 + $0x20] sm:$0xff] %v1008_v23  ;;  %1018 = vst [vmem:[%s2124_s12 + $0x30] sm:$0xff] %v1010_v24 }
 0x17b   : > { %1017 = vst [vmem:[%s2124_s12 + $0x28] sm:$0xff] %v1009_v27  ;;  %1019 = vst [vmem:[%s2124_s12 + $0x38] sm:$0xff] %v1011_v28 }
 0x17f   : > { %v1024_v32 = vld [vmem:[%s2124_s12] sm:$0xff]  ;;  %v1026_v38 = vld [vmem:[%s2124_s12 + $0x10] sm:$0xff] }
 0x180   : > { %v1025_v33 = vld [vmem:[%s2124_s12 + $0x8] sm:$0xff]  ;;  %v1027_v39 = vld [vmem:[%s2124_s12 + $0x18] sm:$0xff]  ;;  %v1054_v50 = vadd.f32 %v1037_v44, %v1024_v32  ;;  %v1056_v52 = vadd.f32 %v1045_v46, %v1026_v38 }
 0x181   : > { %v1028_v40 = vld [vmem:[%s2124_s12 + $0x20] sm:$0xff]  ;;  %v1030_v42 = vld [vmem:[%s2124_s12 + $0x30] sm:$0xff]  ;;  %v1055_v51 = vadd.f32 %v1041_v45, %v1025_v33  ;;  %v1057_v53 = vadd.f32 %v1049_v47, %v1027_v39 }
 0x182   : > { %v1029_v41 = vld [vmem:[%s2124_s12 + $0x28] sm:$0xff]  ;;  %v1031_v43 = vld [vmem:[%s2124_s12 + $0x38] sm:$0xff]  ;;  %v1058_v54 = vadd.f32 %v1037_v44, %v1028_v40  ;;  %v1060_v56 = vadd.f32 %v1045_v46, %v1030_v42  ;;  %v1071_v58 = vmul.f32 %v1525_v49, %v1054_v50  ;;  %v1073_v60 = vmul.f32 %v1525_v49, %v1056_v52 }
 0x183   : > { %v1059_v55 = vadd.f32 %v1041_v45, %v1029_v41  ;;  %v1061_v57 = vadd.f32 %v1049_v47, %v1031_v43  ;;  %v1072_v59 = vmul.f32 %v1525_v49, %v1055_v51  ;;  %v1074_v61 = vmul.f32 %v1525_v49, %v1057_v53 }
 0x184   : > { %v1075_v62 = vmul.f32 0.0, %v1058_v54  ;;  %v1077_v0 = vmul.f32 0.0, %v1060_v56 }
 0x185   : > { %v1076_v63 = vmul.f32 0.0, %v1059_v55  ;;  %v1078_v1 = vmul.f32 0.0, %v1061_v57 }
 0x186   : > { %v1079_v2 = vadd.f32 %v1075_v62, %v1071_v58  ;;  %v1093_v4 = vadd.f32 %v1077_v0, %v1073_v60 }
 0x187   : > { %v1086_v3 = vadd.f32 %v1076_v63, %v1072_v59  ;;  %v1100_v5 = vadd.f32 %v1078_v1, %v1074_v61 }
 0x188   : > { %v1080_v6 = vrot.slane %v1079_v2, 4  ;;  %v1094_v8 = vrot.slane %v1093_v4, 4 }
 0x189   : > { %v1087_v7 = vrot.slane %v1086_v3, 4  ;;  %v1101_v9 = vrot.slane %v1100_v5, 4 }
 0x18a   : > { %v1081_v10 = vadd.f32 %v1080_v6, %v1079_v2  ;;  %v1095_v12 = vadd.f32 %v1094_v8, %v1093_v4 }
 0x18b   : > { %v1088_v11 = vadd.f32 %v1087_v7, %v1086_v3  ;;  %v1102_v13 = vadd.f32 %v1101_v9, %v1100_v5 }
 0x18c   : > { %v1082_v14 = vrot.slane %v1081_v10, 2  ;;  %v1096_v16 = vrot.slane %v1095_v12, 2 }
 0x18d   : > { %v1089_v15 = vrot.slane %v1088_v11, 2  ;;  %v1103_v17 = vrot.slane %v1102_v13, 2 }
 0x18e   : > { %v1083_v18 = vadd.f32 %v1082_v14, %v1081_v10  ;;  %v1097_v20 = vadd.f32 %v1096_v16, %v1095_v12 }
 0x18f   : > { %v1090_v19 = vadd.f32 %v1089_v15, %v1088_v11  ;;  %v1104_v21 = vadd.f32 %v1103_v17, %v1102_v13 }
 0x190   : > { %v1084_v22 = vrot.slane %v1083_v18, 1  ;;  %v1098_v24 = vrot.slane %v1097_v20, 1 }
 0x191   : > { %v1091_v23 = vrot.slane %v1090_v19, 1  ;;  %v1105_v25 = vrot.slane %v1104_v21, 1 }
 0x192   : > { %v1085_v26 = vadd.f32 %v1084_v22, %v1083_v18  ;;  %v1099_v28 = vadd.f32 %v1098_v24, %v1097_v20 }
 0x193   : > { %v1092_v27 = vadd.f32 %v1091_v23, %v1090_v19  ;;  %v1106_v29 = vadd.f32 %v1105_v25, %v1104_v21 }
 0x194   : > { %v1107_v31 = vmul.f32 0.5, %v1085_v26  ;;  %v1109_v33 = vmul.f32 0.5, %v1099_v28 }
 0x195   : > { %v1108_v32 = vmul.f32 0.5, %v1092_v27  ;;  %v1110_v38 = vmul.f32 0.5, %v1106_v29 }
 0x196   : > { %v2252_v39 = vsub.f32 %v1054_v50, %v1107_v31  ;;  %v2256_v41 = vsub.f32 %v1056_v52, %v1109_v33  ;;  %v2260_v43 = vsub.f32 %v1058_v54, %v1107_v31  ;;  %v2264_v45 = vsub.f32 %v1060_v56, %v1109_v33 }
 0x197   : > { %v2254_v40 = vsub.f32 %v1055_v51, %v1108_v32  ;;  %v2258_v42 = vsub.f32 %v1057_v53, %v1110_v38  ;;  %v2262_v44 = vsub.f32 %v1059_v55, %v1108_v32  ;;  %v2266_v46 = vsub.f32 %v1061_v57, %v1110_v38 }
 0x198   : > { %v1119_v47 = vmul.f32 %v1525_v49, %v2252_v39  ;;  %v1121_v50 = vmul.f32 %v1525_v49, %v2256_v41  ;;  %v1123_v52 = vmul.f32 0.0, %v2260_v43  ;;  %v1125_v54 = vmul.f32 0.0, %v2264_v45 }
 0x199   : > { %v1120_v48 = vmul.f32 %v1525_v49, %v2254_v40  ;;  %v1122_v51 = vmul.f32 %v1525_v49, %v2258_v42  ;;  %v1124_v53 = vmul.f32 0.0, %v2262_v44  ;;  %v1126_v55 = vmul.f32 0.0, %v2266_v46 }
 0x19a   : > { %v1127_v56 = vmul.f32 %v1119_v47, %v1119_v47  ;;  %v1129_v57 = vmul.f32 %v1121_v50, %v1121_v50  ;;  %v1131_v60 = vmul.f32 %v1123_v52, %v1123_v52  ;;  %v1133_v62 = vmul.f32 %v1125_v54, %v1125_v54 }
 0x19b   : > { %v1128_v58 = vmul.f32 %v1120_v48, %v1120_v48  ;;  %v1130_v59 = vmul.f32 %v1122_v51, %v1122_v51  ;;  %v1132_v61 = vmul.f32 %v1124_v53, %v1124_v53  ;;  %v1134_v63 = vmul.f32 %v1126_v55, %v1126_v55 }
 0x19c   : > { %v1135_v0 = vadd.f32 %v1131_v60, %v1127_v56  ;;  %v1149_v2 = vadd.f32 %v1133_v62, %v1129_v57  ;;  %v1822_v48 = vmov 1966171168   ;;  %v1167_v62 = vld [vmem:[%s494_s20] sm:$0xf] }
 0x19d   : > { %v1142_v1 = vadd.f32 %v1132_v61, %v1128_v58  ;;  %v1156_v49 = vadd.f32 %v1134_v63, %v1130_v59  ;;  %v1183_v50 = vunpack.c.l.s4 %v1822_v48 }
 0x19e   : > { %v1136_v3 = vrot.slane %v1135_v0, 4  ;;  %v1150_v5 = vrot.slane %v1149_v2, 4 }
 0x19f   : > { %v1143_v4 = vrot.slane %v1142_v1, 4  ;;  %v1157_v6 = vrot.slane %v1156_v49, 4  ;;  %v1184_v51 = vunpack.c.0.s8 %v1183_v50 }
 0x1a0   : > { %v1137_v7 = vadd.f32 %v1136_v3, %v1135_v0  ;;  %v1151_v9 = vadd.f32 %v1150_v5, %v1149_v2  ;;  %v1235_v0 = vld [vmem:[%s499_s18] sm:$0xf] }
 0x1a1   : > { %v1144_v8 = vadd.f32 %v1143_v4, %v1142_v1  ;;  %v1158_v10 = vadd.f32 %v1157_v6, %v1156_v49  ;;  %v1187_v53 = vsub.s32 %v1184_v51, %v2220_v30  ;;  %v1240_v1 = vrot.slane %v1235_v0, %v2230_v34 }
 0x1a2   : > { %v1138_v11 = vrot.slane %v1137_v7, 2  ;;  %v1152_v13 = vrot.slane %v1151_v9, 2  ;;  %v1244_v2 = vrot.slane %v1235_v0, %v2233_v35  ;;  %v1248_v49 = vrot.slane %v1235_v0, %v2236_v36 }
 0x1a3   : > { %v1145_v12 = vrot.slane %v1144_v8, 2  ;;  %v1159_v14 = vrot.slane %v1158_v10, 2  ;;  %v1252_v3 = vrot.slane %v1235_v0, %v2239_v37 }
 0x1a4   : > { %v1139_v15 = vadd.f32 %v1138_v11, %v1137_v7  ;;  %v1153_v17 = vadd.f32 %v1152_v13, %v1151_v9 }
 0x1a5   : > { %v1146_v16 = vadd.f32 %v1145_v12, %v1144_v8  ;;  %v1160_v18 = vadd.f32 %v1159_v14, %v1158_v10 }
 0x1a6   : > { %v1140_v19 = vrot.slane %v1139_v15, 1  ;;  %v1154_v21 = vrot.slane %v1153_v17, 1 }
 0x1a7   : > { %v1147_v20 = vrot.slane %v1146_v16, 1  ;;  %v1161_v22 = vrot.slane %v1160_v18, 1 }
 0x1a8   : > { %v1141_v23 = vadd.f32 %v1140_v19, %v1139_v15  ;;  %v1155_v25 = vadd.f32 %v1154_v21, %v1153_v17 }
 0x1a9   : > { %v1148_v24 = vadd.f32 %v1147_v20, %v1146_v16  ;;  %v1162_v26 = vadd.f32 %v1161_v22, %v1160_v18 }
 0x1aa   : > { %v1163_v27 = vmul.f32 0.5, %v1141_v23  ;;  %v1165_v29 = vmul.f32 0.5, %v1155_v25 }
 0x1ab   : > { %v1164_v28 = vmul.f32 0.5, %v1148_v24  ;;  %v1166_v31 = vmul.f32 0.5, %v1162_v26 }
 0x1ac   : > { %v1168_v32 = vadd.f32 1e-05, %v1163_v27  ;;  %v1170_v38 = vadd.f32 1e-05, %v1165_v29 }
 0x1ad   : > { %v1169_v33 = vadd.f32 1e-05, %v1164_v28  ;;  %v1171_v47 = vadd.f32 1e-05, %v1166_v31 }
 0x1ae   : > { %1724 = vrsqrt.f32 %v1168_v32 }
 0x1af   : > { %1726 = vrsqrt.f32 %v1169_v33 }
 0x1b0   : > { %1728 = vrsqrt.f32 %v1170_v38 }
 0x1b1   : > { %1730 = vrsqrt.f32 %v1171_v47 }
 0x1b8   : > { %v1725_v52 = vpop.eup %1724 }
 0x1b9   : > { %v1727_v54 = vpop.eup %1726 }
 0x1ba   : > { %v1729_v55 = vpop.eup %1728  ;;  %v1180_v56 = vcombine.low %v1725_v52, %v1727_v54 }
 0x1bb   : > { %v1731_v58 = vpop.eup %1730 }
 0x1bc   : > { %v1181_v57 = vcombine.low %v1729_v55, %v1731_v58  ;;  %v1188_v59 = vrot.slane %v1180_v56, %v1187_v53 }
 0x1be   : > { %v1195_v60 = vrot.slane %v1181_v57, %v1187_v53 }
 0x1c0   : > { %v1196_v61 = vcombine.low %v1188_v59, %v1195_v60 }
 0x1c2   : > { %v1203_v63 = vrot.slane %v1196_v61, %v1187_v53 }
 0x1c4   : > { %v1205_v30 = vmul.f32 %v1203_v63, %v1167_v62 }
 0x1c6   : > { %v1210_v4 = vrot.slane %v1205_v30, %v2230_v34  ;;  %v1214_v5 = vrot.slane %v1205_v30, %v2233_v35  ;;  %v1218_v6 = vrot.slane %v1205_v30, %v2236_v36  ;;  %v1222_v7 = vrot.slane %v1205_v30, %v2239_v37 }
 0x1c8   : > { %v1227_v8 = vmul.f32 %v1210_v4, %v2252_v39  ;;  %v1228_v9 = vmul.f32 %v1214_v5, %v2254_v40  ;;  %v1229_v10 = vmul.f32 %v1218_v6, %v2256_v41  ;;  %v1230_v11 = vmul.f32 %v1222_v7, %v2258_v42 }
 0x1c9   : > { %v1231_v12 = vmul.f32 %v1210_v4, %v2260_v43  ;;  %v1232_v13 = vmul.f32 %v1214_v5, %v2262_v44  ;;  %v1233_v34 = vmul.f32 %v1218_v6, %v2264_v45  ;;  %v1234_v35 = vmul.f32 %v1222_v7, %v2266_v46 }
 0x1ca   : > { %v1257_v14 = vadd.f32 %v1240_v1, %v1227_v8  ;;  %v1258_v36 = vadd.f32 %v1244_v2, %v1228_v9  ;;  %v1259_v37 = vadd.f32 %v1248_v49, %v1229_v10  ;;  %v1260_v39 = vadd.f32 %v1252_v3, %v1230_v11 }
 0x1cb   : > { %v1261_v40 = vadd.f32 %v1240_v1, %v1231_v12  ;;  %v1262_v41 = vadd.f32 %v1244_v2, %v1232_v13  ;;  %v1263_v42 = vadd.f32 %v1248_v49, %v1233_v34  ;;  %v1264_v43 = vadd.f32 %v1252_v3, %v1234_v35 }
 0x1cc   : > { %v1265_v44 = vmax.f32 %v1257_v14, 0.0  ;;  %v1266_v45 = vmax.f32 %v1258_v36, 0.0  ;;  %v1267_v15 = vmax.f32 %v1259_v37, 0.0  ;;  %v1268_v46 = vmax.f32 %v1260_v39, 0.0 }
 0x1cd   : > { %v1269_v16 = vmax.f32 %v1261_v40, 0.0  ;;  %v1270_v17 = vmax.f32 %v1262_v41, 0.0  ;;  %v1271_v18 = vmax.f32 %v1263_v42, 0.0  ;;  %v1272_v19 = vmax.f32 %v1264_v43, 0.0 }
 0x1ce   : > { %1273 = vst [vmem:[%s2124_s12] sm:$0xff] %v1265_v44  ;;  %1274 = vst [vmem:[%s2124_s12 + $0x8] sm:$0xff] %v1266_v45 }
 0x1cf   : > { %1275 = vst [vmem:[%s2124_s12 + $0x10] sm:$0xff] %v1267_v15  ;;  %1276 = vst [vmem:[%s2124_s12 + $0x18] sm:$0xff] %v1268_v46 }
 0x1d0   : > { %1277 = vst [vmem:[%s2124_s12 + $0x20] sm:$0xff] %v1269_v16  ;;  %1278 = vst [vmem:[%s2124_s12 + $0x28] sm:$0xff] %v1270_v17 }
 0x1d1   : > { %1279 = vst [vmem:[%s2124_s12 + $0x30] sm:$0xff] %v1271_v18  ;;  %1280 = vst [vmem:[%s2124_s12 + $0x38] sm:$0xff] %v1272_v19 }
 0x1d2 PF: > { %1287 = sbr.rel (!%p1947_p12) target bundleno = 475 (0x1db), region = 113  ;;  %s1533_s15 = sshll.u32 (%p1947_p12), %s1806_s25, 5 }
 0x1d3   : > { %s1290_s22 = scalar_lea.vmem (%p1947_p12), %s2363_s5, %s1533_s15 }
 0x1d5   : > { %v1303_v20 = vld [vmem:[%s2124_s12] sm:$0xff] (%p1947_p12) }
 0x1d6   : > { %v1305_v21 = vld [vmem:[%s2124_s12 + $0x8] sm:$0xff] (%p1947_p12)  ;;  %v1307_v22 = vld [vmem:[%s2124_s12 + $0x10] sm:$0xff] (%p1947_p12)  ;;  %v1309_v23 = vld [vmem:[%s2124_s12 + $0x18] sm:$0xff] (%p1947_p12)  ;;  %1304 = vst [vmem:[%s1290_s22] sm:$0xff] (%p1947_p12), %v1303_v20 }
 0x1d7   : > { %v1311_v24 = vld [vmem:[%s2124_s12 + $0x20] sm:$0xff] (%p1947_p12)  ;;  %1306 = vst [vmem:[%s1290_s22 + $0x8] sm:$0xff] (%p1947_p12), %v1305_v21  ;;  %1308 = vst [vmem:[%s1290_s22 + $0x10] sm:$0xff] (%p1947_p12), %v1307_v22 }
 0x1d8   : > { %v1313_v25 = vld [vmem:[%s2124_s12 + $0x28] sm:$0xff] (%p1947_p12)  ;;  %1310 = vst [vmem:[%s1290_s22 + $0x18] sm:$0xff] (%p1947_p12), %v1309_v23  ;;  %1312 = vst [vmem:[%s1290_s22 + $0x80] sm:$0xff] (%p1947_p12), %v1311_v24  ;;  %v1315_v26 = vld [vmem:[%s2124_s12 + $0x30] sm:$0xff] (%p1947_p12) }
 0x1d9   : > { %1314 = vst [vmem:[%s1290_s22 + $0x88] sm:$0xff] %v1313_v25  ;;  %v1317_v27 = vld [vmem:[%s2124_s12 + $0x38] sm:$0xff]  ;;  %1316 = vst [vmem:[%s1290_s22 + $0x90] sm:$0xff] %v1315_v26 }
 0x1da   : > { %1318 = vst [vmem:[%s1290_s22 + $0x98] sm:$0xff] %v1317_v27 }
 0x1db PF: > { %s15_s28 = sadd.s32 1, %s1818_s28   ;;  %s2375_s25 = sld [smem:[#allocation9_spill]] }
 0x1dc   : > { %p12_p6 = scmp.ge.s32.totalorder %s15_s28, 10   ;;  %s2376_s22 = sld [smem:[#allocation5_spill]] }
 0x1dd   : > { %s2377_s23 = sld [smem:[#allocation8_spill]]  ;;  %s2378_s30 = sld [smem:[#allocation6_spill]] }
 0x1de   : > { %s2379_s13 = sld [smem:[#allocation7_spill]]  ;;  %s2380_s18 = smov %s1782_s19 }
 0x1df   : > { %s2381_s19 = smov %s1945_s17  ;;  %s2382_s20 = smov %s1790_s21 }
 0x1e0   : > { %s2384_s24 = smov %s1810_s26  ;;  %14 = sbr.rel (!%p12_p6) target bundleno = 6 (0x6), region = 184 }
 0x1e1   : > { %s2383_s21 = smov %s2375_s25  ;;  %s2385_s25 = smov %s1814_s27 }
 0x1e3   : > { %s2386_s26 = smov %s2378_s30 }
 0x1e4   : > { %s2387_s27 = smov %s2379_s13 }

// kernel: simsiam_forward.93
= control target key start
LH: loop header
LB: loop body
LE: loop exit
PB: predicated region body
PF: predicated region fallthrough
CT: control target
= control target key end

     0   :  { %s1237_s12 = smov 0   ;;  %s1239_s13 = smov 0   ;;  %s1500_s0 = inlined_call_operand.vmem [shape: bf16[16,2048], index: 0, kind: input, shape index: {}]   ;;  %s1501_s1 = inlined_call_operand.vmem [shape: bf16[2048,512], index: 1, kind: input, shape index: {}]   ;;  %s1502_s2 = inlined_call_operand.vmem [shape: f32[1,512], index: 2, kind: input, shape index: {}]   ;;  %s1503_s3 = inlined_call_operand.vmem [shape: f32[16,512], index: 3, kind: output, shape index: {}]  }
   0x1   :  { %s1241_s14 = smov 0   ;;  %s1243_s15 = smov 0  }
   0x2   :  { %s1245_s16 = smov 0  }
   0x3 LB: > { %s22_s17 = sadd.s32 1, %s1210_s15  ;;  %p39_p1 = scmp.ne.s32.totalorder %s1202_s13, %s1198_s12  ;;  %s1214_s16 = sphi %s1245_s16, %s13_s16   ;;  %s1210_s15 = sphi %s1243_s15, %s1507_s15   ;;  %s1206_s14 = sphi %s1241_s14, %s1506_s14   ;;  %s1202_s13 = sphi %s1239_s13, %s1505_s13   ;;  %s1198_s12 = sphi %s1237_s12, %s1504_s12  }
   0x4   : > { %p23_p0 = scmp.ge.s32.totalorder %s22_s17, 8  ;;  %p40_p2 = scmp.eq.s32.totalorder %s1214_s16, 0 }
   0x5   : > { %s32_s19 = sadd.s32 1, %s1202_s13  ;;  %p953_p5 = scmp.ge.s32.totalorder %s1214_s16, 8 }
   0x6   : > { %s1509_s17 = smov (%p23_p0, %s22_s17), 0  ;;  %p41_p3 = por %p40_p2, %p39_p1 }
   0x7   : > { %s29_s18 = ssub.s32 %s1210_s15, %s1509_s17  ;;  %153 = sbr.rel (%p953_p5) target bundleno = 21 (0x15), region = 20 }
   0x8   : > { %p30_p4 = scmp.eq.s32.totalorder %s29_s18, 0 }
   0xa   : > { %s1272_s20 = scalar_select %p30_p4, %s1202_s13, %s32_s19  }
   0xe   : > { %156 = sbr.rel (!%p41_p3) target bundleno = 21 (0x15), region = 24  ;;  %s158_s21 = sand.u32 (%p41_p3), 1, %s1202_s13  }
   0xf   : > { %s1034_s22 = sshll.u32 (%p41_p3), %s1210_s15, 3  ;;  %s954_s23 = sshll.u32 (%p41_p3), %s158_s21, 4 }
  0x10   : > { %s163_s26 = scalar_lea.vmem (%p41_p3), %s1500_s0, %s1034_s22  ;;  %s160_s27 = scalar_lea.vmem (%p41_p3), [#allocation2], %s954_s23 }
  0x11   : > { %v193_v0 = vld [vmem:[%s163_s26] sm:$0xff] (%p41_p3) }
  0x12   : > { %v195_v1 = vld [vmem:[%s163_s26 + $0x40] sm:$0xff] (%p41_p3)  ;;  %194 = vst [vmem:[%s160_s27] sm:$0xff] (%p41_p3), %v193_v0 }
  0x13   : > { %196 = vst [vmem:[%s160_s27 + $0x8] sm:$0xff] (%p41_p3), %v195_v1 }
  0x15 PF: > { %p957_p6 = scmp.ge.s32.totalorder %s1214_s16, 1  ;;  %p216_p7 = scmp.lt.s32.totalorder %s1214_s16, 9 }
  0x17   : > { %p217_p8 = pnand %p957_p6, %p216_p7 }
  0x18   : > { %s223_s28 = sand.u32 (!%p217_p8), 1, %s1198_s12   ;;  %s959_s29 = sshll.u32 (!%p217_p8), %s1206_s14, 5 }
  0x19   : > { %220 = sbr.rel (%p217_p8) target bundleno = 332 (0x14c), region = 66  ;;  %s1284_s30 = sshll.u32 (!%p217_p8), %s223_s28, 4 }
  0x1a   : > { %p263_p9 = scmp.lt.s32.totalorder (!%p217_p8), %s959_s29, 255  ;;  %s225_s8 = scalar_lea.vmem (!%p217_p8), [#allocation2], %s1284_s30 }
  0x1b   : > { %p962_p10 = scmp.ne.s32.totalorder (!%p217_p8), %s1206_s14, 0 }
  0x20   : > { %s1511_s29 = smov (!%p263_p9, %s959_s29), 255  ;;  %287 = sbr.rel (%p962_p10) target bundleno = 39 (0x27), region = 74 }
  0x21   : > { %s1035_s4 = sshll.u32 %s1511_s29, 4  ;;  %v1216_v2 = vmov (!%p962_p10), 0.0  }
  0x22   : > { %s1289_s7 = scalar_lea.vmem %s1501_s1, %s1035_s4  ;;  %288 = vst [vmem:[%s1503_s3] sm:$0xff] (!%p962_p10), %v1216_v2  ;;  %289 = vst [vmem:[%s1503_s3 + $0x8] sm:$0xff] (!%p962_p10), %v1216_v2 }
  0x23   : > { %290 = vst [vmem:[%s1503_s3 + $0x10] sm:$0xff] (!%p962_p10), %v1216_v2  ;;  %291 = vst [vmem:[%s1503_s3 + $0x18] sm:$0xff] (!%p962_p10), %v1216_v2 }
  0x24   : > { %292 = vst [vmem:[%s1503_s3 + $0x20] sm:$0xff] (!%p962_p10), %v1216_v2  ;;  %293 = vst [vmem:[%s1503_s3 + $0x28] sm:$0xff] (!%p962_p10), %v1216_v2 }
  0x25   : > { %294 = vst [vmem:[%s1503_s3 + $0x30] sm:$0xff] (!%p962_p10), %v1216_v2  ;;  %295 = vst [vmem:[%s1503_s3 + $0x38] sm:$0xff] (!%p962_p10), %v1216_v2 }
  0x27 PF: > { %v1077_v3 = vld [vmem:[%s1289_s7 + $0x4] ss:$16 sps:$4 sm:$0xff]   ;;  %v1079_v4 = vld [vmem:[%s1289_s7 + $0xc] ss:$16 sps:$4 sm:$0xff]   ;;  %v1081_v5 = vld [vmem:[%s1289_s7] ss:$16 sps:$4 sm:$0xff]  }
  0x28   : > { %700 = vmatprep.subr.bf16.mxu0 %v1077_v3  ;;  %v1082_v6 = vld [vmem:[%s1289_s7 + $0x8] ss:$16 sps:$4 sm:$0xff]   ;;  %743 = vmatprep.subr.bf16.mxu1 %v1079_v4  ;;  %v1083_v7 = vld [vmem:[%s1289_s7 + $0x24] ss:$16 sps:$4 sm:$0xff]   ;;  %v1085_v8 = vld [vmem:[%s1289_s7 + $0x2c] ss:$16 sps:$4 sm:$0xff]  }
  0x29   : > { %701 = vmatpush1.bf16.msra.mxu0 %v1081_v5  ;;  %744 = vmatpush1.bf16.msra.mxu1 %v1082_v6  ;;  %v1087_v9 = vld [vmem:[%s1289_s7 + $0x20] ss:$16 sps:$4 sm:$0xff]   ;;  %v1088_v10 = vld [vmem:[%s1289_s7 + $0x28] ss:$16 sps:$4 sm:$0xff]   ;;  %v1089_v11 = vld [vmem:[%s1289_s7 + $0x44] ss:$16 sps:$4 sm:$0xff]  }
  0x2a   : > { %702 = vmatprep.subr.bf16.mxu0 %v1083_v7  ;;  %745 = vmatprep.subr.bf16.mxu1 %v1085_v8  ;;  %v1091_v12 = vld [vmem:[%s1289_s7 + $0x4c] ss:$16 sps:$4 sm:$0xff]   ;;  %v1093_v13 = vld [vmem:[%s1289_s7 + $0x40] ss:$16 sps:$4 sm:$0xff]   ;;  %v1094_v14 = vld [vmem:[%s1289_s7 + $0x48] ss:$16 sps:$4 sm:$0xff]  }
  0x2b   : > { %v1095_v15 = vld [vmem:[%s1289_s7 + $0x64] ss:$16 sps:$4 sm:$0xff]   ;;  %v1097_v16 = vld [vmem:[%s1289_s7 + $0x6c] ss:$16 sps:$4 sm:$0xff]   ;;  %v1099_v17 = vld [vmem:[%s1289_s7 + $0x60] ss:$16 sps:$4 sm:$0xff]  }
  0x2c   : > { %v1100_v18 = vld [vmem:[%s1289_s7 + $0x68] ss:$16 sps:$4 sm:$0xff]   ;;  %v1101_v19 = vld [vmem:[%s1289_s7 + $0x84] ss:$16 sps:$4 sm:$0xff]   ;;  %v1103_v20 = vld [vmem:[%s1289_s7 + $0x8c] ss:$16 sps:$4 sm:$0xff]  }
  0x2d   : > { %703 = vmatpush1.bf16.msra.mxu0 %v1087_v9  ;;  %746 = vmatpush1.bf16.msra.mxu1 %v1088_v10  ;;  %v1105_v21 = vld [vmem:[%s1289_s7 + $0x80] ss:$16 sps:$4 sm:$0xff]   ;;  %v1106_v22 = vld [vmem:[%s1289_s7 + $0x88] ss:$16 sps:$4 sm:$0xff]   ;;  %v1107_v23 = vld [vmem:[%s1289_s7 + $0xa4] ss:$16 sps:$4 sm:$0xff]  }
  0x2e   : > { %704 = vmatprep.subr.bf16.mxu0 %v1089_v11  ;;  %747 = vmatprep.subr.bf16.mxu1 %v1091_v12  ;;  %v1109_v24 = vld [vmem:[%s1289_s7 + $0xac] ss:$16 sps:$4 sm:$0xff]   ;;  %v1111_v25 = vld [vmem:[%s1289_s7 + $0xa0] ss:$16 sps:$4 sm:$0xff]   ;;  %v1112_v26 = vld [vmem:[%s1289_s7 + $0xa8] ss:$16 sps:$4 sm:$0xff]  }
  0x2f   : > { %v1113_v27 = vld [vmem:[%s1289_s7 + $0xc4] ss:$16 sps:$4 sm:$0xff]   ;;  %v1115_v28 = vld [vmem:[%s1289_s7 + $0xcc] ss:$16 sps:$4 sm:$0xff]   ;;  %v1117_v29 = vld [vmem:[%s1289_s7 + $0xc0] ss:$16 sps:$4 sm:$0xff]  }
  0x30   : > { %v1118_v30 = vld [vmem:[%s1289_s7 + $0xc8] ss:$16 sps:$4 sm:$0xff]   ;;  %v1119_v31 = vld [vmem:[%s1289_s7 + $0xe4] ss:$16 sps:$4 sm:$0xff]   ;;  %v1121_v32 = vld [vmem:[%s1289_s7 + $0xec] ss:$16 sps:$4 sm:$0xff]  }
  0x31   : > { %705 = vmatpush1.bf16.msra.mxu0 %v1093_v13  ;;  %748 = vmatpush1.bf16.msra.mxu1 %v1094_v14  ;;  %v1123_v33 = vld [vmem:[%s1289_s7 + $0xe0] ss:$16 sps:$4 sm:$0xff]   ;;  %v1124_v34 = vld [vmem:[%s1289_s7 + $0xe8] ss:$16 sps:$4 sm:$0xff]   ;;  %v1125_v35 = vld [vmem:[%s1289_s7 + $0x104] ss:$16 sps:$4 sm:$0xff]  }
  0x32   : > { %706 = vmatprep.subr.bf16.mxu0 %v1095_v15  ;;  %749 = vmatprep.subr.bf16.mxu1 %v1097_v16  ;;  %v1127_v36 = vld [vmem:[%s1289_s7 + $0x10c] ss:$16 sps:$4 sm:$0xff]   ;;  %v1129_v37 = vld [vmem:[%s1289_s7 + $0x100] ss:$16 sps:$4 sm:$0xff]   ;;  %v1130_v38 = vld [vmem:[%s1289_s7 + $0x108] ss:$16 sps:$4 sm:$0xff]  }
  0x33   : > { %v1131_v39 = vld [vmem:[%s1289_s7 + $0x124] ss:$16 sps:$4 sm:$0xff]   ;;  %v1133_v40 = vld [vmem:[%s1289_s7 + $0x12c] ss:$16 sps:$4 sm:$0xff]   ;;  %v1135_v41 = vld [vmem:[%s1289_s7 + $0x120] ss:$16 sps:$4 sm:$0xff]  }
  0x34   : > { %v1136_v42 = vld [vmem:[%s1289_s7 + $0x128] ss:$16 sps:$4 sm:$0xff]   ;;  %v1137_v43 = vld [vmem:[%s1289_s7 + $0x144] ss:$16 sps:$4 sm:$0xff]   ;;  %v1139_v44 = vld [vmem:[%s1289_s7 + $0x14c] ss:$16 sps:$4 sm:$0xff]  }
  0x35   : > { %707 = vmatpush1.bf16.msra.mxu0 %v1099_v17  ;;  %750 = vmatpush1.bf16.msra.mxu1 %v1100_v18  ;;  %v1141_v45 = vld [vmem:[%s1289_s7 + $0x140] ss:$16 sps:$4 sm:$0xff]   ;;  %v1142_v46 = vld [vmem:[%s1289_s7 + $0x148] ss:$16 sps:$4 sm:$0xff]   ;;  %v1143_v47 = vld [vmem:[%s1289_s7 + $0x164] ss:$16 sps:$4 sm:$0xff]  }
  0x36   : > { %708 = vmatprep.subr.bf16.mxu0 %v1101_v19  ;;  %751 = vmatprep.subr.bf16.mxu1 %v1103_v20  ;;  %v1145_v48 = vld [vmem:[%s1289_s7 + $0x16c] ss:$16 sps:$4 sm:$0xff]   ;;  %v1147_v50 = vld [vmem:[%s1289_s7 + $0x160] ss:$16 sps:$4 sm:$0xff]   ;;  %v1148_v51 = vld [vmem:[%s1289_s7 + $0x168] ss:$16 sps:$4 sm:$0xff]  }
  0x37   : > { %v1175_v49 = vld [vmem:[%s225_s8 + $0x4] ss:$8 sps:$4 sm:$0xff]   ;;  %v1153_v54 = vld [vmem:[%s1289_s7 + $0x180] ss:$16 sps:$4 sm:$0xff]   ;;  %v1154_v55 = vld [vmem:[%s1289_s7 + $0x188] ss:$16 sps:$4 sm:$0xff]  }
  0x38   : > { %v1149_v52 = vld [vmem:[%s1289_s7 + $0x184] ss:$16 sps:$4 sm:$0xff]   ;;  %v1151_v53 = vld [vmem:[%s1289_s7 + $0x18c] ss:$16 sps:$4 sm:$0xff]   ;;  %732 = vmatprep.mubr.bf16.mxu0 %v1175_v49  ;;  %775 = vmatprep.mubr.bf16.mxu1 %v1175_v49  ;;  %v1159_v58 = vld [vmem:[%s1289_s7 + $0x1a0] ss:$16 sps:$4 sm:$0xff]  }
  0x39   : > { %709 = vmatpush1.bf16.msra.mxu0 %v1105_v21  ;;  %752 = vmatpush1.bf16.msra.mxu1 %v1106_v22  ;;  %v1155_v56 = vld [vmem:[%s1289_s7 + $0x1a4] ss:$16 sps:$4 sm:$0xff]   ;;  %v1157_v57 = vld [vmem:[%s1289_s7 + $0x1ac] ss:$16 sps:$4 sm:$0xff]   ;;  %v1160_v59 = vld [vmem:[%s1289_s7 + $0x1a8] ss:$16 sps:$4 sm:$0xff]  }
  0x3a   : > { %710 = vmatprep.subr.bf16.mxu0 %v1107_v23  ;;  %753 = vmatprep.subr.bf16.mxu1 %v1109_v24  ;;  %v1161_v60 = vld [vmem:[%s1289_s7 + $0x1c4] ss:$16 sps:$4 sm:$0xff]   ;;  %v1163_v61 = vld [vmem:[%s1289_s7 + $0x1cc] ss:$16 sps:$4 sm:$0xff]   ;;  %v1165_v62 = vld [vmem:[%s1289_s7 + $0x1c0] ss:$16 sps:$4 sm:$0xff]  }
  0x3b   : > { %v1166_v63 = vld [vmem:[%s1289_s7 + $0x1c8] ss:$16 sps:$4 sm:$0xff]   ;;  %v1167_v0 = vld [vmem:[%s1289_s7 + $0x1e4] ss:$16 sps:$4 sm:$0xff]   ;;  %v1169_v1 = vld [vmem:[%s1289_s7 + $0x1ec] ss:$16 sps:$4 sm:$0xff]  }
  0x3c   : > { %v1171_v2 = vld [vmem:[%s1289_s7 + $0x1e0] ss:$16 sps:$4 sm:$0xff]   ;;  %v1172_v3 = vld [vmem:[%s1289_s7 + $0x1e8] ss:$16 sps:$4 sm:$0xff]   ;;  %p1029_p11 = scmp.ne.s32.totalorder %s1206_s14, 7 }
  0x3d   : > { %711 = vmatpush1.bf16.msra.mxu0 %v1111_v25  ;;  %754 = vmatpush1.bf16.msra.mxu1 %v1112_v26  ;;  %v1173_v4 = vld [vmem:[%s225_s8] ss:$8 sps:$4 sm:$0xff]  }
  0x3e   : > { %712 = vmatprep.subr.bf16.mxu0 %v1113_v27  ;;  %755 = vmatprep.subr.bf16.mxu1 %v1115_v28  ;;  %v296_v5 = vld [vmem:[%s1503_s3] sm:$0xff]  ;;  %v298_v6 = vld [vmem:[%s1503_s3 + $0x10] sm:$0xff]  ;;  %v297_v7 = vld [vmem:[%s1503_s3 + $0x8] sm:$0xff] }
  0x3f   : > { %v299_v8 = vld [vmem:[%s1503_s3 + $0x18] sm:$0xff]  ;;  %v300_v11 = vld [vmem:[%s1503_s3 + $0x20] sm:$0xff]  ;;  %v302_v12 = vld [vmem:[%s1503_s3 + $0x30] sm:$0xff] }
  0x40   : > { %v301_v17 = vld [vmem:[%s1503_s3 + $0x28] sm:$0xff]  ;;  %v303_v18 = vld [vmem:[%s1503_s3 + $0x38] sm:$0xff] }
  0x41   : > { %713 = vmatpush1.bf16.msra.mxu0 %v1117_v29  ;;  %756 = vmatpush1.bf16.msra.mxu1 %v1118_v30  ;;  %v816_v29 = vlaneseq (!%p1029_p11) }
  0x42   : > { %714 = vmatprep.subr.bf16.mxu0 %v1119_v31  ;;  %757 = vmatprep.subr.bf16.mxu1 %v1121_v32  ;;  %v814_v31 = vld [vmem:[%s1502_s2] sm:$0xf] (!%p1029_p11) }
  0x43   : > { %v817_v30 = vshrl.u32 (!%p1029_p11), %v816_v29, 7 }
  0x45   : > { %715 = vmatpush1.bf16.msra.mxu0 %v1123_v33  ;;  %758 = vmatpush1.bf16.msra.mxu1 %v1124_v34  ;;  %v818_v33 = vsub.s32 (!%p1029_p11), 0, %v817_v30 }
  0x46   : > { %716 = vmatprep.subr.bf16.mxu0 %v1125_v35  ;;  %759 = vmatprep.subr.bf16.mxu1 %v1127_v36  ;;  %v822_v35 = vsub.s32 (!%p1029_p11), 1, %v817_v30  ;;  %v826_v36 = vsub.s32 (!%p1029_p11), 2, %v817_v30 }
  0x49   : > { %717 = vmatpush1.bf16.msra.mxu0 %v1129_v37  ;;  %760 = vmatpush1.bf16.msra.mxu1 %v1130_v38  ;;  %v830_v37 = vsub.s32 (!%p1029_p11), 3, %v817_v30 }
  0x4a   : > { %718 = vmatprep.subr.bf16.mxu0 %v1131_v39  ;;  %761 = vmatprep.subr.bf16.mxu1 %v1133_v40 }
  0x4d   : > { %719 = vmatpush1.bf16.msra.mxu0 %v1135_v41  ;;  %762 = vmatpush1.bf16.msra.mxu1 %v1136_v42  ;;  %v819_v41 = vrot.slane (!%p1029_p11), %v814_v31, %v818_v33  ;;  %v823_v42 = vrot.slane (!%p1029_p11), %v814_v31, %v822_v35 }
  0x4e   : > { %720 = vmatprep.subr.bf16.mxu0 %v1137_v43  ;;  %763 = vmatprep.subr.bf16.mxu1 %v1139_v44  ;;  %v827_v43 = vrot.slane (!%p1029_p11), %v814_v31, %v826_v36  ;;  %v831_v44 = vrot.slane (!%p1029_p11), %v814_v31, %v830_v37 }
  0x51   : > { %721 = vmatpush1.bf16.msra.mxu0 %v1141_v45  ;;  %764 = vmatpush1.bf16.msra.mxu1 %v1142_v46 }
  0x52   : > { %722 = vmatprep.subr.bf16.mxu0 %v1143_v47  ;;  %765 = vmatprep.subr.bf16.mxu1 %v1145_v48 }
  0x55   : > { %723 = vmatpush1.bf16.msra.mxu0 %v1147_v50  ;;  %766 = vmatpush1.bf16.msra.mxu1 %v1148_v51 }
  0x56   : > { %724 = vmatprep.subr.bf16.mxu0 %v1149_v52  ;;  %767 = vmatprep.subr.bf16.mxu1 %v1151_v53 }
  0x59   : > { %725 = vmatpush1.bf16.msra.mxu0 %v1153_v54  ;;  %768 = vmatpush1.bf16.msra.mxu1 %v1154_v55 }
  0x5a   : > { %726 = vmatprep.subr.bf16.mxu0 %v1155_v56  ;;  %769 = vmatprep.subr.bf16.mxu1 %v1157_v57 }
  0x5d   : > { %727 = vmatpush1.bf16.msra.mxu0 %v1159_v58  ;;  %770 = vmatpush1.bf16.msra.mxu1 %v1160_v59 }
  0x5e   : > { %728 = vmatprep.subr.bf16.mxu0 %v1161_v60  ;;  %771 = vmatprep.subr.bf16.mxu1 %v1163_v61 }
  0x61   : > { %729 = vmatpush1.bf16.msra.mxu0 %v1165_v62  ;;  %772 = vmatpush1.bf16.msra.mxu1 %v1166_v63 }
  0x62   : > { %730 = vmatprep.subr.bf16.mxu0 %v1167_v0  ;;  %773 = vmatprep.subr.bf16.mxu1 %v1169_v1 }
  0x65   : > { %731 = vmatpush1.bf16.msra.mxu0 %v1171_v2  ;;  %774 = vmatpush1.bf16.msra.mxu1 %v1172_v3 }
  0x68   : > { %733 = vmatmul.mubr.bf16.vlgmr.msra.gmra.mrb[0].mxu0 %v1173_v4  ;;  %776 = vmatmul.mubr.bf16.vlgmr.msra.gmra.mrb[0].mxu1 %v1173_v4 }
 0x13b   : > { %v734_v9 = vpop.f32.mrb[0].mxu0  ;;  %v777_v10 = vpop.f32.mrb[0].mxu1  ;;  %805 = sbr.rel (%p1029_p11) target bundleno = 332 (0x14c), region = 78 }
 0x13c   : > { %v786_v13 = vadd.f32 %v734_v9, %v296_v5  ;;  %v788_v14 = vadd.f32 %v777_v10, %v298_v6  ;;  %v736_v15 = vpop.f32.mrb[1].mxu0  ;;  %v779_v16 = vpop.f32.mrb[1].mxu1 }
 0x13d   : > { %v787_v19 = vadd.f32 %v736_v15, %v297_v7  ;;  %v789_v20 = vadd.f32 %v779_v16, %v299_v8  ;;  %v738_v21 = vpop.f32.mrb[2].mxu0  ;;  %v781_v22 = vpop.f32.mrb[2].mxu1 }
 0x13e   : > { %794 = vst [vmem:[%s1503_s3] sm:$0xff] %v786_v13  ;;  %796 = vst [vmem:[%s1503_s3 + $0x10] sm:$0xff] %v788_v14  ;;  %v790_v23 = vadd.f32 %v738_v21, %v300_v11  ;;  %v792_v24 = vadd.f32 %v781_v22, %v302_v12  ;;  %v740_v25 = vpop.f32.mrb[3].mxu0  ;;  %v783_v26 = vpop.f32.mrb[3].mxu1 }
 0x13f   : > { %795 = vst [vmem:[%s1503_s3 + $0x8] sm:$0xff] %v787_v19  ;;  %797 = vst [vmem:[%s1503_s3 + $0x18] sm:$0xff] %v789_v20  ;;  %v791_v27 = vadd.f32 %v740_v25, %v301_v17  ;;  %v793_v28 = vadd.f32 %v783_v26, %v303_v18 }
 0x140   : > { %798 = vst [vmem:[%s1503_s3 + $0x20] sm:$0xff] %v790_v23  ;;  %800 = vst [vmem:[%s1503_s3 + $0x30] sm:$0xff] %v792_v24 }
 0x141   : > { %799 = vst [vmem:[%s1503_s3 + $0x28] sm:$0xff] %v791_v27  ;;  %801 = vst [vmem:[%s1503_s3 + $0x38] sm:$0xff] %v793_v28 }
 0x145   : > { %v806_v32 = vld [vmem:[%s1503_s3] sm:$0xff]  ;;  %v808_v38 = vld [vmem:[%s1503_s3 + $0x10] sm:$0xff] }
 0x146   : > { %v807_v34 = vld [vmem:[%s1503_s3 + $0x8] sm:$0xff]  ;;  %v809_v39 = vld [vmem:[%s1503_s3 + $0x18] sm:$0xff]  ;;  %v836_v48 = vadd.f32 %v819_v41, %v806_v32  ;;  %v838_v50 = vadd.f32 %v827_v43, %v808_v38 }
 0x147   : > { %v810_v40 = vld [vmem:[%s1503_s3 + $0x20] sm:$0xff]  ;;  %v812_v46 = vld [vmem:[%s1503_s3 + $0x30] sm:$0xff]  ;;  %v837_v49 = vadd.f32 %v823_v42, %v807_v34  ;;  %v839_v51 = vadd.f32 %v831_v44, %v809_v39 }
 0x148   : > { %v811_v45 = vld [vmem:[%s1503_s3 + $0x28] sm:$0xff]  ;;  %v813_v47 = vld [vmem:[%s1503_s3 + $0x38] sm:$0xff]  ;;  %v840_v52 = vadd.f32 %v819_v41, %v810_v40  ;;  %v842_v54 = vadd.f32 %v827_v43, %v812_v46  ;;  %844 = vst [vmem:[%s1503_s3] sm:$0xff] %v836_v48  ;;  %846 = vst [vmem:[%s1503_s3 + $0x10] sm:$0xff] %v838_v50 }
 0x149   : > { %v841_v53 = vadd.f32 %v823_v42, %v811_v45  ;;  %v843_v55 = vadd.f32 %v831_v44, %v813_v47  ;;  %845 = vst [vmem:[%s1503_s3 + $0x8] sm:$0xff] %v837_v49  ;;  %847 = vst [vmem:[%s1503_s3 + $0x18] sm:$0xff] %v839_v51 }
 0x14a   : > { %848 = vst [vmem:[%s1503_s3 + $0x20] sm:$0xff] %v840_v52  ;;  %850 = vst [vmem:[%s1503_s3 + $0x30] sm:$0xff] %v842_v54 }
 0x14b   : > { %849 = vst [vmem:[%s1503_s3 + $0x28] sm:$0xff] %v841_v53  ;;  %851 = vst [vmem:[%s1503_s3 + $0x38] sm:$0xff] %v843_v55 }
 0x14c PF: > { %s13_s16 = sadd.s32 1, %s1214_s16   ;;  %s1504_s12 = smov %s1202_s13 }
 0x14d   : > { %p10_p12 = scmp.ge.s32.totalorder %s13_s16, 10   ;;  %s1505_s13 = smov %s1272_s20 }
 0x14e   : > { %s1506_s14 = smov %s1210_s15  ;;  %s1507_s15 = smov %s1509_s17 }
 0x14f   :  { %12 = sbr.rel (!%p10_p12) target bundleno = 3 (0x3), region = 119 }

// kernel: simsiam_forward.98
= control target key start
LH: loop header
LB: loop body
LE: loop exit
PB: predicated region body
PF: predicated region fallthrough
CT: control target
= control target key end

     0   :  { %v16_v1 = vlaneseq  ;;  %v108_v3 = vmov 1983009808   ;;  %s136_s0 = inlined_call_operand.vmem [shape: f32[2,512], index: 0, kind: input, shape index: {}]   ;;  %s137_s1 = inlined_call_operand.hbm [shape: f32[2,512], index: 1, kind: output, shape index: {}]  }
   0x1   :  { %v9_v0 = vld [vmem:[%s136_s0] sm:$0xff]  ;;  %v14_v4 = vunpack.c.l.s4 %v108_v3 }
   0x2   :  { %v10_v2 = vmul.f32 %v9_v0, %v9_v0 }
   0x3   :  { %6 = vsyncpa [#allocation3], 0  ;;  %v17_v5 = vshrl.u32 %v16_v1, 7  ;;  %v15_v7 = vunpack.c.0.s8 %v14_v4  ;;  %vm33_vm0 = vcmask 1041408   ;;  %v109_v21 = vmov 269488144  }
   0x4   :  { %v12_v6 = vcombine.high %v10_v2, %v10_v2  ;;  %v53_v22 = vunpack.c.l.s4 %v109_v21  ;;  %s110_s0 = smov [#allocation2]  }
   0x5   :  { %v18_v8 = vsub.s32 %v15_v7, %v17_v5  ;;  %s69_s8 = sshll.u32 %s110_s0, 4  ;;  %s70_s8 = int_to_ptr.vmem [resolvable:$true] %s69_s8 }
   0x6   :  { %v54_v23 = vunpack.c.0.s8 %v53_v22  ;;  %s84_s9 = scalar_lea.vmem %s70_s8, 128  ;;  %p89_p1 = scmp.lt.s32.totalorder %s70_s8, %s70_s8 }
   0x7   :  { %v19_v9 = vrot.slane %v10_v2, %v18_v8  ;;  %v26_v10 = vrot.slane %v12_v6, %v18_v8  ;;  %p85_p0 = scmp.ne.s32.totalorder %s70_s8, %s84_s9  ;;  %p90_p2 = scmp.lt.s32.totalorder %s84_s9, %s84_s9 }
   0x8   :  { %v57_v27 = vsub.s32 %v54_v23, %v17_v5 }
   0x9   :  { %v27_v11 = vcombine.high %v19_v9, %v19_v9  ;;  %v28_v12 = vcombine.high %v26_v10, %v26_v10  ;;  %v34_v13 = vsel %vm33_vm0, %v19_v9, 0.0  ;;  %v37_v15 = vsel %vm33_vm0, %v26_v10, 0.0  ;;  %p91_p3 = por %p90_p2, %p89_p1 }
   0xb   :  { %v35_v14 = vsel %vm33_vm0, %v27_v11, 0.0  ;;  %v39_v17 = vsel %vm33_vm0, %v28_v12, 0.0  ;;  %p92_p4 = pnand %p91_p3, %p85_p0 }
   0xc   :  { %v36_v16 = vadd.f32 %v35_v14, %v34_v13 }
   0xe   :  { %v38_v18 = vadd.f32 %v37_v15, %v36_v16 }
  0x10   :  { %v40_v19 = vadd.f32 %v39_v17, %v38_v18 }
  0x12   :  { %41 = vadd.xlane.f32.xlu0 %v40_v19 }
  0x9f   :  { %v42_v20 = vpop.xlane.xlu0 %41 }
  0xa0   :  { %80 = vrsqrt.f32 %v42_v20  ;;  %vm45_vm1 = vcmp.eq.f32.partialorder %v42_v20, inf  ;;  %v48_v26 = vand.u32 2147483648, %v42_v20  ;;  %vm47_vm2 = vcmp.eq.f32.partialorder %v42_v20, 0.0 }
  0xaa   :  { %v81_v24 = vpop.eup %80 }
  0xab   :  { %v44_v25 = vmul.f32 %v81_v24, %v42_v20 }
  0xad   :  { %v46_v28 = vsel %vm45_vm1, %v42_v20, %v44_v25 }
  0xae   :  { %v49_v29 = vsel %vm47_vm2, %v48_v26, %v46_v28 }
  0xaf   :  { %v50_v30 = vmax.f32 %v49_v29, 1e-12 }
  0xb1   :  { %v58_v31 = vrot.slane %v50_v30, %v57_v27 }
  0xb3   :  { %82 = vrcp.f32 %v58_v31 }
  0xbd   :  { %v83_v32 = vpop.eup %82 }
  0xbe   :  { %v61_v33 = vmul.f32 %v83_v32, %v9_v0 }
  0xc0   :  { %62 = vst [vmem:[#allocation2] sm:$0xff] %v61_v33 }
  0xc1   :  { %95 = shalt.err (!%p92_p4)
}
  0xc2   :  { %s96_s12 = scalar_lea.hbm %s137_s1, 128 }
  0xc3   :  { %p97_p5 = scmp.ne.s32.totalorder %s137_s1, %s96_s12  ;;  %p100_p6 = scmp.lt.u32.totalorder %s96_s12, %s137_s1 }
  0xc5   :  { %p102_p7 = pnand %p100_p6, %p97_p5 }
  0xc7   :  { %105 = shalt.err (!%p102_p7)
}
  0xc8   :  { %72 = dma.vmem_to_hbm [thread:$0]  %s70_s8, 128, %s137_s1, [#allocation3]  }
  0xc9   :  { %106 = dma.done.wait [#allocation3], 128  }
  0xca   :  { %107 = vsyncadd [#allocation3], 4294967168 }
  0xcb   :  { %76 = vsyncpa [#allocation3], 1 }

</bundles_post_ra>
